<compile_context>
chip_gen: v6e
topology: v6e:2x2x1
jax: 0.10.0
libtpu: 0.0.40
codegen_flags: <defaults>
</compile_context>

<pallas_src>
import jax
import jax.numpy as jnp
from jax import lax
from jax.experimental import pallas as pl
from jax.experimental.pallas import tpu as pltpu


def resnet_block_pallas_nhwc(x_nhwc, temb, p):
    """Core entry point: x_nhwc (N,H,W,CIN) f32, temb (N,TC) f32, p = kernel params."""
    N, H, W, CIN = x_nhwc.shape
    COUT = p["cb1"].shape[-1]
    TC = temb.shape[-1]
    HW = H * W
    CMAX = max(CIN, COUT)
    assert W % 8 == 0 and HW % 8 == 0, "W and H*W must be multiples of 8"
    PAD = W + 16                  # 16-aligned interior offset (bf16 packed tiles)
    NROWS = HW + 2 * PAD          # flat padded buffer rows

    def kernel(x_ref, temb_ref,
               g1_ref, b1_ref, gm1_ref, w1_ref, cb1_ref,
               wt_ref, bt_ref,
               g2_ref, b2_ref, gm2_ref, w2_ref, cb2_ref,
               wn_ref, bn_ref,
               out_ref, pad_ref):
        eps = 1e-6

        def swish(v):
            # sigmoid via EUP exp + approx reciprocal (VPU divide avoided)
            return v * pl.reciprocal(1.0 + jnp.exp(-v), approx=True)

        def group_norm(v, gm_ref, gamma_ref, beta_ref):
            # v: (HW, C) f32.  gm is a block-diagonal (C, C) group-averaging matrix
            # folding 1/(HW*group_size); two-pass (centered) statistics in f32.
            s1 = jnp.sum(v, axis=0, keepdims=True)
            mean = jnp.dot(s1, gm_ref[...], preferred_element_type=jnp.float32)
            d = v - mean
            s2 = jnp.sum(d * d, axis=0, keepdims=True)
            var = jnp.dot(s2, gm_ref[...], preferred_element_type=jnp.float32)
            rstd = lax.rsqrt(var + eps)
            return d * (rstd * gamma_ref[...]) + beta_ref[...]

        # Column-validity masks for the left/right conv taps, (HW, 1) f32.
        col = lax.broadcasted_iota(jnp.int32, (HW, 1), 0) % W
        mask_l = (col != 0).astype(jnp.float32)        # tap reads column x-1
        mask_r = (col != W - 1).astype(jnp.float32)    # tap reads column x+1

        # Zero only the halo rows of the shared padded scratch (interior is fully
        # rewritten by each conv; halo is tiny compared to a full-buffer zero fill).
        halo = jnp.zeros((PAD, CMAX), jnp.bfloat16)
        pad_ref[pl.ds(0, PAD), :] = halo
        pad_ref[pl.ds(PAD + HW, PAD), :] = halo

        def conv3x3(v, w_ref, b_ref, cin):
            # v: (HW, cin) f32 -> (HW, COUT) f32.  3x3 / pad-1 conv as 9 bf16 MXU
            # matmuls over flat row-offset taps of the padded scratch; the two
            # off-centre column groups are masked once after dy-accumulation.
            pad_ref[pl.ds(PAD, HW), 0:cin] = v.astype(jnp.bfloat16)
            acc = None
            for dx, mask in ((1, None), (0, mask_l), (2, mask_r)):
                csum = None
                for dy in range(3):
                    start = PAD + (dy - 1) * W + (dx - 1)
                    patch = pad_ref[pl.ds(start, HW), 0:cin]
                    d = jnp.dot(patch, w_ref[dy * 3 + dx],
                                preferred_element_type=jnp.float32)
                    csum = d if csum is None else csum + d
                if mask is not None:
                    csum = csum * mask
                acc = csum if acc is None else acc + csum
            return acc + b_ref[...]   # bias folded in once, post-accumulation

        x = x_ref[0]                                      # (HW, CIN) f32

        # norm1 -> swish -> conv1
        h = swish(group_norm(x, gm1_ref, g1_ref, b1_ref))
        h = conv3x3(h, w1_ref, cb1_ref, CIN)

        # + temb projection: Linear(swish(temb)), broadcast over spatial
        t = swish(temb_ref[0]).astype(jnp.bfloat16)       # (1, TC)
        h = h + (jnp.dot(t, wt_ref[...], preferred_element_type=jnp.float32)
                 + bt_ref[...])

        # norm2 -> swish -> dropout -> conv2
        h = swish(group_norm(h, gm2_ref, g2_ref, b2_ref))
        # TODO(synk): dropout implemented as identity (inference semantics); train-mode RNG dropout omitted.
        h = conv3x3(h, w2_ref, cb2_ref, COUT)

        # 1x1 nin_shortcut on x + residual add
        xs = jnp.dot(x.astype(jnp.bfloat16), wn_ref[...],
                     preferred_element_type=jnp.float32) + bn_ref[...]
        out_ref[0] = (xs + h).astype(out_ref.dtype)

    x2d = x_nhwc.reshape(N, HW, CIN).astype(jnp.float32)
    temb3 = temb.reshape(N, 1, TC).astype(jnp.float32)

    def const_spec(a):
        nd = a.ndim
        return pl.BlockSpec(a.shape, lambda n, _nd=nd: (0,) * _nd)

    args = (x2d, temb3,
            p["g1"], p["b1"], p["gm1"], p["w1"], p["cb1"],
            p["wt"], p["bt"],
            p["g2"], p["b2"], p["gm2"], p["w2"], p["cb2"],
            p["wn"], p["bn"])

    in_specs = [pl.BlockSpec((1, HW, CIN), lambda n: (n, 0, 0)),
                pl.BlockSpec((1, 1, TC), lambda n: (n, 0, 0))]
    in_specs += [const_spec(a) for a in args[2:]]

    out2d = pl.pallas_call(
        kernel,
        out_shape=jax.ShapeDtypeStruct((N, HW, COUT), jnp.float32),
        grid_spec=pltpu.PrefetchScalarGridSpec(
            num_scalar_prefetch=0,
            grid=(N,),
            in_specs=in_specs,
            out_specs=pl.BlockSpec((1, HW, COUT), lambda n: (n, 0, 0)),
            scratch_shapes=[pltpu.VMEM((NROWS, CMAX), jnp.bfloat16)]),
        compiler_params=pltpu.CompilerParams(
            dimension_semantics=("parallel",),          # shards batch across TCs (v7x)
            vmem_limit_bytes=32 * 1024 * 1024),
    )(*args)
    return out2d.reshape(N, H, W, COUT)


def resnet_block_pallas(x_nchw, temb, p):
    # NCHW adapter (PyTorch parity). NHWC callers should use resnet_block_pallas_nhwc
    # directly to avoid the two transpose HBM passes bracketing the kernel.
    out_nhwc = resnet_block_pallas_nhwc(jnp.transpose(x_nchw, (0, 2, 3, 1)), temb, p)
    return jnp.transpose(out_nhwc, (0, 3, 1, 2))


def make_params(key, cin, cout, tc, h, w, groups=32):
    ks = jax.random.split(key, 12)
    # PyTorch-form parameters (Conv2d weights OIHW, Linear weight (out, in))
    g1 = 1.0 + 0.1 * jax.random.normal(ks[0], (cin,), jnp.float32)
    b1 = 0.1 * jax.random.normal(ks[1], (cin,), jnp.float32)
    w1 = 0.05 * jax.random.normal(ks[2], (cout, cin, 3, 3), jnp.float32)
    cb1 = 0.05 * jax.random.normal(ks[3], (cout,), jnp.float32)
    wt = 0.05 * jax.random.normal(ks[4], (cout, tc), jnp.float32)
    bt = 0.05 * jax.random.normal(ks[5], (cout,), jnp.float32)
    g2 = 1.0 + 0.1 * jax.random.normal(ks[6], (cout,), jnp.float32)
    b2 = 0.1 * jax.random.normal(ks[7], (cout,), jnp.float32)
    w2 = 0.05 * jax.random.normal(ks[8], (cout, cout, 3, 3), jnp.float32)
    cb2 = 0.05 * jax.random.normal(ks[9], (cout,), jnp.float32)
    wn = 0.05 * jax.random.normal(ks[10], (cout, cin, 1, 1), jnp.float32)
    bn = 0.05 * jax.random.normal(ks[11], (cout,), jnp.float32)
    torch_p = dict(g1=g1, b1=b1, w1=w1, cb1=cb1, wt=wt, bt=bt,
                   g2=g2, b2=b2, w2=w2, cb2=cb2, wn=wn, bn=bn)

    def group_mat(c):
        gs = c // groups
        gid = jnp.arange(c) // gs
        return (gid[:, None] == gid[None, :]).astype(jnp.float32) / float(h * w * gs)

    # Kernel-form parameters: HWIO conv weights flattened to (9, cin, cout) in bf16
    # (MXU operands); norms / biases / group matrices stay f32.
    kern_p = dict(
        g1=g1.reshape(1, cin), b1=b1.reshape(1, cin), gm1=group_mat(cin),
        w1=jnp.transpose(w1, (2, 3, 1, 0)).reshape(9, cin, cout).astype(jnp.bfloat16),
        cb1=cb1.reshape(1, cout),
        wt=wt.T.astype(jnp.bfloat16), bt=bt.reshape(1, cout),
        g2=g2.reshape(1, cout), b2=b2.reshape(1, cout), gm2=group_mat(cout),
        w2=jnp.transpose(w2, (2, 3, 1, 0)).reshape(9, cout, cout).astype(jnp.bfloat16),
        cb2=cb2.reshape(1, cout),
        wn=wn[:, :, 0, 0].T.astype(jnp.bfloat16), bn=bn.reshape(1, cout))
    return torch_p, kern_p


def ref_forward(x, temb, p, groups=32):
    eps = 1e-6

    def gn(v, g, b):
        N, C, H, W = v.shape
        vg = v.reshape(N, groups, C // groups, H, W)
        mean = jnp.mean(vg, axis=(2, 3, 4), keepdims=True)
        var = jnp.mean((vg - mean) ** 2, axis=(2, 3, 4), keepdims=True)
        vn = ((vg - mean) / jnp.sqrt(var + eps)).reshape(N, C, H, W)
        return vn * g[None, :, None, None] + b[None, :, None, None]

    def swish(v):
        return v * jax.nn.sigmoid(v)

    def conv(v, w, b, pad):
        y = lax.conv_general_dilated(v, w, (1, 1), ((pad, pad), (pad, pad)),
                                     dimension_numbers=("NCHW", "OIHW", "NCHW"))
        return y + b[None, :, None, None]

    h = conv(swish(gn(x, p["g1"], p["b1"])), p["w1"], p["cb1"], 1)
    h = h + (swish(temb) @ p["wt"].T + p["bt"])[:, :, None, None]
    h = conv(swish(gn(h, p["g2"], p["b2"])), p["w2"], p["cb2"], 1)
    xs = conv(x, p["wn"], p["bn"], 0)
    return xs + h


if __name__ == "__main__":
    N, CIN, COUT, H, W, TC = 2, 32, 64, 16, 16, 64
    key = jax.random.PRNGKey(0)
    kx, kt, kp = jax.random.split(key, 3)
    x = jax.random.normal(kx, (N, CIN, H, W), jnp.float32)
    temb = jax.random.normal(kt, (N, TC), jnp.float32)

    torch_p, kern_p = make_params(kp, CIN, COUT, TC, H, W)

    out = resnet_block_pallas(x, temb, kern_p)
    out = jax.block_until_ready(out)

    ref = ref_forward(x, temb, torch_p)
    assert out.shape == (N, COUT, H, W), out.shape
    max_err = float(jnp.max(jnp.abs(out - ref)))
    # Tolerance accounts for bf16 MXU operands through two stacked 3x3 convs
    # (per perf review); any structural bug produces errors orders of magnitude larger.
    assert jnp.allclose(out, ref, rtol=2e-2, atol=4e-2), f"max abs err {max_err}"
    print("KERNEL_OK")
</pallas_src>

<mosaic_0001>
module attributes {stable_mosaic.version = 11 : i64} {
  func.func @kernel(%arg0: i32, %arg1: memref<1x256x32xf32, #tpu.memory_space<vmem>>, %arg2: memref<1x1x64xf32, #tpu.memory_space<vmem>>, %arg3: memref<1x32xf32, #tpu.memory_space<vmem>>, %arg4: memref<1x32xf32, #tpu.memory_space<vmem>>, %arg5: memref<32x32xf32, #tpu.memory_space<vmem>>, %arg6: memref<9x32x64xbf16, #tpu.memory_space<vmem>>, %arg7: memref<1x64xf32, #tpu.memory_space<vmem>>, %arg8: memref<64x64xbf16, #tpu.memory_space<vmem>>, %arg9: memref<1x64xf32, #tpu.memory_space<vmem>>, %arg10: memref<1x64xf32, #tpu.memory_space<vmem>>, %arg11: memref<1x64xf32, #tpu.memory_space<vmem>>, %arg12: memref<64x64xf32, #tpu.memory_space<vmem>>, %arg13: memref<9x64x64xbf16, #tpu.memory_space<vmem>>, %arg14: memref<1x64xf32, #tpu.memory_space<vmem>>, %arg15: memref<32x64xbf16, #tpu.memory_space<vmem>>, %arg16: memref<1x64xf32, #tpu.memory_space<vmem>>, %arg17: memref<1x256x64xf32, #tpu.memory_space<vmem>>, %arg18: memref<320x64xbf16, #tpu.memory_space<vmem>>) attributes {dimension_semantics = [#tpu.dimension_semantics<parallel>], iteration_bounds = array<i64: 2>, scalar_prefetch = 0 : i64, scratch_operands = 1 : i64, tpu.core_type = #tpu.core_type<tc>, window_params = [{transform_indices = @transform_0, window_bounds = array<i64: 1, 256, 32>}, {transform_indices = @transform_1, window_bounds = array<i64: 1, 1, 64>}, {pipeline_mode = #tpu.pipeline_mode<synchronous>, transform_indices = @transform_2, window_bounds = array<i64: 1, 32>}, {pipeline_mode = #tpu.pipeline_mode<synchronous>, transform_indices = @transform_3, window_bounds = array<i64: 1, 32>}, {pipeline_mode = #tpu.pipeline_mode<synchronous>, transform_indices = @transform_4, window_bounds = array<i64: 32, 32>}, {pipeline_mode = #tpu.pipeline_mode<synchronous>, transform_indices = @transform_5, window_bounds = array<i64: 9, 32, 64>}, {pipeline_mode = #tpu.pipeline_mode<synchronous>, transform_indices = @transform_6, window_bounds = array<i64: 1, 64>}, {pipeline_mode = #tpu.pipeline_mode<synchronous>, transform_indices = @transform_7, window_bounds = array<i64: 64, 64>}, {pipeline_mode = #tpu.pipeline_mode<synchronous>, transform_indices = @transform_8, window_bounds = array<i64: 1, 64>}, {pipeline_mode = #tpu.pipeline_mode<synchronous>, transform_indices = @transform_9, window_bounds = array<i64: 1, 64>}, {pipeline_mode = #tpu.pipeline_mode<synchronous>, transform_indices = @transform_10, window_bounds = array<i64: 1, 64>}, {pipeline_mode = #tpu.pipeline_mode<synchronous>, transform_indices = @transform_11, window_bounds = array<i64: 64, 64>}, {pipeline_mode = #tpu.pipeline_mode<synchronous>, transform_indices = @transform_12, window_bounds = array<i64: 9, 64, 64>}, {pipeline_mode = #tpu.pipeline_mode<synchronous>, transform_indices = @transform_13, window_bounds = array<i64: 1, 64>}, {pipeline_mode = #tpu.pipeline_mode<synchronous>, transform_indices = @transform_14, window_bounds = array<i64: 32, 64>}, {pipeline_mode = #tpu.pipeline_mode<synchronous>, transform_indices = @transform_15, window_bounds = array<i64: 1, 64>}, {transform_indices = @transform_16, window_bounds = array<i64: 1, 256, 64>}]} {
    %0 = tpu.iota {dimensions = array<i32: 0>} : vector<256x1xi32>
    %c16_i32 = arith.constant 16 : i32
    %c0_i32 = arith.constant 0 : i32
    %1 = arith.cmpi eq, %c16_i32, %c0_i32 : i32
    %c1_i32 = arith.constant 1 : i32
    %2 = arith.select %1, %c1_i32, %c16_i32 : i32
    %3 = vector.broadcast %2 : i32 to vector<256x1xi32>
    %4 = arith.remsi %0, %3 : vector<256x1xi32>
    %c0_i32_0 = arith.constant 0 : i32
    %5 = vector.broadcast %c0_i32_0 : i32 to vector<256x1xi32>
    %6 = arith.cmpi ne, %4, %5 : vector<256x1xi32>
    %c0_i32_1 = arith.constant 0 : i32
    %7 = vector.broadcast %c0_i32_1 : i32 to vector<256x1xi32>
    %8 = arith.cmpi slt, %4, %7 : vector<256x1xi32>
    %c0_i32_2 = arith.constant 0 : i32
    %9 = arith.cmpi slt, %2, %c0_i32_2 : i32
    %10 = vector.broadcast %9 : i1 to vector<256x1xi1>
    %11 = vector.broadcast %10 : vector<256x1xi1> to vector<256x1xi1>
    %12 = arith.xori %8, %11 : vector<256x1xi1>
    %13 = arith.andi %12, %6 : vector<256x1xi1>
    %14 = vector.broadcast %2 : i32 to vector<256x1xi32>
    %15 = arith.addi %4, %14 : vector<256x1xi32>
    %16 = arith.select %13, %15, %4 : vector<256x1xi1>, vector<256x1xi32>
    %c0_i32_3 = arith.constant 0 : i32
    %17 = vector.broadcast %c0_i32_3 : i32 to vector<256x1xi32>
    %18 = arith.cmpi ne, %16, %17 : vector<256x1xi32>
    %19 = arith.extui %18 : vector<256x1xi1> to vector<256x1xi32>
    %20 = arith.sitofp %19 : vector<256x1xi32> to vector<256x1xf32>
    %c15_i32 = arith.constant 15 : i32
    %21 = vector.broadcast %c15_i32 : i32 to vector<256x1xi32>
    %22 = arith.cmpi ne, %16, %21 : vector<256x1xi32>
    %23 = arith.extui %22 : vector<256x1xi1> to vector<256x1xi32>
    %24 = arith.sitofp %23 : vector<256x1xi32> to vector<256x1xf32>
    %cst = arith.constant 0.000000e+00 : bf16
    %25 = vector.broadcast %cst : bf16 to vector<32x64xbf16>
    %c0 = arith.constant 0 : index
    %c0_4 = arith.constant 0 : index
    %26 = vector.load %arg18[%c0, %c0_4] : memref<320x64xbf16, #tpu.memory_space<vmem>>, vector<32x64xbf16>
    tpu.vector_store %arg18[%c0, %c0_4], %25 {strides = array<i32>} : memref<320x64xbf16, #tpu.memory_space<vmem>>, vector<32x64xbf16>,
    %c288 = arith.constant 288 : index
    %c0_5 = arith.constant 0 : index
    %27 = vector.load %arg18[%c288, %c0_5] : memref<320x64xbf16, #tpu.memory_space<vmem>>, vector<32x64xbf16>
    tpu.vector_store %arg18[%c288, %c0_5], %25 {strides = array<i32>} : memref<320x64xbf16, #tpu.memory_space<vmem>>, vector<32x64xbf16>,
    %c0_6 = arith.constant 0 : index
    %c0_7 = arith.constant 0 : index
    %c0_8 = arith.constant 0 : index
    %28 = vector.load %arg1[%c0_6, %c0_7, %c0_8] : memref<1x256x32xf32, #tpu.memory_space<vmem>>, vector<1x256x32xf32>
    %29 = vector.shape_cast %28 : vector<1x256x32xf32> to vector<256x32xf32>
    %cst_9 = arith.constant dense<0.000000e+00> : vector<32xf32>
    %30 = vector.multi_reduction <add>, %29, %cst_9 [0] : vector<256x32xf32> to vector<32xf32>
    %31 = vector.shape_cast %30 : vector<32xf32> to vector<1x32xf32>
    %c0_10 = arith.constant 0 : index
    %c0_11 = arith.constant 0 : index
    %32 = vector.load %arg5[%c0_10, %c0_11] : memref<32x32xf32, #tpu.memory_space<vmem>>, vector<32x32xf32>
    %cst_12 = arith.constant dense<0.000000e+00> : vector<1x32xf32>
    %33 = tpu.matmul %31, %32, %cst_12 {dimension_numbers = #tpu.dot_dimension_numbers<[1], [0], [0], [1], [0, 0, 1, 1], [], []>} : vector<1x32xf32>, vector<32x32xf32>, vector<1x32xf32> -> vector<1x32xf32>
    %34 = vector.broadcast %33 : vector<1x32xf32> to vector<256x32xf32>
    %35 = arith.subf %29, %34 : vector<256x32xf32>
    %36 = arith.mulf %35, %35 : vector<256x32xf32>
    %cst_13 = arith.constant dense<0.000000e+00> : vector<32xf32>
    %37 = vector.multi_reduction <add>, %36, %cst_13 [0] : vector<256x32xf32> to vector<32xf32>
    %38 = vector.shape_cast %37 : vector<32xf32> to vector<1x32xf32>
    %c0_14 = arith.constant 0 : index
    %c0_15 = arith.constant 0 : index
    %39 = vector.load %arg5[%c0_14, %c0_15] : memref<32x32xf32, #tpu.memory_space<vmem>>, vector<32x32xf32>
    %cst_16 = arith.constant dense<0.000000e+00> : vector<1x32xf32>
    %40 = tpu.matmul %38, %39, %cst_16 {dimension_numbers = #tpu.dot_dimension_numbers<[1], [0], [0], [1], [0, 0, 1, 1], [], []>} : vector<1x32xf32>, vector<32x32xf32>, vector<1x32xf32> -> vector<1x32xf32>
    %cst_17 = arith.constant 9.99999997E-7 : f32
    %41 = vector.broadcast %cst_17 : f32 to vector<1x32xf32>
    %42 = arith.addf %40, %41 : vector<1x32xf32>
    %43 = math.rsqrt %42 : vector<1x32xf32>
    %c0_18 = arith.constant 0 : index
    %c0_19 = arith.constant 0 : index
    %44 = vector.load %arg3[%c0_18, %c0_19] : memref<1x32xf32, #tpu.memory_space<vmem>>, vector<1x32xf32>
    %45 = arith.mulf %43, %44 : vector<1x32xf32>
    %46 = vector.broadcast %45 : vector<1x32xf32> to vector<256x32xf32>
    %47 = arith.mulf %35, %46 : vector<256x32xf32>
    %c0_20 = arith.constant 0 : index
    %c0_21 = arith.constant 0 : index
    %48 = vector.load %arg4[%c0_20, %c0_21] : memref<1x32xf32, #tpu.memory_space<vmem>>, vector<1x32xf32>
    %49 = vector.broadcast %48 : vector<1x32xf32> to vector<256x32xf32>
    %50 = arith.addf %47, %49 : vector<256x32xf32>
    %cst_22 = arith.constant 0.000000e+00 : f32
    %51 = vector.broadcast %cst_22 : f32 to vector<256x32xf32>
    %52 = arith.subf %51, %50 : vector<256x32xf32>
    %53 = math.exp %52 : vector<256x32xf32>
    %cst_23 = arith.constant 1.000000e+00 : f32
    %54 = vector.broadcast %cst_23 : f32 to vector<256x32xf32>
    %55 = arith.addf %54, %53 : vector<256x32xf32>
    %56 = tpu.reciprocal %55 {approx = true} : vector<256x32xf32> -> vector<256x32xf32>
    %57 = arith.mulf %50, %56 : vector<256x32xf32>
    %58 = arith.truncf %57 : vector<256x32xf32> to vector<256x32xbf16>
    %c32 = arith.constant 32 : index
    %c0_24 = arith.constant 0 : index
    %59 = vector.load %arg18[%c32, %c0_24] : memref<320x64xbf16, #tpu.memory_space<vmem>>, vector<256x32xbf16>
    tpu.vector_store %arg18[%c32, %c0_24], %58 {strides = array<i32>} : memref<320x64xbf16, #tpu.memory_space<vmem>>, vector<256x32xbf16>,
    %c16 = arith.constant 16 : index
    %c0_25 = arith.constant 0 : index
    %60 = vector.load %arg18[%c16, %c0_25] : memref<320x64xbf16, #tpu.memory_space<vmem>>, vector<256x32xbf16>
    %c1 = arith.constant 1 : index
    %c0_26 = arith.constant 0 : index
    %c0_27 = arith.constant 0 : index
    %61 = vector.load %arg6[%c1, %c0_26, %c0_27] : memref<9x32x64xbf16, #tpu.memory_space<vmem>>, vector<1x32x64xbf16>
    %62 = vector.shape_cast %61 : vector<1x32x64xbf16> to vector<32x64xbf16>
    %cst_28 = arith.constant dense<0.000000e+00> : vector<256x64xf32>
    %63 = tpu.matmul %60, %62, %cst_28 {dimension_numbers = #tpu.dot_dimension_numbers<[1], [0], [0], [1], [0, 0, 1, 1], [], []>} : vector<256x32xbf16>, vector<32x64xbf16>, vector<256x64xf32> -> vector<256x64xf32>
    %c32_29 = arith.constant 32 : index
    %c0_30 = arith.constant 0 : index
    %64 = vector.load %arg18[%c32_29, %c0_30] : memref<320x64xbf16, #tpu.memory_space<vmem>>, vector<256x32xbf16>
    %c4 = arith.constant 4 : index
    %c0_31 = arith.constant 0 : index
    %c0_32 = arith.constant 0 : index
    %65 = vector.load %arg6[%c4, %c0_31, %c0_32] : memref<9x32x64xbf16, #tpu.memory_space<vmem>>, vector<1x32x64xbf16>
    %66 = vector.shape_cast %65 : vector<1x32x64xbf16> to vector<32x64xbf16>
    %cst_33 = arith.constant dense<0.000000e+00> : vector<256x64xf32>
    %67 = tpu.matmul %64, %66, %cst_33 {dimension_numbers = #tpu.dot_dimension_numbers<[1], [0], [0], [1], [0, 0, 1, 1], [], []>} : vector<256x32xbf16>, vector<32x64xbf16>, vector<256x64xf32> -> vector<256x64xf32>
    %68 = arith.addf %63, %67 : vector<256x64xf32>
    %c48 = arith.constant 48 : index
    %c0_34 = arith.constant 0 : index
    %69 = vector.load %arg18[%c48, %c0_34] : memref<320x64xbf16, #tpu.memory_space<vmem>>, vector<256x32xbf16>
    %c7 = arith.constant 7 : index
    %c0_35 = arith.constant 0 : index
    %c0_36 = arith.constant 0 : index
    %70 = vector.load %arg6[%c7, %c0_35, %c0_36] : memref<9x32x64xbf16, #tpu.memory_space<vmem>>, vector<1x32x64xbf16>
    %71 = vector.shape_cast %70 : vector<1x32x64xbf16> to vector<32x64xbf16>
    %cst_37 = arith.constant dense<0.000000e+00> : vector<256x64xf32>
    %72 = tpu.matmul %69, %71, %cst_37 {dimension_numbers = #tpu.dot_dimension_numbers<[1], [0], [0], [1], [0, 0, 1, 1], [], []>} : vector<256x32xbf16>, vector<32x64xbf16>, vector<256x64xf32> -> vector<256x64xf32>
    %73 = arith.addf %68, %72 : vector<256x64xf32>
    %c15 = arith.constant 15 : index
    %c0_38 = arith.constant 0 : index
    %74 = vector.load %arg18[%c15, %c0_38] : memref<320x64xbf16, #tpu.memory_space<vmem>>, vector<256x32xbf16>
    %c0_39 = arith.constant 0 : index
    %c0_40 = arith.constant 0 : index
    %c0_41 = arith.constant 0 : index
    %75 = vector.load %arg6[%c0_39, %c0_40, %c0_41] : memref<9x32x64xbf16, #tpu.memory_space<vmem>>, vector<1x32x64xbf16>
    %76 = vector.shape_cast %75 : vector<1x32x64xbf16> to vector<32x64xbf16>
    %cst_42 = arith.constant dense<0.000000e+00> : vector<256x64xf32>
    %77 = tpu.matmul %74, %76, %cst_42 {dimension_numbers = #tpu.dot_dimension_numbers<[1], [0], [0], [1], [0, 0, 1, 1], [], []>} : vector<256x32xbf16>, vector<32x64xbf16>, vector<256x64xf32> -> vector<256x64xf32>
    %c31 = arith.constant 31 : index
    %c0_43 = arith.constant 0 : index
    %78 = vector.load %arg18[%c31, %c0_43] : memref<320x64xbf16, #tpu.memory_space<vmem>>, vector<256x32xbf16>
    %c3 = arith.constant 3 : index
    %c0_44 = arith.constant 0 : index
    %c0_45 = arith.constant 0 : index
    %79 = vector.load %arg6[%c3, %c0_44, %c0_45] : memref<9x32x64xbf16, #tpu.memory_space<vmem>>, vector<1x32x64xbf16>
    %80 = vector.shape_cast %79 : vector<1x32x64xbf16> to vector<32x64xbf16>
    %cst_46 = arith.constant dense<0.000000e+00> : vector<256x64xf32>
    %81 = tpu.matmul %78, %80, %cst_46 {dimension_numbers = #tpu.dot_dimension_numbers<[1], [0], [0], [1], [0, 0, 1, 1], [], []>} : vector<256x32xbf16>, vector<32x64xbf16>, vector<256x64xf32> -> vector<256x64xf32>
    %82 = arith.addf %77, %81 : vector<256x64xf32>
    %c47 = arith.constant 47 : index
    %c0_47 = arith.constant 0 : index
    %83 = vector.load %arg18[%c47, %c0_47] : memref<320x64xbf16, #tpu.memory_space<vmem>>, vector<256x32xbf16>
    %c6 = arith.constant 6 : index
    %c0_48 = arith.constant 0 : index
    %c0_49 = arith.constant 0 : index
    %84 = vector.load %arg6[%c6, %c0_48, %c0_49] : memref<9x32x64xbf16, #tpu.memory_space<vmem>>, vector<1x32x64xbf16>
    %85 = vector.shape_cast %84 : vector<1x32x64xbf16> to vector<32x64xbf16>
    %cst_50 = arith.constant dense<0.000000e+00> : vector<256x64xf32>
    %86 = tpu.matmul %83, %85, %cst_50 {dimension_numbers = #tpu.dot_dimension_numbers<[1], [0], [0], [1], [0, 0, 1, 1], [], []>} : vector<256x32xbf16>, vector<32x64xbf16>, vector<256x64xf32> -> vector<256x64xf32>
    %87 = arith.addf %82, %86 : vector<256x64xf32>
    %88 = vector.broadcast %20 : vector<256x1xf32> to vector<256x64xf32>
    %89 = arith.mulf %87, %88 : vector<256x64xf32>
    %90 = arith.addf %73, %89 : vector<256x64xf32>
    %c17 = arith.constant 17 : index
    %c0_51 = arith.constant 0 : index
    %91 = vector.load %arg18[%c17, %c0_51] : memref<320x64xbf16, #tpu.memory_space<vmem>>, vector<256x32xbf16>
    %c2 = arith.constant 2 : index
    %c0_52 = arith.constant 0 : index
    %c0_53 = arith.constant 0 : index
    %92 = vector.load %arg6[%c2, %c0_52, %c0_53] : memref<9x32x64xbf16, #tpu.memory_space<vmem>>, vector<1x32x64xbf16>
    %93 = vector.shape_cast %92 : vector<1x32x64xbf16> to vector<32x64xbf16>
    %cst_54 = arith.constant dense<0.000000e+00> : vector<256x64xf32>
    %94 = tpu.matmul %91, %93, %cst_54 {dimension_numbers = #tpu.dot_dimension_numbers<[1], [0], [0], [1], [0, 0, 1, 1], [], []>} : vector<256x32xbf16>, vector<32x64xbf16>, vector<256x64xf32> -> vector<256x64xf32>
    %c33 = arith.constant 33 : index
    %c0_55 = arith.constant 0 : index
    %95 = vector.load %arg18[%c33, %c0_55] : memref<320x64xbf16, #tpu.memory_space<vmem>>, vector<256x32xbf16>
    %c5 = arith.constant 5 : index
    %c0_56 = arith.constant 0 : index
    %c0_57 = arith.constant 0 : index
    %96 = vector.load %arg6[%c5, %c0_56, %c0_57] : memref<9x32x64xbf16, #tpu.memory_space<vmem>>, vector<1x32x64xbf16>
    %97 = vector.shape_cast %96 : vector<1x32x64xbf16> to vector<32x64xbf16>
    %cst_58 = arith.constant dense<0.000000e+00> : vector<256x64xf32>
    %98 = tpu.matmul %95, %97, %cst_58 {dimension_numbers = #tpu.dot_dimension_numbers<[1], [0], [0], [1], [0, 0, 1, 1], [], []>} : vector<256x32xbf16>, vector<32x64xbf16>, vector<256x64xf32> -> vector<256x64xf32>
    %99 = arith.addf %94, %98 : vector<256x64xf32>
    %c49 = arith.constant 49 : index
    %c0_59 = arith.constant 0 : index
    %100 = vector.load %arg18[%c49, %c0_59] : memref<320x64xbf16, #tpu.memory_space<vmem>>, vector<256x32xbf16>
    %c8 = arith.constant 8 : index
    %c0_60 = arith.constant 0 : index
    %c0_61 = arith.constant 0 : index
    %101 = vector.load %arg6[%c8, %c0_60, %c0_61] : memref<9x32x64xbf16, #tpu.memory_space<vmem>>, vector<1x32x64xbf16>
    %102 = vector.shape_cast %101 : vector<1x32x64xbf16> to vector<32x64xbf16>
    %cst_62 = arith.constant dense<0.000000e+00> : vector<256x64xf32>
    %103 = tpu.matmul %100, %102, %cst_62 {dimension_numbers = #tpu.dot_dimension_numbers<[1], [0], [0], [1], [0, 0, 1, 1], [], []>} : vector<256x32xbf16>, vector<32x64xbf16>, vector<256x64xf32> -> vector<256x64xf32>
    %104 = arith.addf %99, %103 : vector<256x64xf32>
    %105 = vector.broadcast %24 : vector<256x1xf32> to vector<256x64xf32>
    %106 = arith.mulf %104, %105 : vector<256x64xf32>
    %107 = arith.addf %90, %106 : vector<256x64xf32>
    %c0_63 = arith.constant 0 : index
    %c0_64 = arith.constant 0 : index
    %108 = vector.load %arg7[%c0_63, %c0_64] : memref<1x64xf32, #tpu.memory_space<vmem>>, vector<1x64xf32>
    %109 = vector.broadcast %108 : vector<1x64xf32> to vector<256x64xf32>
    %110 = arith.addf %107, %109 : vector<256x64xf32>
    %c0_65 = arith.constant 0 : index
    %c0_66 = arith.constant 0 : index
    %c0_67 = arith.constant 0 : index
    %111 = vector.load %arg2[%c0_65, %c0_66, %c0_67] : memref<1x1x64xf32, #tpu.memory_space<vmem>>, vector<1x1x64xf32>
    %112 = vector.shape_cast %111 : vector<1x1x64xf32> to vector<1x64xf32>
    %cst_68 = arith.constant 0.000000e+00 : f32
    %113 = vector.broadcast %cst_68 : f32 to vector<1x64xf32>
    %114 = arith.subf %113, %112 : vector<1x64xf32>
    %115 = math.exp %114 : vector<1x64xf32>
    %cst_69 = arith.constant 1.000000e+00 : f32
    %116 = vector.broadcast %cst_69 : f32 to vector<1x64xf32>
    %117 = arith.addf %116, %115 : vector<1x64xf32>
    %118 = tpu.reciprocal %117 {approx = true} : vector<1x64xf32> -> vector<1x64xf32>
    %119 = arith.mulf %112, %118 : vector<1x64xf32>
    %120 = arith.truncf %119 : vector<1x64xf32> to vector<1x64xbf16>
    %c0_70 = arith.constant 0 : index
    %c0_71 = arith.constant 0 : index
    %121 = vector.load %arg8[%c0_70, %c0_71] : memref<64x64xbf16, #tpu.memory_space<vmem>>, vector<64x64xbf16>
    %cst_72 = arith.constant dense<0.000000e+00> : vector<1x64xf32>
    %122 = tpu.matmul %120, %121, %cst_72 {dimension_numbers = #tpu.dot_dimension_numbers<[1], [0], [0], [1], [0, 0, 1, 1], [], []>} : vector<1x64xbf16>, vector<64x64xbf16>, vector<1x64xf32> -> vector<1x64xf32>
    %c0_73 = arith.constant 0 : index
    %c0_74 = arith.constant 0 : index
    %123 = vector.load %arg9[%c0_73, %c0_74] : memref<1x64xf32, #tpu.memory_space<vmem>>, vector<1x64xf32>
    %124 = arith.addf %122, %123 : vector<1x64xf32>
    %125 = vector.broadcast %124 : vector<1x64xf32> to vector<256x64xf32>
    %126 = arith.addf %110, %125 : vector<256x64xf32>
    %cst_75 = arith.constant dense<0.000000e+00> : vector<64xf32>
    %127 = vector.multi_reduction <add>, %126, %cst_75 [0] : vector<256x64xf32> to vector<64xf32>
    %128 = vector.shape_cast %127 : vector<64xf32> to vector<1x64xf32>
    %c0_76 = arith.constant 0 : index
    %c0_77 = arith.constant 0 : index
    %129 = vector.load %arg12[%c0_76, %c0_77] : memref<64x64xf32, #tpu.memory_space<vmem>>, vector<64x64xf32>
    %cst_78 = arith.constant dense<0.000000e+00> : vector<1x64xf32>
    %130 = tpu.matmul %128, %129, %cst_78 {dimension_numbers = #tpu.dot_dimension_numbers<[1], [0], [0], [1], [0, 0, 1, 1], [], []>} : vector<1x64xf32>, vector<64x64xf32>, vector<1x64xf32> -> vector<1x64xf32>
    %131 = vector.broadcast %130 : vector<1x64xf32> to vector<256x64xf32>
    %132 = arith.subf %126, %131 : vector<256x64xf32>
    %133 = arith.mulf %132, %132 : vector<256x64xf32>
    %cst_79 = arith.constant dense<0.000000e+00> : vector<64xf32>
    %134 = vector.multi_reduction <add>, %133, %cst_79 [0] : vector<256x64xf32> to vector<64xf32>
    %135 = vector.shape_cast %134 : vector<64xf32> to vector<1x64xf32>
    %c0_80 = arith.constant 0 : index
    %c0_81 = arith.constant 0 : index
    %136 = vector.load %arg12[%c0_80, %c0_81] : memref<64x64xf32, #tpu.memory_space<vmem>>, vector<64x64xf32>
    %cst_82 = arith.constant dense<0.000000e+00> : vector<1x64xf32>
    %137 = tpu.matmul %135, %136, %cst_82 {dimension_numbers = #tpu.dot_dimension_numbers<[1], [0], [0], [1], [0, 0, 1, 1], [], []>} : vector<1x64xf32>, vector<64x64xf32>, vector<1x64xf32> -> vector<1x64xf32>
    %cst_83 = arith.constant 9.99999997E-7 : f32
    %138 = vector.broadcast %cst_83 : f32 to vector<1x64xf32>
    %139 = arith.addf %137, %138 : vector<1x64xf32>
    %140 = math.rsqrt %139 : vector<1x64xf32>
    %c0_84 = arith.constant 0 : index
    %c0_85 = arith.constant 0 : index
    %141 = vector.load %arg10[%c0_84, %c0_85] : memref<1x64xf32, #tpu.memory_space<vmem>>, vector<1x64xf32>
    %142 = arith.mulf %140, %141 : vector<1x64xf32>
    %143 = vector.broadcast %142 : vector<1x64xf32> to vector<256x64xf32>
    %144 = arith.mulf %132, %143 : vector<256x64xf32>
    %c0_86 = arith.constant 0 : index
    %c0_87 = arith.constant 0 : index
    %145 = vector.load %arg11[%c0_86, %c0_87] : memref<1x64xf32, #tpu.memory_space<vmem>>, vector<1x64xf32>
    %146 = vector.broadcast %145 : vector<1x64xf32> to vector<256x64xf32>
    %147 = arith.addf %144, %146 : vector<256x64xf32>
    %cst_88 = arith.constant 0.000000e+00 : f32
    %148 = vector.broadcast %cst_88 : f32 to vector<256x64xf32>
    %149 = arith.subf %148, %147 : vector<256x64xf32>
    %150 = math.exp %149 : vector<256x64xf32>
    %cst_89 = arith.constant 1.000000e+00 : f32
    %151 = vector.broadcast %cst_89 : f32 to vector<256x64xf32>
    %152 = arith.addf %151, %150 : vector<256x64xf32>
    %153 = tpu.reciprocal %152 {approx = true} : vector<256x64xf32> -> vector<256x64xf32>
    %154 = arith.mulf %147, %153 : vector<256x64xf32>
    %155 = arith.truncf %154 : vector<256x64xf32> to vector<256x64xbf16>
    %c32_90 = arith.constant 32 : index
    %c0_91 = arith.constant 0 : index
    %156 = vector.load %arg18[%c32_90, %c0_91] : memref<320x64xbf16, #tpu.memory_space<vmem>>, vector<256x64xbf16>
    tpu.vector_store %arg18[%c32_90, %c0_91], %155 {strides = array<i32>} : memref<320x64xbf16, #tpu.memory_space<vmem>>, vector<256x64xbf16>,
    %c16_92 = arith.constant 16 : index
    %c0_93 = arith.constant 0 : index
    %157 = vector.load %arg18[%c16_92, %c0_93] : memref<320x64xbf16, #tpu.memory_space<vmem>>, vector<256x64xbf16>
    %c1_94 = arith.constant 1 : index
    %c0_95 = arith.constant 0 : index
    %c0_96 = arith.constant 0 : index
    %158 = vector.load %arg13[%c1_94, %c0_95, %c0_96] : memref<9x64x64xbf16, #tpu.memory_space<vmem>>, vector<1x64x64xbf16>
    %159 = vector.shape_cast %158 : vector<1x64x64xbf16> to vector<64x64xbf16>
    %cst_97 = arith.constant dense<0.000000e+00> : vector<256x64xf32>
    %160 = tpu.matmul %157, %159, %cst_97 {dimension_numbers = #tpu.dot_dimension_numbers<[1], [0], [0], [1], [0, 0, 1, 1], [], []>} : vector<256x64xbf16>, vector<64x64xbf16>, vector<256x64xf32> -> vector<256x64xf32>
    %c32_98 = arith.constant 32 : index
    %c0_99 = arith.constant 0 : index
    %161 = vector.load %arg18[%c32_98, %c0_99] : memref<320x64xbf16, #tpu.memory_space<vmem>>, vector<256x64xbf16>
    %c4_100 = arith.constant 4 : index
    %c0_101 = arith.constant 0 : index
    %c0_102 = arith.constant 0 : index
    %162 = vector.load %arg13[%c4_100, %c0_101, %c0_102] : memref<9x64x64xbf16, #tpu.memory_space<vmem>>, vector<1x64x64xbf16>
    %163 = vector.shape_cast %162 : vector<1x64x64xbf16> to vector<64x64xbf16>
    %cst_103 = arith.constant dense<0.000000e+00> : vector<256x64xf32>
    %164 = tpu.matmul %161, %163, %cst_103 {dimension_numbers = #tpu.dot_dimension_numbers<[1], [0], [0], [1], [0, 0, 1, 1], [], []>} : vector<256x64xbf16>, vector<64x64xbf16>, vector<256x64xf32> -> vector<256x64xf32>
    %165 = arith.addf %160, %164 : vector<256x64xf32>
    %c48_104 = arith.constant 48 : index
    %c0_105 = arith.constant 0 : index
    %166 = vector.load %arg18[%c48_104, %c0_105] : memref<320x64xbf16, #tpu.memory_space<vmem>>, vector<256x64xbf16>
    %c7_106 = arith.constant 7 : index
    %c0_107 = arith.constant 0 : index
    %c0_108 = arith.constant 0 : index
    %167 = vector.load %arg13[%c7_106, %c0_107, %c0_108] : memref<9x64x64xbf16, #tpu.memory_space<vmem>>, vector<1x64x64xbf16>
    %168 = vector.shape_cast %167 : vector<1x64x64xbf16> to vector<64x64xbf16>
    %cst_109 = arith.constant dense<0.000000e+00> : vector<256x64xf32>
    %169 = tpu.matmul %166, %168, %cst_109 {dimension_numbers = #tpu.dot_dimension_numbers<[1], [0], [0], [1], [0, 0, 1, 1], [], []>} : vector<256x64xbf16>, vector<64x64xbf16>, vector<256x64xf32> -> vector<256x64xf32>
    %170 = arith.addf %165, %169 : vector<256x64xf32>
    %c15_110 = arith.constant 15 : index
    %c0_111 = arith.constant 0 : index
    %171 = vector.load %arg18[%c15_110, %c0_111] : memref<320x64xbf16, #tpu.memory_space<vmem>>, vector<256x64xbf16>
    %c0_112 = arith.constant 0 : index
    %c0_113 = arith.constant 0 : index
    %c0_114 = arith.constant 0 : index
    %172 = vector.load %arg13[%c0_112, %c0_113, %c0_114] : memref<9x64x64xbf16, #tpu.memory_space<vmem>>, vector<1x64x64xbf16>
    %173 = vector.shape_cast %172 : vector<1x64x64xbf16> to vector<64x64xbf16>
    %cst_115 = arith.constant dense<0.000000e+00> : vector<256x64xf32>
    %174 = tpu.matmul %171, %173, %cst_115 {dimension_numbers = #tpu.dot_dimension_numbers<[1], [0], [0], [1], [0, 0, 1, 1], [], []>} : vector<256x64xbf16>, vector<64x64xbf16>, vector<256x64xf32> -> vector<256x64xf32>
    %c31_116 = arith.constant 31 : index
    %c0_117 = arith.constant 0 : index
    %175 = vector.load %arg18[%c31_116, %c0_117] : memref<320x64xbf16, #tpu.memory_space<vmem>>, vector<256x64xbf16>
    %c3_118 = arith.constant 3 : index
    %c0_119 = arith.constant 0 : index
    %c0_120 = arith.constant 0 : index
    %176 = vector.load %arg13[%c3_118, %c0_119, %c0_120] : memref<9x64x64xbf16, #tpu.memory_space<vmem>>, vector<1x64x64xbf16>
    %177 = vector.shape_cast %176 : vector<1x64x64xbf16> to vector<64x64xbf16>
    %cst_121 = arith.constant dense<0.000000e+00> : vector<256x64xf32>
    %178 = tpu.matmul %175, %177, %cst_121 {dimension_numbers = #tpu.dot_dimension_numbers<[1], [0], [0], [1], [0, 0, 1, 1], [], []>} : vector<256x64xbf16>, vector<64x64xbf16>, vector<256x64xf32> -> vector<256x64xf32>
    %179 = arith.addf %174, %178 : vector<256x64xf32>
    %c47_122 = arith.constant 47 : index
    %c0_123 = arith.constant 0 : index
    %180 = vector.load %arg18[%c47_122, %c0_123] : memref<320x64xbf16, #tpu.memory_space<vmem>>, vector<256x64xbf16>
    %c6_124 = arith.constant 6 : index
    %c0_125 = arith.constant 0 : index
    %c0_126 = arith.constant 0 : index
    %181 = vector.load %arg13[%c6_124, %c0_125, %c0_126] : memref<9x64x64xbf16, #tpu.memory_space<vmem>>, vector<1x64x64xbf16>
    %182 = vector.shape_cast %181 : vector<1x64x64xbf16> to vector<64x64xbf16>
    %cst_127 = arith.constant dense<0.000000e+00> : vector<256x64xf32>
    %183 = tpu.matmul %180, %182, %cst_127 {dimension_numbers = #tpu.dot_dimension_numbers<[1], [0], [0], [1], [0, 0, 1, 1], [], []>} : vector<256x64xbf16>, vector<64x64xbf16>, vector<256x64xf32> -> vector<256x64xf32>
    %184 = arith.addf %179, %183 : vector<256x64xf32>
    %185 = vector.broadcast %20 : vector<256x1xf32> to vector<256x64xf32>
    %186 = arith.mulf %184, %185 : vector<256x64xf32>
    %187 = arith.addf %170, %186 : vector<256x64xf32>
    %c17_128 = arith.constant 17 : index
    %c0_129 = arith.constant 0 : index
    %188 = vector.load %arg18[%c17_128, %c0_129] : memref<320x64xbf16, #tpu.memory_space<vmem>>, vector<256x64xbf16>
    %c2_130 = arith.constant 2 : index
    %c0_131 = arith.constant 0 : index
    %c0_132 = arith.constant 0 : index
    %189 = vector.load %arg13[%c2_130, %c0_131, %c0_132] : memref<9x64x64xbf16, #tpu.memory_space<vmem>>, vector<1x64x64xbf16>
    %190 = vector.shape_cast %189 : vector<1x64x64xbf16> to vector<64x64xbf16>
    %cst_133 = arith.constant dense<0.000000e+00> : vector<256x64xf32>
    %191 = tpu.matmul %188, %190, %cst_133 {dimension_numbers = #tpu.dot_dimension_numbers<[1], [0], [0], [1], [0, 0, 1, 1], [], []>} : vector<256x64xbf16>, vector<64x64xbf16>, vector<256x64xf32> -> vector<256x64xf32>
    %c33_134 = arith.constant 33 : index
    %c0_135 = arith.constant 0 : index
    %192 = vector.load %arg18[%c33_134, %c0_135] : memref<320x64xbf16, #tpu.memory_space<vmem>>, vector<256x64xbf16>
    %c5_136 = arith.constant 5 : index
    %c0_137 = arith.constant 0 : index
    %c0_138 = arith.constant 0 : index
    %193 = vector.load %arg13[%c5_136, %c0_137, %c0_138] : memref<9x64x64xbf16, #tpu.memory_space<vmem>>, vector<1x64x64xbf16>
    %194 = vector.shape_cast %193 : vector<1x64x64xbf16> to vector<64x64xbf16>
    %cst_139 = arith.constant dense<0.000000e+00> : vector<256x64xf32>
    %195 = tpu.matmul %192, %194, %cst_139 {dimension_numbers = #tpu.dot_dimension_numbers<[1], [0], [0], [1], [0, 0, 1, 1], [], []>} : vector<256x64xbf16>, vector<64x64xbf16>, vector<256x64xf32> -> vector<256x64xf32>
    %196 = arith.addf %191, %195 : vector<256x64xf32>
    %c49_140 = arith.constant 49 : index
    %c0_141 = arith.constant 0 : index
    %197 = vector.load %arg18[%c49_140, %c0_141] : memref<320x64xbf16, #tpu.memory_space<vmem>>, vector<256x64xbf16>
    %c8_142 = arith.constant 8 : index
    %c0_143 = arith.constant 0 : index
    %c0_144 = arith.constant 0 : index
    %198 = vector.load %arg13[%c8_142, %c0_143, %c0_144] : memref<9x64x64xbf16, #tpu.memory_space<vmem>>, vector<1x64x64xbf16>
    %199 = vector.shape_cast %198 : vector<1x64x64xbf16> to vector<64x64xbf16>
    %cst_145 = arith.constant dense<0.000000e+00> : vector<256x64xf32>
    %200 = tpu.matmul %197, %199, %cst_145 {dimension_numbers = #tpu.dot_dimension_numbers<[1], [0], [0], [1], [0, 0, 1, 1], [], []>} : vector<256x64xbf16>, vector<64x64xbf16>, vector<256x64xf32> -> vector<256x64xf32>
    %201 = arith.addf %196, %200 : vector<256x64xf32>
    %202 = vector.broadcast %24 : vector<256x1xf32> to vector<256x64xf32>
    %203 = arith.mulf %201, %202 : vector<256x64xf32>
    %204 = arith.addf %187, %203 : vector<256x64xf32>
    %c0_146 = arith.constant 0 : index
    %c0_147 = arith.constant 0 : index
    %205 = vector.load %arg14[%c0_146, %c0_147] : memref<1x64xf32, #tpu.memory_space<vmem>>, vector<1x64xf32>
    %206 = vector.broadcast %205 : vector<1x64xf32> to vector<256x64xf32>
    %207 = arith.addf %204, %206 : vector<256x64xf32>
    %208 = arith.truncf %29 : vector<256x32xf32> to vector<256x32xbf16>
    %c0_148 = arith.constant 0 : index
    %c0_149 = arith.constant 0 : index
    %209 = vector.load %arg15[%c0_148, %c0_149] : memref<32x64xbf16, #tpu.memory_space<vmem>>, vector<32x64xbf16>
    %cst_150 = arith.constant dense<0.000000e+00> : vector<256x64xf32>
    %210 = tpu.matmul %208, %209, %cst_150 {dimension_numbers = #tpu.dot_dimension_numbers<[1], [0], [0], [1], [0, 0, 1, 1], [], []>} : vector<256x32xbf16>, vector<32x64xbf16>, vector<256x64xf32> -> vector<256x64xf32>
    %c0_151 = arith.constant 0 : index
    %c0_152 = arith.constant 0 : index
    %211 = vector.load %arg16[%c0_151, %c0_152] : memref<1x64xf32, #tpu.memory_space<vmem>>, vector<1x64xf32>
    %212 = vector.broadcast %211 : vector<1x64xf32> to vector<256x64xf32>
    %213 = arith.addf %210, %212 : vector<256x64xf32>
    %214 = arith.addf %213, %207 : vector<256x64xf32>
    %c0_153 = arith.constant 0 : index
    %c0_154 = arith.constant 0 : index
    %c0_155 = arith.constant 0 : index
    %215 = vector.load %arg17[%c0_153, %c0_154, %c0_155] : memref<1x256x64xf32, #tpu.memory_space<vmem>>, vector<1x256x64xf32>
    %216 = vector.shape_cast %215 : vector<1x256x64xf32> to vector<256x64xf32>
    %217 = vector.shape_cast %214 : vector<256x64xf32> to vector<1x256x64xf32>
    tpu.vector_store %arg17[%c0_153, %c0_154, %c0_155], %217 {strides = array<i32>} : memref<1x256x64xf32, #tpu.memory_space<vmem>>, vector<1x256x64xf32>,
    return
  }
  func.func @transform_0(%arg0: i32) -> (i32, i32, i32) {
    %c0_i32 = arith.constant 0 : i32
    %c0_i32_0 = arith.constant 0 : i32
    %c0_i32_1 = arith.constant 0 : i32
    return %arg0, %c0_i32, %c0_i32_0 : i32, i32, i32
  }
  func.func @transform_1(%arg0: i32) -> (i32, i32, i32) {
    %c0_i32 = arith.constant 0 : i32
    %c0_i32_0 = arith.constant 0 : i32
    %c0_i32_1 = arith.constant 0 : i32
    return %arg0, %c0_i32, %c0_i32_0 : i32, i32, i32
  }
  func.func @transform_2(%arg0: i32) -> (i32, i32) {
    %c0_i32 = arith.constant 0 : i32
    %c0_i32_0 = arith.constant 0 : i32
    %c0_i32_1 = arith.constant 0 : i32
    return %c0_i32, %c0_i32_0 : i32, i32
  }
  func.func @transform_3(%arg0: i32) -> (i32, i32) {
    %c0_i32 = arith.constant 0 : i32
    %c0_i32_0 = arith.constant 0 : i32
    %c0_i32_1 = arith.constant 0 : i32
    return %c0_i32, %c0_i32_0 : i32, i32
  }
  func.func @transform_4(%arg0: i32) -> (i32, i32) {
    %c0_i32 = arith.constant 0 : i32
    %c0_i32_0 = arith.constant 0 : i32
    %c0_i32_1 = arith.constant 0 : i32
    return %c0_i32, %c0_i32_0 : i32, i32
  }
  func.func @transform_5(%arg0: i32) -> (i32, i32, i32) {
    %c0_i32 = arith.constant 0 : i32
    %c0_i32_0 = arith.constant 0 : i32
    %c0_i32_1 = arith.constant 0 : i32
    %c0_i32_2 = arith.constant 0 : i32
    return %c0_i32, %c0_i32_0, %c0_i32_1 : i32, i32, i32
  }
  func.func @transform_6(%arg0: i32) -> (i32, i32) {
    %c0_i32 = arith.constant 0 : i32
    %c0_i32_0 = arith.constant 0 : i32
    %c0_i32_1 = arith.constant 0 : i32
    return %c0_i32, %c0_i32_0 : i32, i32
  }
  func.func @transform_7(%arg0: i32) -> (i32, i32) {
    %c0_i32 = arith.constant 0 : i32
    %c0_i32_0 = arith.constant 0 : i32
    %c0_i32_1 = arith.constant 0 : i32
    return %c0_i32, %c0_i32_0 : i32, i32
  }
  func.func @transform_8(%arg0: i32) -> (i32, i32) {
    %c0_i32 = arith.constant 0 : i32
    %c0_i32_0 = arith.constant 0 : i32
    %c0_i32_1 = arith.constant 0 : i32
    return %c0_i32, %c0_i32_0 : i32, i32
  }
  func.func @transform_9(%arg0: i32) -> (i32, i32) {
    %c0_i32 = arith.constant 0 : i32
    %c0_i32_0 = arith.constant 0 : i32
    %c0_i32_1 = arith.constant 0 : i32
    return %c0_i32, %c0_i32_0 : i32, i32
  }
  func.func @transform_10(%arg0: i32) -> (i32, i32) {
    %c0_i32 = arith.constant 0 : i32
    %c0_i32_0 = arith.constant 0 : i32
    %c0_i32_1 = arith.constant 0 : i32
    return %c0_i32, %c0_i32_0 : i32, i32
  }
  func.func @transform_11(%arg0: i32) -> (i32, i32) {
    %c0_i32 = arith.constant 0 : i32
    %c0_i32_0 = arith.constant 0 : i32
    %c0_i32_1 = arith.constant 0 : i32
    return %c0_i32, %c0_i32_0 : i32, i32
  }
  func.func @transform_12(%arg0: i32) -> (i32, i32, i32) {
    %c0_i32 = arith.constant 0 : i32
    %c0_i32_0 = arith.constant 0 : i32
    %c0_i32_1 = arith.constant 0 : i32
    %c0_i32_2 = arith.constant 0 : i32
    return %c0_i32, %c0_i32_0, %c0_i32_1 : i32, i32, i32
  }
  func.func @transform_13(%arg0: i32) -> (i32, i32) {
    %c0_i32 = arith.constant 0 : i32
    %c0_i32_0 = arith.constant 0 : i32
    %c0_i32_1 = arith.constant 0 : i32
    return %c0_i32, %c0_i32_0 : i32, i32
  }
  func.func @transform_14(%arg0: i32) -> (i32, i32) {
    %c0_i32 = arith.constant 0 : i32
    %c0_i32_0 = arith.constant 0 : i32
    %c0_i32_1 = arith.constant 0 : i32
    return %c0_i32, %c0_i32_0 : i32, i32
  }
  func.func @transform_15(%arg0: i32) -> (i32, i32) {
    %c0_i32 = arith.constant 0 : i32
    %c0_i32_0 = arith.constant 0 : i32
    %c0_i32_1 = arith.constant 0 : i32
    return %c0_i32, %c0_i32_0 : i32, i32
  }
  func.func @transform_16(%arg0: i32) -> (i32, i32, i32) {
    %c0_i32 = arith.constant 0 : i32
    %c0_i32_0 = arith.constant 0 : i32
    %c0_i32_1 = arith.constant 0 : i32
    return %arg0, %c0_i32, %c0_i32_0 : i32, i32, i32
  }
}

</mosaic_0001>

<bundles_post_ra>
// kernel: tpu_custom_call.1
= control target key start
LH: loop header
LB: loop body
LE: loop exit
PB: predicated region body
PF: predicated region fallthrough
CT: control target
= control target key end

     0   :  { %s12712_s21 = smov 0   ;;  %s17179_s0 = inlined_call_operand.vmem [shape: f32[2,256,32], index: 0, kind: input, shape index: {}]   ;;  %s17180_s1 = inlined_call_operand.vmem [shape: f32[2,1,64], index: 1, kind: input, shape index: {}]   ;;  %s17181_s2 = inlined_call_operand.vmem [shape: f32[1,32], index: 2, kind: input, shape index: {}]   ;;  %s17182_s3 = inlined_call_operand.vmem [shape: f32[1,32], index: 3, kind: input, shape index: {}]   ;;  %s17183_s4 = inlined_call_operand.vmem [shape: f32[32,32], index: 4, kind: input, shape index: {}]   ;;  %s17184_s5 = inlined_call_operand.vmem [shape: bf16[9,32,64], index: 5, kind: input, shape index: {}]   ;;  %s17185_s6 = inlined_call_operand.vmem [shape: f32[1,64], index: 6, kind: input, shape index: {}]   ;;  %s17186_s7 = inlined_call_operand.vmem [shape: bf16[64,64], index: 7, kind: input, shape index: {}]   ;;  %s17187_s8 = inlined_call_operand.vmem [shape: f32[1,64], index: 8, kind: input, shape index: {}]   ;;  %s17188_s9 = inlined_call_operand.vmem [shape: f32[1,64], index: 9, kind: input, shape index: {}]   ;;  %s17189_s10 = inlined_call_operand.vmem [shape: f32[1,64], index: 10, kind: input, shape index: {}]   ;;  %s17190_s11 = inlined_call_operand.vmem [shape: f32[64,64], index: 11, kind: input, shape index: {}]   ;;  %s17191_s12 = inlined_call_operand.vmem [shape: bf16[9,64,64], index: 12, kind: input, shape index: {}]   ;;  %s17192_s13 = inlined_call_operand.vmem [shape: f32[1,64], index: 13, kind: input, shape index: {}]   ;;  %s17193_s14 = inlined_call_operand.vmem [shape: bf16[32,64], index: 14, kind: input, shape index: {}]   ;;  %s17194_s15 = inlined_call_operand.vmem [shape: f32[1,64], index: 15, kind: input, shape index: {}]   ;;  %s17195_s16 = inlined_call_operand.vmem [shape: f32[2,256,64], index: 16, kind: output, shape index: {}]  }
   0x1   :  { %17254 = sst [smem:[#allocation91_spill]] %s17179_s0 }
   0x2 LB: > { %s10004_s22 = sadd.s32 4294967295, %s12622_s21   ;;  %p10008_p0 = scmp.ge.s32.totalorder %s12622_s21, 1  ;;  %s12622_s21 = sphi %s12712_s21, %s26_s21  }
   0x3   : > { %p470_p1 = scmp.lt.s32.totalorder %s12622_s21, 3 }
   0x5   : > { %p471_p2 = pnand %p10008_p0, %p470_p1 }
   0x7   : > { %474 = sbr.rel (%p471_p2) target bundleno = 2291 (0x8f3), region = 84 }
   0xc   : > { %v12723_v0 = vld [vmem:[%s17183_s4 + $0x18] sm:$0xff]  ;;  %p523_p3 = scmp.lt.s32.totalorder %s10004_s22, 1  ;;  %v17196_v1 = vmov 0.0   ;;  %v12729_v2 = vld [vmem:[%s17183_s4 + $0x10] sm:$0xff]  ;;  %vm12625_vm0 = vmmov 0   ;;  %v12737_v3 = vld [vmem:[%s17183_s4 + $0x8] sm:$0xff] }
   0xd   : > { %11252 = vmatprep.subr.mxu1 %v17196_v1  ;;  %11260 = vmatprep.mubr.msk.f32.mxu1 %vm12625_vm0, %v17196_v1  ;;  %v12745_v4 = vld [vmem:[%s17183_s4] sm:$0xff]  ;;  %vm1187_vm1 = vcmask 261120   ;;  %s17255_s19 = sld [smem:[#allocation91_spill]]  ;;  %vm1146_vm2 = vcmask 519168   ;;  %vm1942_vm3 = vcmask 257024   ;;  %vm5316_vm6 = vcmask 523264  }
   0xe   : > { %11253 = vmatpush3.msra.mxu1 %v12723_v0  ;;  %s17661_s22 = smov (!%p523_p3, %s10004_s22), 1  ;;  %vm2901_vm4 = vsmask.f32 4352  ;;  %vm4112_vm5 = vsmask.f32 7424 }
   0xf   : > { %11254 = vmatprep.subr.mxu1 %v17196_v1  ;;  %s10793_s0 = sshll.u32 %s17661_s22, 8  ;;  %s530_s27 = scalar_lea.vmem %s17180_s1, %s17661_s22 }
  0x10   : > { %11255 = vmatpush3.msra.mxu1 %v12729_v2  ;;  %s16949_s25 = scalar_lea.vmem %s17195_s16, %s10793_s0 }
  0x11   : > { %11256 = vmatprep.subr.mxu1 %v17196_v1 }
  0x12   : > { %11257 = vmatpush3.msra.mxu1 %v12737_v3 }
  0x13   : > { %s12755_s20 = scalar_lea.vmem %s17255_s19, %s10793_s0  ;;  %11258 = vmatprep.subr.mxu1 %v17196_v1 }
  0x14   : > { %v12759_v5 = vld [vmem:[%s12755_s20] sm:$0xff]  ;;  %v12762_v6 = vld [vmem:[%s12755_s20 + $0x8] sm:$0xff]  ;;  %v12765_v7 = vld [vmem:[%s12755_s20 + $0x10] sm:$0xff]  ;;  %11259 = vmatpush3.msra.mxu1 %v12745_v4 }
  0x15   : > { %v12769_v8 = vld [vmem:[%s12755_s20 + $0x18] sm:$0xff]  ;;  %v12772_v9 = vld [vmem:[%s12755_s20 + $0x20] sm:$0xff]  ;;  %v12775_v10 = vld [vmem:[%s12755_s20 + $0x28] sm:$0xff]  ;;  %v1188_v11 = vsel %vm1187_vm1, %v12759_v5, 0.0  ;;  %v1189_v12 = vsel %vm1187_vm1, %v12762_v6, 0.0  ;;  %v1191_v13 = vsel %vm1187_vm1, %v12765_v7, 0.0  ;;  %11263 = vmatprep.subr.mxu1 %v17196_v1 }
  0x16   : > { %v12785_v14 = vld [vmem:[%s12755_s20 + $0x30] sm:$0xff]  ;;  %v12788_v15 = vld [vmem:[%s12755_s20 + $0x38] sm:$0xff]  ;;  %v12791_v16 = vld [vmem:[%s12755_s20 + $0x40] sm:$0xff]  ;;  %v1190_v17 = vadd.f32 %v1189_v12, %v1188_v11  ;;  %v1193_v21 = vsel %vm1187_vm1, %v12769_v8, 0.0  ;;  %v1195_v26 = vsel %vm1187_vm1, %v12772_v9, 0.0  ;;  %v1197_v30 = vsel %vm1187_vm1, %v12775_v10, 0.0 }
  0x17   : > { %v12794_v18 = vld [vmem:[%s12755_s20 + $0x48] sm:$0xff]  ;;  %v12797_v19 = vld [vmem:[%s12755_s20 + $0x50] sm:$0xff]  ;;  %v12800_v20 = vld [vmem:[%s12755_s20 + $0x58] sm:$0xff]  ;;  %v1199_v31 = vsel %vm1187_vm1, %v12785_v14, 0.0  ;;  %v1201_v32 = vsel %vm1187_vm1, %v12788_v15, 0.0  ;;  %v1203_v37 = vsel %vm1187_vm1, %v12791_v16, 0.0 }
  0x18   : > { %v12806_v22 = vld [vmem:[%s12755_s20 + $0x60] sm:$0xff]  ;;  %v12809_v23 = vld [vmem:[%s12755_s20 + $0x68] sm:$0xff]  ;;  %v12812_v24 = vld [vmem:[%s12755_s20 + $0x70] sm:$0xff]  ;;  %v1192_v25 = vadd.f32 %v1191_v13, %v1190_v17  ;;  %v1205_v38 = vsel %vm1187_vm1, %v12794_v18, 0.0  ;;  %v1207_v39 = vsel %vm1187_vm1, %v12797_v19, 0.0  ;;  %v1209_v43 = vsel %vm1187_vm1, %v12800_v20, 0.0 }
  0x19   : > { %v12817_v27 = vld [vmem:[%s12755_s20 + $0x78] sm:$0xff]  ;;  %v12820_v28 = vld [vmem:[%s12755_s20 + $0x80] sm:$0xff]  ;;  %v12823_v29 = vld [vmem:[%s12755_s20 + $0x88] sm:$0xff]  ;;  %v1211_v44 = vsel %vm1187_vm1, %v12806_v22, 0.0  ;;  %v1213_v45 = vsel %vm1187_vm1, %v12809_v23, 0.0  ;;  %v1215_v49 = vsel %vm1187_vm1, %v12812_v24, 0.0 }
  0x1a   : > { %v12832_v33 = vld [vmem:[%s12755_s20 + $0x90] sm:$0xff]  ;;  %v12835_v34 = vld [vmem:[%s12755_s20 + $0x98] sm:$0xff]  ;;  %v12838_v35 = vld [vmem:[%s12755_s20 + $0xa0] sm:$0xff]  ;;  %v1194_v36 = vadd.f32 %v1193_v21, %v1192_v25  ;;  %v1217_v50 = vsel %vm1187_vm1, %v12817_v27, 0.0  ;;  %v1219_v51 = vsel %vm1187_vm1, %v12820_v28, 0.0  ;;  %v1221_v52 = vsel %vm1187_vm1, %v12823_v29, 0.0 }
  0x1b   : > { %v12847_v40 = vld [vmem:[%s12755_s20 + $0xa8] sm:$0xff]  ;;  %v12850_v41 = vld [vmem:[%s12755_s20 + $0xb0] sm:$0xff]  ;;  %v12853_v42 = vld [vmem:[%s12755_s20 + $0xb8] sm:$0xff]  ;;  %v1223_v53 = vsel %vm1187_vm1, %v12832_v33, 0.0  ;;  %v1225_v54 = vsel %vm1187_vm1, %v12835_v34, 0.0  ;;  %v1227_v55 = vsel %vm1187_vm1, %v12838_v35, 0.0 }
  0x1c   : > { %v12862_v46 = vld [vmem:[%s12755_s20 + $0xc0] sm:$0xff]  ;;  %v12865_v47 = vld [vmem:[%s12755_s20 + $0xc8] sm:$0xff]  ;;  %v1196_v48 = vadd.f32 %v1195_v26, %v1194_v36  ;;  %v1229_v57 = vsel %vm1187_vm1, %v12847_v40, 0.0  ;;  %v1231_v58 = vsel %vm1187_vm1, %v12850_v41, 0.0  ;;  %v1233_v59 = vsel %vm1187_vm1, %v12853_v42, 0.0 }
  0x1d   : > { %17256 = vst [vmem:[#allocation3_spill] sm:$0xff] %v12862_v46  ;;  %17257 = vst [vmem:[#allocation4_spill] sm:$0xff] %v12865_v47  ;;  %v1235_v60 = vsel %vm1187_vm1, %v12862_v46, 0.0  ;;  %v1237_v61 = vsel %vm1187_vm1, %v12865_v47, 0.0 }
  0x1e   : > { %v1198_v56 = vadd.f32 %v1197_v30, %v1196_v48 }
  0x20   : > { %v1200_v62 = vadd.f32 %v1199_v31, %v1198_v56 }
  0x22   : > { %v1202_v63 = vadd.f32 %v1201_v32, %v1200_v62  ;;  %v12892_v32 = vld [vmem:[%s12755_s20 + $0xd0] sm:$0xff] }
  0x24   : > { %v1204_v11 = vadd.f32 %v1203_v37, %v1202_v63 }
  0x26   : > { %v1206_v12 = vadd.f32 %v1205_v38, %v1204_v11 }
  0x28   : > { %v1208_v13 = vadd.f32 %v1207_v39, %v1206_v12  ;;  %v12895_v39 = vld [vmem:[%s12755_s20 + $0xd8] sm:$0xff] }
  0x2a   : > { %v1210_v17 = vadd.f32 %v1209_v43, %v1208_v13 }
  0x2c   : > { %v1212_v21 = vadd.f32 %v1211_v44, %v1210_v17  ;;  %v1239_v44 = vsel %vm1187_vm1, %v12892_v32, 0.0  ;;  %v17258_v17 = vmov 0.0  }
  0x2e   : > { %v1214_v25 = vadd.f32 %v1213_v45, %v1212_v21  ;;  %v12900_v45 = vld [vmem:[%s12755_s20 + $0xe0] sm:$0xff]  ;;  %v537_v21 = vlaneseq }
  0x30   : > { %v1216_v26 = vadd.f32 %v1215_v49, %v1214_v25  ;;  %v12931_v25 = vshrl.u32 %v537_v21, 7 }
  0x32   : > { %v1218_v30 = vadd.f32 %v1217_v50, %v1216_v26  ;;  %v1241_v50 = vsel %vm1187_vm1, %v12895_v39, 0.0  ;;  %17259 = vst [vmem:[#allocation5_spill] sm:$0xff] %v12931_v25 }
  0x34   : > { %v1220_v36 = vadd.f32 %v1219_v51, %v1218_v30  ;;  %v12910_v51 = vld [vmem:[%s12755_s20 + $0xf0] sm:$0xff]  ;;  %v12934_v30 = vsub.s32 0, %v12931_v25 }
  0x35   : > { %v1247_v56 = vsel %vm1187_vm1, %v12910_v51, 0.0 }
  0x36   : > { %v1222_v48 = vadd.f32 %v1221_v52, %v1220_v36  ;;  %17260 = vst [vmem:[#allocation6_spill] sm:$0xff] %v12934_v30 }
  0x38   : > { %v1224_v1 = vadd.f32 %v1223_v53, %v1222_v48 }
  0x3a   : > { %v1226_v46 = vadd.f32 %v1225_v54, %v1224_v1  ;;  %v12905_v1 = vld [vmem:[%s12755_s20 + $0xe8] sm:$0xff]  ;;  %v12915_v54 = vld [vmem:[%s12755_s20 + $0xf8] sm:$0xff] }
  0x3b   : > { %v1245_v53 = vsel %vm1187_vm1, %v12905_v1, 0.0 }
  0x3c   : > { %v1228_v47 = vadd.f32 %v1227_v55, %v1226_v46 }
  0x3e   : > { %v1230_v31 = vadd.f32 %v1229_v57, %v1228_v47  ;;  %v1243_v47 = vsel %vm1187_vm1, %v12900_v45, 0.0 }
  0x40   : > { %v1232_v37 = vadd.f32 %v1231_v58, %v1230_v31  ;;  %v1249_v58 = vsel %vm1187_vm1, %v12915_v54, 0.0 }
  0x42   : > { %v1234_v38 = vadd.f32 %v1233_v59, %v1232_v37 }
  0x44   : > { %v1236_v43 = vadd.f32 %v1235_v60, %v1234_v38 }
  0x46   : > { %v1238_v49 = vadd.f32 %v1237_v61, %v1236_v43 }
  0x48   : > { %v1240_v46 = vadd.f32 %v1239_v44, %v1238_v49 }
  0x4a   : > { %v1242_v52 = vadd.f32 %v1241_v50, %v1240_v46 }
  0x4c   : > { %v1244_v55 = vadd.f32 %v1243_v47, %v1242_v52 }
  0x4e   : > { %v1246_v57 = vadd.f32 %v1245_v53, %v1244_v55 }
  0x50   : > { %v1248_v59 = vadd.f32 %v1247_v56, %v1246_v57 }
  0x52   : > { %v1250_v60 = vadd.f32 %v1249_v58, %v1248_v59 }
  0x54   : > { %v1251_v61 = vrot.slane %v1250_v60, 4 }
  0x56   : > { %v1252_v62 = vadd.f32 %v1251_v61, %v1250_v60 }
  0x58   : > { %v1253_v63 = vrot.slane %v1252_v62, 2 }
  0x5a   : > { %v1254_v11 = vadd.f32 %v1253_v63, %v1252_v62 }
  0x5c   : > { %v1255_v12 = vrot.slane %v1254_v11, 1 }
  0x5e   : > { %v1256_v13 = vadd.f32 %v1255_v12, %v1254_v11 }
  0x60   : > { %11261 = vmatmul.mubr.msk.f32.vlgmr.msra.gmra.mxu1 %vm1187_vm1, %v1256_v13 }
  0x61   : > { %11264 = vmatpush3.msra.mxu1 %v12723_v0  ;;  %11271 = vmatprep.mubr.msk.f32.mxu1 %vm12625_vm0, %v17258_v17 }
  0x62   : > { %11265 = vmatprep.subr.mxu1 %v17258_v17 }
  0x63   : > { %11266 = vmatpush3.msra.mxu1 %v12729_v2 }
  0x64   : > { %11267 = vmatprep.subr.mxu1 %v17258_v17 }
  0x65   : > { %11268 = vmatpush3.msra.mxu1 %v12737_v3 }
  0x66   : > { %11269 = vmatprep.subr.mxu1 %v17258_v17 }
  0x67   : > { %11270 = vmatpush3.msra.mxu1 %v12745_v4 }
 0x120   : > { %v1330_v26 = vpop.f32.mrf.mxu1 }
 0x121   : > { %v12937_v36 = vrot.slane %v1330_v26, %v12934_v30 }
 0x122   : > { %v11262_v0 = vpop.f32.mrf.mxu1 }
 0x123   : > { %v12941_v2 = vsub.f32 %v12759_v5, %v12937_v36  ;;  %v12945_v3 = vsub.f32 %v12762_v6, %v12937_v36  ;;  %v12949_v4 = vsub.f32 %v12765_v7, %v12937_v36  ;;  %v12953_v48 = vsub.f32 %v12769_v8, %v12937_v36 }
 0x124   : > { %v12961_v5 = vsub.f32 %v12772_v9, %v12937_v36  ;;  %v12967_v7 = vsub.f32 %v12775_v10, %v12937_v36  ;;  %v12975_v49 = vsub.f32 %v12785_v14, %v12937_v36  ;;  %v12982_v10 = vsub.f32 %v12788_v15, %v12937_v36 }
 0x125   : > { %v1370_v31 = vmul.f32 %v12941_v2, %v12941_v2  ;;  %v1371_v37 = vmul.f32 %v12945_v3, %v12945_v3  ;;  %v1372_v6 = vmul.f32 %v12949_v4, %v12949_v4  ;;  %v1373_v8 = vmul.f32 %v12953_v48, %v12953_v48 }
 0x126   : > { %v1374_v9 = vmul.f32 %v12961_v5, %v12961_v5  ;;  %v1375_v47 = vmul.f32 %v12967_v7, %v12967_v7  ;;  %v12989_v14 = vsub.f32 %v12791_v16, %v12937_v36  ;;  %v1376_v55 = vmul.f32 %v12975_v49, %v12975_v49 }
 0x127   : > { %v1402_v38 = vsel %vm1187_vm1, %v1370_v31, 0.0  ;;  %v1403_v43 = vsel %vm1187_vm1, %v1371_v37, 0.0  ;;  %v1405_v50 = vsel %vm1187_vm1, %v1372_v6, 0.0  ;;  %v1407_v52 = vsel %vm1187_vm1, %v1373_v8, 0.0 }
 0x128   : > { %v1404_v44 = vadd.f32 %v1403_v43, %v1402_v38  ;;  %v1409_v56 = vsel %vm1187_vm1, %v1374_v9, 0.0  ;;  %v12996_v15 = vsub.f32 %v12794_v18, %v12937_v36  ;;  %v1377_v58 = vmul.f32 %v12982_v10, %v12982_v10 }
 0x129   : > { %v1411_v59 = vsel %vm1187_vm1, %v1375_v47, 0.0  ;;  %v13003_v16 = vsub.f32 %v12797_v19, %v12937_v36  ;;  %v1378_v61 = vmul.f32 %v12989_v14, %v12989_v14  ;;  %v1413_v62 = vsel %vm1187_vm1, %v1376_v55, 0.0 }
 0x12a   : > { %v1406_v46 = vadd.f32 %v1405_v50, %v1404_v44  ;;  %v13010_v18 = vsub.f32 %v12800_v20, %v12937_v36  ;;  %v1379_v11 = vmul.f32 %v12996_v15, %v12996_v15  ;;  %v1415_v12 = vsel %vm1187_vm1, %v1377_v58, 0.0 }
 0x12b   : > { %v13017_v19 = vsub.f32 %v12806_v22, %v12937_v36  ;;  %v1380_v21 = vmul.f32 %v13003_v16, %v13003_v16  ;;  %v1417_v26 = vsel %vm1187_vm1, %v1378_v61, 0.0  ;;  %v13024_v20 = vsub.f32 %v12809_v23, %v12937_v36 }
 0x12c   : > { %v1408_v53 = vadd.f32 %v1407_v52, %v1406_v46  ;;  %v1381_v31 = vmul.f32 %v13010_v18, %v13010_v18  ;;  %v1419_v37 = vsel %vm1187_vm1, %v1379_v11, 0.0  ;;  %v13031_v22 = vsub.f32 %v12812_v24, %v12937_v36 }
 0x12d   : > { %v1382_v8 = vmul.f32 %v13017_v19, %v13017_v19  ;;  %v1421_v38 = vsel %vm1187_vm1, %v1380_v21, 0.0  ;;  %v13038_v23 = vsub.f32 %v12817_v27, %v12937_v36  ;;  %v1383_v44 = vmul.f32 %v13024_v20, %v13024_v20 }
 0x12e   : > { %v1410_v57 = vadd.f32 %v1409_v56, %v1408_v53  ;;  %v1423_v9 = vsel %vm1187_vm1, %v1381_v31, 0.0  ;;  %v13045_v24 = vsub.f32 %v12820_v28, %v12937_v36  ;;  %v1384_v46 = vmul.f32 %v13031_v22, %v13031_v22 }
 0x12f   : > { %v1425_v47 = vsel %vm1187_vm1, %v1382_v8, 0.0  ;;  %v13052_v27 = vsub.f32 %v12823_v29, %v12937_v36  ;;  %v1385_v53 = vmul.f32 %v13038_v23, %v13038_v23  ;;  %v1427_v55 = vsel %vm1187_vm1, %v1383_v44, 0.0 }
 0x130   : > { %v1412_v60 = vadd.f32 %v1411_v59, %v1410_v57  ;;  %v13059_v28 = vsub.f32 %v12832_v33, %v12937_v36  ;;  %v1386_v57 = vmul.f32 %v13045_v24, %v13045_v24  ;;  %v1429_v58 = vsel %vm1187_vm1, %v1384_v46, 0.0  ;;  %v17262_v46 = vld [vmem:[#allocation4_spill] sm:$0xff] }
 0x131   : > { %v13066_v29 = vsub.f32 %v12835_v34, %v12937_v36  ;;  %v1431_v61 = vsel %vm1187_vm1, %v1385_v53, 0.0  ;;  %v13073_v33 = vsub.f32 %v12838_v35, %v12937_v36  ;;  %v13080_v34 = vsub.f32 %v12847_v40, %v12937_v36 }
 0x132   : > { %v1414_v63 = vadd.f32 %v1413_v62, %v1412_v60  ;;  %v1387_v60 = vmul.f32 %v13052_v27, %v13052_v27  ;;  %v1433_v11 = vsel %vm1187_vm1, %v1386_v57, 0.0  ;;  %v13087_v35 = vsub.f32 %v12850_v41, %v12937_v36 }
 0x133   : > { %v13094_v40 = vsub.f32 %v12853_v42, %v12937_v36  ;;  %v13108_v42 = vsub.f32 %v17262_v46, %v12937_v36 }
 0x134   : > { %v1416_v13 = vadd.f32 %v1415_v12, %v1414_v63  ;;  %v1388_v63 = vmul.f32 %v13059_v28, %v13059_v28  ;;  %v1435_v21 = vsel %vm1187_vm1, %v1387_v60, 0.0  ;;  %v1392_v44 = vmul.f32 %v13087_v35, %v13087_v35 }
 0x135   : > { %v1395_v60 = vmul.f32 %v13108_v42, %v13108_v42 }
 0x136   : > { %v1418_v0 = vadd.f32 %v1417_v26, %v1416_v13  ;;  %v1389_v13 = vmul.f32 %v13066_v29, %v13066_v29  ;;  %v1437_v31 = vsel %vm1187_vm1, %v1388_v63, 0.0  ;;  %v1445_v57 = vsel %vm1187_vm1, %v1392_v44, 0.0 }
 0x138   : > { %v1420_v6 = vadd.f32 %v1419_v37, %v1418_v0  ;;  %v1390_v0 = vmul.f32 %v13073_v33, %v13073_v33  ;;  %v1439_v8 = vsel %vm1187_vm1, %v1389_v13, 0.0 }
 0x13a   : > { %v1422_v43 = vadd.f32 %v1421_v38, %v1420_v6  ;;  %v1391_v6 = vmul.f32 %v13080_v34, %v13080_v34 }
 0x13c   : > { %v1424_v50 = vadd.f32 %v1423_v9, %v1422_v43  ;;  %v17261_v43 = vld [vmem:[#allocation3_spill] sm:$0xff]  ;;  %v1441_v9 = vsel %vm1187_vm1, %v1390_v0, 0.0 }
 0x13d   : > { %v13101_v41 = vsub.f32 %v17261_v43, %v12937_v36 }
 0x13e   : > { %v1426_v52 = vadd.f32 %v1425_v47, %v1424_v50  ;;  %v1393_v47 = vmul.f32 %v13094_v40, %v13094_v40 }
 0x140   : > { %v1428_v56 = vadd.f32 %v1427_v55, %v1426_v52  ;;  %v1443_v52 = vsel %vm1187_vm1, %v1391_v6, 0.0  ;;  %v13115_v55 = vsub.f32 %v12892_v32, %v12937_v36  ;;  %v13129_v32 = vsub.f32 %v12900_v45, %v12937_v36 }
 0x141   : > { %v13143_v45 = vsub.f32 %v12910_v51, %v12937_v36 }
 0x142   : > { %v1430_v59 = vadd.f32 %v1429_v58, %v1428_v56  ;;  %v1394_v56 = vmul.f32 %v13101_v41, %v13101_v41  ;;  %v1396_v63 = vmul.f32 %v13115_v55, %v13115_v55  ;;  %v1398_v0 = vmul.f32 %v13129_v32, %v13129_v32 }
 0x143   : > { %v1400_v51 = vmul.f32 %v13143_v45, %v13143_v45 }
 0x144   : > { %v1432_v62 = vadd.f32 %v1431_v61, %v1430_v59  ;;  %v13122_v59 = vsub.f32 %v12895_v39, %v12937_v36  ;;  %v1447_v61 = vsel %vm1187_vm1, %v1393_v47, 0.0  ;;  %v13136_v39 = vsub.f32 %v12905_v1, %v12937_v36 }
 0x145   : > { %v13150_v1 = vsub.f32 %v12915_v54, %v12937_v36  ;;  %v1457_v43 = vsel %vm1187_vm1, %v1398_v0, 0.0  ;;  %v1461_v54 = vsel %vm1187_vm1, %v1400_v51, 0.0  ;;  %v1545_v51 = vld [vmem:[%s17181_s2] sm:$0x1] }
 0x146   : > { %v1434_v12 = vadd.f32 %v1433_v11, %v1432_v62  ;;  %v1449_v11 = vsel %vm1187_vm1, %v1394_v56, 0.0  ;;  %v1397_v13 = vmul.f32 %v13122_v59, %v13122_v59  ;;  %v1399_v6 = vmul.f32 %v13136_v39, %v13136_v39 }
 0x148   : > { %v1436_v26 = vadd.f32 %v1435_v21, %v1434_v12  ;;  %v1451_v21 = vsel %vm1187_vm1, %v1395_v60, 0.0 }
 0x14a   : > { %v1438_v37 = vadd.f32 %v1437_v31, %v1436_v26  ;;  %v1453_v31 = vsel %vm1187_vm1, %v1396_v63, 0.0  ;;  %v12055_v63 = vld [vmem:[%s17184_s5 + $0x48] sm:$0xff]  }
 0x14b   : > { %11274 = vmatprep.subr.bf16.mxu0 %v12055_v63 }
 0x14c   : > { %v1440_v38 = vadd.f32 %v1439_v8, %v1438_v37  ;;  %v1455_v8 = vsel %vm1187_vm1, %v1397_v13, 0.0  ;;  %v12058_v13 = vld [vmem:[%s17184_s5 + $0x10] sm:$0xff]   ;;  %11275 = vmatpush3.bf16.msra.mxu0 %v12055_v63 }
 0x14e   : > { %v1442_v50 = vadd.f32 %v1441_v9, %v1440_v38  ;;  %v1401_v9 = vmul.f32 %v13150_v1, %v13150_v1 }
 0x150   : > { %v1444_v53 = vadd.f32 %v1443_v52, %v1442_v50  ;;  %v1459_v50 = vsel %vm1187_vm1, %v1399_v6, 0.0  ;;  %v1463_v47 = vsel %vm1187_vm1, %v1401_v9, 0.0 }
 0x152   : > { %v1446_v58 = vadd.f32 %v1445_v57, %v1444_v53 }
 0x154   : > { %v1448_v62 = vadd.f32 %v1447_v61, %v1446_v58 }
 0x156   : > { %v1450_v12 = vadd.f32 %v1449_v11, %v1448_v62  ;;  %v12626_v62 = vmov 0   ;;  %v12056_v11 = vld [vmem:[%s17184_s5 + $0x18] sm:$0xff]  }
 0x157   : > { %1148 = vst.msk [vmem:[#allocation2 + $0x4] sm:$0xf] %vm1146_vm2, %v12626_v62  ;;  %1149 = vst.msk [vmem:[#allocation2 + $0x8] sm:$0xf] %vm1146_vm2, %v12626_v62  ;;  %11310 = vmatprep.subr.bf16.mxu1 %v12056_v11 }
 0x158   : > { %v1452_v26 = vadd.f32 %v1451_v21, %v1450_v12  ;;  %1150 = vst.msk [vmem:[#allocation2 + $0xc] sm:$0xf] %vm1146_vm2, %v12626_v62  ;;  %1151 = vst.msk [vmem:[#allocation2 + $0x90] sm:$0xf] %vm1146_vm2, %v12626_v62  ;;  %v12057_v12 = vld [vmem:[%s17184_s5 + $0x40] sm:$0xff]  }
 0x159   : > { %1152 = vst.msk [vmem:[#allocation2 + $0x94] sm:$0xf] %vm1146_vm2, %v12626_v62  ;;  %1153 = vst.msk [vmem:[#allocation2 + $0x98] sm:$0xf] %vm1146_vm2, %v12626_v62  ;;  %11276 = vmatprep.subr.bf16.mxu0 %v12057_v12 }
 0x15a   : > { %v1454_v37 = vadd.f32 %v1453_v31, %v1452_v26  ;;  %11277 = vmatpush3.bf16.msra.mxu0 %v12057_v12  ;;  %v13186_v31 = vld [vmem:[%s17184_s5 + $0x78] sm:$0xff]  }
 0x15b   : > { %11346 = vmatprep.subr.bf16.mxu0 %v13186_v31 }
 0x15c   : > { %v1456_v38 = vadd.f32 %v1455_v8, %v1454_v37  ;;  %v13192_v37 = vld [vmem:[%s17184_s5 + $0x38] sm:$0xff]  }
 0x15e   : > { %v1458_v44 = vadd.f32 %v1457_v43, %v1456_v38  ;;  %v1975_v21 = vld [vmem:[#allocation2 + $0x8] sm:$0xf] }
 0x15f   : > { %v1976_v26 = vld [vmem:[#allocation2 + $0xc] sm:$0xf] }
 0x160   : > { %v1460_v46 = vadd.f32 %v1459_v50, %v1458_v44  ;;  %v10122_v0 = vcombine.low %v1975_v21, %v1976_v26  ;;  %v13204_v50 = vld [vmem:[%s17182_s3] ss:$0 sm:$0xff] }
 0x162   : > { %v1462_v36 = vadd.f32 %v1461_v54, %v1460_v46 }
 0x164   : > { %v1464_v52 = vadd.f32 %v1463_v47, %v1462_v36 }
 0x166   : > { %v1465_v53 = vrot.slane %v1464_v52, 4 }
 0x168   : > { %v1466_v56 = vadd.f32 %v1465_v53, %v1464_v52 }
 0x16a   : > { %v1467_v57 = vrot.slane %v1466_v56, 2 }
 0x16c   : > { %v1468_v58 = vadd.f32 %v1467_v57, %v1466_v56 }
 0x16e   : > { %v1469_v60 = vrot.slane %v1468_v58, 1 }
 0x170   : > { %v1470_v61 = vadd.f32 %v1469_v60, %v1468_v58 }
 0x172   : > { %11272 = vmatmul.mubr.msk.f32.vlgmr.msra.gmra.mxu1 %vm1187_vm1, %v1470_v61 }
 0x173   : > { %11311 = vmatpush3.bf16.msra.mxu1 %v12056_v11  ;;  %11314 = vmatprep.mubr.msk.bf16.mxu1 %vm1187_vm1, %v10122_v0 }
 0x174   : > { %11312 = vmatprep.subr.bf16.mxu1 %v12058_v13 }
 0x177   : > { %11313 = vmatpush3.bf16.msra.mxu1 %v12058_v13 }
 0x178   : > { %11382 = vmatprep.subr.bf16.mxu1 %v13192_v37 }
 0x232   : > { %v1540_v6 = vpop.f32.mrf.mxu1 }
 0x233   : > { %v1541_v8 = vadd.f32 1e-06, %v1540_v6 }
 0x234   : > { %v11273_v38 = vpop.f32.mrf.mxu1 }
 0x235   : > { %12316 = vrsqrt.f32 %v1541_v8 }
 0x242   : > { %v12317_v43 = vpop.eup %12316 }
 0x243   : > { %v1546_v44 = vmul.f32 %v12317_v43, %v1545_v51 }
 0x245   : > { %v13199_v9 = vrot.slane %v1546_v44, %v12934_v30 }
 0x247   : > { %v1571_v46 = vmul.f32 %v13199_v9, %v13073_v33  ;;  %v1572_v54 = vmul.f32 %v13199_v9, %v13080_v34  ;;  %v1573_v36 = vmul.f32 %v13199_v9, %v13087_v35  ;;  %v1574_v47 = vmul.f32 %v13199_v9, %v13094_v40 }
 0x248   : > { %v1575_v52 = vmul.f32 %v13199_v9, %v13101_v41  ;;  %v1576_v53 = vmul.f32 %v13199_v9, %v13108_v42  ;;  %v1577_v56 = vmul.f32 %v13199_v9, %v13115_v55  ;;  %v1578_v33 = vmul.f32 %v13199_v9, %v13122_v59 }
 0x249   : > { %v1579_v34 = vmul.f32 %v13199_v9, %v13129_v32  ;;  %v1580_v35 = vmul.f32 %v13199_v9, %v13136_v39  ;;  %v1581_v40 = vmul.f32 %v13199_v9, %v13143_v45  ;;  %v1582_v41 = vmul.f32 %v13199_v9, %v13150_v1 }
 0x24a   : > { %v13231_v42 = vadd.f32 %v13204_v50, %v1571_v46  ;;  %v13234_v55 = vadd.f32 %v13204_v50, %v1572_v54  ;;  %v13237_v59 = vadd.f32 %v13204_v50, %v1573_v36  ;;  %v13240_v32 = vadd.f32 %v13204_v50, %v1574_v47 }
 0x24b   : > { %v13243_v39 = vadd.f32 %v13204_v50, %v1575_v52  ;;  %v13246_v45 = vadd.f32 %v13204_v50, %v1576_v53  ;;  %v13249_v1 = vadd.f32 %v13204_v50, %v1577_v56  ;;  %v13252_v57 = vadd.f32 %v13204_v50, %v1578_v33 }
 0x24c   : > { %v13255_v58 = vadd.f32 %v13204_v50, %v1579_v34  ;;  %v13258_v60 = vadd.f32 %v13204_v50, %v1580_v35  ;;  %v13261_v61 = vadd.f32 %v13204_v50, %v1581_v40  ;;  %v13264_v62 = vadd.f32 %v13204_v50, %v1582_v41 }
 0x24d   : > { %v1642_v63 = vsub.f32 0.0, %v13231_v42  ;;  %v1643_v11 = vsub.f32 0.0, %v13234_v55  ;;  %v1644_v12 = vsub.f32 0.0, %v13237_v59  ;;  %v1645_v13 = vsub.f32 0.0, %v13240_v32 }
 0x24e   : > { %v1646_v21 = vsub.f32 0.0, %v13243_v39  ;;  %v1647_v26 = vsub.f32 0.0, %v13246_v45  ;;  %v1648_v0 = vsub.f32 0.0, %v13249_v1  ;;  %v1649_v6 = vsub.f32 0.0, %v13252_v57 }
 0x24f   : > { %v1650_v8 = vsub.f32 0.0, %v13255_v58  ;;  %v1651_v38 = vsub.f32 0.0, %v13258_v60  ;;  %v1694_v51 = vmul.f32 1.442695, %v1642_v63  ;;  %v1696_v43 = vmul.f32 1.442695, %v1643_v11 }
 0x250   : > { %v1652_v44 = vsub.f32 0.0, %v13261_v61  ;;  %v1698_v46 = vmul.f32 1.442695, %v1644_v12  ;;  %v1700_v54 = vmul.f32 1.442695, %v1645_v13  ;;  %v1551_v36 = vmul.f32 %v13199_v9, %v12941_v2 }
 0x251   : > { %v1653_v47 = vsub.f32 0.0, %v13264_v62  ;;  %12318 = vpow2.f32 %v1694_v51  ;;  %v1702_v52 = vmul.f32 1.442695, %v1646_v21  ;;  %v1704_v53 = vmul.f32 1.442695, %v1647_v26 }
 0x252   : > { %12320 = vpow2.f32 %v1696_v43  ;;  %v1706_v56 = vmul.f32 1.442695, %v1648_v0  ;;  %v1708_v33 = vmul.f32 1.442695, %v1649_v6  ;;  %v1710_v34 = vmul.f32 1.442695, %v1650_v8 }
 0x253   : > { %12322 = vpow2.f32 %v1698_v46  ;;  %v1712_v35 = vmul.f32 1.442695, %v1651_v38  ;;  %v1552_v40 = vmul.f32 %v13199_v9, %v12945_v3  ;;  %v1553_v41 = vmul.f32 %v13199_v9, %v12949_v4 }
 0x254   : > { %12324 = vpow2.f32 %v1700_v54  ;;  %v13285_v2 = vadd.f32 %v13204_v50, %v1551_v36  ;;  %v1554_v63 = vmul.f32 %v13199_v9, %v12953_v48  ;;  %v1555_v11 = vmul.f32 %v13199_v9, %v12961_v5 }
 0x255   : > { %12326 = vpow2.f32 %v1702_v52  ;;  %v13292_v12 = vadd.f32 %v13204_v50, %v1552_v40  ;;  %v13295_v13 = vadd.f32 %v13204_v50, %v1553_v41  ;;  %v1556_v3 = vmul.f32 %v13199_v9, %v12967_v7 }
 0x256   : > { %12328 = vpow2.f32 %v1704_v53  ;;  %v1622_v4 = vsub.f32 0.0, %v13285_v2  ;;  %v13301_v21 = vadd.f32 %v13204_v50, %v1554_v63  ;;  %v13304_v48 = vadd.f32 %v13204_v50, %v1555_v11 }
 0x257   : > { %12330 = vpow2.f32 %v1706_v56  ;;  %v1714_v5 = vmul.f32 1.442695, %v1652_v44  ;;  %v1623_v26 = vsub.f32 0.0, %v13292_v12  ;;  %v1624_v0 = vsub.f32 0.0, %v13295_v13 }
 0x258   : > { %12332 = vpow2.f32 %v1708_v33  ;;  %v1716_v6 = vmul.f32 1.442695, %v1653_v47  ;;  %v1625_v8 = vsub.f32 0.0, %v13301_v21  ;;  %v13310_v7 = vadd.f32 %v13204_v50, %v1556_v3 }
 0x259   : > { %12334 = vpow2.f32 %v1710_v34  ;;  %v1654_v38 = vmul.f32 1.442695, %v1622_v4  ;;  %v1656_v51 = vmul.f32 1.442695, %v1623_v26  ;;  %v1626_v43 = vsub.f32 0.0, %v13304_v48 }
 0x25a   : > { %12336 = vpow2.f32 %v1712_v35  ;;  %v1557_v44 = vmul.f32 %v13199_v9, %v12975_v49  ;;  %v1658_v46 = vmul.f32 1.442695, %v1624_v0  ;;  %v1558_v54 = vmul.f32 %v13199_v9, %v12982_v10 }
 0x25b   : > { %12338 = vpow2.f32 %v1714_v5  ;;  %v1559_v36 = vmul.f32 %v13199_v9, %v12989_v14  ;;  %v1660_v47 = vmul.f32 1.442695, %v1625_v8  ;;  %v1627_v52 = vsub.f32 0.0, %v13310_v7 }
 0x25c   : > { %12340 = vpow2.f32 %v1716_v6  ;;  %v13321_v53 = vadd.f32 %v13204_v50, %v1557_v44  ;;  %v13325_v56 = vmul.f32 %v13199_v9, %v13059_v28  ;;  %v1560_v49 = vmul.f32 %v13199_v9, %v12996_v15 }
 0x25d   : > { %12342 = vpow2.f32 %v1654_v38  ;;  %v1561_v10 = vmul.f32 %v13199_v9, %v13003_v16  ;;  %v13333_v14 = vmul.f32 %v13199_v9, %v13066_v29  ;;  %v13336_v34 = vadd.f32 %v13204_v50, %v1558_v54 }
 0x25e   : > { %v12319_v33 = vpop.eup %12318  ;;  %12344 = vpow2.f32 %v1656_v51  ;;  %v13339_v35 = vadd.f32 %v13204_v50, %v1559_v36  ;;  %v13341_v41 = vmul.f32 1.442695, %v1626_v43  ;;  %v1628_v15 = vsub.f32 0.0, %v13321_v53 }
 0x25f   : > { %v12321_v28 = vpop.eup %12320  ;;  %v1738_v40 = vadd.f32 1.0, %v12319_v33  ;;  %12346 = vpow2.f32 %v1658_v46  ;;  %v13344_v11 = vmul.f32 1.442695, %v1627_v52  ;;  %v1562_v29 = vmul.f32 %v13199_v9, %v13010_v18 }
 0x260   : > { %v12323_v16 = vpop.eup %12322  ;;  %v1739_v63 = vadd.f32 1.0, %v12321_v28  ;;  %12348 = vpow2.f32 %v1660_v47  ;;  %v13349_v5 = vadd.f32 %v13204_v50, %v1560_v49  ;;  %v13352_v26 = vadd.f32 %v13204_v50, %v1561_v10 }
 0x261   : > { %v12325_v3 = vpop.eup %12324  ;;  %v1740_v4 = vadd.f32 1.0, %v12323_v16  ;;  %12350 = vrcp.f32 %v1738_v40  ;;  %v1629_v8 = vsub.f32 0.0, %v13336_v34  ;;  %v1630_v38 = vsub.f32 0.0, %v13339_v35 }
 0x262   : > { %v12327_v0 = vpop.eup %12326  ;;  %v1741_v6 = vadd.f32 1.0, %v12325_v3  ;;  %12352 = vrcp.f32 %v1739_v63  ;;  %v13356_v18 = vmul.f32 1.442695, %v1628_v15  ;;  %v1563_v44 = vmul.f32 %v13199_v9, %v13017_v19 }
 0x263   : > { %v12329_v51 = vpop.eup %12328  ;;  %v1742_v43 = vadd.f32 1.0, %v12327_v0  ;;  %12354 = vrcp.f32 %v1740_v4  ;;  %v13361_v36 = vadd.f32 %v13204_v50, %v1562_v29  ;;  %v1564_v47 = vmul.f32 %v13199_v9, %v13024_v20 }
 0x264   : > { %v12331_v46 = vpop.eup %12330  ;;  %v1743_v54 = vadd.f32 1.0, %v12329_v51  ;;  %12356 = vrcp.f32 %v1741_v6  ;;  %v1631_v10 = vsub.f32 0.0, %v13349_v5  ;;  %v13367_v33 = vadd.f32 %v13204_v50, %v1563_v44 }
 0x265   : > { %v12333_v52 = vpop.eup %12332  ;;  %v1744_v49 = vadd.f32 1.0, %v12331_v46  ;;  %12358 = vrcp.f32 %v1742_v43  ;;  %v13369_v19 = vmul.f32 1.442695, %v1629_v8  ;;  %v13372_v15 = vadd.f32 %v13204_v50, %v1564_v47 }
 0x266   : > { %v12335_v28 = vpop.eup %12334  ;;  %v1745_v40 = vadd.f32 1.0, %v12333_v52  ;;  %12360 = vrcp.f32 %v1743_v54  ;;  %v1632_v20 = vsub.f32 0.0, %v13352_v26  ;;  %v1565_v29 = vmul.f32 %v13199_v9, %v13031_v22 }
 0x267   : > { %v12337_v16 = vpop.eup %12336  ;;  %v1746_v63 = vadd.f32 1.0, %v12335_v28  ;;  %12362 = vrcp.f32 %v1744_v49  ;;  %v1633_v0 = vsub.f32 0.0, %v13361_v36  ;;  %v1566_v6 = vmul.f32 %v13199_v9, %v13038_v23 }
 0x268   : > { %v12339_v3 = vpop.eup %12338  ;;  %v1747_v4 = vadd.f32 1.0, %v12337_v16  ;;  %12364 = vrcp.f32 %v1745_v40  ;;  %v1634_v43 = vsub.f32 0.0, %v13367_v33  ;;  %v13382_v44 = vadd.f32 %v13204_v50, %v1565_v29 }
 0x269   : > { %v12341_v8 = vpop.eup %12340  ;;  %v1748_v51 = vadd.f32 1.0, %v12339_v3  ;;  %12366 = vrcp.f32 %v1746_v63  ;;  %v1635_v22 = vsub.f32 0.0, %v13372_v15  ;;  %v13386_v47 = vadd.f32 %v13204_v50, %v1566_v6 }
 0x26a   : > { %v12343_v46 = vpop.eup %12342  ;;  %v1749_v54 = vadd.f32 1.0, %v12341_v8  ;;  %12368 = vrcp.f32 %v1747_v4  ;;  %v1636_v49 = vsub.f32 0.0, %v13382_v44  ;;  %v1567_v28 = vmul.f32 %v13199_v9, %v13045_v24 }
 0x26b   : > { %17263 = vst [vmem:[#allocation3_spill] sm:$0xff] %v13386_v47  ;;  %v12345_v52 = vpop.eup %12344  ;;  %12370 = vrcp.f32 %v1748_v51  ;;  %v1718_v23 = vadd.f32 1.0, %v12343_v46  ;;  %v1637_v63 = vsub.f32 0.0, %v13386_v47  ;;  %v1568_v29 = vmul.f32 %v13199_v9, %v13052_v27 }
 0x26c   : > { %v12347_v40 = vpop.eup %12346  ;;  %12372 = vrcp.f32 %v1749_v54  ;;  %v1719_v16 = vadd.f32 1.0, %v12345_v52  ;;  %v1670_v6 = vmul.f32 1.442695, %v1630_v38  ;;  %v13395_v8 = vadd.f32 %v13204_v50, %v1567_v28 }
 0x26d   : > { %v12349_v3 = vpop.eup %12348  ;;  %v1720_v4 = vadd.f32 1.0, %v12347_v40  ;;  %12374 = vrcp.f32 %v1718_v23  ;;  %v1672_v30 = vmul.f32 1.442695, %v1631_v10  ;;  %v1674_v24 = vmul.f32 1.442695, %v1632_v20 }
 0x26e   : > { %v12351_v51 = vpop.eup %12350  ;;  %12376 = vrcp.f32 %v1719_v16  ;;  %v1721_v46 = vadd.f32 1.0, %v12349_v3  ;;  %v1676_v54 = vmul.f32 1.442695, %v1633_v0  ;;  %v1678_v52 = vmul.f32 1.442695, %v1634_v43 }
 0x26f   : > { %v12353_v25 = vpop.eup %12352  ;;  %12378 = vrcp.f32 %v1720_v4  ;;  %v1680_v17 = vmul.f32 1.442695, %v1635_v22  ;;  %v13397_v27 = vmul.f32 1.442695, %v1636_v49  ;;  %v13399_v9 = vmul.f32 1.442695, %v1637_v63 }
 0x270   : > { %v12355_v47 = vpop.eup %12354  ;;  %12380 = vrcp.f32 %v1721_v46  ;;  %v13402_v38 = vadd.f32 %v13204_v50, %v1568_v29  ;;  %v1638_v10 = vsub.f32 0.0, %v13395_v8  ;;  %v1802_v20 = vmul.f32 %v12351_v51, %v13231_v42 }
 0x271   : > { %v12357_v23 = vpop.eup %12356  ;;  %v1804_v28 = vmul.f32 %v12355_v47, %v13237_v59  ;;  %12382 = vpow2.f32 %v13341_v41  ;;  %v13412_v22 = vadd.f32 %v13204_v50, %v13325_v56  ;;  %v1803_v49 = vmul.f32 %v12353_v25, %v13234_v55 }
 0x272   : > { %v12359_v0 = vpop.eup %12358  ;;  %v1805_v43 = vmul.f32 %v12357_v23, %v13240_v32  ;;  %12384 = vpow2.f32 %v13344_v11  ;;  %v13419_v42 = vadd.f32 %v13204_v50, %v13333_v14  ;;  %v1639_v56 = vsub.f32 0.0, %v13402_v38 }
 0x273   : > { %v12361_v40 = vpop.eup %12360  ;;  %v1806_v59 = vmul.f32 %v12359_v0, %v13243_v39  ;;  %v10817_v47 = vpack.c.bf16 %v1804_v28, %v1804_v28  ;;  %12386 = vpow2.f32 %v13356_v18  ;;  %v10815_v39 = vpack.c.bf16 %v1802_v20, %v1802_v20 }
 0x274   : > { %v12363_v41 = vpop.eup %12362  ;;  %v1807_v32 = vmul.f32 %v12361_v40, %v13246_v45  ;;  %v10818_v11 = vpack.c.bf16 %v1805_v43, %v1805_v43  ;;  %12388 = vpow2.f32 %v13369_v19  ;;  %v10816_v45 = vpack.c.bf16 %v1803_v49, %v1803_v49 }
 0x275   : > { %v12365_v16 = vpop.eup %12364  ;;  %v1808_v25 = vmul.f32 %v12363_v41, %v13249_v1  ;;  %v10819_v55 = vpack.c.bf16 %v1806_v59, %v1806_v59  ;;  %1965 = vst.msk [vmem:[#allocation2 + $0x68] sm:$0xf] %vm1942_vm3, %v10817_v47  ;;  %12390 = vpow2.f32 %v1670_v6  ;;  %v1640_v1 = vsub.f32 0.0, %v13412_v22  ;;  %1963 = vst.msk [vmem:[#allocation2 + $0x60] sm:$0xf] %vm1942_vm3, %v10815_v39 }
 0x276   : > { %v12367_v18 = vpop.eup %12366  ;;  %v1809_v50 = vmul.f32 %v12365_v16, %v13252_v57  ;;  %v10820_v14 = vpack.c.bf16 %v1807_v32, %v1807_v32  ;;  %1966 = vst.msk [vmem:[#allocation2 + $0x6c] sm:$0xf] %vm1942_vm3, %v10818_v11  ;;  %12392 = vpow2.f32 %v1672_v30  ;;  %v1641_v30 = vsub.f32 0.0, %v13419_v42  ;;  %1964 = vst.msk [vmem:[#allocation2 + $0x64] sm:$0xf] %vm1942_vm3, %v10816_v45 }
 0x277   : > { %v12369_v63 = vpop.eup %12368  ;;  %v1810_v19 = vmul.f32 %v12367_v18, %v13255_v58  ;;  %v10821_v29 = vpack.c.bf16 %v1808_v25, %v1808_v25  ;;  %1967 = vst.msk [vmem:[#allocation2 + $0x70] sm:$0xf] %vm1942_vm3, %v10819_v55  ;;  %12394 = vpow2.f32 %v1674_v24  ;;  %v1686_v46 = vmul.f32 1.442695, %v1638_v10 }
 0x278   : > { %v12371_v3 = vpop.eup %12370  ;;  %v1811_v4 = vmul.f32 %v12369_v63, %v13258_v60  ;;  %v10822_v57 = vpack.c.bf16 %v1809_v50, %v1809_v50  ;;  %1968 = vst.msk [vmem:[#allocation2 + $0x74] sm:$0xf] %vm1942_vm3, %v10820_v14  ;;  %12396 = vpow2.f32 %v1676_v54  ;;  %v1688_v54 = vmul.f32 1.442695, %v1639_v56 }
 0x279   : > { %v12373_v58 = vpop.eup %12372  ;;  %v1812_v6 = vmul.f32 %v12371_v3, %v13261_v61  ;;  %v10823_v51 = vpack.c.bf16 %v1810_v19, %v1810_v19  ;;  %1969 = vst.msk [vmem:[#allocation2 + $0x78] sm:$0xf] %vm1942_vm3, %v10821_v29  ;;  %12398 = vpow2.f32 %v1678_v52  ;;  %v1690_v61 = vmul.f32 1.442695, %v1640_v1 }
 0x27a   : > { %v12375_v24 = vpop.eup %12374  ;;  %v1813_v23 = vmul.f32 %v12373_v58, %v13264_v62  ;;  %v10824_v60 = vpack.c.bf16 %v1811_v4, %v1811_v4  ;;  %1970 = vst.msk [vmem:[#allocation2 + $0x7c] sm:$0xf] %vm1942_vm3, %v10822_v57  ;;  %12400 = vpow2.f32 %v1680_v17  ;;  %v1692_v10 = vmul.f32 1.442695, %v1641_v30 }
 0x27b   : > { %v12377_v28 = vpop.eup %12376  ;;  %v10825_v20 = vpack.c.bf16 %v1812_v6, %v1812_v6  ;;  %1971 = vst.msk [vmem:[#allocation2 + $0x80] sm:$0xf] %vm1942_vm3, %v10823_v51  ;;  %v1782_v0 = vmul.f32 %v12375_v24, %v13285_v2  ;;  %12402 = vpow2.f32 %v13397_v27  ;;  %v12080_v24 = vld [vmem:[%s17184_s5 + $0x30] sm:$0xff]  }
 0x27c   : > { %v12379_v43 = vpop.eup %12378  ;;  %v10826_v52 = vpack.c.bf16 %v1813_v23, %v1813_v23  ;;  %1972 = vst.msk [vmem:[#allocation2 + $0x84] sm:$0xf] %vm1942_vm3, %v10824_v60  ;;  %v1783_v62 = vmul.f32 %v12377_v28, %v13292_v12  ;;  %12404 = vpow2.f32 %v13399_v9  ;;  %v12073_v28 = vld [vmem:[%s17184_s5 + $0x70] sm:$0xff]  }
 0x27d   : > { %v12381_v17 = vpop.eup %12380  ;;  %1973 = vst.msk [vmem:[#allocation2 + $0x88] sm:$0xf] %vm1942_vm3, %v10825_v20  ;;  %v1784_v49 = vmul.f32 %v12379_v43, %v13295_v13  ;;  %v10795_v40 = vpack.c.bf16 %v1782_v0, %v1782_v0  ;;  %12406 = vpow2.f32 %v1686_v46 }
 0x27e   : > { %v12383_v2 = vpop.eup %12382  ;;  %1974 = vst.msk [vmem:[#allocation2 + $0x8c] sm:$0xf] %vm1942_vm3, %v10826_v52  ;;  %v10796_v27 = vpack.c.bf16 %v1783_v62, %v1783_v62  ;;  %v1785_v59 = vmul.f32 %v12381_v17, %v13301_v21  ;;  %12408 = vpow2.f32 %v1688_v54  ;;  %v13480_v52 = vld [vmem:[%s17184_s5 + $0x68] sm:$0xff]  }
 0x27f   : > { %v12385_v47 = vpop.eup %12384  ;;  %v10797_v41 = vpack.c.bf16 %v1784_v49, %v1784_v49  ;;  %1943 = vst.msk [vmem:[#allocation2 + $0x10] sm:$0xf] %vm1942_vm3, %v10795_v40  ;;  %v1722_v12 = vadd.f32 1.0, %v12383_v2  ;;  %12410 = vpow2.f32 %v1690_v61  ;;  %v13486_v49 = vld [vmem:[%s17184_s5 + $0x8] sm:$0xff]  }
 0x280   : > { %v12387_v9 = vpop.eup %12386  ;;  %1944 = vst.msk [vmem:[#allocation2 + $0x14] sm:$0xf] %vm1942_vm3, %v10796_v27  ;;  %v10798_v32 = vpack.c.bf16 %v1785_v59, %v1785_v59  ;;  %v1723_v13 = vadd.f32 1.0, %v12385_v47  ;;  %12412 = vpow2.f32 %v1692_v10 }
 0x281   : > { %v12389_v11 = vpop.eup %12388  ;;  %1945 = vst.msk [vmem:[#allocation2 + $0x18] sm:$0xf] %vm1942_vm3, %v10797_v41  ;;  %12414 = vrcp.f32 %v1722_v12  ;;  %v1724_v56 = vadd.f32 1.0, %v12387_v9 }
 0x282   : > { %v12391_v16 = vpop.eup %12390  ;;  %1946 = vst.msk [vmem:[#allocation2 + $0x1c] sm:$0xf] %vm1942_vm3, %v10798_v32  ;;  %12416 = vrcp.f32 %v1723_v13  ;;  %v1725_v21 = vadd.f32 1.0, %v12389_v11 }
 0x283   : > { %v12393_v25 = vpop.eup %12392  ;;  %12418 = vrcp.f32 %v1724_v56  ;;  %v1726_v55 = vadd.f32 1.0, %v12391_v16 }
 0x284   : > { %v12395_v39 = vpop.eup %12394  ;;  %12420 = vrcp.f32 %v1725_v21  ;;  %v1727_v18 = vadd.f32 1.0, %v12393_v25 }
 0x285   : > { %v12397_v50 = vpop.eup %12396  ;;  %12422 = vrcp.f32 %v1726_v55  ;;  %v1728_v14 = vadd.f32 1.0, %v12395_v39 }
 0x286   : > { %v12399_v45 = vpop.eup %12398  ;;  %v13454_v63 = vld [vmem:[#allocation2 + $0x10] sm:$0xf]  ;;  %12424 = vrcp.f32 %v1727_v18  ;;  %v1729_v19 = vadd.f32 1.0, %v12397_v50 }
 0x287   : > { %v12401_v29 = vpop.eup %12400  ;;  %v13456_v1 = vld [vmem:[#allocation2 + $0x14] sm:$0xf]  ;;  %12426 = vrcp.f32 %v1728_v14  ;;  %v1730_v3 = vadd.f32 1.0, %v12399_v45 }
 0x288   : > { %v12403_v4 = vpop.eup %12402  ;;  %v13458_v57 = vld [vmem:[#allocation2 + $0x18] sm:$0xf]  ;;  %v10088_v30 = vcombine.low %v13454_v63, %v13456_v1  ;;  %12428 = vrcp.f32 %v1729_v19  ;;  %v1731_v58 = vadd.f32 1.0, %v12401_v29 }
 0x289   : > { %v12405_v6 = vpop.eup %12404  ;;  %v13462_v51 = vld [vmem:[#allocation2 + $0x1c] sm:$0xf]  ;;  %12430 = vrcp.f32 %v1730_v3  ;;  %v1732_v46 = vadd.f32 1.0, %v12403_v4 }
 0x28a   : > { %v12407_v23 = vpop.eup %12406  ;;  %11278 = vmatprep.mubr.msk.bf16.mxu0 %vm1187_vm1, %v10088_v30  ;;  %11315 = vmatmul.mubr.msk.bf16.vlgmr.msra.gmra.mxu1 %vm1187_vm1, %v10088_v30  ;;  %v10089_v60 = vcombine.low %v13458_v57, %v13462_v51  ;;  %12432 = vrcp.f32 %v1731_v58  ;;  %v1733_v54 = vadd.f32 1.0, %v12405_v6  ;;  %v17264_v30 = vld [vmem:[#allocation3_spill] sm:$0xff] }
 0x28b   : > { %v12409_v20 = vpop.eup %12408  ;;  %11383 = vmatpush3.bf16.msra.mxu1 %v13192_v37  ;;  %12434 = vrcp.f32 %v1732_v46  ;;  %v1734_v0 = vadd.f32 1.0, %v12407_v23 }
 0x28c   : > { %v12411_v61 = vpop.eup %12410  ;;  %11279 = vmatmul.mubr.msk.bf16.vlgmr.msra.gmra.mxu0 %vm1187_vm1, %v10089_v60  ;;  %11318 = vmatprep.mubr.msk.bf16.mxu1 %vm1187_vm1, %v10089_v60  ;;  %12436 = vrcp.f32 %v1733_v54  ;;  %v1735_v43 = vadd.f32 1.0, %v12409_v20 }
 0x28d   : > { %v12413_v62 = vpop.eup %12412  ;;  %11347 = vmatpush3.bf16.msra.mxu0 %v13186_v31  ;;  %12438 = vrcp.f32 %v1734_v0  ;;  %v1736_v10 = vadd.f32 1.0, %v12411_v61  ;;  %11384 = vmatprep.subr.bf16.mxu1 %v12080_v24 }
 0x28e   : > { %v12415_v37 = vpop.eup %12414  ;;  %12440 = vrcp.f32 %v1735_v43  ;;  %11348 = vmatprep.subr.bf16.mxu0 %v12073_v28  ;;  %v1737_v17 = vadd.f32 1.0, %v12413_v62 }
 0x28f   : > { %v12417_v40 = vpop.eup %12416  ;;  %v1786_v2 = vmul.f32 %v12415_v37, %v13304_v48  ;;  %12442 = vrcp.f32 %v1736_v10  ;;  %11385 = vmatpush3.bf16.msra.mxu1 %v12080_v24 }
 0x290   : > { %v12419_v27 = vpop.eup %12418  ;;  %v1787_v31 = vmul.f32 %v12417_v40, %v13310_v7  ;;  %12444 = vrcp.f32 %v1737_v17  ;;  %11454 = vmatprep.subr.bf16.mxu1 %v13480_v52 }
 0x291   : > { %v12421_v59 = vpop.eup %12420  ;;  %v10799_v47 = vpack.c.bf16 %v1786_v2, %v1786_v2  ;;  %v1788_v41 = vmul.f32 %v12419_v27, %v13321_v53  ;;  %11349 = vmatpush3.bf16.msra.mxu0 %v12073_v28 }
 0x292   : > { %v12423_v12 = vpop.eup %12422  ;;  %v10800_v9 = vpack.c.bf16 %v1787_v31, %v1787_v31  ;;  %v1789_v32 = vmul.f32 %v12421_v59, %v13336_v34  ;;  %11418 = vmatprep.subr.bf16.mxu0 %v13486_v49 }
 0x293   : > { %v12425_v48 = vpop.eup %12424  ;;  %1947 = vst.msk [vmem:[#allocation2 + $0x20] sm:$0xf] %vm1942_vm3, %v10799_v47  ;;  %v10801_v13 = vpack.c.bf16 %v1788_v41, %v1788_v41  ;;  %v1790_v7 = vmul.f32 %v12423_v12, %v13339_v35 }
 0x294   : > { %v12427_v11 = vpop.eup %12426  ;;  %1948 = vst.msk [vmem:[#allocation2 + $0x24] sm:$0xf] %vm1942_vm3, %v10800_v9  ;;  %v10802_v56 = vpack.c.bf16 %v1789_v32, %v1789_v32  ;;  %v1791_v16 = vmul.f32 %v12425_v48, %v13349_v5 }
 0x295   : > { %v12429_v53 = vpop.eup %12428  ;;  %1949 = vst.msk [vmem:[#allocation2 + $0x28] sm:$0xf] %vm1942_vm3, %v10801_v13  ;;  %v10803_v21 = vpack.c.bf16 %v1790_v7, %v1790_v7  ;;  %v1792_v34 = vmul.f32 %v12427_v11, %v13352_v26  ;;  %v13581_v11 = vld [vmem:[#allocation2 + $0x60] sm:$0xf] }
 0x296   : > { %v12431_v25 = vpop.eup %12430  ;;  %1950 = vst.msk [vmem:[#allocation2 + $0x2c] sm:$0xf] %vm1942_vm3, %v10802_v56  ;;  %v10804_v55 = vpack.c.bf16 %v1791_v16, %v1791_v16  ;;  %v1793_v39 = vmul.f32 %v12429_v53, %v13361_v36  ;;  %v13583_v56 = vld [vmem:[#allocation2 + $0x64] sm:$0xf] }
 0x297   : > { %v12433_v18 = vpop.eup %12432  ;;  %1951 = vst.msk [vmem:[#allocation2 + $0x30] sm:$0xf] %vm1942_vm3, %v10803_v21  ;;  %v10805_v35 = vpack.c.bf16 %v1792_v34, %v1792_v34  ;;  %v1794_v50 = vmul.f32 %v12431_v25, %v13367_v33  ;;  %v10098_v53 = vcombine.low %v13581_v11, %v13583_v56  ;;  %v2876_v21 = vld [vmem:[#allocation2 + $0xc] sm:$0x8]  ;;  %v13593_v34 = vld [vmem:[#allocation2 + $0x68] sm:$0xf] }
 0x298   : > { %v12435_v14 = vpop.eup %12434  ;;  %1952 = vst.msk [vmem:[#allocation2 + $0x34] sm:$0xf] %vm1942_vm3, %v10804_v55  ;;  %v10806_v5 = vpack.c.bf16 %v1793_v39, %v1793_v39  ;;  %v1795_v45 = vmul.f32 %v12433_v18, %v13372_v15  ;;  %v13595_v25 = vld [vmem:[#allocation2 + $0x6c] sm:$0xf]  ;;  %v13597_v55 = vld [vmem:[#allocation2 + $0x70] sm:$0xf]  ;;  %v10183_v18 = vcombine.low %v2876_v21, %v13454_v63 }
 0x299   : > { %v12437_v19 = vpop.eup %12436  ;;  %1953 = vst.msk [vmem:[#allocation2 + $0x38] sm:$0xf] %vm1942_vm3, %v10805_v35  ;;  %v10807_v26 = vpack.c.bf16 %v1794_v50, %v1794_v50  ;;  %v1796_v29 = vmul.f32 %v12435_v14, %v13382_v44  ;;  %v13599_v39 = vld [vmem:[#allocation2 + $0x74] sm:$0xf]  ;;  %v10099_v35 = vcombine.low %v13593_v34, %v13595_v25  ;;  %v10184_v50 = vcombine.low %v13456_v1, %v13458_v57  ;;  %v13616_v1 = vld [vmem:[#allocation2 + $0x80] sm:$0xf] }
 0x29a   : > { %v12439_v3 = vpop.eup %12438  ;;  %v13508_v36 = vld [vmem:[#allocation2 + $0x20] sm:$0xf]  ;;  %1954 = vst.msk [vmem:[#allocation2 + $0x3c] sm:$0xf] %vm1942_vm3, %v10806_v5  ;;  %v10808_v4 = vpack.c.bf16 %v1795_v45, %v1795_v45  ;;  %v1797_v33 = vmul.f32 %v12437_v19, %v17264_v30  ;;  %v10100_v14 = vcombine.low %v13597_v55, %v13599_v39  ;;  %v13612_v5 = vld [vmem:[#allocation2 + $0x78] sm:$0xf] }
 0x29b   : > { %v12441_v58 = vpop.eup %12440  ;;  %v13512_v6 = vld [vmem:[#allocation2 + $0x24] sm:$0xf]  ;;  %1955 = vst.msk [vmem:[#allocation2 + $0x40] sm:$0xf] %vm1942_vm3, %v10807_v26  ;;  %v10809_v15 = vpack.c.bf16 %v1796_v29, %v1796_v29  ;;  %v1798_v46 = vmul.f32 %v12439_v3, %v13395_v8  ;;  %v2903_v45 = vshrl.u32 %v10183_v18, 16  ;;  %v2911_v19 = vshrl.u32 %v10184_v50, 16 }
 0x29c   : > { %v12443_v24 = vpop.eup %12442  ;;  %v10090_v44 = vcombine.low %v13508_v36, %v13512_v6  ;;  %v13518_v23 = vld [vmem:[#allocation2 + $0x28] sm:$0xf]  ;;  %1956 = vst.msk [vmem:[#allocation2 + $0x44] sm:$0xf] %vm1942_vm3, %v10808_v4  ;;  %v10810_v60 = vpack.c.bf16 %v1797_v33, %v1797_v33  ;;  %v1799_v54 = vmul.f32 %v12441_v58, %v13402_v38  ;;  %v2914_v26 = vshll.u32 %v10184_v50, 16 }
 0x29d   : > { %v12445_v28 = vpop.eup %12444  ;;  %v13522_v20 = vld [vmem:[#allocation2 + $0x2c] sm:$0xf]  ;;  %1957 = vst.msk [vmem:[#allocation2 + $0x48] sm:$0xf] %vm1942_vm3, %v10809_v15  ;;  %v10811_v0 = vpack.c.bf16 %v1798_v46, %v1798_v46  ;;  %v1800_v38 = vmul.f32 %v12443_v24, %v13412_v22  ;;  %v13614_v29 = vld [vmem:[#allocation2 + $0x7c] sm:$0xf]  ;;  %v10185_v4 = vcombine.low %v13462_v51, %v13508_v36  ;;  %v10186_v46 = vcombine.low %v13512_v6, %v13518_v23 }
 0x29e   : > { %11282 = vmatprep.mubr.msk.bf16.mxu0 %vm1187_vm1, %v10090_v44  ;;  %11319 = vmatmul.mubr.msk.bf16.gmra.mxu1 %vm1187_vm1, %v10090_v44  ;;  %v10091_v8 = vcombine.low %v13518_v23, %v13522_v20  ;;  %v13529_v61 = vld [vmem:[#allocation2 + $0x30] sm:$0xf]  ;;  %1958 = vst.msk [vmem:[#allocation2 + $0x4c] sm:$0xf] %vm1942_vm3, %v10810_v60  ;;  %v10812_v43 = vpack.c.bf16 %v1799_v54, %v1799_v54  ;;  %v2906_v3 = vshll.u32 %v10183_v18, 16  ;;  %v2905_v33 = vrot.slane %v2903_v45, 3 }
 0x29f   : > { %v13533_v62 = vld [vmem:[#allocation2 + $0x34] sm:$0xf]  ;;  %1959 = vst.msk [vmem:[#allocation2 + $0x50] sm:$0xf] %vm1942_vm3, %v10811_v0  ;;  %v1801_v10 = vmul.f32 %v12445_v28, %v13419_v42  ;;  %v10813_v17 = vpack.c.bf16 %v1800_v38, %v1800_v38  ;;  %v13618_v57 = vld [vmem:[#allocation2 + $0x84] sm:$0xf]  ;;  %v10101_v30 = vcombine.low %v13612_v5, %v13614_v29 }
 0x2a0   : > { %11283 = vmatmul.mubr.msk.bf16.gmra.mxu0 %vm1187_vm1, %v10091_v8  ;;  %11322 = vmatprep.mubr.msk.bf16.mxu1 %vm1187_vm1, %v10091_v8  ;;  %v10092_v37 = vcombine.low %v13529_v61, %v13533_v62  ;;  %1960 = vst.msk [vmem:[#allocation2 + $0x54] sm:$0xf] %vm1942_vm3, %v10812_v43  ;;  %v13543_v22 = vld [vmem:[#allocation2 + $0x38] sm:$0xf]  ;;  %v2913_v58 = vrot.slane %v2911_v19, 3  ;;  %v2916_v15 = vrot.slane %v2914_v26, 4  ;;  %v10102_v44 = vcombine.low %v13616_v1, %v13618_v57 }
 0x2a1   : > { %v10814_v40 = vpack.c.bf16 %v1801_v10, %v1801_v10  ;;  %v13545_v2 = vld [vmem:[#allocation2 + $0x3c] sm:$0xf]  ;;  %1961 = vst.msk [vmem:[#allocation2 + $0x58] sm:$0xf] %vm1942_vm3, %v10813_v17  ;;  %v2908_v24 = vrot.slane %v2906_v3, 4  ;;  %v2920_v51 = vshrl.u32 %v10185_v4, 16 }
 0x2a2   : > { %11286 = vmatprep.mubr.msk.bf16.mxu0 %vm1187_vm1, %v10092_v37  ;;  %v13549_v42 = vld [vmem:[#allocation2 + $0x40] sm:$0xf]  ;;  %v10093_v31 = vcombine.low %v13543_v22, %v13545_v2  ;;  %v2923_v36 = vshll.u32 %v10185_v4, 16  ;;  %v13632_v60 = vld [vmem:[#allocation2 + $0x88] sm:$0xf]  ;;  %v13636_v6 = vor.u32 %v2916_v15, %v2913_v58  ;;  %v2929_v23 = vshrl.u32 %v10186_v46, 16 }
 0x2a3   : > { %1962 = vst.msk [vmem:[#allocation2 + $0x5c] sm:$0xf] %vm1942_vm3, %v10814_v40  ;;  %v13551_v27 = vld [vmem:[#allocation2 + $0x44] sm:$0xf]  ;;  %v13634_v54 = vld [vmem:[#allocation2 + $0x8c] sm:$0xf]  ;;  %v2909_v28 = vor.u32 %v2908_v24, %v2905_v33  ;;  %v10188_v40 = vcombine.low %v13533_v62, %v13543_v22  ;;  %v10189_v19 = vcombine.low %v13545_v2, %v13549_v42 }
 0x2a4   : > { %v10094_v59 = vcombine.low %v13549_v42, %v13551_v27  ;;  %v13561_v47 = vld [vmem:[#allocation2 + $0x48] sm:$0xf]  ;;  %v2932_v0 = vshll.u32 %v10186_v46, 16  ;;  %v13638_v8 = vld [vmem:[#allocation2 + $0x18] sm:$0xf]  ;;  %v2922_v38 = vrot.slane %v2920_v51, 3  ;;  %v10103_v17 = vcombine.low %v13632_v60, %v13634_v54 }
 0x2a5   : > { %v13563_v41 = vld [vmem:[#allocation2 + $0x4c] sm:$0xf]  ;;  %v13640_v43 = vld [vmem:[#allocation2 + $0x1c] sm:$0xf]  ;;  %v2925_v10 = vrot.slane %v2923_v36, 4  ;;  %v2947_v21 = vshrl.u32 %v10188_v40, 16 }
 0x2a6   : > { %11323 = vmatmul.mubr.msk.bf16.gmra.mxu1 %vm1187_vm1, %v10092_v37  ;;  %v13565_v12 = vld [vmem:[#allocation2 + $0x50] sm:$0xf]  ;;  %v10095_v32 = vcombine.low %v13561_v47, %v13563_v41  ;;  %v10187_v37 = vcombine.low %v13522_v20, %v13529_v61  ;;  %v13655_v20 = vld [vmem:[#allocation2 + $0x20] sm:$0xf]  ;;  %v13657_v61 = vld [vmem:[#allocation2 + $0x24] sm:$0xf] }
 0x2a7   : > { %11326 = vmatprep.mubr.msk.bf16.mxu1 %vm1187_vm1, %v10093_v31  ;;  %v13567_v9 = vld [vmem:[#allocation2 + $0x54] sm:$0xf]  ;;  %v2926_v62 = vor.u32 %v2925_v10, %v2922_v38  ;;  %v2950_v18 = vshll.u32 %v10188_v40, 16  ;;  %v13662_v50 = vld [vmem:[#allocation2 + $0x28] sm:$0xf]  ;;  %v12117_v45 = vld [vmem:[%s17184_s5 + $0x60] sm:$0xff]   ;;  %v10191_v10 = vcombine.low %v13563_v41, %v13565_v12 }
 0x2a8   : > { %11287 = vmatmul.mubr.msk.bf16.gmra.mxu0 %vm1187_vm1, %v10093_v31  ;;  %v10096_v48 = vcombine.low %v13565_v12, %v13567_v9  ;;  %v13577_v13 = vld [vmem:[#allocation2 + $0x58] sm:$0xf]  ;;  %v2918_v31 = vsel %vm2901_vm4, %v2909_v28, %v13636_v6  ;;  %v2938_v22 = vshrl.u32 %v10187_v37, 16  ;;  %v2949_v58 = vrot.slane %v2947_v21, 3  ;;  %v12108_v2 = vld [vmem:[%s17184_s5] sm:$0xff]  }
 0x2a9   : > { %11290 = vmatprep.mubr.msk.bf16.mxu0 %vm1187_vm1, %v10094_v59  ;;  %v13673_v26 = vsel %vm2901_vm4, %v13636_v6, %v2926_v62  ;;  %v2952_v15 = vrot.slane %v2950_v18, 4  ;;  %v13698_v46 = vld [vmem:[#allocation2 + $0x30] sm:$0xf]  ;;  %v13700_v24 = vld [vmem:[#allocation2 + $0x34] sm:$0xf]  ;;  %v2959_v51 = vshll.u32 %v10189_v19, 16  ;;  %v10194_v18 = vcombine.low %v13583_v56, %v13593_v34 }
 0x2aa   : > { %v13579_v7 = vld [vmem:[#allocation2 + $0x5c] sm:$0xf]  ;;  %v2940_v3 = vrot.slane %v2938_v22, 3  ;;  %v13735_v21 = vld [vmem:[#allocation2 + $0x44] sm:$0xf] }
 0x2ab   : > { %v10097_v16 = vcombine.low %v13577_v13, %v13579_v7  ;;  %v13711_v38 = vld [vmem:[#allocation2 + $0x3c] sm:$0xf]  ;;  %v2961_v40 = vrot.slane %v2959_v51, 4  ;;  %v3004_v51 = vshll.u32 %v10194_v18, 16 }
 0x2ae   : > { %11327 = vmatmul.mubr.msk.bf16.gmra.mxu1 %vm1187_vm1, %v10094_v59  ;;  %v2931_v59 = vrot.slane %v2929_v23, 3  ;;  %v13705_v23 = vld [vmem:[%s17184_s5 + $0x58] sm:$0xff]  }
 0x2af   : > { %11330 = vmatprep.mubr.msk.bf16.mxu1 %vm1187_vm1, %v10095_v32 }
 0x2b0   : > { %11291 = vmatmul.mubr.msk.bf16.gmra.mxu0 %vm1187_vm1, %v10095_v32  ;;  %v2934_v32 = vrot.slane %v2932_v0, 4  ;;  %v13709_v0 = vld [vmem:[#allocation2 + $0x38] sm:$0xf] }
 0x2b1   : > { %11294 = vmatprep.mubr.msk.bf16.mxu0 %vm1187_vm1, %v10096_v48  ;;  %v10149_v41 = vcombine.low %v13709_v0, %v13711_v38 }
 0x2b6   : > { %11331 = vmatmul.mubr.msk.bf16.gmra.mxu1 %vm1187_vm1, %v10096_v48  ;;  %v10145_v48 = vcombine.low %v13638_v8, %v13640_v43 }
 0x2b7   : > { %11334 = vmatprep.mubr.msk.bf16.mxu1 %vm1187_vm1, %v10097_v16 }
 0x2b8   : > { %11295 = vmatmul.mubr.msk.bf16.gmra.mxu0 %vm1187_vm1, %v10097_v16  ;;  %v2941_v16 = vshll.u32 %v10187_v37, 16 }
 0x2b9   : > { %11298 = vmatprep.mubr.msk.bf16.mxu0 %vm1187_vm1, %v10098_v53 }
 0x2ba   : > { %v2943_v4 = vrot.slane %v2941_v16, 4 }
 0x2be   : > { %11335 = vmatmul.mubr.msk.bf16.gmra.mxu1 %vm1187_vm1, %v10098_v53  ;;  %v2935_v53 = vor.u32 %v2934_v32, %v2931_v59 }
 0x2bf   : > { %11338 = vmatprep.mubr.msk.bf16.mxu1 %vm1187_vm1, %v10099_v35 }
 0x2c0   : > { %11299 = vmatmul.mubr.msk.bf16.gmra.mxu0 %vm1187_vm1, %v10099_v35  ;;  %v10146_v35 = vcombine.low %v13655_v20, %v13657_v61  ;;  %v13680_v33 = vsel %vm2901_vm4, %v2926_v62, %v2935_v53 }
 0x2c1   : > { %11302 = vmatprep.mubr.msk.bf16.mxu0 %vm1187_vm1, %v10100_v14 }
 0x2c6   : > { %11339 = vmatmul.mubr.msk.bf16.gmra.mxu1 %vm1187_vm1, %v10100_v14  ;;  %v13664_v14 = vld [vmem:[#allocation2 + $0x2c] sm:$0xf] }
 0x2c7   : > { %11342 = vmatprep.mubr.msk.bf16.mxu1 %vm1187_vm1, %v10101_v30  ;;  %v10147_v42 = vcombine.low %v13662_v50, %v13664_v14 }
 0x2c8   : > { %11303 = vmatmul.mubr.msk.bf16.gmra.mxu0 %vm1187_vm1, %v10101_v30  ;;  %v10190_v30 = vcombine.low %v13551_v27, %v13561_v47  ;;  %v13694_v27 = vld [vmem:[%s17184_s5 + $0x28] sm:$0xff]   ;;  %v2944_v47 = vor.u32 %v2943_v4, %v2940_v3 }
 0x2c9   : > { %11306 = vmatprep.mubr.msk.bf16.mxu0 %vm1187_vm1, %v10102_v44 }
 0x2ca   : > { %v2965_v36 = vshrl.u32 %v10190_v30, 16  ;;  %v2968_v28 = vshll.u32 %v10190_v30, 16  ;;  %v13717_v37 = vsel %vm2901_vm4, %v2935_v53, %v2944_v47  ;;  %v13733_v53 = vld [vmem:[#allocation2 + $0x40] sm:$0xf] }
 0x2cc   : > { %v2967_v32 = vrot.slane %v2965_v36, 3  ;;  %v13763_v36 = vld [vmem:[#allocation2 + $0x54] sm:$0xf] }
 0x2ce   : > { %11343 = vmatmul.mubr.msk.bf16.gmra.mxu1 %vm1187_vm1, %v10102_v44  ;;  %v2956_v44 = vshrl.u32 %v10189_v19, 16  ;;  %v10193_v19 = vcombine.low %v13579_v7, %v13581_v11 }
 0x2cf   : > { %11386 = vmatprep.mubr.msk.bf16.mxu1 %vm1187_vm1, %v2918_v31  ;;  %v10192_v31 = vcombine.low %v13567_v9, %v13577_v13  ;;  %v2974_v9 = vshrl.u32 %v10191_v10, 16  ;;  %v2977_v13 = vshll.u32 %v10191_v10, 16  ;;  %v13769_v10 = vld [vmem:[#allocation2 + $0x5c] sm:$0xf] }
 0x2d0   : > { %11307 = vmatmul.mubr.msk.bf16.gmra.mxu0 %vm1187_vm1, %v10103_v17  ;;  %v2958_v17 = vrot.slane %v2956_v44, 3  ;;  %v3001_v44 = vshrl.u32 %v10194_v18, 16  ;;  %v13791_v18 = vld [vmem:[#allocation2 + $0x64] sm:$0xf] }
 0x2d1   : > { %11350 = vmatprep.mubr.msk.bf16.mxu0 %vm1187_vm1, %v10145_v48  ;;  %v2970_v48 = vrot.slane %v2968_v28, 4  ;;  %v2983_v22 = vshrl.u32 %v10192_v31, 16  ;;  %v2986_v16 = vshll.u32 %v10192_v31, 16  ;;  %v2976_v4 = vrot.slane %v2974_v9, 3 }
 0x2d2   : > { %v2962_v12 = vor.u32 %v2961_v40, %v2958_v17  ;;  %v2979_v30 = vrot.slane %v2977_v13, 4  ;;  %v10195_v28 = vcombine.low %v13595_v25, %v13597_v55  ;;  %v10196_v17 = vcombine.low %v13599_v39, %v13612_v5 }
 0x2d3   : > { %v2971_v62 = vor.u32 %v2970_v48, %v2967_v32  ;;  %v2985_v34 = vrot.slane %v2983_v22, 3  ;;  %v3003_v55 = vrot.slane %v3001_v44, 3 }
 0x2d4   : > { %v2980_v11 = vor.u32 %v2979_v30, %v2976_v4  ;;  %v3010_v5 = vshrl.u32 %v10195_v28, 16  ;;  %v3022_v22 = vshll.u32 %v10196_v17, 16  ;;  %v13795_v4 = vld [vmem:[#allocation2 + $0x6c] sm:$0xf] }
 0x2d5   : > { %v13753_v56 = vsel %vm2901_vm4, %v2962_v12, %v2971_v62 }
 0x2d6   : > { %11387 = vmatmul.mubr.msk.bf16.vlgmr.msra.gmra.mxu1 %vm1187_vm1, %v13673_v26  ;;  %v13774_v40 = vsel %vm2901_vm4, %v2971_v62, %v2980_v11  ;;  %v3019_v62 = vshrl.u32 %v10196_v17, 16  ;;  %v3012_v30 = vrot.slane %v3010_v5, 3  ;;  %v3024_v44 = vrot.slane %v3022_v22, 4  ;;  %v13826_v5 = vld [vmem:[#allocation2 + $0x78] sm:$0xf] }
 0x2d7   : > { %11390 = vmatprep.mubr.msk.bf16.mxu1 %vm1187_vm1, %v13680_v33  ;;  %11455 = vmatpush3.bf16.msra.mxu1 %v13480_v52  ;;  %v2953_v52 = vor.u32 %v2952_v15, %v2949_v58  ;;  %v10150_v58 = vcombine.low %v13733_v53, %v13735_v21  ;;  %v2988_v15 = vrot.slane %v2986_v16, 4  ;;  %v13789_v16 = vld [vmem:[#allocation2 + $0x60] sm:$0xf] }
 0x2d8   : > { %11351 = vmatmul.mubr.msk.bf16.vlgmr.msra.gmra.mxu0 %vm1187_vm1, %v10146_v35  ;;  %11456 = vmatprep.subr.bf16.mxu1 %v12117_v45  ;;  %v13739_v35 = vld [vmem:[#allocation2 + $0x48] sm:$0xf] }
 0x2d9   : > { %11419 = vmatpush3.bf16.msra.mxu0 %v13486_v49  ;;  %11354 = vmatprep.mubr.msk.bf16.mxu0 %vm1187_vm1, %v10147_v42  ;;  %v10148_v49 = vcombine.low %v13698_v46, %v13700_v24  ;;  %v13724_v59 = vsel %vm2901_vm4, %v2944_v47, %v2953_v52  ;;  %v13746_v3 = vsel %vm2901_vm4, %v2953_v52, %v2962_v12  ;;  %v2995_v42 = vshll.u32 %v10193_v19, 16  ;;  %v13761_v52 = vld [vmem:[#allocation2 + $0x50] sm:$0xf] }
 0x2da   : > { %11420 = vmatprep.subr.bf16.mxu0 %v12108_v2  ;;  %v2989_v47 = vor.u32 %v2988_v15, %v2985_v34  ;;  %v10152_v48 = vcombine.low %v13761_v52, %v13763_v36  ;;  %v3013_v12 = vshll.u32 %v10195_v28, 16  ;;  %v10197_v34 = vcombine.low %v13614_v29, %v13616_v1 }
 0x2db   : > { %11457 = vmatpush3.bf16.msra.mxu1 %v12117_v45  ;;  %v13741_v45 = vld [vmem:[#allocation2 + $0x4c] sm:$0xf]  ;;  %v2997_v32 = vrot.slane %v2995_v42, 4  ;;  %v10198_v15 = vcombine.low %v13618_v57, %v13632_v60  ;;  %v3021_v42 = vrot.slane %v3019_v62, 3 }
 0x2dc   : > { %11526 = vmatprep.subr.bf16.mxu1 %v13694_v27  ;;  %v10151_v7 = vcombine.low %v13739_v35, %v13741_v45  ;;  %v13781_v25 = vsel %vm2901_vm4, %v2980_v11, %v2989_v47  ;;  %v10154_v11 = vcombine.low %v13789_v16, %v13791_v18  ;;  %v3028_v60 = vshrl.u32 %v10197_v34, 16 }
 0x2dd   : > { %11421 = vmatpush3.bf16.msra.mxu0 %v12108_v2  ;;  %v2992_v2 = vshrl.u32 %v10193_v19, 16  ;;  %v13793_v19 = vld [vmem:[#allocation2 + $0x68] sm:$0xf]  ;;  %v3040_v28 = vshll.u32 %v10198_v15, 16  ;;  %v3025_v17 = vor.u32 %v3024_v44, %v3021_v42  ;;  %v12581_v42 = vld [vmem:[#allocation2 + $0xc] sm:$0xf] }
 0x2de   : > { %11391 = vmatmul.mubr.msk.bf16.gmra.mxu1 %vm1187_vm1, %v13717_v37  ;;  %11490 = vmatprep.subr.bf16.mxu0 %v13705_v23  ;;  %v10155_v29 = vcombine.low %v13793_v19, %v13795_v4  ;;  %v13849_v44 = vld [vmem:[#allocation2 + $0x80] sm:$0xf] }
 0x2df   : > { %11394 = vmatprep.mubr.msk.bf16.mxu1 %vm1187_vm1, %v13724_v59  ;;  %v2994_v31 = vrot.slane %v2992_v2, 3 }
 0x2e0   : > { %11355 = vmatmul.mubr.msk.bf16.gmra.mxu0 %vm1187_vm1, %v10148_v49  ;;  %v13767_v49 = vld [vmem:[#allocation2 + $0x58] sm:$0xf] }
 0x2e1   : > { %11358 = vmatprep.mubr.msk.bf16.mxu0 %vm1187_vm1, %v10149_v41  ;;  %v3006_v41 = vrot.slane %v3004_v51, 4  ;;  %v10153_v39 = vcombine.low %v13767_v49, %v13769_v10  ;;  %v2998_v9 = vor.u32 %v2997_v32, %v2994_v31  ;;  %v3037_v51 = vshrl.u32 %v10198_v15, 16  ;;  %v3489_v31 = vld [vmem:[#allocation2 + $0x14] sm:$0x8]  ;;  %v13817_v32 = vld [vmem:[#allocation2 + $0x70] sm:$0xf] }
 0x2e2   : > { %v12580_v15 = vld [vmem:[#allocation2 + $0x8] sm:$0xf] }
 0x2e3   : > { %v3007_v13 = vor.u32 %v3006_v41, %v3003_v55  ;;  %v2871_v55 = vld [vmem:[#allocation2 + $0x4] sm:$0x8]  ;;  %v10199_v41 = vcombine.low %v13634_v54, %v13634_v54  ;;  %v3039_v22 = vrot.slane %v3037_v51, 3 }
 0x2e5   : > { %v13809_v2 = vsel %vm2901_vm4, %v2998_v9, %v3007_v13 }
 0x2e6   : > { %11395 = vmatmul.mubr.msk.bf16.gmra.mxu1 %vm1187_vm1, %v13746_v3  ;;  %17265 = vst [vmem:[#allocation4_spill] sm:$0xff] %v13809_v2 }
 0x2e7   : > { %11398 = vmatprep.mubr.msk.bf16.mxu1 %vm1187_vm1, %v13753_v56 }
 0x2e8   : > { %11359 = vmatmul.mubr.msk.bf16.gmra.mxu0 %vm1187_vm1, %v10150_v58  ;;  %v3015_v58 = vrot.slane %v3013_v12, 4  ;;  %v13828_v12 = vld [vmem:[#allocation2 + $0x7c] sm:$0xf] }
 0x2e9   : > { %11362 = vmatprep.mubr.msk.bf16.mxu0 %vm1187_vm1, %v10151_v7  ;;  %v13802_v7 = vsel %vm2901_vm4, %v2989_v47, %v2998_v9  ;;  %v3031_v47 = vshll.u32 %v10197_v34, 16  ;;  %v3030_v9 = vrot.slane %v3028_v60, 3  ;;  %v10244_v34 = vcombine.low %v13640_v43, %v13655_v20 }
 0x2ea   : > { %v3016_v1 = vor.u32 %v3015_v58, %v3012_v30  ;;  %v3042_v30 = vrot.slane %v3040_v28, 4  ;;  %v10243_v58 = vcombine.low %v3489_v31, %v13638_v8  ;;  %v10157_v8 = vcombine.low %v13826_v5, %v13828_v12 }
 0x2eb   : > { %v3033_v62 = vrot.slane %v3031_v47, 4  ;;  %v10219_v43 = vcombine.low %v12581_v42, %v13454_v63  ;;  %v3046_v60 = vshrl.u32 %v10199_v41, 16  ;;  %v3049_v47 = vshll.u32 %v10199_v41, 16 }
 0x2ec   : > { %v3515_v51 = vshrl.u32 %v10243_v58, 16  ;;  %v3518_v28 = vshll.u32 %v10243_v58, 16  ;;  %v3523_v31 = vshrl.u32 %v10244_v34, 16  ;;  %v10245_v63 = vcombine.low %v13657_v61, %v13662_v50 }
 0x2ed   : > { %v13847_v20 = vor.u32 %v3033_v62, %v3030_v9  ;;  %v10246_v9 = vcombine.low %v13664_v14, %v13698_v46  ;;  %v3289_v41 = vshrl.u32 %v10219_v43, 16  ;;  %v3048_v50 = vrot.slane %v3046_v60, 3 }
 0x2ee   : > { %11399 = vmatmul.mubr.msk.bf16.gmra.mxu1 %vm1187_vm1, %v13774_v40  ;;  %v3517_v14 = vrot.slane %v3515_v51, 3  ;;  %v3520_v46 = vrot.slane %v3518_v28, 4  ;;  %v3532_v60 = vshrl.u32 %v10245_v63, 16 }
 0x2ef   : > { %11402 = vmatprep.mubr.msk.bf16.mxu1 %vm1187_vm1, %v13781_v25  ;;  %17268 = vst [vmem:[#allocation8_spill] sm:$0xff] %v13847_v20  ;;  %v13865_v58 = vsel %vm2901_vm4, %v3025_v17, %v13847_v20 }
 0x2f0   : > { %11363 = vmatmul.mubr.msk.bf16.gmra.mxu0 %vm1187_vm1, %v10152_v48  ;;  %v13819_v48 = vld [vmem:[#allocation2 + $0x74] sm:$0xf]  ;;  %17269 = vst [vmem:[#allocation9_spill] sm:$0xff] %v13865_v58  ;;  %v3521_v51 = vor.u32 %v3520_v46, %v3517_v14 }
 0x2f1   : > { %11366 = vmatprep.mubr.msk.bf16.mxu0 %vm1187_vm1, %v10153_v39  ;;  %v13824_v39 = vsel %vm2901_vm4, %v3007_v13, %v3016_v1  ;;  %v10156_v54 = vcombine.low %v13817_v32, %v13819_v48  ;;  %v13838_v13 = vsel %vm2901_vm4, %v3016_v1, %v3025_v17  ;;  %v3043_v1 = vor.u32 %v3042_v30, %v3039_v22  ;;  %v13861_v22 = vld [vmem:[#allocation2 + $0x8c] sm:$0xf] }
 0x2f2   : > { %17266 = vst [vmem:[#allocation3_spill] sm:$0xff] %v13824_v39  ;;  %17267 = vst [vmem:[#allocation7_spill] sm:$0xff] %v13838_v13  ;;  %v3292_v30 = vshll.u32 %v10219_v43, 16 }
 0x2f3   : > { %v3044_v61 = vsel %vm2901_vm4, %v13847_v20, %v3043_v1 }
 0x2f4   : > { %v3294_v20 = vrot.slane %v3292_v30, 4 }
 0x2f6   : > { %11403 = vmatmul.mubr.msk.bf16.gmra.mxu1 %vm1187_vm1, %v13802_v7 }
 0x2f7   : > { %11406 = vmatprep.mubr.msk.bf16.mxu1 %vm1187_vm1, %v13809_v2  ;;  %v13876_v2 = vld [vmem:[#allocation2 + $0x90] sm:$0xf] }
 0x2f8   : > { %11367 = vmatmul.mubr.msk.bf16.gmra.mxu0 %vm1187_vm1, %v10154_v11  ;;  %v10218_v11 = vcombine.low %v2871_v55, %v12580_v15  ;;  %v3526_v55 = vshll.u32 %v10244_v34, 16  ;;  %v3051_v34 = vrot.slane %v3049_v47, 4  ;;  %v3535_v47 = vshll.u32 %v10245_v63, 16 }
 0x2f9   : > { %11370 = vmatprep.mubr.msk.bf16.mxu0 %vm1187_vm1, %v10155_v29  ;;  %v13851_v29 = vld [vmem:[#allocation2 + $0x84] sm:$0xf]  ;;  %v10247_v63 = vcombine.low %v13700_v24, %v13709_v0 }
 0x2fa   : > { %v3281_v15 = vshrl.u32 %v10218_v11, 16  ;;  %v10158_v62 = vcombine.low %v13849_v44, %v13851_v29  ;;  %v3528_v42 = vrot.slane %v3526_v55, 4  ;;  %v3544_v55 = vshll.u32 %v10246_v9, 16 }
 0x2fb   : > { %v3537_v30 = vrot.slane %v3535_v47, 4  ;;  %v3550_v0 = vshrl.u32 %v10247_v63, 16 }
 0x2fc   : > { %v3283_v17 = vrot.slane %v3281_v15, 3  ;;  %v3546_v46 = vrot.slane %v3544_v55, 4 }
 0x2fe   : > { %11407 = vmatmul.mubr.msk.bf16.gmra.mxu1 %vm1187_vm1, %v13824_v39  ;;  %v3291_v39 = vrot.slane %v3289_v41, 3  ;;  %v3534_v41 = vrot.slane %v3532_v60, 3 }
 0x2ff   : > { %11410 = vmatprep.mubr.msk.bf16.mxu1 %vm1187_vm1, %v13838_v13 }
 0x300   : > { %11371 = vmatmul.mubr.msk.bf16.gmra.mxu0 %vm1187_vm1, %v10156_v54  ;;  %v3284_v54 = vshll.u32 %v10218_v11, 16  ;;  %v3525_v11 = vrot.slane %v3523_v31, 3  ;;  %v3541_v31 = vshrl.u32 %v10246_v9, 16  ;;  %v3538_v24 = vor.u32 %v3537_v30, %v3534_v41 }
 0x301   : > { %11374 = vmatprep.mubr.msk.bf16.mxu0 %vm1187_vm1, %v10157_v8  ;;  %v13859_v8 = vld [vmem:[#allocation2 + $0x88] sm:$0xf]  ;;  %v10252_v41 = vcombine.low %v13769_v10, %v13789_v16 }
 0x302   : > { %v10159_v43 = vcombine.low %v13859_v8, %v13861_v22  ;;  %v3286_v13 = vrot.slane %v3284_v54, 4  ;;  %v3529_v28 = vor.u32 %v3528_v42, %v3525_v11  ;;  %v3295_v54 = vor.u32 %v3294_v20, %v3291_v39 }
 0x303   : > { %v3543_v14 = vrot.slane %v3541_v31, 3  ;;  %v3552_v42 = vrot.slane %v3550_v0, 3  ;;  %v12127_v31 = vld [vmem:[%s17184_s5 + $0x50] sm:$0xff]   ;;  %v3595_v16 = vshrl.u32 %v10252_v41, 16  ;;  %v10254_v0 = vcombine.low %v13795_v4, %v13817_v32 }
 0x304   : > { %v3287_v15 = vor.u32 %v3286_v13, %v3283_v17  ;;  %v3530_v9 = vsel %vm2901_vm4, %v3521_v51, %v3529_v28  ;;  %v3553_v13 = vshll.u32 %v10247_v63, 16  ;;  %v3539_v11 = vsel %vm2901_vm4, %v3529_v28, %v3538_v24 }
 0x305   : > { %v3547_v20 = vor.u32 %v3546_v46, %v3543_v14  ;;  %v10250_v17 = vcombine.low %v13741_v45, %v13761_v52  ;;  %v10253_v14 = vcombine.low %v13791_v18, %v13793_v19  ;;  %v3616_v4 = vshll.u32 %v10254_v0, 16 }
 0x306   : > { %11411 = vmatmul.mubr.msk.bf16.gmra.mxu1 %vm1187_vm1, %v13865_v58  ;;  %v3052_v58 = vor.u32 %v3051_v34, %v3048_v50  ;;  %v10248_v34 = vcombine.low %v13711_v38, %v13733_v53  ;;  %v3296_v39 = vsel %vm2901_vm4, %v3287_v15, %v3295_v54  ;;  %v12128_v53 = vld [vmem:[%s17184_s5 + $0x20] sm:$0xff]   ;;  %v10255_v32 = vcombine.low %v13819_v48, %v13826_v5 }
 0x307   : > { %11414 = vmatprep.mubr.msk.bf16.mxu1 %vm1187_vm1, %v3044_v61  ;;  %v13878_v61 = vld [vmem:[#allocation2 + $0x94] sm:$0xf]  ;;  %v3548_v60 = vsel %vm2901_vm4, %v3538_v24, %v3547_v20  ;;  %v3577_v55 = vshrl.u32 %v10250_v17, 16  ;;  %v3604_v19 = vshrl.u32 %v10253_v14, 16 }
 0x308   : > { %11375 = vmatmul.mubr.msk.bf16.gmra.mxu0 %vm1187_vm1, %v10158_v62  ;;  %v10160_v62 = vcombine.low %v13876_v2, %v13878_v61  ;;  %v3053_v50 = vsel %vm2901_vm4, %v3043_v1, %v3052_v58  ;;  %v3559_v1 = vshrl.u32 %v10248_v34, 16  ;;  %v3562_v38 = vshll.u32 %v10248_v34, 16 }
 0x309   : > { %11378 = vmatprep.mubr.msk.bf16.mxu0 %vm1187_vm1, %v10159_v43  ;;  %v10249_v58 = vcombine.low %v13735_v21, %v13739_v35  ;;  %v3555_v43 = vrot.slane %v3553_v13, 4  ;;  %v3297_v21 = vsel %vm2901_vm4, %v3295_v54, %v13636_v6  ;;  %v13917_v6 = vld [vmem:[%s17184_s5 + $0x88] sm:$0xff]   ;;  %v3579_v63 = vrot.slane %v3577_v55, 3 }
 0x30a   : > { %v3561_v47 = vrot.slane %v3559_v1, 3  ;;  %v3564_v51 = vrot.slane %v3562_v38, 4  ;;  %v3613_v38 = vshrl.u32 %v10254_v0, 16  ;;  %v3622_v5 = vshrl.u32 %v10255_v32, 16 }
 0x30b   : > { %v3556_v35 = vor.u32 %v3555_v43, %v3552_v42  ;;  %v3568_v45 = vshrl.u32 %v10249_v58, 16  ;;  %v3571_v52 = vshll.u32 %v10249_v58, 16  ;;  %v3606_v58 = vrot.slane %v3604_v19, 3  ;;  %v17273_v19 = vld [vmem:[#allocation7_spill] sm:$0xff] }
 0x30c   : > { %v3565_v28 = vor.u32 %v3564_v51, %v3561_v47  ;;  %v10256_v42 = vcombine.low %v13828_v12, %v13849_v44  ;;  %v3618_v43 = vrot.slane %v3616_v4, 4  ;;  %v10257_v44 = vcombine.low %v13851_v29, %v13859_v8 }
 0x30d   : > { %v3570_v15 = vrot.slane %v3568_v45, 3  ;;  %v3573_v54 = vrot.slane %v3571_v52, 4 }
 0x30e   : > { %11415 = vmatmul.mubr.msk.bf16.gmra.mxu1 %vm1187_vm1, %v3053_v50  ;;  %v3566_v30 = vsel %vm2901_vm4, %v3556_v35, %v3565_v28  ;;  %v3631_v47 = vshrl.u32 %v10256_v42, 16  ;;  %v3634_v12 = vshll.u32 %v10256_v42, 16  ;;  %v3640_v8 = vshrl.u32 %v10257_v44, 16 }
 0x30f   : > { %11458 = vmatprep.mubr.msk.bf16.mxu1 %vm1187_vm1, %v3530_v9  ;;  %v3598_v9 = vshll.u32 %v10252_v41, 16  ;;  %v3643_v52 = vshll.u32 %v10257_v44, 16  ;;  %v10220_v41 = vcombine.low %v13618_v57, %v13618_v57 }
 0x310   : > { %11379 = vmatmul.mubr.msk.bf16.gmra.mxu0 %vm1187_vm1, %v10160_v62  ;;  %v3580_v62 = vshll.u32 %v10250_v17, 16  ;;  %v3625_v17 = vshll.u32 %v10255_v32, 16  ;;  %v3636_v45 = vrot.slane %v3634_v12, 4  ;;  %v12135_v12 = vld [vmem:[#allocation2 + $0x28] sm:$0xff]  }
 0x311   : > { %11422 = vmatprep.mubr.msk.bf16.mxu0 %vm1187_vm1, %v3296_v39  ;;  %v3600_v13 = vrot.slane %v3598_v9, 4  ;;  %v3302_v9 = vshll.u32 %v10220_v41, 16 }
 0x312   : > { %v3582_v50 = vrot.slane %v3580_v62, 4 }
 0x314   : > { %v3583_v10 = vor.u32 %v3582_v50, %v3579_v63  ;;  %v17272_v63 = vld [vmem:[#allocation3_spill] sm:$0xff] }
 0x316   : > { %11459 = vmatmul.mubr.msk.bf16.vlgmr.msra.gmra.mxu1 %vm1187_vm1, %v3539_v11 }
 0x317   : > { %11462 = vmatprep.mubr.msk.bf16.mxu1 %vm1187_vm1, %v3548_v60  ;;  %11527 = vmatpush3.bf16.msra.mxu1 %v13694_v27  ;;  %v17270_v27 = vmov 0.0  }
 0x318   : > { %11423 = vmatmul.mubr.msk.bf16.vlgmr.msra.gmra.mxu0 %vm1187_vm1, %v3297_v21  ;;  %11528 = vmatprep.subr.bf16.mxu1 %v12128_v53  ;;  %v3627_v21 = vrot.slane %v3625_v17, 4 }
 0x319   : > { %11491 = vmatpush3.bf16.msra.mxu0 %v13705_v23  ;;  %11426 = vmatprep.mubr.msk.bf16.mxu0 %vm1187_vm1, %v13673_v26  ;;  %v10251_v23 = vcombine.low %v13763_v36, %v13767_v49  ;;  %v3557_v26 = vsel %vm2901_vm4, %v3547_v20, %v3556_v35  ;;  %v3574_v36 = vor.u32 %v3573_v54, %v3570_v15  ;;  %v3607_v20 = vshll.u32 %v10253_v14, 16 }
 0x31a   : > { %11492 = vmatprep.subr.bf16.mxu0 %v12127_v31  ;;  %v10258_v35 = vcombine.low %v13861_v22, %v13876_v2  ;;  %v10259_v22 = vcombine.low %v13878_v61, %v13878_v61  ;;  %v12130_v61 = vld [vmem:[#allocation2 + $0x10] sm:$0xff]  }
 0x31b   : > { %11529 = vmatpush3.bf16.msra.mxu1 %v12128_v53  ;;  %v3586_v49 = vshrl.u32 %v10251_v23, 16  ;;  %v3589_v34 = vshll.u32 %v10251_v23, 16  ;;  %v3575_v46 = vsel %vm2901_vm4, %v3565_v28, %v3574_v36  ;;  %v3609_v11 = vrot.slane %v3607_v20, 4 }
 0x31c   : > { %11598 = vmatprep.subr.bf16.mxu1 %v17270_v27  ;;  %v3649_v55 = vshrl.u32 %v10258_v35, 16  ;;  %v3652_v2 = vshll.u32 %v10258_v35, 16  ;;  %v3642_v23 = vrot.slane %v3640_v8, 3  ;;  %v4116_v14 = vshll.u32 %v12130_v61, 16 }
 0x31d   : > { %11493 = vmatpush3.bf16.msra.mxu0 %v12127_v31  ;;  %v3588_v39 = vrot.slane %v3586_v49, 3  ;;  %v3591_v24 = vrot.slane %v3589_v34, 4  ;;  %v3610_v48 = vor.u32 %v3609_v11, %v3606_v58  ;;  %v3624_v31 = vrot.slane %v3622_v5, 3 }
 0x31e   : > { %11463 = vmatmul.mubr.msk.bf16.gmra.mxu1 %vm1187_vm1, %v3557_v26  ;;  %11562 = vmatprep.subr.bf16.mxu0 %v13917_v6  ;;  %v3645_v26 = vrot.slane %v3643_v52, 4  ;;  %v3651_v15 = vrot.slane %v3649_v55, 3  ;;  %v3654_v54 = vrot.slane %v3652_v2, 4  ;;  %v3661_v49 = vshll.u32 %v10259_v22, 16  ;;  %v12136_v52 = vld [vmem:[#allocation2 + $0x30] sm:$0xff]  }
 0x31f   : > { %11466 = vmatprep.mubr.msk.bf16.mxu1 %vm1187_vm1, %v3566_v30  ;;  %v3592_v18 = vor.u32 %v3591_v24, %v3588_v39  ;;  %v3628_v29 = vor.u32 %v3627_v21, %v3624_v31  ;;  %v17271_v30 = vld [vmem:[#allocation4_spill] sm:$0xff]  ;;  %v4118_v20 = vrot.slane %v4116_v14, 1 }
 0x320   : > { %11427 = vmatmul.mubr.msk.bf16.gmra.mxu0 %vm1187_vm1, %v13680_v33  ;;  %v3584_v33 = vsel %vm2901_vm4, %v3574_v36, %v3583_v10  ;;  %v3646_v50 = vor.u32 %v3645_v26, %v3642_v23  ;;  %v3658_v36 = vshrl.u32 %v10259_v22, 16  ;;  %v3655_v34 = vor.u32 %v3654_v54, %v3651_v15  ;;  %v17275_v31 = vld [vmem:[#allocation8_spill] sm:$0xff]  ;;  %v12138_v26 = vld [vmem:[%s17186_s7 + $0x18] sm:$0xff]  }
 0x321   : > { %11430 = vmatprep.mubr.msk.bf16.mxu0 %vm1187_vm1, %v13717_v37  ;;  %v3597_v37 = vrot.slane %v3595_v16, 3  ;;  %v3593_v53 = vsel %vm2901_vm4, %v3583_v10, %v3592_v18  ;;  %v3299_v16 = vshrl.u32 %v10220_v41, 16  ;;  %v3663_v24 = vrot.slane %v3661_v49, 4  ;;  %v12137_v41 = vld [vmem:[#allocation2 + $0x38] sm:$0xff]   ;;  %v12139_v49 = vld [vmem:[#allocation2 + $0x40] sm:$0xff]  }
 0x322   : > { %v3660_v39 = vrot.slane %v3658_v36, 3  ;;  %v3656_v57 = vsel %vm2901_vm4, %v3646_v50, %v3655_v34  ;;  %v4137_v22 = vshll.u32 %v12135_v12, 16  ;;  %v4145_v15 = vshll.u32 %v12136_v52, 16 }
 0x323   : > { %v3601_v1 = vor.u32 %v3600_v13, %v3597_v37  ;;  %v12132_v37 = vld [vmem:[#allocation2 + $0x18] sm:$0xff]   ;;  %v3301_v13 = vrot.slane %v3299_v16, 3  ;;  %v4153_v16 = vshll.u32 %v12137_v41, 16 }
 0x324   : > { %v3664_v4 = vor.u32 %v3663_v24, %v3660_v39  ;;  %v4121_v58 = vshll.u32 %v12132_v37, 16  ;;  %v4147_v36 = vrot.slane %v4145_v15, 1 }
 0x325   : > { %v3611_v51 = vsel %vm2901_vm4, %v3601_v1, %v3610_v48  ;;  %v4155_v24 = vrot.slane %v4153_v16, 1 }
 0x326   : > { %11467 = vmatmul.mubr.msk.bf16.gmra.mxu1 %vm1187_vm1, %v3575_v46  ;;  %v3665_v5 = vsel %vm2901_vm4, %v3655_v34, %v3664_v4 }
 0x327   : > { %11470 = vmatprep.mubr.msk.bf16.mxu1 %vm1187_vm1, %v3584_v33 }
 0x328   : > { %11431 = vmatmul.mubr.msk.bf16.gmra.mxu0 %vm1187_vm1, %v13724_v59  ;;  %v3602_v59 = vsel %vm2901_vm4, %v3592_v18, %v3601_v1  ;;  %v3304_v18 = vrot.slane %v3302_v9, 4  ;;  %v12134_v1 = vld [vmem:[#allocation2 + $0x20] sm:$0xff]   ;;  %v12149_v9 = vld [vmem:[%s17186_s7 + $0x8] sm:$0xff]  }
 0x329   : > { %11434 = vmatprep.mubr.msk.bf16.mxu0 %vm1187_vm1, %v13746_v3  ;;  %v3615_v3 = vrot.slane %v3613_v38, 3  ;;  %v17274_v38 = vld [vmem:[#allocation9_spill] sm:$0xff]  ;;  %v4133_v2 = vshrl.u32 %v12134_v1, 16 }
 0x32a   : > { %v3305_v42 = vor.u32 %v3304_v18, %v3301_v13 }
 0x32b   : > { %v3619_v60 = vor.u32 %v3618_v43, %v3615_v3  ;;  %v4129_v43 = vshll.u32 %v12134_v1, 16  ;;  %v12141_v1 = vld [vmem:[#allocation2 + $0x50] sm:$0xff]  }
 0x32c   : > { %v3306_v21 = vsel %vm2901_vm4, %v17275_v31, %v3305_v42  ;;  %v12142_v31 = vld [vmem:[#allocation2 + $0x58] sm:$0xff]  }
 0x32d   : > { %v3629_v62 = vsel %vm2901_vm4, %v3619_v60, %v3628_v29  ;;  %v4185_v15 = vshll.u32 %v12142_v31, 16 }
 0x32e   : > { %11471 = vmatmul.mubr.msk.bf16.gmra.mxu1 %vm1187_vm1, %v3593_v53  ;;  %v4114_v53 = vshrl.u32 %v12130_v61, 16  ;;  %v12143_v61 = vld [vmem:[%s17186_s7 + $0x10] sm:$0xff]  }
 0x32f   : > { %11474 = vmatprep.mubr.msk.bf16.mxu1 %vm1187_vm1, %v3602_v59 }
 0x330   : > { %11435 = vmatmul.mubr.msk.bf16.gmra.mxu0 %vm1187_vm1, %v13753_v56  ;;  %v3620_v56 = vsel %vm2901_vm4, %v3610_v48, %v3619_v60  ;;  %v4119_v59 = vor.u32 %v4118_v20, %v4114_v53 }
 0x331   : > { %11438 = vmatprep.mubr.msk.bf16.mxu0 %vm1187_vm1, %v13774_v40  ;;  %v3633_v40 = vrot.slane %v3631_v47, 3  ;;  %v4123_v47 = vrot.slane %v4121_v58, 1  ;;  %v4165_v58 = vshrl.u32 %v12139_v49, 16 }
 0x333   : > { %v3637_v28 = vor.u32 %v3636_v45, %v3633_v40  ;;  %v4125_v40 = vshrl.u32 %v12132_v37, 16  ;;  %v4131_v45 = vrot.slane %v4129_v43, 1 }
 0x335   : > { %v3647_v46 = vsel %vm2901_vm4, %v3637_v28, %v3646_v50  ;;  %v4127_v55 = vor.u32 %v4125_v40, %v4123_v47  ;;  %v4141_v50 = vshrl.u32 %v12135_v12, 16 }
 0x336   : > { %11475 = vmatmul.mubr.msk.bf16.gmra.mxu1 %vm1187_vm1, %v3611_v51 }
 0x337   : > { %11478 = vmatprep.mubr.msk.bf16.mxu1 %vm1187_vm1, %v3620_v56  ;;  %v4124_v56 = vsel %vm4112_vm5, %v4119_v59, %v4123_v47  ;;  %v4132_v54 = vsel %vm4112_vm5, %v4127_v55, %v4131_v45  ;;  %v12145_v55 = vld [vmem:[#allocation2 + $0x60] sm:$0xff]  }
 0x338   : > { %11439 = vmatmul.mubr.msk.bf16.gmra.mxu0 %vm1187_vm1, %v13781_v25  ;;  %v3638_v25 = vsel %vm2901_vm4, %v3628_v29, %v3637_v28 }
 0x339   : > { %11442 = vmatprep.mubr.msk.bf16.mxu0 %vm1187_vm1, %v13802_v7  ;;  %v12131_v7 = vld [vmem:[#allocation2 + $0x8] sm:$0xff]  }
 0x33a   : > { %v4477_v10 = vshll.u32 %v12131_v7, 16  ;;  %v4475_v0 = vshrl.u32 %v12131_v7, 16  ;;  %v4139_v7 = vrot.slane %v4137_v22, 1 }
 0x33c   : > { %v4479_v33 = vrot.slane %v4477_v10, 1  ;;  %v4143_v34 = vor.u32 %v4141_v50, %v4139_v7  ;;  %v4149_v10 = vshrl.u32 %v12136_v52, 16 }
 0x33e   : > { %11479 = vmatmul.mubr.msk.bf16.gmra.mxu1 %vm1187_vm1, %v3629_v62  ;;  %v4480_v32 = vor.u32 %v4479_v33, %v4475_v0  ;;  %v4151_v14 = vor.u32 %v4149_v10, %v4147_v36  ;;  %v4148_v39 = vsel %vm4112_vm5, %v4143_v34, %v4147_v36  ;;  %v12156_v0 = vld [vmem:[%s17186_s7] sm:$0xff]   ;;  %v4187_v34 = vrot.slane %v4185_v15, 1  ;;  %v12146_v10 = vld [vmem:[#allocation2 + $0x68] sm:$0xff]  }
 0x33f   : > { %11482 = vmatprep.mubr.msk.bf16.mxu1 %vm1187_vm1, %v3638_v25  ;;  %v4135_v25 = vor.u32 %v4133_v2, %v4131_v45  ;;  %v14037_v33 = vld [vmem:[%s530_s27] sm:$0x1] }
 0x340   : > { %11443 = vmatmul.mubr.msk.bf16.gmra.mxu0 %vm1187_vm1, %v17271_v30  ;;  %v4481_v60 = vsel %vm4112_vm5, %v4480_v32, %v4118_v20  ;;  %v12144_v30 = vld [vmem:[%s17184_s5 + $0x80] sm:$0xff]   ;;  %v4156_v18 = vsel %vm4112_vm5, %v4151_v14, %v4155_v24  ;;  %v5276_v42 = vsub.f32 0.0, %v14037_v33 }
 0x341   : > { %11446 = vmatprep.mubr.msk.bf16.mxu0 %vm1187_vm1, %v17272_v63  ;;  %v4140_v63 = vsel %vm4112_vm5, %v4135_v25, %v4139_v7  ;;  %v4181_v25 = vshrl.u32 %v12141_v1, 16 }
 0x346   : > { %11483 = vmatmul.mubr.msk.bf16.gmra.mxu1 %vm1187_vm1, %v3647_v46  ;;  %v4161_v46 = vshll.u32 %v12139_v49, 16 }
 0x347   : > { %11486 = vmatprep.mubr.msk.bf16.mxu1 %vm1187_vm1, %v3656_v57  ;;  %v12140_v57 = vld [vmem:[#allocation2 + $0x48] sm:$0xff]  }
 0x348   : > { %11447 = vmatmul.mubr.msk.bf16.gmra.mxu0 %vm1187_vm1, %v17273_v19  ;;  %v4157_v19 = vshrl.u32 %v12137_v41, 16  ;;  %v4163_v20 = vrot.slane %v4161_v46, 1 }
 0x349   : > { %11450 = vmatprep.mubr.msk.bf16.mxu0 %vm1187_vm1, %v17274_v38 }
 0x34a   : > { %v11316_v11 = vpop.f32.mrf.mxu1  ;;  %v4159_v53 = vor.u32 %v4157_v19, %v4155_v24  ;;  %v12147_v24 = vld [vmem:[#allocation2 + $0x70] sm:$0xff]   ;;  %v4201_v19 = vshll.u32 %v12146_v10, 16 }
 0x34c   : > { %v11280_v3 = vpop.f32.mrf.mxu0  ;;  %v2374_v48 = vpop.f32.mrf.mxu1 }
 0x34d   : > { %v13990_v17 = vadd.f32 %v11316_v11, %v11280_v3  ;;  %v4169_v11 = vshll.u32 %v12140_v57, 16 }
 0x34e   : > { %11487 = vmatmul.mubr.msk.bf16.gmra.mxu1 %vm1187_vm1, %v3665_v5  ;;  %v2193_v44 = vpop.f32.mrf.mxu0  ;;  %v11317_v51 = vpop.f32.mrf.mxu1  ;;  %v4177_v5 = vshll.u32 %v12141_v1, 16 }
 0x34f   : > { %11530 = vmatprep.mubr.msk.bf16.mxu1 %vm1187_vm1, %v4481_v60  ;;  %v13997_v35 = vadd.f32 %v2374_v48, %v2193_v44  ;;  %v4167_v48 = vor.u32 %v4165_v58, %v4163_v20  ;;  %v4164_v44 = vsel %vm4112_vm5, %v4159_v53, %v4163_v20  ;;  %v4209_v53 = vshll.u32 %v12147_v24, 16 }
 0x350   : > { %11451 = vmatmul.mubr.msk.bf16.gmra.mxu0 %vm1187_vm1, %v3306_v21  ;;  %v11281_v29 = vpop.f32.mrf.mxu0  ;;  %v2377_v8 = vpop.f32.mrf.mxu1  ;;  %v5277_v21 = vmul.f32 1.442695, %v5276_v42  ;;  %v4179_v52 = vrot.slane %v4177_v5, 1 }
 0x351   : > { %11494 = vmatprep.mubr.msk.bf16.mxu0 %vm1187_vm1, %v4124_v56  ;;  %v14002_v28 = vadd.f32 %v11317_v51, %v11281_v29  ;;  %v4171_v51 = vrot.slane %v4169_v11, 1 }
 0x352   : > { %v2196_v62 = vpop.f32.mrf.mxu0  ;;  %12446 = vpow2.f32 %v5277_v21  ;;  %v4211_v21 = vrot.slane %v4209_v53, 1 }
 0x353   : > { %v14004_v23 = vadd.f32 %v2377_v8, %v2196_v62  ;;  %v4172_v29 = vsel %vm4112_vm5, %v4167_v48, %v4171_v51  ;;  %v4173_v8 = vshrl.u32 %v12140_v57, 16  ;;  %v12148_v48 = vld [vmem:[#allocation2 + $0x78] sm:$0xff]  }
 0x356   : > { %11531 = vmatmul.mubr.msk.bf16.vlgmr.msra.gmra.mxu1 %vm1187_vm1, %v4124_v56 }
 0x357   : > { %11534 = vmatprep.mubr.msk.bf16.mxu1 %vm1187_vm1, %v4132_v54  ;;  %11599 = vmatpush3.bf16.msra.mxu1 %v12138_v26  ;;  %v4175_v26 = vor.u32 %v4173_v8, %v4171_v51 }
 0x358   : > { %11495 = vmatmul.mubr.msk.bf16.vlgmr.msra.gmra.mxu0 %vm1187_vm1, %v4132_v54  ;;  %11600 = vmatprep.subr.bf16.mxu1 %v17270_v27 }
 0x359   : > { %11563 = vmatpush3.bf16.msra.mxu0 %v13917_v6  ;;  %11498 = vmatprep.mubr.msk.bf16.mxu0 %vm1187_vm1, %v4140_v63  ;;  %v4180_v49 = vsel %vm4112_vm5, %v4175_v26, %v4179_v52 }
 0x35a   : > { %11564 = vmatprep.subr.bf16.mxu0 %v12144_v30 }
 0x35b   : > { %11601 = vmatpush3.bf16.msra.mxu1 %v12143_v61  ;;  %v4193_v61 = vshll.u32 %v12145_v55, 16 }
 0x35c   : > { %11602 = vmatprep.subr.bf16.mxu1 %v17270_v27 }
 0x35d   : > { %11565 = vmatpush3.bf16.msra.mxu0 %v12144_v30  ;;  %v4183_v30 = vor.u32 %v4181_v25, %v4179_v52 }
 0x35e   : > { %v11320_v6 = vpop.f32.mrf.mxu1  ;;  %11535 = vmatmul.mubr.msk.bf16.gmra.mxu1 %vm1187_vm1, %v4140_v63 }
 0x35f   : > { %11538 = vmatprep.mubr.msk.bf16.mxu1 %vm1187_vm1, %v4148_v39  ;;  %11603 = vmatpush3.bf16.msra.mxu1 %v12149_v9  ;;  %v4188_v46 = vsel %vm4112_vm5, %v4183_v30, %v4187_v34  ;;  %v12447_v5 = vpop.eup %12446 }
 0x360   : > { %v11284_v37 = vpop.f32.mrf.mxu0  ;;  %11499 = vmatmul.mubr.msk.bf16.gmra.mxu0 %vm1187_vm1, %v4148_v39  ;;  %v2390_v13 = vpop.f32.mrf.mxu1  ;;  %11604 = vmatprep.subr.bf16.mxu1 %v17270_v27  ;;  %v4195_v39 = vrot.slane %v4193_v61, 1 }
 0x361   : > { %v14042_v38 = vadd.f32 %v11320_v6, %v11284_v37  ;;  %11502 = vmatprep.mubr.msk.bf16.mxu0 %vm1187_vm1, %v4156_v18  ;;  %v4189_v6 = vshrl.u32 %v12142_v31, 16  ;;  %v4205_v31 = vshrl.u32 %v12146_v10, 16 }
 0x362   : > { %v2209_v4 = vpop.f32.mrf.mxu0  ;;  %v11321_v32 = vpop.f32.mrf.mxu1 }
 0x363   : > { %v14046_v59 = vadd.f32 %v2390_v13, %v2209_v4  ;;  %11605 = vmatpush3.bf16.msra.mxu1 %v12156_v0  ;;  %v4191_v0 = vor.u32 %v4189_v6, %v4187_v34  ;;  %v12151_v34 = vld [vmem:[#allocation2 + $0x88] sm:$0xff]   ;;  %v4221_v6 = vshrl.u32 %v12148_v48, 16 }
 0x364   : > { %v11285_v3 = vpop.f32.mrf.mxu0  ;;  %v2393_v43 = vpop.f32.mrf.mxu1  ;;  %11610 = vmatprep.subr.mxu1 %v17270_v27 }
 0x365   : > { %v14049_v60 = vadd.f32 %v11321_v32, %v11285_v3  ;;  %v4196_v3 = vsel %vm4112_vm5, %v4191_v0, %v4195_v39 }
 0x366   : > { %v2212_v47 = vpop.f32.mrf.mxu0  ;;  %v11324_v12 = vpop.f32.mrf.mxu1  ;;  %11539 = vmatmul.mubr.msk.bf16.gmra.mxu1 %vm1187_vm1, %v4156_v18  ;;  %v4197_v18 = vshrl.u32 %v12145_v55, 16  ;;  %v4213_v55 = vshrl.u32 %v12147_v24, 16  ;;  %v12154_v24 = vld [vmem:[#allocation2 + $0x18] sm:$0xff]  }
 0x367   : > { %v14053_v56 = vadd.f32 %v2393_v43, %v2212_v47  ;;  %11542 = vmatprep.mubr.msk.bf16.mxu1 %vm1187_vm1, %v4164_v44  ;;  %v4203_v43 = vrot.slane %v4201_v19, 1 }
 0x368   : > { %v11288_v40 = vpop.f32.mrf.mxu0  ;;  %11503 = vmatmul.mubr.msk.bf16.gmra.mxu0 %vm1187_vm1, %v4164_v44  ;;  %v2406_v45 = vpop.f32.mrf.mxu1  ;;  %v4199_v32 = vor.u32 %v4197_v18, %v4195_v39 }
 0x369   : > { %v14058_v2 = vadd.f32 %v11324_v12, %v11288_v40  ;;  %11506 = vmatprep.mubr.msk.bf16.mxu0 %vm1187_vm1, %v4172_v29  ;;  %v12150_v40 = vld [vmem:[#allocation2 + $0x80] sm:$0xff]  }
 0x36a   : > { %v2225_v22 = vpop.f32.mrf.mxu0  ;;  %v11325_v62 = vpop.f32.mrf.mxu1  ;;  %v4204_v51 = vsel %vm4112_vm5, %v4199_v32, %v4203_v43  ;;  %v4229_v19 = vshrl.u32 %v12150_v40, 16  ;;  %v12153_v32 = vld [vmem:[#allocation2 + $0x90] ss:$0 sps:$4 sm:$0x11]  }
 0x36b   : > { %v14061_v54 = vadd.f32 %v2406_v45, %v2225_v22  ;;  %v4217_v22 = vshll.u32 %v12148_v48, 16 }
 0x36c   : > { %v11289_v7 = vpop.f32.mrf.mxu0  ;;  %v2409_v41 = vpop.f32.mrf.mxu1 }
 0x36d   : > { %v14063_v63 = vadd.f32 %v11325_v62, %v11289_v7  ;;  %v5279_v62 = vadd.f32 1.0, %v12447_v5  ;;  %v4215_v7 = vor.u32 %v4213_v55, %v4211_v21  ;;  %v12157_v55 = vld [vmem:[#allocation2 + $0x28] sm:$0xff]  }
 0x36e   : > { %v2228_v50 = vpop.f32.mrf.mxu0  ;;  %v11328_v36 = vpop.f32.mrf.mxu1  ;;  %11543 = vmatmul.mubr.msk.bf16.gmra.mxu1 %vm1187_vm1, %v4172_v29  ;;  %v4207_v29 = vor.u32 %v4205_v31, %v4203_v43 }
 0x36f   : > { %v14067_v16 = vadd.f32 %v2409_v41, %v2228_v50  ;;  %11546 = vmatprep.mubr.msk.bf16.mxu1 %vm1187_vm1, %v4180_v49  ;;  %v4225_v41 = vshll.u32 %v12150_v40, 16  ;;  %12448 = vrcp.f32 %v5279_v62  ;;  %v4237_v62 = vshrl.u32 %v12151_v34, 16 }
 0x370   : > { %v11292_v9 = vpop.f32.mrf.mxu0  ;;  %11507 = vmatmul.mubr.msk.bf16.gmra.mxu0 %vm1187_vm1, %v4180_v49  ;;  %v2422_v14 = vpop.f32.mrf.mxu1  ;;  %v4219_v49 = vrot.slane %v4217_v22, 1 }
 0x371   : > { %v14072_v57 = vadd.f32 %v11328_v36, %v11292_v9  ;;  %11510 = vmatprep.mubr.msk.bf16.mxu0 %vm1187_vm1, %v4188_v46  ;;  %v4212_v36 = vsel %vm4112_vm5, %v4207_v29, %v4211_v21  ;;  %v4227_v39 = vrot.slane %v4225_v41, 1  ;;  %v4241_v21 = vshll.u32 %v12153_v32, 16 }
 0x372   : > { %v2241_v37 = vpop.f32.mrf.mxu0  ;;  %v11329_v13 = vpop.f32.mrf.mxu1 }
 0x373   : > { %v14075_v20 = vadd.f32 %v2422_v14, %v2241_v37  ;;  %v4223_v37 = vor.u32 %v4221_v6, %v4219_v49 }
 0x374   : > { %v11293_v1 = vpop.f32.mrf.mxu0  ;;  %v2425_v4 = vpop.f32.mrf.mxu1 }
 0x375   : > { %v14077_v58 = vadd.f32 %v11329_v13, %v11293_v1  ;;  %v4233_v1 = vshll.u32 %v12151_v34, 16 }
 0x376   : > { %v2244_v11 = vpop.f32.mrf.mxu0  ;;  %v11332_v42 = vpop.f32.mrf.mxu1  ;;  %11547 = vmatmul.mubr.msk.bf16.gmra.mxu1 %vm1187_vm1, %v4188_v46  ;;  %v4220_v46 = vsel %vm4112_vm5, %v4215_v7, %v4219_v49  ;;  %v4788_v7 = vshrl.u32 %v12154_v24, 16 }
 0x377   : > { %v14081_v47 = vadd.f32 %v2425_v4, %v2244_v11  ;;  %11550 = vmatprep.mubr.msk.bf16.mxu1 %vm1187_vm1, %v4196_v3  ;;  %v12152_v4 = vld [vmem:[#allocation2 + $0x88] ss:$0 sps:$4 sm:$0x11]  }
 0x378   : > { %v11296_v12 = vpop.f32.mrf.mxu0  ;;  %11511 = vmatmul.mubr.msk.bf16.gmra.mxu0 %vm1187_vm1, %v4196_v3  ;;  %v2438_v44 = vpop.f32.mrf.mxu1  ;;  %v4790_v3 = vshll.u32 %v12154_v24, 16  ;;  %v4483_v31 = vshll.u32 %v12152_v4, 16  ;;  %v12158_v4 = vld [vmem:[#allocation2 + $0x30] sm:$0xff]  }
 0x379   : > { %v14086_v45 = vadd.f32 %v11332_v42, %v11296_v12  ;;  %11514 = vmatprep.mubr.msk.bf16.mxu0 %vm1187_vm1, %v4204_v51  ;;  %v4231_v42 = vor.u32 %v4229_v19, %v4227_v39  ;;  %v4228_v12 = vsel %vm4112_vm5, %v4223_v37, %v4227_v39  ;;  %v4803_v37 = vshll.u32 %v12157_v55, 16 }
 0x37a   : > { %v2257_v8 = vpop.f32.mrf.mxu0  ;;  %v11333_v52 = vpop.f32.mrf.mxu1  ;;  %v4485_v49 = vrot.slane %v4483_v31, 1 }
 0x37b   : > { %v14089_v26 = vadd.f32 %v2438_v44, %v2257_v8  ;;  %v4235_v44 = vrot.slane %v4233_v1, 1 }
 0x37c   : > { %v11297_v25 = vpop.f32.mrf.mxu0  ;;  %v2441_v15 = vpop.f32.mrf.mxu1  ;;  %v4486_v34 = vsel %vm4112_vm5, %v4231_v42, %v4485_v49 }
 0x37d   : > { %v14091_v30 = vadd.f32 %v11333_v52, %v11297_v25  ;;  %v4236_v8 = vsel %vm4112_vm5, %v4231_v42, %v4235_v44  ;;  %v4792_v52 = vrot.slane %v4790_v3, 1 }
 0x37e   : > { %v2260_v61 = vpop.f32.mrf.mxu0  ;;  %v11336_v50 = vpop.f32.mrf.mxu1  ;;  %11551 = vmatmul.mubr.msk.bf16.gmra.mxu1 %vm1187_vm1, %v4204_v51  ;;  %v12155_v51 = vld [vmem:[#allocation2 + $0x20] sm:$0xff]  }
 0x37f   : > { %v14095_v10 = vadd.f32 %v2441_v15, %v2260_v61  ;;  %11554 = vmatprep.mubr.msk.bf16.mxu1 %vm1187_vm1, %v4212_v36  ;;  %v4795_v41 = vshll.u32 %v12155_v51, 16  ;;  %v12449_v61 = vpop.eup %12448  ;;  %v4793_v39 = vor.u32 %v4792_v52, %v4788_v7 }
 0x380   : > { %v11300_v9 = vpop.f32.mrf.mxu0  ;;  %11515 = vmatmul.mubr.msk.bf16.gmra.mxu0 %vm1187_vm1, %v4212_v36  ;;  %v14099_v14 = vpop.f32.mrf.mxu1  ;;  %v5281_v32 = vmul.f32 %v12449_v61, %v14037_v33 }
 0x381   : > { %17276 = vst [vmem:[#allocation4_spill] sm:$0xff] %v14095_v10  ;;  %v14102_v0 = vadd.f32 %v11336_v50, %v11300_v9  ;;  %11518 = vmatprep.mubr.msk.bf16.mxu0 %vm1187_vm1, %v4220_v46  ;;  %v4239_v50 = vor.u32 %v4237_v62, %v4235_v44  ;;  %v4243_v9 = vrot.slane %v4241_v21, 1  ;;  %v4797_v24 = vrot.slane %v4795_v41, 1  ;;  %v12159_v44 = vld [vmem:[#allocation2 + $0x38] sm:$0xff]  }
 0x382   : > { %v14105_v13 = vpop.f32.mrf.mxu0  ;;  %v11337_v18 = vpop.f32.mrf.mxu1  ;;  %v4799_v21 = vshrl.u32 %v12155_v51, 16  ;;  %v5282_v52 = vpack.c.bf16 %v5281_v32, %v5281_v32  ;;  %v4819_v61 = vshll.u32 %v12159_v44, 16 }
 0x383   : > { %v4798_v42 = vsel %vm4112_vm5, %v4793_v39, %v4797_v24 }
 0x384   : > { %v11301_v53 = vpop.f32.mrf.mxu0  ;;  %v14107_v11 = vpop.f32.mrf.mxu1  ;;  %v4801_v62 = vor.u32 %v4799_v21, %v4797_v24  ;;  %v12161_v24 = vld [vmem:[#allocation2 + $0x48] sm:$0xff]  }
 0x385   : > { %17277 = vst [vmem:[#allocation3_spill] sm:$0xff] %v14107_v11  ;;  %v14109_v43 = vadd.f32 %v11337_v18, %v11301_v53  ;;  %v4244_v53 = vsel %vm4112_vm5, %v4239_v50, %v4243_v9  ;;  %v12170_v11 = vld [vmem:[#allocation2 + $0x90] sm:$0xff]  }
 0x386   : > { %v14111_v48 = vpop.f32.mrf.mxu0  ;;  %v11340_v5 = vpop.f32.mrf.mxu1  ;;  %11555 = vmatmul.mubr.msk.bf16.gmra.mxu1 %vm1187_vm1, %v4220_v46 }
 0x387   : > { %17278 = vst [vmem:[#allocation7_spill] sm:$0xff] %v14111_v48  ;;  %11558 = vmatprep.mubr.msk.bf16.mxu1 %vm1187_vm1, %v4228_v12 }
 0x388   : > { %v11304_v40 = vpop.f32.mrf.mxu0  ;;  %11519 = vmatmul.mubr.msk.bf16.gmra.mxu0 %vm1187_vm1, %v4228_v12  ;;  %v2470_v29 = vpop.f32.mrf.mxu1  ;;  %v4805_v12 = vrot.slane %v4803_v37, 1 }
 0x389   : > { %v14118_v22 = vadd.f32 %v11340_v5, %v11304_v40  ;;  %11522 = vmatprep.mubr.msk.bf16.mxu0 %vm1187_vm1, %v4236_v8  ;;  %v4811_v8 = vshll.u32 %v12158_v4, 16 }
 0x38a   : > { %v2289_v25 = vpop.f32.mrf.mxu0  ;;  %v11341_v15 = vpop.f32.mrf.mxu1 }
 0x38b   : > { %v14121_v36 = vadd.f32 %v2470_v29, %v2289_v25  ;;  %v4807_v29 = vshrl.u32 %v12157_v55, 16  ;;  %v4813_v9 = vrot.slane %v4811_v8, 1  ;;  %v12160_v55 = vld [vmem:[#allocation2 + $0x40] sm:$0xff]  }
 0x38c   : > { %v11305_v46 = vpop.f32.mrf.mxu0  ;;  %v14123_v6 = vpop.f32.mrf.mxu1 }
 0x38d   : > { %17279 = vst [vmem:[#allocation9_spill] sm:$0xff] %v14123_v6  ;;  %v14125_v18 = vadd.f32 %v11341_v15, %v11305_v46  ;;  %v4809_v41 = vor.u32 %v4807_v29, %v4805_v12  ;;  %v4806_v46 = vsel %vm4112_vm5, %v4801_v62, %v4805_v12  ;;  %v4827_v12 = vshll.u32 %v12160_v55, 16  ;;  %v12168_v6 = vld [vmem:[#allocation2 + $0x80] sm:$0xff]  }
 0x38e   : > { %v14128_v19 = vpop.f32.mrf.mxu0  ;;  %v11344_v1 = vpop.f32.mrf.mxu1  ;;  %11559 = vmatmul.mubr.msk.bf16.gmra.mxu1 %vm1187_vm1, %v4486_v34 }
 0x38f   : > { %17280 = vst [vmem:[#allocation8_spill] sm:$0xff] %v14128_v19  ;;  %11606 = vmatprep.mubr.msk.bf16.mxu1 %vm12625_vm0, %v17270_v27  ;;  %v4814_v34 = vsel %vm4112_vm5, %v4809_v41, %v4813_v9  ;;  %v12162_v41 = vld [vmem:[#allocation2 + $0x50] sm:$0xff]  }
 0x390   : > { %v11308_v3 = vpop.f32.mrf.mxu0  ;;  %11523 = vmatmul.mubr.msk.bf16.gmra.mxu0 %vm1187_vm1, %v4244_v53  ;;  %v2486_v5 = vpop.f32.mrf.mxu1  ;;  %v4815_v53 = vshrl.u32 %v12158_v4, 16 }
 0x391   : > { %v14137_v31 = vadd.f32 %v11344_v1, %v11308_v3  ;;  %11566 = vmatprep.mubr.msk.bf16.mxu0 %vm1187_vm1, %v4798_v42  ;;  %v4821_v1 = vrot.slane %v4819_v61, 1  ;;  %v4823_v42 = vshrl.u32 %v12159_v44, 16 }
 0x392   : > { %v2305_v40 = vpop.f32.mrf.mxu0  ;;  %v11345_v33 = vpop.f32.mrf.mxu1  ;;  %v4817_v21 = vor.u32 %v4815_v53, %v4813_v9  ;;  %v4831_v53 = vshrl.u32 %v12160_v55, 16 }
 0x393   : > { %v14140_v25 = vadd.f32 %v2486_v5, %v2305_v40  ;;  %v4825_v8 = vor.u32 %v4823_v42, %v4821_v1  ;;  %v4839_v42 = vshrl.u32 %v12161_v24, 16 }
 0x394   : > { %v11309_v15 = vpop.f32.mrf.mxu0  ;;  %v14142_v7 = vpop.f32.mrf.mxu1  ;;  %v4822_v61 = vsel %vm4112_vm5, %v4817_v21, %v4821_v1  ;;  %v4843_v1 = vshll.u32 %v12162_v41, 16 }
 0x395   : > { %17281 = vst [vmem:[#allocation10_spill] sm:$0xff] %v14142_v7  ;;  %v14144_v50 = vadd.f32 %v11345_v33, %v11309_v15  ;;  %v4829_v15 = vrot.slane %v4827_v12, 1  ;;  %v12166_v7 = vld [vmem:[#allocation2 + $0x70] sm:$0xff]  }
 0x396   : > { %v14146_v49 = vpop.f32.mrf.mxu0  ;;  %v14148_v51 = vpop.f32.mrf.mxu1  ;;  %11607 = vmatmul.mubr.msk.bf16.vlgmr.msra.gmra.mxu1 %vm5316_vm6, %v5282_v52  ;;  %v4835_v52 = vshll.u32 %v12161_v24, 16 }
 0x397   : > { %17282 = vst [vmem:[#allocation11_spill] sm:$0xff] %v14146_v49  ;;  %11626 = vmatprep.mubr.msk.f32.mxu1 %vm12625_vm0, %v17270_v27  ;;  %v4833_v12 = vor.u32 %v4831_v53, %v4829_v15 }
 0x398   : > { %v11352_v39 = vpop.f32.mrf.mxu0  ;;  %11567 = vmatmul.mubr.msk.bf16.vlgmr.msra.gmra.mxu0 %vm1187_vm1, %v4806_v46  ;;  %v14155_v37 = vpop.f32.mrf.mxu1  ;;  %v4830_v46 = vsel %vm4112_vm5, %v4825_v8, %v4829_v15 }
 0x399   : > { %v14159_v32 = vadd.f32 %v11352_v39, %v13990_v17  ;;  %11570 = vmatprep.mubr.msk.bf16.mxu0 %vm1187_vm1, %v4814_v34  ;;  %v4837_v39 = vrot.slane %v4835_v52, 1 }
 0x39a   : > { %v2712_v3 = vpop.f32.mrf.mxu0  ;;  %v14162_v5 = vpop.f32.mrf.mxu1 }
 0x39b   : > { %v14165_v40 = vadd.f32 %v2712_v3, %v13997_v35  ;;  %v4841_v8 = vor.u32 %v4839_v42, %v4837_v39  ;;  %v4838_v15 = vsel %vm4112_vm5, %v4833_v12, %v4837_v39 }
 0x39c   : > { %v11353_v33 = vpop.f32.mrf.mxu0  ;;  %v14167_v29 = vpop.f32.mrf.mxu1 }
 0x39d   : > { %17283 = vst [vmem:[#allocation12_spill] sm:$0xff] %v14167_v29  ;;  %v14170_v17 = vadd.f32 %v11353_v33, %v14002_v28  ;;  %v12163_v28 = vld [vmem:[#allocation2 + $0x58] sm:$0xff]  }
 0x39e   : > { %v2715_v4 = vpop.f32.mrf.mxu0  ;;  %v14172_v62 = vpop.f32.mrf.mxu1  ;;  %v4851_v52 = vshll.u32 %v12163_v28, 16 }
 0x39f   : > { %v14175_v44 = vadd.f32 %v2715_v4, %v14004_v23 }
 0x3a0   : > { %v11356_v35 = vpop.f32.mrf.mxu0  ;;  %11571 = vmatmul.mubr.msk.bf16.gmra.mxu0 %vm1187_vm1, %v4822_v61  ;;  %v14179_v9 = vpop.f32.mrf.mxu1  ;;  %v4853_v42 = vrot.slane %v4851_v52, 1 }
 0x3a1   : > { %17284 = vst [vmem:[#allocation13_spill] sm:$0xff] %v14175_v44  ;;  %v14183_v34 = vadd.f32 %v11356_v35, %v14042_v38  ;;  %11574 = vmatprep.mubr.msk.bf16.mxu0 %vm1187_vm1, %v4830_v46  ;;  %v4845_v35 = vrot.slane %v4843_v1, 1  ;;  %v12164_v46 = vld [vmem:[#allocation2 + $0x60] sm:$0xff]   ;;  %v4847_v44 = vshrl.u32 %v12162_v41, 16 }
 0x3a2   : > { %v2728_v3 = vpop.f32.mrf.mxu0  ;;  %v14186_v23 = vpop.f32.mrf.mxu1  ;;  %v4859_v39 = vshll.u32 %v12164_v46, 16 }
 0x3a3   : > { %v14189_v21 = vadd.f32 %v2728_v3, %v14046_v59  ;;  %v4846_v3 = vsel %vm4112_vm5, %v4841_v8, %v4845_v35  ;;  %v4849_v12 = vor.u32 %v4847_v44, %v4845_v35 }
 0x3a4   : > { %v11357_v33 = vpop.f32.mrf.mxu0  ;;  %v14191_v4 = vpop.f32.mrf.mxu1 }
 0x3a5   : > { %17285 = vst [vmem:[#allocation14_spill] sm:$0xff] %v14191_v4  ;;  %v14194_v38 = vadd.f32 %v11357_v33, %v14049_v60  ;;  %v12165_v60 = vld [vmem:[#allocation2 + $0x68] sm:$0xff]   ;;  %v4854_v44 = vsel %vm4112_vm5, %v4849_v12, %v4853_v42 }
 0x3a6   : > { %v2731_v55 = vpop.f32.mrf.mxu0  ;;  %v14196_v61 = vpop.f32.mrf.mxu1  ;;  %v4867_v52 = vshll.u32 %v12165_v60, 16 }
 0x3a7   : > { %v14199_v24 = vadd.f32 %v2731_v55, %v14053_v56  ;;  %v4855_v55 = vshrl.u32 %v12163_v28, 16 }
 0x3a8   : > { %v11360_v59 = vpop.f32.mrf.mxu0  ;;  %11575 = vmatmul.mubr.msk.bf16.gmra.mxu0 %vm1187_vm1, %v4838_v15  ;;  %v14203_v53 = vpop.f32.mrf.mxu1 }
 0x3a9   : > { %17286 = vst [vmem:[#allocation15_spill] sm:$0xff] %v14199_v24  ;;  %v14207_v33 = vadd.f32 %v11360_v59, %v14058_v2  ;;  %11578 = vmatprep.mubr.msk.bf16.mxu0 %vm1187_vm1, %v4846_v3  ;;  %v4857_v8 = vor.u32 %v4855_v55, %v4853_v42  ;;  %v4861_v3 = vrot.slane %v4859_v39, 1  ;;  %v4869_v55 = vrot.slane %v4867_v52, 1 }
 0x3aa   : > { %v2744_v1 = vpop.f32.mrf.mxu0  ;;  %v14210_v56 = vpop.f32.mrf.mxu1  ;;  %v4875_v42 = vshll.u32 %v12166_v7, 16 }
 0x3ab   : > { %v14213_v15 = vadd.f32 %v2744_v1, %v14061_v54  ;;  %v4862_v1 = vsel %vm4112_vm5, %v4857_v8, %v4861_v3 }
 0x3ac   : > { %v11361_v24 = vpop.f32.mrf.mxu0  ;;  %v14215_v10 = vpop.f32.mrf.mxu1 }
 0x3ad   : > { %17287 = vst [vmem:[#allocation16_spill] sm:$0xff] %v14215_v10  ;;  %v14218_v2 = vadd.f32 %v11361_v24, %v14063_v63  ;;  %v12167_v63 = vld [vmem:[#allocation2 + $0x78] sm:$0xff]   ;;  %v4863_v10 = vshrl.u32 %v12164_v46, 16 }
 0x3ae   : > { %v2747_v41 = vpop.f32.mrf.mxu0  ;;  %v14220_v59 = vpop.f32.mrf.mxu1  ;;  %v4883_v52 = vshll.u32 %v12167_v63, 16 }
 0x3af   : > { %v14223_v28 = vadd.f32 %v2747_v41, %v14067_v16  ;;  %v4871_v41 = vshrl.u32 %v12165_v60, 16  ;;  %v4865_v12 = vor.u32 %v4863_v10, %v4861_v3 }
 0x3b0   : > { %v11364_v54 = vpop.f32.mrf.mxu0  ;;  %11579 = vmatmul.mubr.msk.bf16.gmra.mxu0 %vm1187_vm1, %v4854_v44  ;;  %v14227_v35 = vpop.f32.mrf.mxu1 }
 0x3b1   : > { %17288 = vst [vmem:[#allocation17_spill] sm:$0xff] %v14223_v28  ;;  %v14231_v24 = vadd.f32 %v11364_v54, %v14072_v57  ;;  %11582 = vmatprep.mubr.msk.bf16.mxu0 %vm1187_vm1, %v4862_v1  ;;  %v4873_v8 = vor.u32 %v4871_v41, %v4869_v55  ;;  %v4877_v1 = vrot.slane %v4875_v42, 1  ;;  %v4870_v10 = vsel %vm4112_vm5, %v4865_v12, %v4869_v55 }
 0x3b2   : > { %v2760_v39 = vpop.f32.mrf.mxu0  ;;  %v14234_v16 = vpop.f32.mrf.mxu1  ;;  %v4885_v41 = vrot.slane %v4883_v52, 1  ;;  %v4891_v55 = vshll.u32 %v12168_v6, 16 }
 0x3b3   : > { %v14237_v44 = vadd.f32 %v2760_v39, %v14075_v20  ;;  %v4878_v39 = vsel %vm4112_vm5, %v4873_v8, %v4877_v1 }
 0x3b4   : > { %v11365_v28 = vpop.f32.mrf.mxu0  ;;  %v14239_v49 = vpop.f32.mrf.mxu1 }
 0x3b5   : > { %17289 = vst [vmem:[#allocation18_spill] sm:$0xff] %v14239_v49  ;;  %v14242_v57 = vadd.f32 %v11365_v28, %v14077_v58  ;;  %v12169_v58 = vld [vmem:[#allocation2 + $0x88] sm:$0xff]   ;;  %v4879_v49 = vshrl.u32 %v12166_v7, 16 }
 0x3b6   : > { %v2763_v46 = vpop.f32.mrf.mxu0  ;;  %v14244_v54 = vpop.f32.mrf.mxu1  ;;  %v4899_v52 = vshll.u32 %v12169_v58, 16 }
 0x3b7   : > { %v14247_v60 = vadd.f32 %v2763_v46, %v14081_v47  ;;  %v4887_v46 = vshrl.u32 %v12167_v63, 16  ;;  %v4881_v12 = vor.u32 %v4879_v49, %v4877_v1 }
 0x3b8   : > { %v11368_v20 = vpop.f32.mrf.mxu0  ;;  %11583 = vmatmul.mubr.msk.bf16.gmra.mxu0 %vm1187_vm1, %v4870_v10  ;;  %v14251_v3 = vpop.f32.mrf.mxu1 }
 0x3b9   : > { %17290 = vst [vmem:[#allocation19_spill] sm:$0xff] %v14247_v60  ;;  %v14255_v28 = vadd.f32 %v11368_v20, %v14086_v45  ;;  %11586 = vmatprep.mubr.msk.bf16.mxu0 %vm1187_vm1, %v4878_v39  ;;  %v4889_v8 = vor.u32 %v4887_v46, %v4885_v41  ;;  %v4893_v39 = vrot.slane %v4891_v55, 1  ;;  %v4886_v63 = vsel %vm4112_vm5, %v4881_v12, %v4885_v41  ;;  %v12171_v55 = vld [vmem:[#allocation2 + $0x98] ss:$0 sps:$4 sm:$0x11]  }
 0x3ba   : > { %v2776_v42 = vpop.f32.mrf.mxu0  ;;  %v14258_v47 = vpop.f32.mrf.mxu1  ;;  %v4907_v46 = vshll.u32 %v12170_v11, 16 }
 0x3bb   : > { %v14261_v10 = vadd.f32 %v2776_v42, %v14089_v26  ;;  %v4894_v1 = vsel %vm4112_vm5, %v4889_v8, %v4893_v39  ;;  %v4901_v42 = vrot.slane %v4899_v52, 1 }
 0x3bc   : > { %v11369_v60 = vpop.f32.mrf.mxu0  ;;  %v14263_v19 = vpop.f32.mrf.mxu1  ;;  %v4909_v29 = vrot.slane %v4907_v46, 1 }
 0x3bd   : > { %17291 = vst [vmem:[#allocation20_spill] sm:$0xff] %v14263_v19  ;;  %v14266_v45 = vadd.f32 %v11369_v60, %v14091_v30  ;;  %v2455_v30 = vadd.f32 %v14099_v14, %v14105_v13  ;;  %v4895_v19 = vshrl.u32 %v12168_v6, 16  ;;  %v4915_v13 = vshll.u32 %v12171_v55, 16 }
 0x3be   : > { %v14268_v7 = vpop.f32.mrf.mxu0  ;;  %v14270_v20 = vpop.f32.mrf.mxu1 }
 0x3bf   : > { %17292 = vst [vmem:[#allocation21_spill] sm:$0xff] %v14268_v7  ;;  %v4897_v7 = vor.u32 %v4895_v19, %v4893_v39 }
 0x3c0   : > { %v11372_v49 = vpop.f32.mrf.mxu0  ;;  %11587 = vmatmul.mubr.msk.bf16.gmra.mxu0 %vm1187_vm1, %v4886_v63  ;;  %v14274_v26 = vpop.f32.mrf.mxu1  ;;  %v4903_v63 = vshrl.u32 %v12169_v58, 16 }
 0x3c1   : > { %v14280_v60 = vadd.f32 %v11372_v49, %v14102_v0  ;;  %11590 = vmatprep.mubr.msk.bf16.mxu0 %vm1187_vm1, %v4894_v1  ;;  %v4911_v0 = vshrl.u32 %v12170_v11, 16  ;;  %v4902_v1 = vsel %vm4112_vm5, %v4897_v7, %v4901_v42  ;;  %v4917_v11 = vrot.slane %v4915_v13, 1 }
 0x3c2   : > { %v2792_v41 = vpop.f32.mrf.mxu0  ;;  %v14283_v12 = vpop.f32.mrf.mxu1  ;;  %v4905_v4 = vor.u32 %v4903_v63, %v4901_v42 }
 0x3c3   : > { %v14285_v48 = vadd.f32 %v2792_v41, %v2455_v30 }
 0x3c4   : > { %v11373_v8 = vpop.f32.mrf.mxu0  ;;  %v14287_v52 = vpop.f32.mrf.mxu1  ;;  %v4910_v39 = vsel %vm4112_vm5, %v4905_v4, %v4909_v29 }
 0x3c5   : > { %17293 = vst [vmem:[#allocation22_spill] sm:$0xff] %v14287_v52  ;;  %v14290_v14 = vadd.f32 %v11373_v8, %v14109_v43  ;;  %v4913_v43 = vor.u32 %v4911_v0, %v4909_v29  ;;  %v17297_v8 = vld [vmem:[#allocation5_spill] sm:$0xff] }
 0x3c6   : > { %v14292_v6 = vpop.f32.mrf.mxu0  ;;  %v14294_v49 = vpop.f32.mrf.mxu1  ;;  %v540_v0 = vadd.s32 16, %v17297_v8 }
 0x3c7   : > { %17294 = vst [vmem:[#allocation23_spill] sm:$0xff] %v14292_v6  ;;  %v4918_v4 = vsel %vm4112_vm5, %v4913_v43, %v4917_v11 }
 0x3c8   : > { %v11376_v58 = vpop.f32.mrf.mxu0  ;;  %11591 = vmatmul.mubr.msk.bf16.gmra.mxu0 %vm1187_vm1, %v4902_v1  ;;  %v14298_v19 = vpop.f32.mrf.mxu1  ;;  %v588_v43 = vand.u32 15, %v540_v0 }
 0x3c9   : > { %v14302_v46 = vadd.f32 %v11376_v58, %v14118_v22  ;;  %11594 = vmatprep.mubr.msk.bf16.mxu0 %vm1187_vm1, %v4910_v39 }
 0x3ca   : > { %v2808_v30 = vpop.f32.mrf.mxu0  ;;  %v14305_v55 = vpop.f32.mrf.mxu1  ;;  %vm956_vm7 = vcmp.ne.s32.totalorder %v588_v43, 0 }
 0x3cb   : > { %v14308_v41 = vadd.f32 %v2808_v30, %v14121_v36 }
 0x3cc   : > { %v11377_v7 = vpop.f32.mrf.mxu0  ;;  %v14310_v42 = vpop.f32.mrf.mxu1 }
 0x3cd   : > { %17295 = vst [vmem:[#allocation24_spill] sm:$0xff] %v14310_v42  ;;  %v14313_v63 = vadd.f32 %v11377_v7, %v14125_v18 }
 0x3ce   : > { %v14316_v22 = vpop.f32.mrf.mxu0  ;;  %v14318_v29 = vpop.f32.mrf.mxu1 }
 0x3cf   : > { %17296 = vst [vmem:[#allocation25_spill] sm:$0xff] %v14316_v22 }
 0x3d0   : > { %v11380_v13 = vpop.f32.mrf.mxu0  ;;  %11595 = vmatmul.mubr.msk.bf16.gmra.mxu0 %vm1187_vm1, %v4918_v4  ;;  %v14322_v1 = vpop.f32.mrf.mxu1  ;;  %v574_v4 = vand.u32 15, %v17297_v8 }
 0x3d1   : > { %17298 = vst [vmem:[#allocation5_spill] sm:$0xff] %v14322_v1  ;;  %v14325_v36 = vadd.f32 %v11380_v13, %v14137_v31  ;;  %v544_v31 = vadd.s32 48, %v17297_v8 }
 0x3d2   : > { %v2824_v58 = vpop.f32.mrf.mxu0  ;;  %v14327_v39 = vpop.f32.mrf.mxu1  ;;  %vm954_vm8 = vcmp.ne.s32.totalorder %v574_v4, 0 }
 0x3d3   : > { %17299 = vst [vmem:[#allocation26_spill] sm:$0xff] %v14325_v36  ;;  %17300 = vst [vmem:[#allocation27_spill] sm:$0xff] %v14327_v39  ;;  %v14330_v18 = vadd.f32 %v2824_v58, %v14140_v25  ;;  %v542_v25 = vadd.s32 32, %v17297_v8  ;;  %v14344_v58 = vsel %vm956_vm7, 1.0, %v17270_v27 }
 0x3d4   : > { %v11381_v11 = vpop.f32.mrf.mxu0  ;;  %v14332_v30 = vpop.f32.mrf.mxu1  ;;  %17305 = vst [vmem:[#allocation32_spill] sm:$0xff] %v14344_v58 }
 0x3d5   : > { %17301 = vst [vmem:[#allocation28_spill] sm:$0xff] %v14330_v18  ;;  %17302 = vst [vmem:[#allocation29_spill] sm:$0xff] %v14332_v30  ;;  %v14335_v7 = vadd.f32 %v11381_v11, %v14144_v50  ;;  %v616_v30 = vand.u32 15, %v544_v31  ;;  %v14348_v18 = vsel %vm954_vm8, 1.0, %v17270_v27  ;;  %v602_v36 = vand.u32 15, %v542_v25 }
 0x3d6   : > { %v14338_v42 = vpop.f32.mrf.mxu0  ;;  %v11460_v52 = vpop.f32.mrf.mxu1  ;;  %17306 = vst [vmem:[#allocation33_spill] sm:$0xff] %v14348_v18 }
 0x3d7   : > { %17303 = vst [vmem:[#allocation30_spill] sm:$0xff] %v14335_v7  ;;  %17304 = vst [vmem:[#allocation31_spill] sm:$0xff] %v14338_v42  ;;  %vm960_vm9 = vcmp.ne.s32.totalorder %v616_v30, 0  ;;  %vm958_vm10 = vcmp.ne.s32.totalorder %v602_v36, 0 }
 0x3d8   : > { %v11424_v13 = vpop.f32.mrf.mxu0  ;;  %v3760_v22 = vpop.f32.mrf.mxu1  ;;  %v14370_v30 = vsel %vm960_vm9, 1.0, %v17270_v27  ;;  %v14374_v36 = vsel %vm958_vm10, 1.0, %v17270_v27 }
 0x3d9   : > { %v3371_v0 = vadd.f32 %v11424_v13, %v14148_v51  ;;  %17308 = vst [vmem:[#allocation35_spill] sm:$0xff] %v14370_v30  ;;  %17309 = vst [vmem:[#allocation36_spill] sm:$0xff] %v14374_v36 }
 0x3da   : > { %v3362_v50 = vpop.f32.mrf.mxu0  ;;  %v11461_v11 = vpop.f32.mrf.mxu1 }
 0x3db   : > { %v3889_v6 = vadd.f32 %v11460_v52, %v3371_v0  ;;  %v3363_v42 = vadd.f32 %v3362_v50, %v14155_v37  ;;  %v548_v37 = vadd.s32 80, %v17297_v8 }
 0x3dc   : > { %v11425_v43 = vpop.f32.mrf.mxu0  ;;  %v14350_v7 = vpop.f32.mrf.mxu1 }
 0x3dd   : > { %17307 = vst [vmem:[#allocation34_spill] sm:$0xff] %v14350_v7  ;;  %v3921_v39 = vmul.f32 %v14344_v58, %v3889_v6  ;;  %v3887_v51 = vadd.f32 %v3760_v22, %v3363_v42  ;;  %v3374_v4 = vadd.f32 %v11425_v43, %v14162_v5  ;;  %v546_v42 = vadd.s32 64, %v17297_v8 }
 0x3de   : > { %v14354_v13 = vpop.f32.mrf.mxu0  ;;  %v11464_v1 = vpop.f32.mrf.mxu1  ;;  %v644_v43 = vand.u32 15, %v548_v37 }
 0x3df   : > { %v3919_v52 = vmul.f32 %v14348_v18, %v3887_v51  ;;  %v3890_v31 = vadd.f32 %v11461_v11, %v3374_v4  ;;  %v14359_v0 = vadd.f32 %v3921_v39, %v14159_v32  ;;  %v550_v18 = vadd.s32 96, %v17297_v8 }
 0x3e0   : > { %v11428_v50 = vpop.f32.mrf.mxu0  ;;  %v3776_v7 = vpop.f32.mrf.mxu1  ;;  %vm964_vm11 = vcmp.ne.s32.totalorder %v644_v43, 0 }
 0x3e1   : > { %v14362_v6 = vadd.f32 %v3890_v31, %v14170_v17  ;;  %v3387_v5 = vadd.f32 %v11428_v50, %v14172_v62  ;;  %v14367_v22 = vadd.f32 %v3919_v52, %v14165_v40  ;;  %v630_v52 = vand.u32 15, %v546_v42 }
 0x3e2   : > { %v3378_v25 = vpop.f32.mrf.mxu0  ;;  %v11465_v11 = vpop.f32.mrf.mxu1 }
 0x3e3   : > { %v3893_v32 = vadd.f32 %v11464_v1, %v3387_v5  ;;  %v3379_v39 = vadd.f32 %v3378_v25, %v14179_v9  ;;  %v552_v9 = vadd.s32 112, %v17297_v8  ;;  %vm962_vm12 = vcmp.ne.s32.totalorder %v630_v52, 0 }
 0x3e4   : > { %v11429_v17 = vpop.f32.mrf.mxu0  ;;  %v14376_v51 = vpop.f32.mrf.mxu1 }
 0x3e5   : > { %v3925_v62 = vmul.f32 %v14370_v30, %v3893_v32  ;;  %v3891_v4 = vadd.f32 %v3776_v7, %v3379_v39  ;;  %v3390_v40 = vadd.f32 %v11429_v17, %v14186_v23 }
 0x3e6   : > { %v14380_v31 = vpop.f32.mrf.mxu0  ;;  %v11468_v50 = vpop.f32.mrf.mxu1 }
 0x3e7   : > { %v3923_v1 = vmul.f32 %v14374_v36, %v3891_v4  ;;  %v3894_v5 = vadd.f32 %v11465_v11, %v3390_v40  ;;  %v14386_v58 = vadd.f32 %v3925_v62, %v14183_v34  ;;  %v14396_v11 = vsel %vm964_vm11, 1.0, %v17270_v27 }
 0x3e8   : > { %v11432_v37 = vpop.f32.mrf.mxu0  ;;  %v3792_v25 = vpop.f32.mrf.mxu1  ;;  %17310 = vst [vmem:[#allocation37_spill] sm:$0xff] %v14396_v11  ;;  %v672_v4 = vand.u32 15, %v552_v9  ;;  %v14400_v34 = vsel %vm962_vm12, 1.0, %v17270_v27 }
 0x3e9   : > { %v14389_v7 = vadd.f32 %v3894_v5, %v14194_v38  ;;  %v3403_v23 = vadd.f32 %v11432_v37, %v14196_v61  ;;  %v14393_v42 = vadd.f32 %v3923_v1, %v14189_v21  ;;  %17311 = vst [vmem:[#allocation38_spill] sm:$0xff] %v14400_v34  ;;  %v658_v61 = vand.u32 15, %v550_v18 }
 0x3ea   : > { %v3394_v32 = vpop.f32.mrf.mxu0  ;;  %v11469_v39 = vpop.f32.mrf.mxu1  ;;  %vm968_vm13 = vcmp.ne.s32.totalorder %v672_v4, 0 }
 0x3eb   : > { %v3897_v43 = vadd.f32 %v11468_v50, %v3403_v23  ;;  %v3395_v17 = vadd.f32 %v3394_v32, %v14203_v53  ;;  %v556_v50 = vadd.s32 144, %v17297_v8  ;;  %vm966_vm14 = vcmp.ne.s32.totalorder %v658_v61, 0 }
 0x3ec   : > { %v11433_v38 = vpop.f32.mrf.mxu0  ;;  %v14402_v62 = vpop.f32.mrf.mxu1  ;;  %v14426_v61 = vsel %vm966_vm14, 1.0, %v17270_v27 }
 0x3ed   : > { %v3929_v40 = vmul.f32 %v14396_v11, %v3897_v43  ;;  %v3895_v21 = vadd.f32 %v3792_v25, %v3395_v17  ;;  %v3406_v52 = vadd.f32 %v11433_v38, %v14210_v56  ;;  %v554_v25 = vadd.s32 128, %v17297_v8  ;;  %17314 = vst [vmem:[#allocation41_spill] sm:$0xff] %v14426_v61 }
 0x3ee   : > { %v14406_v1 = vpop.f32.mrf.mxu0  ;;  %v11472_v5 = vpop.f32.mrf.mxu1  ;;  %v14422_v17 = vsel %vm968_vm13, 1.0, %v17270_v27 }
 0x3ef   : > { %v3927_v53 = vmul.f32 %v14400_v34, %v3895_v21  ;;  %v3898_v9 = vadd.f32 %v11469_v39, %v3406_v52  ;;  %v14411_v37 = vadd.f32 %v3929_v40, %v14207_v33  ;;  %17313 = vst [vmem:[#allocation40_spill] sm:$0xff] %v14422_v17  ;;  %v700_v33 = vand.u32 15, %v556_v50 }
 0x3f0   : > { %v11436_v23 = vpop.f32.mrf.mxu0  ;;  %v3808_v32 = vpop.f32.mrf.mxu1 }
 0x3f1   : > { %v14414_v18 = vadd.f32 %v3898_v9, %v14218_v2  ;;  %v3419_v56 = vadd.f32 %v11436_v23, %v14220_v59  ;;  %v14419_v43 = vadd.f32 %v3927_v53, %v14213_v15  ;;  %v686_v53 = vand.u32 15, %v554_v25 }
 0x3f2   : > { %v3410_v39 = vpop.f32.mrf.mxu0  ;;  %v11473_v4 = vpop.f32.mrf.mxu1  ;;  %vm972_vm15 = vcmp.ne.s32.totalorder %v700_v33, 0 }
 0x3f3   : > { %17312 = vst [vmem:[#allocation39_spill] sm:$0xff] %v14414_v18  ;;  %v3901_v38 = vadd.f32 %v11472_v5, %v3419_v56  ;;  %v3411_v40 = vadd.f32 %v3410_v39, %v14227_v35  ;;  %v560_v35 = vadd.s32 176, %v17297_v8  ;;  %vm970_vm3 = vcmp.ne.s32.totalorder %v686_v53, 0 }
 0x3f4   : > { %v11437_v2 = vpop.f32.mrf.mxu0  ;;  %v14428_v21 = vpop.f32.mrf.mxu1  ;;  %v14445_v25 = vsel %vm972_vm15, 1.0, %v17270_v27 }
 0x3f5   : > { %v3933_v59 = vmul.f32 %v14422_v17, %v3901_v38  ;;  %v3899_v52 = vadd.f32 %v3808_v32, %v3411_v40  ;;  %v3422_v15 = vadd.f32 %v11437_v2, %v14234_v16  ;;  %v558_v32 = vadd.s32 160, %v17297_v8  ;;  %17317 = vst [vmem:[#allocation44_spill] sm:$0xff] %v14445_v25 }
 0x3f6   : > { %v14432_v9 = vpop.f32.mrf.mxu0  ;;  %v11476_v23 = vpop.f32.mrf.mxu1 }
 0x3f7   : > { %v3931_v5 = vmul.f32 %v14426_v61, %v3899_v52  ;;  %v3902_v50 = vadd.f32 %v11473_v4, %v3422_v15  ;;  %v14437_v56 = vadd.f32 %v3933_v59, %v14231_v24  ;;  %v728_v59 = vand.u32 15, %v560_v35 }
 0x3f8   : > { %v11440_v39 = vpop.f32.mrf.mxu0  ;;  %v3824_v34 = vpop.f32.mrf.mxu1 }
 0x3f9   : > { %17315 = vst [vmem:[#allocation42_spill] sm:$0xff] %v14437_v56  ;;  %v14440_v38 = vadd.f32 %v3902_v50, %v14242_v57  ;;  %v3435_v16 = vadd.f32 %v11440_v39, %v14244_v54  ;;  %v14448_v40 = vadd.f32 %v3931_v5, %v14237_v44  ;;  %v14452_v57 = vsel %vm970_vm3, 1.0, %v17270_v27 }
 0x3fa   : > { %v3426_v33 = vpop.f32.mrf.mxu0  ;;  %v11477_v4 = vpop.f32.mrf.mxu1  ;;  %17319 = vst [vmem:[#allocation46_spill] sm:$0xff] %v14452_v57  ;;  %v714_v39 = vand.u32 15, %v558_v32  ;;  %vm976_vm7 = vcmp.ne.s32.totalorder %v728_v59, 0  ;;  %v547_v56 = vadd.s32 72, %v17297_v8 }
 0x3fb   : > { %17316 = vst [vmem:[#allocation43_spill] sm:$0xff] %v14440_v38  ;;  %17318 = vst [vmem:[#allocation45_spill] sm:$0xff] %v14448_v40  ;;  %v3905_v24 = vadd.f32 %v11476_v23, %v3435_v16  ;;  %v3427_v2 = vadd.f32 %v3426_v33, %v14251_v3  ;;  %v564_v3 = vadd.s32 208, %v17297_v8  ;;  %v14471_v32 = vsel %vm976_vm7, 1.0, %v17270_v27  ;;  %v17379_v40 = vld [vmem:[#allocation8_spill] sm:$0xff] }
 0x3fc   : > { %v11441_v52 = vpop.f32.mrf.mxu0  ;;  %v14454_v54 = vpop.f32.mrf.mxu1  ;;  %vm974_vm8 = vcmp.ne.s32.totalorder %v714_v39, 0  ;;  %17322 = vst [vmem:[#allocation49_spill] sm:$0xff] %v14471_v32 }
 0x3fd   : > { %v3937_v15 = vmul.f32 %v14445_v25, %v3905_v24  ;;  %v3903_v53 = vadd.f32 %v3824_v34, %v3427_v2  ;;  %v3438_v50 = vadd.f32 %v11441_v52, %v14258_v47  ;;  %v562_v34 = vadd.s32 192, %v17297_v8 }
 0x3fe   : > { %v14458_v61 = vpop.f32.mrf.mxu0  ;;  %v11480_v44 = vpop.f32.mrf.mxu1 }
 0x3ff   : > { %v3935_v23 = vmul.f32 %v14452_v57, %v3903_v53  ;;  %v3906_v5 = vadd.f32 %v11477_v4, %v3438_v50  ;;  %v14463_v33 = vadd.f32 %v3937_v15, %v14255_v28  ;;  %v756_v15 = vand.u32 15, %v564_v3 }
 0x400   : > { %v11444_v35 = vpop.f32.mrf.mxu0  ;;  %v3840_v16 = vpop.f32.mrf.mxu1 }
 0x401   : > { %17320 = vst [vmem:[#allocation47_spill] sm:$0xff] %v14463_v33  ;;  %v14466_v24 = vadd.f32 %v3906_v5, %v14266_v45  ;;  %v3451_v47 = vadd.f32 %v11444_v35, %v14270_v20  ;;  %v14474_v59 = vadd.f32 %v3935_v23, %v14261_v10  ;;  %v14478_v45 = vsel %vm974_vm8, 1.0, %v17270_v27 }
 0x402   : > { %v3442_v4 = vpop.f32.mrf.mxu0  ;;  %v11481_v2 = vpop.f32.mrf.mxu1  ;;  %17324 = vst [vmem:[#allocation51_spill] sm:$0xff] %v14478_v45  ;;  %v742_v35 = vand.u32 15, %v562_v34  ;;  %vm980_vm9 = vcmp.ne.s32.totalorder %v756_v15, 0 }
 0x403   : > { %17321 = vst [vmem:[#allocation48_spill] sm:$0xff] %v14466_v24  ;;  %17323 = vst [vmem:[#allocation50_spill] sm:$0xff] %v14474_v59  ;;  %v3909_v52 = vadd.f32 %v11480_v44, %v3451_v47  ;;  %v3443_v28 = vadd.f32 %v3442_v4, %v14274_v26  ;;  %v568_v26 = vadd.s32 240, %v17297_v8  ;;  %v14497_v34 = vsel %vm980_vm9, 1.0, %v17270_v27 }
 0x404   : > { %v11445_v53 = vpop.f32.mrf.mxu0  ;;  %v14480_v20 = vpop.f32.mrf.mxu1  ;;  %vm978_vm10 = vcmp.ne.s32.totalorder %v742_v35, 0  ;;  %17327 = vst [vmem:[#allocation54_spill] sm:$0xff] %v14497_v34 }
 0x405   : > { %v3941_v50 = vmul.f32 %v14471_v32, %v3909_v52  ;;  %v3907_v39 = vadd.f32 %v3840_v16, %v3443_v28  ;;  %v3454_v5 = vadd.f32 %v11445_v53, %v14283_v12  ;;  %v566_v16 = vadd.s32 224, %v17297_v8 }
 0x406   : > { %v14484_v57 = vpop.f32.mrf.mxu0  ;;  %v11484_v10 = vpop.f32.mrf.mxu1 }
 0x407   : > { %v3939_v44 = vmul.f32 %v14478_v45, %v3907_v39  ;;  %v3910_v23 = vadd.f32 %v11481_v2, %v3454_v5  ;;  %v14489_v4 = vadd.f32 %v3941_v50, %v14280_v60  ;;  %v784_v50 = vand.u32 15, %v568_v26 }
 0x408   : > { %v11448_v3 = vpop.f32.mrf.mxu0  ;;  %v3856_v47 = vpop.f32.mrf.mxu1 }
 0x409   : > { %17325 = vst [vmem:[#allocation52_spill] sm:$0xff] %v14489_v4  ;;  %v14492_v52 = vadd.f32 %v3910_v23, %v14290_v14  ;;  %v3467_v12 = vadd.f32 %v11448_v3, %v14294_v49  ;;  %v14500_v15 = vadd.f32 %v3939_v44, %v14285_v48  ;;  %v14504_v14 = vsel %vm978_vm10, 1.0, %v17270_v27 }
 0x40a   : > { %v3458_v2 = vpop.f32.mrf.mxu0  ;;  %v11485_v28 = vpop.f32.mrf.mxu1  ;;  %17329 = vst [vmem:[#allocation56_spill] sm:$0xff] %v14504_v14  ;;  %v770_v3 = vand.u32 15, %v566_v16  ;;  %vm984_vm11 = vcmp.ne.s32.totalorder %v784_v50, 0  ;;  %v17334_v50 = vld [vmem:[#allocation5_spill] sm:$0xff] }
 0x40b   : > { %17326 = vst [vmem:[#allocation53_spill] sm:$0xff] %v14492_v52  ;;  %17328 = vst [vmem:[#allocation55_spill] sm:$0xff] %v14500_v15  ;;  %v3913_v53 = vadd.f32 %v11484_v10, %v3467_v12  ;;  %v3459_v60 = vadd.f32 %v3458_v2, %v14298_v19 }
 0x40c   : > { %v11449_v39 = vpop.f32.mrf.mxu0  ;;  %v14506_v49 = vpop.f32.mrf.mxu1  ;;  %vm982_vm12 = vcmp.ne.s32.totalorder %v770_v3, 0 }
 0x40d   : > { %v3945_v5 = vmul.f32 %v14497_v34, %v3913_v53  ;;  %v3911_v35 = vadd.f32 %v3856_v47, %v3459_v60  ;;  %v3470_v23 = vadd.f32 %v11449_v39, %v14305_v55  ;;  %v14521_v55 = vsel %vm984_vm11, 1.0, %v17270_v27 }
 0x40e   : > { %v14510_v45 = vpop.f32.mrf.mxu0  ;;  %v11488_v48 = vpop.f32.mrf.mxu1  ;;  %17332 = vst [vmem:[#allocation59_spill] sm:$0xff] %v14521_v55 }
 0x40f   : > { %v3943_v10 = vmul.f32 %v14504_v14, %v3911_v35  ;;  %v3914_v44 = vadd.f32 %v11485_v28, %v3470_v23  ;;  %v14514_v12 = vadd.f32 %v3945_v5, %v14302_v46  ;;  %v14528_v46 = vsel %vm982_vm12, 1.0, %v17270_v27  ;;  %v17337_v23 = vld [vmem:[#allocation27_spill] sm:$0xff]  ;;  %v17341_v14 = vld [vmem:[#allocation30_spill] sm:$0xff] }
 0x410   : > { %v11452_v19 = vpop.f32.mrf.mxu0  ;;  %v3872_v26 = vpop.f32.mrf.mxu1  ;;  %17335 = vst [vmem:[#allocation5_spill] sm:$0xff] %v14528_v46 }
 0x411   : > { %17330 = vst [vmem:[#allocation57_spill] sm:$0xff] %v14514_v12  ;;  %v14517_v2 = vadd.f32 %v3914_v44, %v14313_v63  ;;  %v3483_v47 = vadd.f32 %v11452_v19, %v14318_v29  ;;  %v14524_v60 = vadd.f32 %v3943_v10, %v14308_v41 }
 0x412   : > { %v3474_v16 = vpop.f32.mrf.mxu0  ;;  %v11489_v53 = vpop.f32.mrf.mxu1 }
 0x413   : > { %17331 = vst [vmem:[#allocation58_spill] sm:$0xff] %v14517_v2  ;;  %17333 = vst [vmem:[#allocation60_spill] sm:$0xff] %v14524_v60  ;;  %v3917_v28 = vadd.f32 %v11488_v48, %v3483_v47  ;;  %v3475_v39 = vadd.f32 %v3474_v16, %v17334_v50  ;;  %v17339_v16 = vld [vmem:[#allocation26_spill] sm:$0xff]  ;;  %v14638_v2 = vld [vmem:[%s17190_s11] sm:$0xff] }
 0x414   : > { %v11453_v5 = vpop.f32.mrf.mxu0  ;;  %v14530_v63 = vpop.f32.mrf.mxu1  ;;  %17359 = vst [vmem:[#allocation76_spill] sm:$0xff] %v14638_v2 }
 0x415   : > { %17336 = vst [vmem:[#allocation61_spill] sm:$0xff] %v14530_v63  ;;  %v3949_v29 = vmul.f32 %v14521_v55, %v3917_v28  ;;  %v3915_v35 = vadd.f32 %v3872_v26, %v3475_v39  ;;  %v3486_v3 = vadd.f32 %v11453_v5, %v17337_v23  ;;  %v17343_v39 = vld [vmem:[#allocation28_spill] sm:$0xff] }
 0x416   : > { %v14534_v44 = vpop.f32.mrf.mxu0  ;;  %v11532_v19 = vpop.f32.mrf.mxu1 }
 0x417   : > { %17338 = vst [vmem:[#allocation27_spill] sm:$0xff] %v14534_v44  ;;  %v3947_v41 = vmul.f32 %v14528_v46, %v3915_v35  ;;  %v3918_v10 = vadd.f32 %v11489_v53, %v3486_v3  ;;  %v14538_v50 = vadd.f32 %v3949_v29, %v17339_v16 }
 0x418   : > { %v11496_v48 = vpop.f32.mrf.mxu0  ;;  %v4539_v47 = vpop.f32.mrf.mxu1 }
 0x419   : > { %17340 = vst [vmem:[#allocation26_spill] sm:$0xff] %v14538_v50  ;;  %v14541_v34 = vadd.f32 %v3918_v10, %v17341_v14  ;;  %v14543_v32 = vadd.f32 %v11532_v19, %v11496_v48  ;;  %v14546_v5 = vadd.f32 %v3947_v41, %v17343_v39 }
 0x41a   : > { %v4339_v28 = vpop.f32.mrf.mxu0  ;;  %v11533_v26 = vpop.f32.mrf.mxu1 }
 0x41b   : > { %17342 = vst [vmem:[#allocation30_spill] sm:$0xff] %v14541_v34  ;;  %17344 = vst [vmem:[#allocation28_spill] sm:$0xff] %v14546_v5  ;;  %v14548_v23 = vadd.f32 %v4539_v47, %v4339_v28 }
 0x41c   : > { %v11497_v55 = vpop.f32.mrf.mxu0  ;;  %v14550_v35 = vpop.f32.mrf.mxu1 }
 0x41d   : > { %v14552_v53 = vadd.f32 %v11533_v26, %v11497_v55 }
 0x41e   : > { %v14554_v3 = vpop.f32.mrf.mxu0  ;;  %v11536_v29 = vpop.f32.mrf.mxu1 }
 0x420   : > { %v11500_v16 = vpop.f32.mrf.mxu0  ;;  %v4555_v14 = vpop.f32.mrf.mxu1 }
 0x421   : > { %v14556_v10 = vadd.f32 %v11536_v29, %v11500_v16 }
 0x422   : > { %v4355_v19 = vpop.f32.mrf.mxu0  ;;  %v11537_v48 = vpop.f32.mrf.mxu1 }
 0x423   : > { %v14558_v46 = vadd.f32 %v4555_v14, %v4355_v19  ;;  %v14577_v19 = vld [vmem:[%s17190_s11 + $0x38] sm:$0xff] }
 0x424   : > { %v11501_v41 = vpop.f32.mrf.mxu0  ;;  %v14560_v39 = vpop.f32.mrf.mxu1  ;;  %17346 = vst [vmem:[#allocation63_spill] sm:$0xff] %v14577_v19  ;;  %11611 = vmatpush3.msra.mxu1 %v14577_v19 }
 0x425   : > { %v14562_v47 = vadd.f32 %v11537_v48, %v11501_v41  ;;  %v14582_v48 = vld [vmem:[%s17190_s11 + $0x30] sm:$0xff]  ;;  %11612 = vmatprep.subr.mxu1 %v17270_v27 }
 0x426   : > { %v14564_v28 = vpop.f32.mrf.mxu0  ;;  %v11540_v55 = vpop.f32.mrf.mxu1  ;;  %17347 = vst [vmem:[#allocation64_spill] sm:$0xff] %v14582_v48  ;;  %11613 = vmatpush3.msra.mxu1 %v14582_v48 }
 0x427   : > { %11614 = vmatprep.subr.mxu1 %v17270_v27 }
 0x428   : > { %v11504_v26 = vpop.f32.mrf.mxu0  ;;  %v4571_v25 = vpop.f32.mrf.mxu1 }
 0x429   : > { %v14566_v17 = vadd.f32 %v11540_v55, %v11504_v26 }
 0x42a   : > { %v4371_v11 = vpop.f32.mrf.mxu0  ;;  %v11541_v36 = vpop.f32.mrf.mxu1 }
 0x42b   : > { %v14568_v29 = vadd.f32 %v4571_v25, %v4371_v11 }
 0x42c   : > { %v11505_v16 = vpop.f32.mrf.mxu0  ;;  %v14570_v30 = vpop.f32.mrf.mxu1 }
 0x42d   : > { %17345 = vst [vmem:[#allocation62_spill] sm:$0xff] %v14570_v30  ;;  %v14572_v14 = vadd.f32 %v11541_v36, %v11505_v16  ;;  %v14591_v36 = vld [vmem:[%s17190_s11 + $0x28] sm:$0xff]  ;;  %v14600_v16 = vld [vmem:[%s17190_s11 + $0x20] sm:$0xff] }
 0x42e   : > { %v14584_v41 = vpop.f32.mrf.mxu0  ;;  %v11544_v55 = vpop.f32.mrf.mxu1  ;;  %17348 = vst [vmem:[#allocation65_spill] sm:$0xff] %v14591_v36  ;;  %17350 = vst [vmem:[#allocation67_spill] sm:$0xff] %v14600_v16  ;;  %11615 = vmatpush3.msra.mxu1 %v14591_v36  ;;  %v17391_v30 = vld [vmem:[#allocation31_spill] sm:$0xff] }
 0x42f   : > { %11616 = vmatprep.subr.mxu1 %v17270_v27 }
 0x430   : > { %v11508_v11 = vpop.f32.mrf.mxu0  ;;  %v4587_v25 = vpop.f32.mrf.mxu1  ;;  %11617 = vmatpush3.msra.mxu1 %v14600_v16  ;;  %v14629_v16 = vld [vmem:[%s17190_s11 + $0x8] sm:$0xff] }
 0x431   : > { %v14594_v26 = vadd.f32 %v11544_v55, %v11508_v11  ;;  %v14609_v55 = vld [vmem:[%s17190_s11 + $0x18] sm:$0xff]  ;;  %11618 = vmatprep.subr.mxu1 %v17270_v27  ;;  %17357 = vst [vmem:[#allocation74_spill] sm:$0xff] %v14629_v16 }
 0x432   : > { %v4387_v19 = vpop.f32.mrf.mxu0  ;;  %v11545_v34 = vpop.f32.mrf.mxu1  ;;  %17352 = vst [vmem:[#allocation69_spill] sm:$0xff] %v14609_v55  ;;  %11619 = vmatpush3.msra.mxu1 %v14609_v55 }
 0x433   : > { %17349 = vst [vmem:[#allocation66_spill] sm:$0xff] %v14594_v26  ;;  %v14603_v5 = vadd.f32 %v4587_v25, %v4387_v19  ;;  %v14620_v19 = vld [vmem:[%s17190_s11 + $0x10] sm:$0xff]  ;;  %11620 = vmatprep.subr.mxu1 %v17270_v27 }
 0x434   : > { %v11509_v11 = vpop.f32.mrf.mxu0  ;;  %v14611_v48 = vpop.f32.mrf.mxu1  ;;  %17355 = vst [vmem:[#allocation72_spill] sm:$0xff] %v14620_v19  ;;  %11621 = vmatpush3.msra.mxu1 %v14620_v19 }
 0x435   : > { %17351 = vst [vmem:[#allocation68_spill] sm:$0xff] %v14603_v5  ;;  %17353 = vst [vmem:[#allocation70_spill] sm:$0xff] %v14611_v48  ;;  %v14614_v63 = vadd.f32 %v11545_v34, %v11509_v11  ;;  %11622 = vmatprep.subr.mxu1 %v17270_v27  ;;  %v549_v5 = vadd.s32 88, %v17297_v8 }
 0x436   : > { %v14622_v25 = vpop.f32.mrf.mxu0  ;;  %v11548_v36 = vpop.f32.mrf.mxu1  ;;  %11623 = vmatpush3.msra.mxu1 %v14629_v16 }
 0x437   : > { %17354 = vst [vmem:[#allocation71_spill] sm:$0xff] %v14614_v63  ;;  %17356 = vst [vmem:[#allocation73_spill] sm:$0xff] %v14622_v25  ;;  %11624 = vmatprep.subr.mxu1 %v17270_v27  ;;  %v17380_v63 = vld [vmem:[#allocation9_spill] sm:$0xff] }
 0x438   : > { %v11512_v34 = vpop.f32.mrf.mxu0  ;;  %v4603_v11 = vpop.f32.mrf.mxu1  ;;  %11625 = vmatpush3.msra.mxu1 %v14638_v2  ;;  %v2474_v48 = vadd.f32 %v17380_v63, %v17379_v40  ;;  %v17388_v40 = vld [vmem:[#allocation23_spill] sm:$0xff] }
 0x439   : > { %v14632_v50 = vadd.f32 %v11548_v36, %v11512_v34  ;;  %11629 = vmatprep.subr.mxu1 %v17270_v27 }
 0x43a   : > { %v4403_v55 = vpop.f32.mrf.mxu0  ;;  %v11549_v44 = vpop.f32.mrf.mxu1 }
 0x43b   : > { %17358 = vst [vmem:[#allocation75_spill] sm:$0xff] %v14632_v50  ;;  %v14641_v60 = vadd.f32 %v4603_v11, %v4403_v55 }
 0x43c   : > { %v11513_v12 = vpop.f32.mrf.mxu0  ;;  %v14644_v52 = vpop.f32.mrf.mxu1 }
 0x43d   : > { %17360 = vst [vmem:[#allocation77_spill] sm:$0xff] %v14641_v60  ;;  %17361 = vst [vmem:[#allocation78_spill] sm:$0xff] %v14644_v52  ;;  %v14647_v36 = vadd.f32 %v11549_v44, %v11513_v12 }
 0x43e   : > { %v14650_v34 = vpop.f32.mrf.mxu0  ;;  %v11552_v19 = vpop.f32.mrf.mxu1 }
 0x43f   : > { %17362 = vst [vmem:[#allocation79_spill] sm:$0xff] %v14647_v36  ;;  %17363 = vst [vmem:[#allocation80_spill] sm:$0xff] %v14650_v34 }
 0x440   : > { %v11516_v15 = vpop.f32.mrf.mxu0  ;;  %v4619_v4 = vpop.f32.mrf.mxu1 }
 0x441   : > { %v14652_v24 = vadd.f32 %v11552_v19, %v11516_v15 }
 0x442   : > { %v4419_v55 = vpop.f32.mrf.mxu0  ;;  %v11553_v11 = vpop.f32.mrf.mxu1 }
 0x443   : > { %17364 = vst [vmem:[#allocation81_spill] sm:$0xff] %v14652_v24  ;;  %v14654_v16 = vadd.f32 %v4619_v4, %v4419_v55 }
 0x444   : > { %v11517_v59 = vpop.f32.mrf.mxu0  ;;  %v14656_v60 = vpop.f32.mrf.mxu1 }
 0x445   : > { %17365 = vst [vmem:[#allocation82_spill] sm:$0xff] %v14654_v16  ;;  %17366 = vst [vmem:[#allocation83_spill] sm:$0xff] %v14656_v60  ;;  %v14658_v52 = vadd.f32 %v11553_v11, %v11517_v59  ;;  %v541_v11 = vadd.s32 24, %v17297_v8  ;;  %v539_v60 = vadd.s32 8, %v17297_v8  ;;  %v17378_v16 = vld [vmem:[#allocation3_spill] sm:$0xff] }
 0x446   : > { %v14660_v12 = vpop.f32.mrf.mxu0  ;;  %v11556_v44 = vpop.f32.mrf.mxu1 }
 0x447   : > { %17367 = vst [vmem:[#allocation84_spill] sm:$0xff] %v14658_v52  ;;  %17368 = vst [vmem:[#allocation85_spill] sm:$0xff] %v14660_v12 }
 0x448   : > { %v11520_v2 = vpop.f32.mrf.mxu0  ;;  %v4635_v36 = vpop.f32.mrf.mxu1 }
 0x449   : > { %v14662_v34 = vadd.f32 %v11556_v44, %v11520_v2  ;;  %v17374_v2 = vld [vmem:[#allocation12_spill] sm:$0xff] }
 0x44a   : > { %v4435_v33 = vpop.f32.mrf.mxu0  ;;  %v11557_v50 = vpop.f32.mrf.mxu1  ;;  %v3366_v44 = vadd.f32 %v14354_v13, %v17374_v2  ;;  %v581_v13 = vand.u32 15, %v539_v60 }
 0x44b   : > { %17369 = vst [vmem:[#allocation86_spill] sm:$0xff] %v14662_v34  ;;  %v14664_v15 = vadd.f32 %v4635_v36, %v4435_v33  ;;  %v17376_v33 = vld [vmem:[#allocation14_spill] sm:$0xff] }
 0x44c   : > { %v11521_v19 = vpop.f32.mrf.mxu0  ;;  %v14666_v24 = vpop.f32.mrf.mxu1  ;;  %v3382_v36 = vadd.f32 %v14380_v31, %v17376_v33  ;;  %v17384_v31 = vld [vmem:[#allocation16_spill] sm:$0xff]  ;;  %vm1051_vm14 = vcmp.ne.s32.totalorder %v581_v13, 15 }
 0x44d   : > { %17370 = vst [vmem:[#allocation87_spill] sm:$0xff] %v14664_v15  ;;  %17371 = vst [vmem:[#allocation88_spill] sm:$0xff] %v14666_v24  ;;  %v14668_v4 = vadd.f32 %v11557_v50, %v11521_v19  ;;  %v595_v19 = vand.u32 15, %v541_v11  ;;  %v17377_v15 = vld [vmem:[#allocation7_spill] sm:$0xff]  ;;  %v3398_v33 = vadd.f32 %v14406_v1, %v17384_v31 }
 0x44e   : > { %v14670_v55 = vpop.f32.mrf.mxu0  ;;  %v11560_v59 = vpop.f32.mrf.mxu1  ;;  %v2458_v38 = vadd.f32 %v17378_v16, %v17377_v15  ;;  %v17386_v16 = vld [vmem:[#allocation4_spill] sm:$0xff]  ;;  %v17387_v15 = vld [vmem:[#allocation21_spill] sm:$0xff] }
 0x44f   : > { %17372 = vst [vmem:[#allocation89_spill] sm:$0xff] %v14668_v4  ;;  %17373 = vst [vmem:[#allocation90_spill] sm:$0xff] %v14670_v55  ;;  %v545_v55 = vadd.s32 56, %v17297_v8  ;;  %v543_v4 = vadd.s32 40, %v17297_v8  ;;  %v2856_v26 = vadd.f32 %v17387_v15, %v17386_v16  ;;  %vm1053_vm13 = vcmp.ne.s32.totalorder %v595_v19, 15 }
 0x450   : > { %v11524_v12 = vpop.f32.mrf.mxu0  ;;  %v4651_v52 = vpop.f32.mrf.mxu1  ;;  %v651_v19 = vand.u32 15, %v549_v5  ;;  %v557_v5 = vadd.s32 152, %v17297_v8 }
 0x451   : > { %v14676_v34 = vadd.f32 %v11560_v59, %v11524_v12  ;;  %v17382_v12 = vld [vmem:[#allocation11_spill] sm:$0xff]  ;;  %v17383_v59 = vld [vmem:[#allocation10_spill] sm:$0xff]  ;;  %v623_v31 = vand.u32 15, %v545_v55  ;;  %v637_v55 = vand.u32 15, %v547_v56 }
 0x452   : > { %v4451_v24 = vpop.f32.mrf.mxu0  ;;  %v11561_v50 = vpop.f32.mrf.mxu1  ;;  %v2490_v2 = vadd.f32 %v17383_v59, %v17382_v12  ;;  %v3892_v12 = vadd.f32 %v14376_v51, %v3382_v36  ;;  %vm14749_vm7 = vcmp.ne.s32.totalorder %v651_v19, 15 }
 0x453   : > { %17375 = vst [vmem:[#allocation12_spill] sm:$0xff] %v14676_v34  ;;  %v14686_v25 = vadd.f32 %v4651_v52, %v4451_v24  ;;  %v14699_v24 = vadd.f32 %v17388_v40, %v2458_v38  ;;  %v17389_v52 = vld [vmem:[#allocation34_spill] sm:$0xff]  ;;  %vm14730_vm15 = vcmp.ne.s32.totalorder %v623_v31, 15  ;;  %v17402_v31 = vld [vmem:[#allocation17_spill] sm:$0xff]  ;;  %vm14753_vm8 = vcmp.ne.s32.totalorder %v637_v55, 15 }
 0x454   : > { %v11525_v11 = vpop.f32.mrf.mxu0  ;;  %v14692_v34 = vpop.f32.mrf.mxu1  ;;  %v3888_v60 = vadd.f32 %v17389_v52, %v3366_v44  ;;  %v14711_v16 = vadd.f32 %v17391_v30, %v2490_v2  ;;  %v17392_v38 = vld [vmem:[#allocation18_spill] sm:$0xff]  ;;  %v3896_v44 = vadd.f32 %v14402_v62, %v3398_v33  ;;  %v14721_v30 = vsel %vm1053_vm13, 1.0, %v17270_v27 }
 0x455   : > { %17381 = vst [vmem:[#allocation14_spill] sm:$0xff] %v14686_v25  ;;  %17385 = vst [vmem:[#allocation7_spill] sm:$0xff] %v14692_v34  ;;  %v14702_v63 = vadd.f32 %v11561_v50, %v11525_v11  ;;  %v609_v34 = vand.u32 15, %v543_v4  ;;  %v17390_v25 = vld [vmem:[#allocation25_spill] sm:$0xff]  ;;  %v3414_v15 = vadd.f32 %v14432_v9, %v17392_v38  ;;  %v17393_v50 = vld [vmem:[#allocation20_spill] sm:$0xff]  ;;  %v14728_v2 = vsel %vm1051_vm14, 1.0, %v17270_v27 }
 0x456   : > { %v14705_v1 = vpop.f32.mrf.mxu0  ;;  %v5354_v59 = vpop.f32.mrf.mxu1  ;;  %v14708_v18 = vadd.f32 %v17390_v25, %v2474_v48  ;;  %v3430_v51 = vadd.f32 %v14458_v61, %v17393_v50  ;;  %v17394_v4 = vld [vmem:[#allocation13_spill] sm:$0xff]  ;;  %17395 = vst [vmem:[#allocation3_spill] sm:$0xff] %v14721_v30  ;;  %v553_v25 = vadd.s32 120, %v17297_v8  ;;  %v17396_v9 = vld [vmem:[#allocation15_spill] sm:$0xff]  ;;  %17397 = vst [vmem:[#allocation8_spill] sm:$0xff] %v14728_v2  ;;  %v14746_v38 = vadd.f32 %v3896_v44, %v17402_v31 }
 0x457   : > { %v3952_v40 = vadd.f32 %v3888_v60, %v17394_v4  ;;  %v14725_v13 = vadd.f32 %v3892_v12, %v17396_v9  ;;  %vm14734_vm3 = vcmp.ne.s32.totalorder %v609_v34, 15  ;;  %v5291_v60 = vld [vmem:[%s17187_s8] sm:$0x1]  ;;  %v551_v12 = vadd.s32 104, %v17297_v8  ;;  %v17407_v4 = vld [vmem:[#allocation22_spill] sm:$0xff] }
 0x458   : > { %v11568_v36 = vpop.f32.mrf.mxu0  ;;  %v11608_v11 = vpop.f32.mrf.mxu1  ;;  %v3904_v34 = vadd.f32 %v14454_v54, %v3430_v51  ;;  %v679_v44 = vand.u32 15, %v553_v25  ;;  %v3446_v54 = vadd.f32 %v14484_v57, %v17407_v4  ;;  %v5355_v51 = vadd.f32 %v5354_v59, %v5291_v60  ;;  %v17413_v31 = vld [vmem:[#allocation6_spill] sm:$0xff] }
 0x459   : > { %v5142_v48 = vadd.f32 %v11568_v36, %v14543_v32  ;;  %v3900_v32 = vadd.f32 %v14428_v21, %v3414_v15  ;;  %v4543_v21 = vadd.f32 %v14550_v35, %v14554_v3  ;;  %v14766_v55 = vsel %vm14730_vm15, 1.0, %v17270_v27  ;;  %v17410_v35 = vld [vmem:[#allocation19_spill] sm:$0xff] }
 0x45a   : > { %v5013_v62 = vpop.f32.mrf.mxu0  ;;  %v5357_v61 = vpop.f32.mrf.mxu1  ;;  %17408 = vst [vmem:[#allocation9_spill] sm:$0xff] %v14766_v55  ;;  %v665_v59 = vand.u32 15, %v551_v12  ;;  %v14794_v56 = vadd.f32 %v3904_v34, %v2856_v26  ;;  %vm1065_vm9 = vcmp.ne.s32.totalorder %v679_v44, 15  ;;  %v3908_v60 = vadd.f32 %v14480_v20, %v3446_v54 }
 0x45b   : > { %v5206_v33 = vadd.f32 %v5142_v48, %v14359_v0  ;;  %v5140_v52 = vadd.f32 %v5013_v62, %v14548_v23  ;;  %v14771_v48 = vsel %vm14734_vm3, 1.0, %v17270_v27  ;;  %v14786_v62 = vsel %vm14749_vm7, 1.0, %v17270_v27 }
 0x45c   : > { %v11569_v50 = vpop.f32.mrf.mxu0  ;;  %v11609_v36 = vpop.f32.mrf.mxu1  ;;  %17409 = vst [vmem:[#allocation11_spill] sm:$0xff] %v14771_v48  ;;  %17411 = vst [vmem:[#allocation10_spill] sm:$0xff] %v14786_v62  ;;  %v14791_v61 = vsel %vm14753_vm8, 1.0, %v17270_v27  ;;  %vm1063_vm10 = vcmp.ne.s32.totalorder %v665_v59, 15  ;;  %v555_v26 = vadd.s32 136, %v17297_v8  ;;  %v14818_v44 = vadd.f32 %v3908_v60, %v14699_v24  ;;  %v17416_v24 = vld [vmem:[#allocation24_spill] sm:$0xff] }
 0x45d   : > { %v5204_v23 = vadd.f32 %v5140_v52, %v14367_v22  ;;  %v5143_v15 = vadd.f32 %v11569_v50, %v14552_v53  ;;  %v14774_v22 = vadd.f32 %v3900_v32, %v17410_v35  ;;  %v14779_v53 = vld [vmem:[%s17185_s6] ss:$0 sm:$0xff]  ;;  %17412 = vst [vmem:[#allocation16_spill] sm:$0xff] %v14791_v61  ;;  %v14801_v50 = vrot.slane %v5355_v51, %v17413_v31  ;;  %v17424_v59 = vld [vmem:[#allocation66_spill] sm:$0xff] }
 0x45e   : > { %v5016_v19 = vpop.f32.mrf.mxu0  ;;  %v5245_v12 = vadd.f32 %v14779_v53, %v5206_v33  ;;  %v14811_v33 = vsel %vm1065_vm9, 1.0, %v17270_v27  ;;  %v4559_v4 = vadd.f32 %v14560_v39, %v14564_v28  ;;  %v14826_v51 = vsel %vm1063_vm10, 1.0, %v17270_v27 }
 0x45f   : > { %v5175_v57 = vmul.f32 %v14721_v30, %v5143_v15  ;;  %v5141_v3 = vadd.f32 %v5016_v19, %v4543_v21  ;;  %v5243_v25 = vadd.f32 %v14779_v53, %v5204_v23  ;;  %17414 = vst [vmem:[#allocation4_spill] sm:$0xff] %v14811_v33  ;;  %v707_v23 = vand.u32 15, %v557_v5  ;;  %17415 = vst [vmem:[#allocation21_spill] sm:$0xff] %v14826_v51 }
 0x460   : > { %v11572_v9 = vpop.f32.mrf.mxu0  ;;  %v693_v35 = vand.u32 15, %v555_v26 }
 0x461   : > { %v5207_v32 = vadd.f32 %v5175_v57, %v14362_v6  ;;  %v5173_v52 = vmul.f32 %v14728_v2, %v5141_v3  ;;  %v5146_v36 = vadd.f32 %v11572_v9, %v14556_v10  ;;  %v14807_v6 = vadd.f32 %v14801_v50, %v5243_v25 }
 0x462   : > { %v5029_v11 = vpop.f32.mrf.mxu0  ;;  %v3462_v57 = vadd.f32 %v14510_v45, %v17416_v24  ;;  %vm14837_vm11 = vcmp.ne.s32.totalorder %v707_v23, 15  ;;  %vm14864_vm12 = vcmp.ne.s32.totalorder %v693_v35, 15 }
 0x463   : > { %v5205_v0 = vadd.f32 %v5173_v52, %v3952_v40  ;;  %v5144_v21 = vadd.f32 %v5029_v11, %v14558_v46  ;;  %v5210_v34 = vadd.f32 %v5146_v36, %v14386_v58  ;;  %v5246_v15 = vadd.f32 %v14779_v53, %v5207_v32 }
 0x464   : > { %v11573_v20 = vpop.f32.mrf.mxu0  ;;  %v14823_v58 = vadd.f32 %v14801_v50, %v5245_v12  ;;  %v5396_v39 = vsel %vm5316_vm6, %v14807_v6, 0.0  ;;  %v561_v36 = vadd.s32 184, %v17297_v8  ;;  %v14862_v23 = vsel %vm14837_vm11, 1.0, %v17270_v27 }
 0x465   : > { %v5244_v10 = vadd.f32 %v14779_v53, %v5205_v0  ;;  %v5208_v40 = vadd.f32 %v5144_v21, %v14393_v42  ;;  %v5147_v46 = vadd.f32 %v11573_v20, %v14562_v47  ;;  %v14842_v25 = vadd.f32 %v14801_v50, %v5246_v15  ;;  %17419 = vst [vmem:[#allocation23_spill] sm:$0xff] %v14862_v23 }
 0x466   : > { %v5032_v54 = vpop.f32.mrf.mxu0  ;;  %v5399_v45 = vsel %vm5316_vm6, %v14823_v58, 0.0  ;;  %v5249_v11 = vadd.f32 %v14779_v53, %v5210_v34  ;;  %v3912_v34 = vadd.f32 %v14506_v49, %v3462_v57 }
 0x467   : > { %v14829_v19 = vadd.f32 %v14801_v50, %v5244_v10  ;;  %v5247_v42 = vadd.f32 %v14779_v53, %v5208_v40  ;;  %v5179_v47 = vmul.f32 %v14766_v55, %v5147_v46  ;;  %v5145_v28 = vadd.f32 %v5032_v54, %v4559_v4 }
 0x468   : > { %v11576_v3 = vpop.f32.mrf.mxu0 }
 0x469   : > { %v5397_v9 = vsel %vm5316_vm6, %v14829_v19, 0.0  ;;  %v5211_v5 = vadd.f32 %v5179_v47, %v14389_v7  ;;  %v5150_v32 = vadd.f32 %v11576_v3, %v14566_v17  ;;  %v5177_v60 = vmul.f32 %v14771_v48, %v5145_v28  ;;  %v17423_v28 = vld [vmem:[#allocation39_spill] sm:$0xff] }
 0x46a   : > { %v5398_v52 = vadd.f32 %v5397_v9, %v5396_v39  ;;  %v5045_v12 = vpop.f32.mrf.mxu0  ;;  %v14854_v0 = vadd.f32 %v14801_v50, %v5247_v42  ;;  %v14878_v47 = vadd.f32 %v14801_v50, %v5249_v11 }
 0x46b   : > { %v5214_v21 = vadd.f32 %v5150_v32, %v14411_v37  ;;  %v5148_v7 = vadd.f32 %v5045_v12, %v14568_v29  ;;  %v5209_v17 = vadd.f32 %v5177_v60, %v14725_v13  ;;  %v5401_v37 = vsel %vm5316_vm6, %v14842_v25, 0.0  ;;  %v17422_v13 = vld [vmem:[#allocation62_spill] sm:$0xff] }
 0x46c   : > { %v5400_v26 = vadd.f32 %v5399_v45, %v5398_v52  ;;  %v11577_v20 = vpop.f32.mrf.mxu0  ;;  %v4575_v40 = vadd.f32 %v17422_v13, %v14584_v41  ;;  %v5250_v4 = vadd.f32 %v14779_v53, %v5211_v5  ;;  %v5403_v49 = vsel %vm5316_vm6, %v14854_v0, 0.0  ;;  %v17430_v13 = vld [vmem:[#allocation73_spill] sm:$0xff] }
 0x46d   : > { %v5212_v29 = vadd.f32 %v5148_v7, %v14419_v43  ;;  %v5151_v10 = vadd.f32 %v11577_v20, %v14572_v14  ;;  %v5248_v54 = vadd.f32 %v14779_v53, %v5209_v17  ;;  %v735_v43 = vand.u32 15, %v561_v36 }
 0x46e   : > { %v5402_v46 = vadd.f32 %v5401_v37, %v5400_v26  ;;  %v5048_v42 = vpop.f32.mrf.mxu0  ;;  %v14892_v5 = vsel %vm14864_vm12, 1.0, %v17270_v27  ;;  %v559_v32 = vadd.s32 168, %v17297_v8  ;;  %v14896_v45 = vadd.f32 %v3912_v34, %v14708_v18  ;;  %v17426_v26 = vld [vmem:[#allocation42_spill] sm:$0xff]  ;;  %v17429_v37 = vld [vmem:[#allocation68_spill] sm:$0xff] }
 0x46f   : > { %v5183_v35 = vmul.f32 %v14786_v62, %v5151_v10  ;;  %v14884_v14 = vadd.f32 %v14801_v50, %v5248_v54  ;;  %v5251_v41 = vadd.f32 %v14779_v53, %v5212_v29  ;;  %v5149_v57 = vadd.f32 %v5048_v42, %v4575_v40  ;;  %17425 = vst [vmem:[#allocation34_spill] sm:$0xff] %v14892_v5  ;;  %v17431_v40 = vld [vmem:[#allocation70_spill] sm:$0xff] }
 0x470   : > { %v5404_v24 = vadd.f32 %v5403_v49, %v5402_v46  ;;  %v11580_v39 = vpop.f32.mrf.mxu0  ;;  %v14899_v52 = vadd.f32 %v14801_v50, %v5250_v4  ;;  %v5253_v7 = vadd.f32 %v14779_v53, %v5214_v21  ;;  %vm14906_vm13 = vcmp.ne.s32.totalorder %v735_v43, 15  ;;  %v17432_v4 = vld [vmem:[#allocation71_spill] sm:$0xff] }
 0x471   : > { %v5215_v3 = vadd.f32 %v5183_v35, %v17423_v28  ;;  %v5154_v9 = vadd.f32 %v11580_v39, %v17424_v59  ;;  %v5405_v60 = vsel %vm5316_vm6, %v14884_v14, 0.0  ;;  %v5181_v12 = vmul.f32 %v14791_v61, %v5149_v57 }
 0x472   : > { %v5061_v36 = vpop.f32.mrf.mxu0  ;;  %v5406_v11 = vadd.f32 %v5405_v60, %v5404_v24  ;;  %v5407_v18 = vsel %vm5316_vm6, %v14878_v47, 0.0  ;;  %v14913_v15 = vadd.f32 %v14801_v50, %v5251_v41  ;;  %v4591_v21 = vadd.f32 %v17431_v40, %v17430_v13  ;;  %v17433_v24 = vld [vmem:[#allocation45_spill] sm:$0xff] }
 0x473   : > { %v5218_v17 = vadd.f32 %v5154_v9, %v17426_v26  ;;  %v5213_v34 = vadd.f32 %v5181_v12, %v14746_v38  ;;  %v5152_v29 = vadd.f32 %v5061_v36, %v17429_v37  ;;  %v721_v42 = vand.u32 15, %v559_v32  ;;  %v17436_v26 = vld [vmem:[#allocation75_spill] sm:$0xff] }
 0x474   : > { %v11581_v10 = vpop.f32.mrf.mxu0  ;;  %v5408_v46 = vadd.f32 %v5407_v18, %v5406_v11  ;;  %v5409_v49 = vsel %vm5316_vm6, %v14899_v52, 0.0  ;;  %v5254_v35 = vadd.f32 %v14779_v53, %v5215_v3  ;;  %v14926_v57 = vadd.f32 %v14801_v50, %v5253_v7  ;;  %v17435_v11 = vld [vmem:[#allocation43_spill] sm:$0xff] }
 0x475   : > { %v5155_v54 = vadd.f32 %v11581_v10, %v17432_v4  ;;  %v5252_v43 = vadd.f32 %v14779_v53, %v5213_v34  ;;  %v5216_v41 = vadd.f32 %v5152_v29, %v17433_v24  ;;  %v14932_v59 = vsel %vm14906_vm13, 1.0, %v17270_v27 }
 0x476   : > { %v5064_v38 = vpop.f32.mrf.mxu0  ;;  %v5410_v39 = vadd.f32 %v5409_v49, %v5408_v46  ;;  %17434 = vst [vmem:[#allocation25_spill] sm:$0xff] %v14932_v59  ;;  %v5411_v9 = vsel %vm5316_vm6, %v14913_v15, 0.0  ;;  %v565_v34 = vadd.s32 216, %v17297_v8  ;;  %v14944_v20 = vadd.f32 %v14801_v50, %v5254_v35  ;;  %v17437_v46 = vld [vmem:[#allocation47_spill] sm:$0xff] }
 0x477   : > { %v5187_v28 = vmul.f32 %v14811_v33, %v5155_v54  ;;  %v14937_v3 = vadd.f32 %v14801_v50, %v5252_v43  ;;  %v5255_v32 = vadd.f32 %v14779_v53, %v5216_v41  ;;  %v5153_v60 = vadd.f32 %v5064_v38, %v4591_v21  ;;  %v17438_v54 = vld [vmem:[#allocation77_spill] sm:$0xff]  ;;  %v17439_v41 = vld [vmem:[#allocation80_spill] sm:$0xff]  ;;  %v17440_v38 = vld [vmem:[#allocation78_spill] sm:$0xff] }
 0x478   : > { %v11584_v12 = vpop.f32.mrf.mxu0  ;;  %v5412_v36 = vadd.f32 %v5411_v9, %v5410_v39  ;;  %v5257_v29 = vadd.f32 %v14779_v53, %v5218_v17  ;;  %v5415_v35 = vsel %vm5316_vm6, %v14926_v57, 0.0  ;;  %vm1071_vm14 = vcmp.ne.s32.totalorder %v721_v42, 15  ;;  %v17441_v9 = vld [vmem:[#allocation50_spill] sm:$0xff] }
 0x479   : > { %v5219_v7 = vadd.f32 %v5187_v28, %v17435_v11  ;;  %v5158_v18 = vadd.f32 %v11584_v12, %v17436_v26  ;;  %v5413_v37 = vsel %vm5316_vm6, %v14937_v3, 0.0  ;;  %v5185_v10 = vmul.f32 %v14826_v51, %v5153_v60  ;;  %v17442_v26 = vld [vmem:[#allocation79_spill] sm:$0xff] }
 0x47a   : > { %v5077_v13 = vpop.f32.mrf.mxu0  ;;  %v5414_v40 = vadd.f32 %v5413_v37, %v5412_v36  ;;  %v14951_v21 = vadd.f32 %v14801_v50, %v5255_v32  ;;  %v563_v17 = vadd.s32 200, %v17297_v8  ;;  %v4607_v39 = vadd.f32 %v17440_v38, %v17439_v41  ;;  %v17445_v38 = vld [vmem:[#allocation48_spill] sm:$0xff] }
 0x47b   : > { %v5222_v4 = vadd.f32 %v5158_v18, %v17437_v46  ;;  %v5156_v49 = vadd.f32 %v5077_v13, %v17438_v54  ;;  %v5217_v43 = vadd.f32 %v5185_v10, %v14774_v22  ;;  %v763_v60 = vand.u32 15, %v565_v34 }
 0x47c   : > { %v11585_v24 = vpop.f32.mrf.mxu0  ;;  %v5416_v28 = vadd.f32 %v5415_v35, %v5414_v40  ;;  %v5417_v12 = vsel %vm5316_vm6, %v14944_v20, 0.0  ;;  %v5258_v36 = vadd.f32 %v14779_v53, %v5219_v7  ;;  %v14968_v42 = vadd.f32 %v14801_v50, %v5257_v29  ;;  %v17444_v35 = vld [vmem:[#allocation81_spill] sm:$0xff] }
 0x47d   : > { %v5220_v32 = vadd.f32 %v5156_v49, %v17441_v9  ;;  %v5256_v11 = vadd.f32 %v14779_v53, %v5217_v43  ;;  %v5159_v22 = vadd.f32 %v11585_v24, %v17442_v26  ;;  %v5419_v10 = vsel %vm5316_vm6, %v14951_v21, 0.0 }
 0x47e   : > { %v5080_v18 = vpop.f32.mrf.mxu0  ;;  %v5418_v37 = vadd.f32 %v5417_v12, %v5416_v28  ;;  %v14973_v13 = vsel %vm1071_vm14, 1.0, %v17270_v27  ;;  %vm1077_vm15 = vcmp.ne.s32.totalorder %v763_v60, 15  ;;  %v749_v43 = vand.u32 15, %v563_v17 }
 0x47f   : > { %17443 = vst [vmem:[#allocation31_spill] sm:$0xff] %v14973_v13  ;;  %v14976_v34 = vadd.f32 %v14801_v50, %v5256_v11  ;;  %v5259_v7 = vadd.f32 %v14779_v53, %v5220_v32  ;;  %v5191_v40 = vmul.f32 %v14862_v23, %v5159_v22  ;;  %v5157_v46 = vadd.f32 %v5080_v18, %v4607_v39  ;;  %v17446_v11 = vld [vmem:[#allocation52_spill] sm:$0xff]  ;;  %v17447_v22 = vld [vmem:[#allocation82_spill] sm:$0xff] }
 0x480   : > { %v11588_v54 = vpop.f32.mrf.mxu0  ;;  %v5420_v49 = vadd.f32 %v5419_v10, %v5418_v37  ;;  %v14982_v24 = vadd.f32 %v14801_v50, %v5258_v36  ;;  %v5261_v39 = vadd.f32 %v14779_v53, %v5222_v4  ;;  %v5423_v17 = vsel %vm5316_vm6, %v14968_v42, 0.0  ;;  %v17450_v4 = vld [vmem:[#allocation84_spill] sm:$0xff]  ;;  %v17462_v23 = vld [vmem:[#allocation90_spill] sm:$0xff] }
 0x481   : > { %v5162_v29 = vadd.f32 %v11588_v54, %v17444_v35  ;;  %v5421_v41 = vsel %vm5316_vm6, %v14976_v34, 0.0  ;;  %v5223_v28 = vadd.f32 %v5191_v40, %v17445_v38  ;;  %v5189_v9 = vmul.f32 %v14892_v5, %v5157_v46  ;;  %v17449_v46 = vld [vmem:[#allocation55_spill] sm:$0xff] }
 0x482   : > { %v5093_v32 = vpop.f32.mrf.mxu0  ;;  %v5422_v12 = vadd.f32 %v5421_v41, %v5420_v49  ;;  %v14994_v60 = vadd.f32 %v14801_v50, %v5259_v7  ;;  %v14998_v10 = vsel %vm1077_vm15, 1.0, %v17270_v27  ;;  %vm15002_vm3 = vcmp.ne.s32.totalorder %v749_v43, 15  ;;  %v17454_v41 = vld [vmem:[#allocation83_spill] sm:$0xff] }
 0x483   : > { %v5226_v26 = vadd.f32 %v5162_v29, %v17446_v11  ;;  %v5160_v18 = vadd.f32 %v5093_v32, %v17447_v22  ;;  %v5221_v36 = vadd.f32 %v5189_v9, %v14794_v56  ;;  %17448 = vst [vmem:[#allocation18_spill] sm:$0xff] %v14998_v10  ;;  %v17453_v29 = vld [vmem:[#allocation85_spill] sm:$0xff]  ;;  %v5425_v7 = vsel %vm5316_vm6, %v14982_v24, 0.0 }
 0x484   : > { %v11589_v37 = vpop.f32.mrf.mxu0  ;;  %v5424_v40 = vadd.f32 %v5423_v17, %v5422_v12  ;;  %v4623_v38 = vadd.f32 %v17454_v41, %v17453_v29  ;;  %v5262_v56 = vadd.f32 %v14779_v53, %v5223_v28  ;;  %v15013_v12 = vadd.f32 %v14801_v50, %v5261_v39 }
 0x485   : > { %v5224_v54 = vadd.f32 %v5160_v18, %v17449_v46  ;;  %v5163_v49 = vadd.f32 %v11589_v37, %v17450_v4  ;;  %v5260_v9 = vadd.f32 %v14779_v53, %v5221_v36  ;;  %v569_v22 = vadd.s32 248, %v17297_v8  ;;  %v17455_v4 = vld [vmem:[#allocation53_spill] sm:$0xff] }
 0x486   : > { %v5096_v32 = vpop.f32.mrf.mxu0  ;;  %v5426_v11 = vadd.f32 %v5425_v7, %v5424_v40  ;;  %v5427_v18 = vsel %vm5316_vm6, %v14994_v60, 0.0  ;;  %v15027_v39 = vsel %vm15002_vm3, 1.0, %v17270_v27  ;;  %v567_v40 = vadd.s32 232, %v17297_v8 }
 0x487   : > { %v5195_v43 = vmul.f32 %v14932_v59, %v5163_v49  ;;  %v15020_v17 = vadd.f32 %v14801_v50, %v5260_v9  ;;  %v5263_v37 = vadd.f32 %v14779_v53, %v5224_v54  ;;  %v5161_v28 = vadd.f32 %v5096_v32, %v4623_v38  ;;  %17456 = vst [vmem:[#allocation20_spill] sm:$0xff] %v15027_v39  ;;  %v17457_v38 = vld [vmem:[#allocation86_spill] sm:$0xff]  ;;  %v17459_v59 = vld [vmem:[#allocation57_spill] sm:$0xff] }
 0x488   : > { %v11592_v46 = vpop.f32.mrf.mxu0  ;;  %v5428_v36 = vadd.f32 %v5427_v18, %v5426_v11  ;;  %v15031_v49 = vadd.f32 %v14801_v50, %v5262_v56  ;;  %v5265_v11 = vadd.f32 %v14779_v53, %v5226_v26  ;;  %v791_v18 = vand.u32 15, %v569_v22 }
 0x489   : > { %v5227_v29 = vadd.f32 %v5195_v43, %v17455_v4  ;;  %v5429_v41 = vsel %vm5316_vm6, %v15020_v17, 0.0  ;;  %v5193_v54 = vmul.f32 %v14973_v13, %v5161_v28  ;;  %v5166_v7 = vadd.f32 %v11592_v46, %v17457_v38  ;;  %v17458_v43 = vld [vmem:[#allocation87_spill] sm:$0xff]  ;;  %v17460_v46 = vld [vmem:[#allocation60_spill] sm:$0xff] }
 0x48a   : > { %v5109_v9 = vpop.f32.mrf.mxu0  ;;  %v5430_v32 = vadd.f32 %v5429_v41, %v5428_v36  ;;  %v5431_v8 = vsel %vm5316_vm6, %v15013_v12, 0.0  ;;  %v15042_v56 = vadd.f32 %v14801_v50, %v5263_v37  ;;  %v17461_v36 = vld [vmem:[#allocation89_spill] sm:$0xff]  ;;  %v777_v26 = vand.u32 15, %v567_v40 }
 0x48b   : > { %v5164_v35 = vadd.f32 %v5109_v9, %v17458_v43  ;;  %v5225_v4 = vadd.f32 %v5193_v54, %v14818_v44  ;;  %v5230_v5 = vadd.f32 %v5166_v7, %v17459_v59  ;;  %v17463_v9 = vld [vmem:[#allocation88_spill] sm:$0xff]  ;;  %v5433_v43 = vsel %vm5316_vm6, %v15031_v49, 0.0 }
 0x48c   : > { %v11593_v28 = vpop.f32.mrf.mxu0  ;;  %v5432_v13 = vadd.f32 %v5431_v8, %v5430_v32  ;;  %v4639_v22 = vadd.f32 %v17463_v9, %v17462_v23  ;;  %v5266_v37 = vadd.f32 %v14779_v53, %v5227_v29  ;;  %v15055_v59 = vadd.f32 %v14801_v50, %v5265_v11  ;;  %v17467_v11 = vld [vmem:[#allocation27_spill] sm:$0xff] }
 0x48d   : > { %v5228_v38 = vadd.f32 %v5164_v35, %v17460_v46  ;;  %v5167_v41 = vadd.f32 %v11593_v28, %v17461_v36  ;;  %v5264_v51 = vadd.f32 %v14779_v53, %v5225_v4  ;;  %vm15058_vm7 = vcmp.ne.s32.totalorder %v791_v18, 15  ;;  %v17466_v4 = vld [vmem:[#allocation29_spill] sm:$0xff]  ;;  %v17468_v46 = vld [vmem:[#allocation58_spill] sm:$0xff]  ;;  %v17469_v18 = vld [vmem:[#allocation12_spill] sm:$0xff] }
 0x48e   : > { %v5112_v44 = vpop.f32.mrf.mxu0  ;;  %v5434_v54 = vadd.f32 %v5433_v43, %v5432_v13  ;;  %v5435_v23 = vsel %vm5316_vm6, %v15042_v56, 0.0  ;;  %v3478_v28 = vadd.f32 %v17467_v11, %v17466_v4  ;;  %v15073_v9 = vadd.f32 %v14801_v50, %v5266_v37 }
 0x48f   : > { %v5199_v7 = vmul.f32 %v14998_v10, %v5167_v41  ;;  %v15065_v40 = vadd.f32 %v14801_v50, %v5264_v51  ;;  %v5267_v29 = vadd.f32 %v14779_v53, %v5228_v38  ;;  %v5165_v35 = vadd.f32 %v5112_v44, %v4639_v22 }
 0x490   : > { %v11596_v8 = vpop.f32.mrf.mxu0  ;;  %v5436_v13 = vadd.f32 %v5435_v23, %v5434_v54  ;;  %vm15078_vm8 = vcmp.ne.s32.totalorder %v777_v26, 15  ;;  %v5269_v44 = vadd.f32 %v14779_v53, %v5230_v5  ;;  %v17472_v54 = vld [vmem:[#allocation26_spill] sm:$0xff]  ;;  %v15087_v37 = vsel %vm15058_vm7, 1.0, %v17270_v27 }
 0x491   : > { %v5231_v36 = vadd.f32 %v5199_v7, %v17468_v46  ;;  %v5170_v41 = vadd.f32 %v11596_v8, %v17469_v18  ;;  %v5437_v43 = vsel %vm5316_vm6, %v15065_v40, 0.0  ;;  %v5197_v51 = vmul.f32 %v15027_v39, %v5165_v35  ;;  %17473 = vst [vmem:[#allocation13_spill] sm:$0xff] %v15087_v37  ;;  %v17474_v8 = vld [vmem:[#allocation14_spill] sm:$0xff]  ;;  %v17476_v46 = vld [vmem:[#allocation7_spill] sm:$0xff]  ;;  %v17477_v39 = vld [vmem:[#allocation28_spill] sm:$0xff] }
 0x492   : > { %v5125_v10 = vpop.f32.mrf.mxu0  ;;  %v5438_v22 = vadd.f32 %v5437_v43, %v5436_v13  ;;  %v5439_v23 = vsel %vm5316_vm6, %v15055_v59, 0.0  ;;  %v15092_v35 = vadd.f32 %v14801_v50, %v5267_v29  ;;  %v17475_v13 = vld [vmem:[#allocation61_spill] sm:$0xff]  ;;  %v4655_v18 = vadd.f32 %v17476_v46, %v14705_v1 }
 0x493   : > { %v5234_v7 = vadd.f32 %v5170_v41, %v17472_v54  ;;  %v5229_v26 = vadd.f32 %v5197_v51, %v14896_v45  ;;  %v5168_v4 = vadd.f32 %v5125_v10, %v17474_v8  ;;  %v3916_v5 = vadd.f32 %v17475_v13, %v3478_v28 }
 0x494   : > { %v11597_v11 = vpop.f32.mrf.mxu0  ;;  %v5440_v41 = vadd.f32 %v5439_v23, %v5438_v22  ;;  %v5441_v43 = vsel %vm5316_vm6, %v15073_v9, 0.0  ;;  %v5270_v54 = vadd.f32 %v14779_v53, %v5231_v36  ;;  %v15106_v10 = vadd.f32 %v14801_v50, %v5269_v44  ;;  %v17479_v44 = vld [vmem:[#allocation30_spill] sm:$0xff] }
 0x495   : > { %v5171_v32 = vadd.f32 %v11597_v11, %v14702_v63  ;;  %v5268_v29 = vadd.f32 %v14779_v53, %v5229_v26  ;;  %v5232_v45 = vadd.f32 %v5168_v4, %v17477_v39  ;;  %v15112_v63 = vsel %vm15078_vm8, 1.0, %v17270_v27 }
 0x496   : > { %v5128_v51 = vpop.f32.mrf.mxu0  ;;  %v5442_v28 = vadd.f32 %v5441_v43, %v5440_v41  ;;  %17478 = vst [vmem:[#allocation15_spill] sm:$0xff] %v15112_v63  ;;  %v5443_v1 = vsel %vm5316_vm6, %v15092_v35, 0.0  ;;  %v3980_v4 = vadd.f32 %v3916_v5, %v14711_v16  ;;  %v15123_v11 = vadd.f32 %v14801_v50, %v5270_v54 }
 0x497   : > { %v5203_v8 = vmul.f32 %v15087_v37, %v5171_v32  ;;  %v15117_v36 = vadd.f32 %v14801_v50, %v5268_v29  ;;  %v5271_v39 = vadd.f32 %v14779_v53, %v5232_v45  ;;  %v5169_v22 = vadd.f32 %v5128_v51, %v4655_v18 }
 0x498   : > { %v5444_v23 = vadd.f32 %v5443_v1, %v5442_v28  ;;  %v5447_v41 = vsel %vm5316_vm6, %v15106_v10, 0.0  ;;  %v5273_v32 = vadd.f32 %v14779_v53, %v5234_v7  ;;  %v5449_v16 = vsel %vm5316_vm6, %v15123_v11, 0.0 }
 0x499   : > { %v5235_v26 = vadd.f32 %v5203_v8, %v17479_v44  ;;  %v5445_v38 = vsel %vm5316_vm6, %v15117_v36, 0.0  ;;  %v5201_v13 = vmul.f32 %v15112_v63, %v5169_v22  ;;  %v15132_v18 = vadd.f32 %v14801_v50, %v5271_v39 }
 0x49a   : > { %v5446_v46 = vadd.f32 %v5445_v38, %v5444_v23  ;;  %v15139_v51 = vadd.f32 %v14801_v50, %v5273_v32 }
 0x49b   : > { %v5233_v43 = vadd.f32 %v5201_v13, %v3980_v4  ;;  %v5274_v5 = vadd.f32 %v14779_v53, %v5235_v26  ;;  %v5451_v28 = vsel %vm5316_vm6, %v15132_v18, 0.0 }
 0x49c   : > { %v5448_v29 = vadd.f32 %v5447_v41, %v5446_v46 }
 0x49d   : > { %v5272_v54 = vadd.f32 %v14779_v53, %v5233_v43  ;;  %v15147_v1 = vadd.f32 %v14801_v50, %v5274_v5  ;;  %v5455_v53 = vsel %vm5316_vm6, %v15139_v51, 0.0  ;;  %v17481_v43 = vld [vmem:[#allocation64_spill] sm:$0xff]  ;;  %v17484_v5 = vld [vmem:[#allocation69_spill] sm:$0xff] }
 0x49e   : > { %v5450_v45 = vadd.f32 %v5449_v16, %v5448_v29  ;;  %v17482_v29 = vld [vmem:[#allocation65_spill] sm:$0xff]  ;;  %v17483_v16 = vld [vmem:[#allocation67_spill] sm:$0xff] }
 0x49f   : > { %v15144_v7 = vadd.f32 %v14801_v50, %v5272_v54  ;;  %v5457_v44 = vsel %vm5316_vm6, %v15147_v1, 0.0  ;;  %v17480_v50 = vld [vmem:[#allocation63_spill] sm:$0xff]  ;;  %v17485_v54 = vld [vmem:[#allocation72_spill] sm:$0xff] }
 0x4a0   : > { %v5452_v8 = vadd.f32 %v5451_v28, %v5450_v45  ;;  %v17486_v45 = vld [vmem:[#allocation74_spill] sm:$0xff]  ;;  %v17487_v28 = vld [vmem:[#allocation76_spill] sm:$0xff] }
 0x4a1   : > { %v5453_v39 = vsel %vm5316_vm6, %v15144_v7, 0.0 }
 0x4a2   : > { %v5454_v22 = vadd.f32 %v5453_v39, %v5452_v8 }
 0x4a4   : > { %v5456_v23 = vadd.f32 %v5455_v53, %v5454_v22 }
 0x4a6   : > { %v5458_v26 = vadd.f32 %v5457_v44, %v5456_v23 }
 0x4a8   : > { %v5459_v4 = vrot.slane %v5458_v26, 4 }
 0x4aa   : > { %v5460_v38 = vadd.f32 %v5459_v4, %v5458_v26 }
 0x4ac   : > { %v5461_v13 = vrot.slane %v5460_v38, 2 }
 0x4ae   : > { %v5462_v46 = vadd.f32 %v5461_v13, %v5460_v38 }
 0x4b0   : > { %v5463_v41 = vrot.slane %v5462_v46, 1 }
 0x4b2   : > { %v5464_v32 = vadd.f32 %v5463_v41, %v5462_v46 }
 0x4b4   : > { %11627 = vmatmul.mubr.msk.f32.vlgmr.msra.gmra.mxu1 %vm5316_vm6, %v5464_v32 }
 0x4b5   : > { %11630 = vmatpush3.msra.mxu1 %v17480_v50  ;;  %11645 = vmatprep.mubr.msk.f32.mxu1 %vm12625_vm0, %v17270_v27 }
 0x4b6   : > { %11631 = vmatprep.subr.mxu1 %v17270_v27 }
 0x4b7   : > { %11632 = vmatpush3.msra.mxu1 %v17481_v43 }
 0x4b8   : > { %11633 = vmatprep.subr.mxu1 %v17270_v27 }
 0x4b9   : > { %11634 = vmatpush3.msra.mxu1 %v17482_v29 }
 0x4ba   : > { %11635 = vmatprep.subr.mxu1 %v17270_v27 }
 0x4bb   : > { %11636 = vmatpush3.msra.mxu1 %v17483_v16 }
 0x4bc   : > { %11637 = vmatprep.subr.mxu1 %v17270_v27 }
 0x4bd   : > { %11638 = vmatpush3.msra.mxu1 %v17484_v5 }
 0x4be   : > { %11639 = vmatprep.subr.mxu1 %v17270_v27 }
 0x4bf   : > { %11640 = vmatpush3.msra.mxu1 %v17485_v54 }
 0x4c0   : > { %11641 = vmatprep.subr.mxu1 %v17270_v27 }
 0x4c1   : > { %11642 = vmatpush3.msra.mxu1 %v17486_v45 }
 0x4c2   : > { %11643 = vmatprep.subr.mxu1 %v17270_v27 }
 0x4c3   : > { %11644 = vmatpush3.msra.mxu1 %v17487_v28 }
 0x574   : > { %v5542_v8 = vpop.f32.mrf.mxu1 }
 0x575   : > { %v15174_v22 = vrot.slane %v5542_v8, %v17413_v31 }
 0x576   : > { %v11628_v39 = vpop.f32.mrf.mxu1 }
 0x577   : > { %v15178_v53 = vsub.f32 %v14807_v6, %v15174_v22  ;;  %v15182_v23 = vsub.f32 %v14829_v19, %v15174_v22  ;;  %v15186_v44 = vsub.f32 %v14823_v58, %v15174_v22  ;;  %v15190_v27 = vsub.f32 %v14842_v25, %v15174_v22 }
 0x578   : > { %v15198_v6 = vsub.f32 %v14854_v0, %v15174_v22  ;;  %v15204_v58 = vsub.f32 %v14884_v14, %v15174_v22  ;;  %v15212_v41 = vsub.f32 %v14878_v47, %v15174_v22  ;;  %v15219_v14 = vsub.f32 %v14899_v52, %v15174_v22 }
 0x579   : > { %v5582_v26 = vmul.f32 %v15178_v53, %v15178_v53  ;;  %v5583_v4 = vmul.f32 %v15182_v23, %v15182_v23  ;;  %v5584_v19 = vmul.f32 %v15186_v44, %v15186_v44  ;;  %v5585_v25 = vmul.f32 %v15190_v27, %v15190_v27 }
 0x57a   : > { %v5586_v0 = vmul.f32 %v15198_v6, %v15198_v6  ;;  %v5587_v43 = vmul.f32 %v15204_v58, %v15204_v58  ;;  %v15226_v47 = vsub.f32 %v14913_v15, %v15174_v22  ;;  %v5588_v5 = vmul.f32 %v15212_v41, %v15212_v41 }
 0x57b   : > { %v5614_v38 = vsel %vm5316_vm6, %v5582_v26, 0.0  ;;  %v5615_v13 = vsel %vm5316_vm6, %v5583_v4, 0.0  ;;  %v5617_v32 = vsel %vm5316_vm6, %v5584_v19, 0.0  ;;  %v5619_v29 = vsel %vm5316_vm6, %v5585_v25, 0.0 }
 0x57c   : > { %v5616_v46 = vadd.f32 %v5615_v13, %v5614_v38  ;;  %v5621_v54 = vsel %vm5316_vm6, %v5586_v0, 0.0  ;;  %v15233_v52 = vsub.f32 %v14937_v3, %v15174_v22  ;;  %v5589_v28 = vmul.f32 %v15219_v14, %v15219_v14 }
 0x57d   : > { %v5623_v8 = vsel %vm5316_vm6, %v5587_v43, 0.0  ;;  %v15240_v15 = vsub.f32 %v14926_v57, %v15174_v22  ;;  %v5590_v26 = vmul.f32 %v15226_v47, %v15226_v47  ;;  %v5625_v4 = vsel %vm5316_vm6, %v5588_v5, 0.0 }
 0x57e   : > { %v5618_v50 = vadd.f32 %v5617_v32, %v5616_v46  ;;  %v15247_v3 = vsub.f32 %v14944_v20, %v15174_v22  ;;  %v5591_v25 = vmul.f32 %v15233_v52, %v15233_v52  ;;  %v5627_v38 = vsel %vm5316_vm6, %v5589_v28, 0.0 }
 0x57f   : > { %v15254_v57 = vsub.f32 %v14951_v21, %v15174_v22  ;;  %v5592_v46 = vmul.f32 %v15240_v15, %v15240_v15  ;;  %v5629_v0 = vsel %vm5316_vm6, %v5590_v26, 0.0  ;;  %v15261_v20 = vsub.f32 %v14976_v34, %v15174_v22 }
 0x580   : > { %v5620_v16 = vadd.f32 %v5619_v29, %v5618_v50  ;;  %v5593_v50 = vmul.f32 %v15247_v3, %v15247_v3  ;;  %v5631_v43 = vsel %vm5316_vm6, %v5591_v25, 0.0  ;;  %v15268_v21 = vsub.f32 %v14968_v42, %v15174_v22 }
 0x581   : > { %v5633_v5 = vsel %vm5316_vm6, %v5592_v46, 0.0  ;;  %v15275_v34 = vsub.f32 %v14982_v24, %v15174_v22  ;;  %v15282_v42 = vsub.f32 %v14994_v60, %v15174_v22  ;;  %v15289_v24 = vsub.f32 %v15020_v17, %v15174_v22 }
 0x582   : > { %v5622_v45 = vadd.f32 %v5621_v54, %v5620_v16  ;;  %v5594_v16 = vmul.f32 %v15254_v57, %v15254_v57  ;;  %v5635_v28 = vsel %vm5316_vm6, %v5593_v50, 0.0  ;;  %v15296_v60 = vsub.f32 %v15013_v12, %v15174_v22 }
 0x583   : > { %v15303_v17 = vsub.f32 %v15031_v49, %v15174_v22  ;;  %v15310_v12 = vsub.f32 %v15042_v56, %v15174_v22  ;;  %v15317_v49 = vsub.f32 %v15065_v40, %v15174_v22  ;;  %v15324_v56 = vsub.f32 %v15055_v59, %v15174_v22 }
 0x584   : > { %v5624_v39 = vadd.f32 %v5623_v8, %v5622_v45  ;;  %v5595_v45 = vmul.f32 %v15261_v20, %v15261_v20  ;;  %v5637_v26 = vsel %vm5316_vm6, %v5594_v16, 0.0  ;;  %v15331_v40 = vsub.f32 %v15073_v9, %v15174_v22 }
 0x585   : > { %v15338_v59 = vsub.f32 %v15092_v35, %v15174_v22  ;;  %v15345_v9 = vsub.f32 %v15117_v36, %v15174_v22  ;;  %v15352_v35 = vsub.f32 %v15106_v10, %v15174_v22  ;;  %v15359_v36 = vsub.f32 %v15123_v11, %v15174_v22 }
 0x586   : > { %v5626_v19 = vadd.f32 %v5625_v4, %v5624_v39  ;;  %v5596_v39 = vmul.f32 %v15268_v21, %v15268_v21  ;;  %v5639_v25 = vsel %vm5316_vm6, %v5595_v45, 0.0  ;;  %v15366_v10 = vsub.f32 %v15132_v18, %v15174_v22 }
 0x587   : > { %v15373_v11 = vsub.f32 %v15144_v7, %v15174_v22  ;;  %v15380_v18 = vsub.f32 %v15139_v51, %v15174_v22  ;;  %v15387_v7 = vsub.f32 %v15147_v1, %v15174_v22 }
 0x588   : > { %v5628_v13 = vadd.f32 %v5627_v38, %v5626_v19  ;;  %v5597_v19 = vmul.f32 %v15275_v34, %v15275_v34  ;;  %v5641_v46 = vsel %vm5316_vm6, %v5596_v39, 0.0 }
 0x589   : > { %v5612_v51 = vmul.f32 %v15380_v18, %v15380_v18 }
 0x58a   : > { %v5630_v32 = vadd.f32 %v5629_v0, %v5628_v13  ;;  %v5598_v13 = vmul.f32 %v15282_v42, %v15282_v42  ;;  %v5643_v50 = vsel %vm5316_vm6, %v5597_v19, 0.0 }
 0x58b   : > { %v5673_v1 = vsel %vm5316_vm6, %v5612_v51, 0.0  ;;  %v12177_v51 = vld [vmem:[%s17191_s12 + $0x20] sm:$0xff]  }
 0x58c   : > { %v5632_v29 = vadd.f32 %v5631_v43, %v5630_v32  ;;  %v5599_v32 = vmul.f32 %v15289_v24, %v15289_v24  ;;  %v5645_v16 = vsel %vm5316_vm6, %v5598_v13, 0.0 }
 0x58e   : > { %v5634_v54 = vadd.f32 %v5633_v5, %v5632_v29  ;;  %v5600_v29 = vmul.f32 %v15296_v60, %v15296_v60  ;;  %v5647_v45 = vsel %vm5316_vm6, %v5599_v32, 0.0 }
 0x590   : > { %v5636_v8 = vadd.f32 %v5635_v28, %v5634_v54  ;;  %v5601_v54 = vmul.f32 %v15303_v17, %v15303_v17  ;;  %v5649_v39 = vsel %vm5316_vm6, %v5600_v29, 0.0 }
 0x592   : > { %v5638_v4 = vadd.f32 %v5637_v26, %v5636_v8  ;;  %v5602_v8 = vmul.f32 %v15310_v12, %v15310_v12  ;;  %v5651_v19 = vsel %vm5316_vm6, %v5601_v54, 0.0 }
 0x594   : > { %v5640_v38 = vadd.f32 %v5639_v25, %v5638_v4  ;;  %v5603_v4 = vmul.f32 %v15317_v49, %v15317_v49  ;;  %v5653_v13 = vsel %vm5316_vm6, %v5602_v8, 0.0 }
 0x596   : > { %v5642_v0 = vadd.f32 %v5641_v46, %v5640_v38  ;;  %v5604_v38 = vmul.f32 %v15324_v56, %v15324_v56  ;;  %v5655_v32 = vsel %vm5316_vm6, %v5603_v4, 0.0 }
 0x598   : > { %v5644_v43 = vadd.f32 %v5643_v50, %v5642_v0  ;;  %v5605_v0 = vmul.f32 %v15331_v40, %v15331_v40  ;;  %v5657_v29 = vsel %vm5316_vm6, %v5604_v38, 0.0 }
 0x59a   : > { %v5646_v5 = vadd.f32 %v5645_v16, %v5644_v43  ;;  %v5606_v43 = vmul.f32 %v15338_v59, %v15338_v59  ;;  %v5659_v54 = vsel %vm5316_vm6, %v5605_v0, 0.0 }
 0x59c   : > { %v5648_v28 = vadd.f32 %v5647_v45, %v5646_v5  ;;  %v5607_v5 = vmul.f32 %v15345_v9, %v15345_v9  ;;  %v5661_v8 = vsel %vm5316_vm6, %v5606_v43, 0.0 }
 0x59e   : > { %v5650_v26 = vadd.f32 %v5649_v39, %v5648_v28  ;;  %v5608_v28 = vmul.f32 %v15352_v35, %v15352_v35  ;;  %v5663_v4 = vsel %vm5316_vm6, %v5607_v5, 0.0 }
 0x5a0   : > { %v5652_v25 = vadd.f32 %v5651_v19, %v5650_v26  ;;  %v5609_v26 = vmul.f32 %v15359_v36, %v15359_v36  ;;  %v5665_v38 = vsel %vm5316_vm6, %v5608_v28, 0.0 }
 0x5a2   : > { %v5654_v46 = vadd.f32 %v5653_v13, %v5652_v25  ;;  %v5610_v25 = vmul.f32 %v15366_v10, %v15366_v10  ;;  %v5667_v0 = vsel %vm5316_vm6, %v5609_v26, 0.0 }
 0x5a4   : > { %v5656_v50 = vadd.f32 %v5655_v32, %v5654_v46  ;;  %v5611_v46 = vmul.f32 %v15373_v11, %v15373_v11 }
 0x5a6   : > { %v5658_v16 = vadd.f32 %v5657_v29, %v5656_v50  ;;  %v5669_v50 = vsel %vm5316_vm6, %v5610_v25, 0.0  ;;  %v5613_v29 = vmul.f32 %v15387_v7, %v15387_v7  ;;  %v12172_v25 = vld [vmem:[%s17191_s12 + $0x38] sm:$0xff]  }
 0x5a7   : > { %11688 = vmatprep.subr.bf16.mxu0 %v12172_v25 }
 0x5a8   : > { %v5660_v45 = vadd.f32 %v5659_v54, %v5658_v16  ;;  %v5671_v16 = vsel %vm5316_vm6, %v5611_v46, 0.0  ;;  %v5675_v54 = vsel %vm5316_vm6, %v5613_v29, 0.0  ;;  %11689 = vmatpush3.bf16.msra.mxu0 %v12172_v25  ;;  %v6187_v29 = vld [vmem:[#allocation2 + $0xc] sm:$0xf] }
 0x5aa   : > { %v5662_v39 = vadd.f32 %v5661_v8, %v5660_v45 }
 0x5ac   : > { %v5664_v19 = vadd.f32 %v5663_v4, %v5662_v39 }
 0x5ae   : > { %v5666_v13 = vadd.f32 %v5665_v38, %v5664_v19  ;;  %v12173_v38 = vld [vmem:[%s17191_s12 + $0x30] sm:$0xff]  }
 0x5af   : > { %11690 = vmatprep.subr.bf16.mxu0 %v12173_v38 }
 0x5b0   : > { %v5668_v32 = vadd.f32 %v5667_v0, %v5666_v13  ;;  %11691 = vmatpush3.bf16.msra.mxu0 %v12173_v38  ;;  %v12174_v13 = vld [vmem:[%s17191_s12 + $0x28] sm:$0xff]   ;;  %v12175_v0 = vld [vmem:[%s17191_s12 + $0x98] sm:$0xff]  }
 0x5b1   : > { %11692 = vmatprep.subr.bf16.mxu0 %v12174_v13  ;;  %11648 = vmatprep.subr.bf16.mxu1 %v12175_v0 }
 0x5b2   : > { %v5670_v43 = vadd.f32 %v5669_v50, %v5668_v32  ;;  %v12176_v32 = vld [vmem:[%s17191_s12 + $0x90] sm:$0xff]   ;;  %v6186_v50 = vld [vmem:[#allocation2 + $0x8] sm:$0xf] }
 0x5b4   : > { %v5672_v5 = vadd.f32 %v5671_v16, %v5670_v43  ;;  %11693 = vmatpush3.bf16.msra.mxu0 %v12174_v13  ;;  %v10473_v16 = vcombine.low %v6186_v50, %v6187_v29  ;;  %v15449_v13 = vld [vmem:[%s17189_s10] ss:$0 sm:$0xff] }
 0x5b5   : > { %11694 = vmatprep.subr.bf16.mxu0 %v12177_v51 }
 0x5b6   : > { %v5674_v22 = vadd.f32 %v5673_v1, %v5672_v5  ;;  %v15422_v5 = vld [vmem:[%s17191_s12 + $0x78] sm:$0xff]   ;;  %v12178_v1 = vld [vmem:[%s17191_s12 + $0x88] sm:$0xff]   ;;  %11696 = vmatprep.mubr.msk.bf16.mxu0 %vm5316_vm6, %v10473_v16 }
 0x5b8   : > { %v5676_v45 = vadd.f32 %v5675_v54, %v5674_v22  ;;  %11695 = vmatpush3.bf16.msra.mxu0 %v12177_v51  ;;  %v12179_v54 = vld [vmem:[%s17191_s12 + $0x80] sm:$0xff]  }
 0x5b9   : > { %11768 = vmatprep.subr.bf16.mxu0 %v15422_v5 }
 0x5ba   : > { %v5677_v28 = vrot.slane %v5676_v45, 4 }
 0x5bc   : > { %v5678_v8 = vadd.f32 %v5677_v28, %v5676_v45  ;;  %v15435_v45 = vld [vmem:[%s17191_s12 + $0xf8] sm:$0xff]  }
 0x5be   : > { %v5679_v39 = vrot.slane %v5678_v8, 2 }
 0x5c0   : > { %v5680_v26 = vadd.f32 %v5679_v39, %v5678_v8  ;;  %v5757_v8 = vld [vmem:[%s17188_s9] sm:$0x1] }
 0x5c2   : > { %v5681_v4 = vrot.slane %v5680_v26, 1 }
 0x5c4   : > { %v5682_v19 = vadd.f32 %v5681_v4, %v5680_v26 }
 0x5c6   : > { %11646 = vmatmul.mubr.msk.f32.vlgmr.msra.gmra.mxu1 %vm5316_vm6, %v5682_v19 }
 0x5c7   : > { %11649 = vmatpush3.bf16.msra.mxu1 %v12175_v0 }
 0x5c8   : > { %11650 = vmatprep.subr.bf16.mxu1 %v12176_v32 }
 0x5cb   : > { %11651 = vmatpush3.bf16.msra.mxu1 %v12176_v32 }
 0x5cc   : > { %11652 = vmatprep.subr.bf16.mxu1 %v12178_v1 }
 0x5cf   : > { %11653 = vmatpush3.bf16.msra.mxu1 %v12178_v1 }
 0x5d0   : > { %11654 = vmatprep.subr.bf16.mxu1 %v12179_v54 }
 0x5d3   : > { %11655 = vmatpush3.bf16.msra.mxu1 %v12179_v54 }
 0x5d4   : > { %11728 = vmatprep.subr.bf16.mxu1 %v15435_v45 }
 0x686   : > { %v5752_v46 = vpop.f32.mrf.mxu1 }
 0x687   : > { %v5753_v22 = vadd.f32 1e-06, %v5752_v46 }
 0x688   : > { %v11647_v43 = vpop.f32.mrf.mxu1 }
 0x689   : > { %12450 = vrsqrt.f32 %v5753_v22 }
 0x696   : > { %v12451_v28 = vpop.eup %12450 }
 0x697   : > { %v5758_v39 = vmul.f32 %v12451_v28, %v5757_v8 }
 0x699   : > { %v5762_v26 = vrot.slane %v5758_v39, %v17413_v31 }
 0x69b   : > { %v5763_v4 = vmul.f32 %v5762_v26, %v15178_v53  ;;  %v5764_v19 = vmul.f32 %v5762_v26, %v15182_v23  ;;  %v5765_v25 = vmul.f32 %v5762_v26, %v15186_v44  ;;  %v5766_v38 = vmul.f32 %v5762_v26, %v15190_v27 }
 0x69c   : > { %v5767_v46 = vmul.f32 %v5762_v26, %v15198_v6  ;;  %v5768_v0 = vmul.f32 %v5762_v26, %v15204_v58  ;;  %v5769_v32 = vmul.f32 %v5762_v26, %v15212_v41  ;;  %v5770_v31 = vmul.f32 %v5762_v26, %v15219_v14 }
 0x69d   : > { %v5771_v53 = vmul.f32 %v5762_v26, %v15226_v47  ;;  %v5772_v23 = vmul.f32 %v5762_v26, %v15233_v52  ;;  %v5773_v44 = vmul.f32 %v5762_v26, %v15240_v15  ;;  %v5774_v27 = vmul.f32 %v5762_v26, %v15247_v3 }
 0x69e   : > { %v5775_v51 = vmul.f32 %v5762_v26, %v15254_v57  ;;  %v5776_v50 = vmul.f32 %v5762_v26, %v15261_v20  ;;  %v5777_v6 = vmul.f32 %v5762_v26, %v15268_v21  ;;  %v5778_v58 = vmul.f32 %v5762_v26, %v15275_v34 }
 0x69f   : > { %v5779_v41 = vmul.f32 %v5762_v26, %v15282_v42  ;;  %v15465_v14 = vadd.f32 %v15449_v13, %v5763_v4  ;;  %v15468_v47 = vadd.f32 %v15449_v13, %v5764_v19  ;;  %v15471_v52 = vadd.f32 %v15449_v13, %v5765_v25 }
 0x6a0   : > { %v5780_v15 = vmul.f32 %v5762_v26, %v15289_v24  ;;  %v5781_v3 = vmul.f32 %v5762_v26, %v15296_v60  ;;  %v5782_v57 = vmul.f32 %v5762_v26, %v15303_v17  ;;  %v15477_v20 = vadd.f32 %v15449_v13, %v5766_v38 }
 0x6a1   : > { %v15480_v21 = vmul.f32 %v5762_v26, %v15310_v12  ;;  %v15483_v34 = vmul.f32 %v5762_v26, %v15317_v49  ;;  %v15486_v42 = vmul.f32 %v5762_v26, %v15324_v56  ;;  %v15489_v43 = vadd.f32 %v15449_v13, %v5767_v46 }
 0x6a2   : > { %v15492_v24 = vmul.f32 %v5762_v26, %v15331_v40  ;;  %v15495_v60 = vmul.f32 %v5762_v26, %v15338_v59  ;;  %v15498_v17 = vadd.f32 %v15449_v13, %v5768_v0  ;;  %v15501_v12 = vadd.f32 %v15449_v13, %v5769_v32 }
 0x6a3   : > { %v15504_v49 = vmul.f32 %v5762_v26, %v15345_v9  ;;  %v5834_v56 = vsub.f32 0.0, %v15465_v14  ;;  %v5835_v29 = vsub.f32 0.0, %v15468_v47  ;;  %v5836_v16 = vsub.f32 0.0, %v15471_v52 }
 0x6a4   : > { %v15510_v40 = vmul.f32 %v5762_v26, %v15352_v35  ;;  %v15513_v59 = vmul.f32 %v5762_v26, %v15359_v36  ;;  %v15516_v1 = vadd.f32 %v15449_v13, %v5770_v31  ;;  %v5837_v22 = vsub.f32 0.0, %v15477_v20 }
 0x6a5   : > { %v15520_v9 = vmul.f32 %v5762_v26, %v15366_v10  ;;  %v15523_v54 = vmul.f32 %v5762_v26, %v15373_v11  ;;  %v15526_v28 = vadd.f32 %v15449_v13, %v5771_v53  ;;  %v5838_v35 = vsub.f32 0.0, %v15489_v43 }
 0x6a6   : > { %v15530_v8 = vmul.f32 %v5762_v26, %v15380_v18  ;;  %v15533_v36 = vadd.f32 %v15449_v13, %v5772_v23  ;;  %v5839_v39 = vsub.f32 0.0, %v15498_v17  ;;  %v5840_v4 = vsub.f32 0.0, %v15501_v12 }
 0x6a7   : > { %v15538_v10 = vadd.f32 %v15449_v13, %v5773_v44  ;;  %v5866_v11 = vmul.f32 1.442695, %v5834_v56  ;;  %v5868_v19 = vmul.f32 1.442695, %v5835_v29  ;;  %v5870_v25 = vmul.f32 1.442695, %v5836_v16 }
 0x6a8   : > { %v15541_v38 = vmul.f32 %v5762_v26, %v15387_v7  ;;  %v15544_v46 = vadd.f32 %v15449_v13, %v5774_v27  ;;  %v5841_v18 = vsub.f32 0.0, %v15516_v1  ;;  %v5872_v0 = vmul.f32 1.442695, %v5837_v22 }
 0x6a9   : > { %v15548_v32 = vadd.f32 %v15449_v13, %v5775_v51  ;;  %v5842_v31 = vsub.f32 0.0, %v15526_v28  ;;  %v5874_v53 = vmul.f32 1.442695, %v5838_v35  ;;  %12452 = vpow2.f32 %v5866_v11 }
 0x6aa   : > { %v15552_v23 = vadd.f32 %v15449_v13, %v5776_v50  ;;  %v5843_v44 = vsub.f32 0.0, %v15533_v36  ;;  %v5876_v7 = vmul.f32 1.442695, %v5839_v39  ;;  %12454 = vpow2.f32 %v5868_v19 }
 0x6ab   : > { %v15556_v26 = vadd.f32 %v15449_v13, %v5777_v6  ;;  %v5844_v27 = vsub.f32 0.0, %v15538_v10  ;;  %v5878_v56 = vmul.f32 1.442695, %v5840_v4  ;;  %12456 = vpow2.f32 %v5870_v25 }
 0x6ac   : > { %v15560_v51 = vadd.f32 %v15449_v13, %v5778_v58  ;;  %v5845_v29 = vsub.f32 0.0, %v15544_v46  ;;  %v5880_v16 = vmul.f32 1.442695, %v5841_v18  ;;  %12458 = vpow2.f32 %v5872_v0 }
 0x6ad   : > { %v15564_v50 = vadd.f32 %v15449_v13, %v5779_v41  ;;  %v5846_v22 = vsub.f32 0.0, %v15548_v32  ;;  %v5882_v35 = vmul.f32 1.442695, %v5842_v31  ;;  %12460 = vpow2.f32 %v5874_v53 }
 0x6ae   : > { %v15568_v6 = vadd.f32 %v15449_v13, %v5780_v15  ;;  %v5847_v39 = vsub.f32 0.0, %v15552_v23  ;;  %v5884_v4 = vmul.f32 1.442695, %v5843_v44  ;;  %12462 = vpow2.f32 %v5876_v7 }
 0x6af   : > { %v15572_v58 = vadd.f32 %v15449_v13, %v5781_v3  ;;  %v5848_v11 = vsub.f32 0.0, %v15556_v26  ;;  %v5886_v19 = vmul.f32 1.442695, %v5844_v27  ;;  %12464 = vpow2.f32 %v5878_v56 }
 0x6b0   : > { %v15576_v41 = vadd.f32 %v15449_v13, %v5782_v57  ;;  %v5849_v25 = vsub.f32 0.0, %v15560_v51  ;;  %v5888_v18 = vmul.f32 1.442695, %v5845_v29  ;;  %12466 = vpow2.f32 %v5880_v16 }
 0x6b1   : > { %v15581_v15 = vadd.f32 %v15449_v13, %v15480_v21  ;;  %v5850_v0 = vsub.f32 0.0, %v15564_v50  ;;  %v5890_v31 = vmul.f32 1.442695, %v5846_v22  ;;  %12468 = vpow2.f32 %v5882_v35 }
 0x6b2   : > { %v15586_v3 = vadd.f32 %v15449_v13, %v15483_v34  ;;  %v5851_v53 = vsub.f32 0.0, %v15568_v6  ;;  %v5892_v57 = vmul.f32 1.442695, %v5847_v39  ;;  %12470 = vpow2.f32 %v5884_v4 }
 0x6b3   : > { %v15591_v44 = vadd.f32 %v15449_v13, %v15486_v42  ;;  %v5852_v7 = vsub.f32 0.0, %v15572_v58  ;;  %v5894_v21 = vmul.f32 1.442695, %v5848_v11  ;;  %12472 = vpow2.f32 %v5886_v19 }
 0x6b4   : > { %v15596_v27 = vadd.f32 %v15449_v13, %v15492_v24  ;;  %v5853_v56 = vsub.f32 0.0, %v15576_v41  ;;  %v5896_v34 = vmul.f32 1.442695, %v5849_v25  ;;  %12474 = vpow2.f32 %v5888_v18 }
 0x6b5   : > { %v15601_v29 = vadd.f32 %v15449_v13, %v15495_v60  ;;  %v5854_v16 = vsub.f32 0.0, %v15581_v15  ;;  %v5898_v42 = vmul.f32 1.442695, %v5850_v0  ;;  %12476 = vpow2.f32 %v5890_v31 }
 0x6b6   : > { %v15604_v22 = vpop.eup %12452  ;;  %v15608_v35 = vadd.f32 %v15449_v13, %v15504_v49  ;;  %v5855_v24 = vsub.f32 0.0, %v15586_v3  ;;  %v5900_v39 = vmul.f32 1.442695, %v5851_v53  ;;  %12478 = vpow2.f32 %v5892_v57 }
 0x6b7   : > { %v12455_v4 = vpop.eup %12454  ;;  %v15613_v11 = vadd.f32 %v15449_v13, %v15510_v40  ;;  %v5856_v60 = vsub.f32 0.0, %v15591_v44  ;;  %v5902_v19 = vmul.f32 1.442695, %v5852_v7  ;;  %12480 = vpow2.f32 %v5894_v21 }
 0x6b8   : > { %v12457_v25 = vpop.eup %12456  ;;  %v15618_v18 = vadd.f32 %v15449_v13, %v15513_v59  ;;  %v5857_v49 = vsub.f32 0.0, %v15596_v27  ;;  %v5904_v0 = vmul.f32 1.442695, %v5853_v56  ;;  %12482 = vpow2.f32 %v5896_v34 }
 0x6b9   : > { %v12459_v31 = vpop.eup %12458  ;;  %v15623_v53 = vadd.f32 %v15449_v13, %v15520_v9  ;;  %v5858_v40 = vsub.f32 0.0, %v15601_v29  ;;  %v5906_v57 = vmul.f32 1.442695, %v5854_v16  ;;  %12484 = vpow2.f32 %v5898_v42 }
 0x6ba   : > { %v12461_v7 = vpop.eup %12460  ;;  %v15628_v21 = vadd.f32 %v15449_v13, %v15523_v54  ;;  %v5859_v59 = vsub.f32 0.0, %v15608_v35  ;;  %v5908_v63 = vmul.f32 1.442695, %v5855_v24  ;;  %12486 = vpow2.f32 %v5900_v39 }
 0x6bb   : > { %v12463_v56 = vpop.eup %12462  ;;  %v15633_v34 = vadd.f32 %v15449_v13, %v15530_v8  ;;  %v5860_v9 = vsub.f32 0.0, %v15613_v11  ;;  %v5910_v37 = vmul.f32 1.442695, %v5856_v60  ;;  %12488 = vpow2.f32 %v5902_v19 }
 0x6bc   : > { %17488 = vst [vmem:[#allocation17_spill] sm:$0xff] %v15628_v21  ;;  %v12465_v16 = vpop.eup %12464  ;;  %v15638_v42 = vadd.f32 %v15449_v13, %v15541_v38  ;;  %v5861_v54 = vsub.f32 0.0, %v15618_v18  ;;  %v5912_v33 = vmul.f32 1.442695, %v5857_v49  ;;  %12490 = vpow2.f32 %v5904_v0 }
 0x6bd   : > { %17489 = vst [vmem:[#allocation22_spill] sm:$0xff] %v15633_v34  ;;  %v12467_v24 = vpop.eup %12466  ;;  %v5862_v39 = vsub.f32 0.0, %v15623_v53  ;;  %v5914_v61 = vmul.f32 1.442695, %v5858_v40  ;;  %12492 = vpow2.f32 %v5906_v57  ;;  %v5863_v62 = vsub.f32 0.0, %v15628_v21 }
 0x6be   : > { %17490 = vst [vmem:[#allocation19_spill] sm:$0xff] %v15638_v42  ;;  %v12469_v8 = vpop.eup %12468  ;;  %v5916_v48 = vmul.f32 1.442695, %v5859_v59  ;;  %12494 = vpow2.f32 %v5908_v63  ;;  %v5864_v19 = vsub.f32 0.0, %v15633_v34  ;;  %v5918_v55 = vmul.f32 1.442695, %v5860_v9 }
 0x6bf   : > { %v12471_v60 = vpop.eup %12470  ;;  %12496 = vpow2.f32 %v5910_v37  ;;  %v5865_v38 = vsub.f32 0.0, %v15638_v42  ;;  %v5920_v49 = vmul.f32 1.442695, %v5861_v54  ;;  %v5922_v2 = vmul.f32 1.442695, %v5862_v39 }
 0x6c0   : > { %v12473_v13 = vpop.eup %12472  ;;  %12498 = vpow2.f32 %v5912_v33  ;;  %v5924_v57 = vmul.f32 1.442695, %v5863_v62  ;;  %v5926_v21 = vmul.f32 1.442695, %v5864_v19  ;;  %v5930_v37 = vadd.f32 1.0, %v15604_v22 }
 0x6c1   : > { %v12475_v0 = vpop.eup %12474  ;;  %12500 = vpow2.f32 %v5914_v61  ;;  %v5928_v59 = vmul.f32 1.442695, %v5865_v38  ;;  %v5931_v54 = vadd.f32 1.0, %v12455_v4  ;;  %v5932_v39 = vadd.f32 1.0, %v12457_v25 }
 0x6c2   : > { %v12477_v40 = vpop.eup %12476  ;;  %12502 = vpow2.f32 %v5916_v48  ;;  %v5933_v62 = vadd.f32 1.0, %v12459_v31  ;;  %v5934_v42 = vadd.f32 1.0, %v12461_v7  ;;  %v5935_v19 = vadd.f32 1.0, %v12463_v56 }
 0x6c3   : > { %v12479_v30 = vpop.eup %12478  ;;  %12504 = vpow2.f32 %v5918_v55  ;;  %v5937_v22 = vadd.f32 1.0, %v12467_v24  ;;  %v5938_v4 = vadd.f32 1.0, %v12469_v8  ;;  %v5939_v25 = vadd.f32 1.0, %v12471_v60 }
 0x6c4   : > { %v12481_v63 = vpop.eup %12480  ;;  %12506 = vpow2.f32 %v5920_v49  ;;  %v5936_v49 = vadd.f32 1.0, %v12465_v16  ;;  %v5940_v31 = vadd.f32 1.0, %v12473_v13 }
 0x6c5   : > { %v12483_v34 = vpop.eup %12482  ;;  %12508 = vpow2.f32 %v5922_v2  ;;  %v5944_v8 = vadd.f32 1.0, %v12481_v63 }
 0x6c6   : > { %v12485_v9 = vpop.eup %12484  ;;  %12510 = vpow2.f32 %v5924_v57  ;;  %v5945_v60 = vadd.f32 1.0, %v12483_v34 }
 0x6c7   : > { %v12487_v33 = vpop.eup %12486  ;;  %12512 = vpow2.f32 %v5926_v21 }
 0x6c8   : > { %v12489_v61 = vpop.eup %12488  ;;  %12514 = vpow2.f32 %v5928_v59 }
 0x6c9   : > { %v12491_v48 = vpop.eup %12490  ;;  %12516 = vrcp.f32 %v5930_v37  ;;  %v5941_v37 = vadd.f32 1.0, %v12475_v0 }
 0x6ca   : > { %v12493_v55 = vpop.eup %12492  ;;  %12518 = vrcp.f32 %v5931_v54  ;;  %v5942_v54 = vadd.f32 1.0, %v12477_v40 }
 0x6cb   : > { %v12495_v38 = vpop.eup %12494  ;;  %12520 = vrcp.f32 %v5932_v39  ;;  %v5943_v39 = vadd.f32 1.0, %v12479_v30  ;;  %v5950_v63 = vadd.f32 1.0, %v12493_v55 }
 0x6cc   : > { %v12497_v2 = vpop.eup %12496  ;;  %12522 = vrcp.f32 %v5933_v62  ;;  %v5946_v62 = vadd.f32 1.0, %v12485_v9 }
 0x6cd   : > { %v12499_v57 = vpop.eup %12498  ;;  %12524 = vrcp.f32 %v5934_v42 }
 0x6ce   : > { %v12501_v21 = vpop.eup %12500  ;;  %12526 = vrcp.f32 %v5935_v19  ;;  %v5947_v19 = vadd.f32 1.0, %v12487_v33  ;;  %v5952_v33 = vadd.f32 1.0, %v12497_v2 }
 0x6cf   : > { %v12503_v59 = vpop.eup %12502  ;;  %12528 = vrcp.f32 %v5936_v49  ;;  %v5948_v49 = vadd.f32 1.0, %v12489_v61 }
 0x6d0   : > { %v12505_v7 = vpop.eup %12504  ;;  %12530 = vrcp.f32 %v5937_v22 }
 0x6d1   : > { %v12507_v56 = vpop.eup %12506  ;;  %12532 = vrcp.f32 %v5938_v4  ;;  %v5949_v4 = vadd.f32 1.0, %v12491_v48 }
 0x6d2   : > { %v15646_v16 = vpop.eup %12508  ;;  %12534 = vrcp.f32 %v5939_v25 }
 0x6d3   : > { %v15648_v24 = vpop.eup %12510  ;;  %12536 = vrcp.f32 %v5940_v31  ;;  %v5951_v31 = vadd.f32 1.0, %v12495_v38  ;;  %v5954_v38 = vadd.f32 1.0, %v12501_v21 }
 0x6d4   : > { %v15650_v42 = vpop.eup %12512  ;;  %12538 = vrcp.f32 %v5941_v37 }
 0x6d5   : > { %v15652_v13 = vpop.eup %12514  ;;  %12540 = vrcp.f32 %v5942_v54 }
 0x6d6   : > { %v12517_v0 = vpop.eup %12516  ;;  %12542 = vrcp.f32 %v5943_v39 }
 0x6d7   : > { %v12519_v40 = vpop.eup %12518  ;;  %12544 = vrcp.f32 %v5944_v8  ;;  %v5994_v30 = vmul.f32 %v12517_v0, %v15465_v14  ;;  %v5953_v14 = vadd.f32 1.0, %v12499_v57  ;;  %v5956_v0 = vadd.f32 1.0, %v12505_v7 }
 0x6d8   : > { %v12521_v22 = vpop.eup %12520  ;;  %12546 = vrcp.f32 %v5945_v60  ;;  %v5995_v25 = vmul.f32 %v12519_v40, %v15468_v47  ;;  %v5957_v40 = vadd.f32 1.0, %v12507_v56 }
 0x6d9   : > { %v12523_v34 = vpop.eup %12522  ;;  %12548 = vrcp.f32 %v5946_v62  ;;  %v5996_v9 = vmul.f32 %v12521_v22, %v15471_v52  ;;  %v10827_v37 = vpack.c.bf16 %v5994_v30, %v5994_v30  ;;  %v5955_v62 = vadd.f32 1.0, %v12503_v59 }
 0x6da   : > { %v12525_v54 = vpop.eup %12524  ;;  %12550 = vrcp.f32 %v5947_v19  ;;  %v5997_v61 = vmul.f32 %v12523_v34, %v15477_v20  ;;  %v10828_v39 = vpack.c.bf16 %v5995_v25, %v5995_v25  ;;  %v5958_v30 = vadd.f32 1.0, %v15646_v16 }
 0x6db   : > { %v12527_v8 = vpop.eup %12526  ;;  %12552 = vrcp.f32 %v5948_v49  ;;  %v5998_v48 = vmul.f32 %v12525_v54, %v15489_v43  ;;  %v10829_v55 = vpack.c.bf16 %v5996_v9, %v5996_v9  ;;  %6154 = vst.msk [vmem:[#allocation2 + $0x10] sm:$0xf] %vm1146_vm2, %v10827_v37  ;;  %v5960_v25 = vadd.f32 1.0, %v15650_v42 }
 0x6dc   : > { %v12529_v47 = vpop.eup %12528  ;;  %12554 = vrcp.f32 %v5949_v4  ;;  %v5999_v52 = vmul.f32 %v12527_v8, %v15498_v17  ;;  %v10830_v60 = vpack.c.bf16 %v5997_v61, %v5997_v61  ;;  %6155 = vst.msk [vmem:[#allocation2 + $0x14] sm:$0xf] %vm1146_vm2, %v10828_v39  ;;  %v5959_v4 = vadd.f32 1.0, %v15648_v24 }
 0x6dd   : > { %v12531_v2 = vpop.eup %12530  ;;  %12556 = vrcp.f32 %v5950_v63  ;;  %v6000_v20 = vmul.f32 %v12529_v47, %v15501_v12  ;;  %v10831_v57 = vpack.c.bf16 %v5998_v48, %v5998_v48  ;;  %6156 = vst.msk [vmem:[#allocation2 + $0x18] sm:$0xf] %vm1146_vm2, %v10829_v55  ;;  %v5961_v24 = vadd.f32 1.0, %v15652_v13 }
 0x6de   : > { %v12533_v43 = vpop.eup %12532  ;;  %12558 = vrcp.f32 %v5951_v31  ;;  %v6001_v19 = vmul.f32 %v12531_v2, %v15516_v1  ;;  %v10832_v21 = vpack.c.bf16 %v5999_v52, %v5999_v52  ;;  %6157 = vst.msk [vmem:[#allocation2 + $0x1c] sm:$0xf] %vm1146_vm2, %v10830_v60 }
 0x6df   : > { %v12535_v17 = vpop.eup %12534  ;;  %12560 = vrcp.f32 %v5952_v33  ;;  %v6002_v49 = vmul.f32 %v12533_v43, %v15526_v28  ;;  %v10833_v59 = vpack.c.bf16 %v6000_v20, %v6000_v20  ;;  %6158 = vst.msk [vmem:[#allocation2 + $0x20] sm:$0xf] %vm1146_vm2, %v10831_v57  ;;  %v15722_v43 = vld [vmem:[%s17191_s12 + $0x68] sm:$0xff]  }
 0x6e0   : > { %v12537_v12 = vpop.eup %12536  ;;  %12562 = vrcp.f32 %v5953_v14  ;;  %v6003_v7 = vmul.f32 %v12535_v17, %v15533_v36  ;;  %v10834_v22 = vpack.c.bf16 %v6001_v19, %v6001_v19  ;;  %6159 = vst.msk [vmem:[#allocation2 + $0x24] sm:$0xf] %vm1146_vm2, %v10832_v21 }
 0x6e1   : > { %v12539_v1 = vpop.eup %12538  ;;  %12564 = vrcp.f32 %v5954_v38  ;;  %v6004_v56 = vmul.f32 %v12537_v12, %v15538_v10  ;;  %v10835_v63 = vpack.c.bf16 %v6002_v49, %v6002_v49  ;;  %6160 = vst.msk [vmem:[#allocation2 + $0x28] sm:$0xf] %vm1146_vm2, %v10833_v59  ;;  %v12196_v38 = vld [vmem:[%s17191_s12 + $0xf0] sm:$0xff]  }
 0x6e2   : > { %v12541_v28 = vpop.eup %12540  ;;  %12566 = vrcp.f32 %v5955_v62  ;;  %v6005_v16 = vmul.f32 %v12539_v1, %v15544_v46  ;;  %v10836_v34 = vpack.c.bf16 %v6003_v7, %v6003_v7  ;;  %6161 = vst.msk [vmem:[#allocation2 + $0x2c] sm:$0xf] %vm1146_vm2, %v10834_v22  ;;  %v15677_v36 = vld [vmem:[#allocation2 + $0x10] sm:$0xf] }
 0x6e3   : > { %v12543_v31 = vpop.eup %12542  ;;  %12568 = vrcp.f32 %v5956_v0  ;;  %v6006_v10 = vmul.f32 %v12541_v28, %v15548_v32  ;;  %v10837_v9 = vpack.c.bf16 %v6004_v56, %v6004_v56  ;;  %6162 = vst.msk [vmem:[#allocation2 + $0x30] sm:$0xf] %vm1146_vm2, %v10835_v63  ;;  %v15682_v37 = vld [vmem:[#allocation2 + $0x14] sm:$0xf] }
 0x6e4   : > { %v12545_v42 = vpop.eup %12544  ;;  %12570 = vrcp.f32 %v5957_v40  ;;  %v6007_v46 = vmul.f32 %v12543_v31, %v15552_v23  ;;  %v10838_v54 = vpack.c.bf16 %v6005_v16, %v6005_v16  ;;  %6163 = vst.msk [vmem:[#allocation2 + $0x34] sm:$0xf] %vm1146_vm2, %v10836_v34  ;;  %v15686_v33 = vld [vmem:[#allocation2 + $0x18] sm:$0xf]  ;;  %v10437_v13 = vcombine.low %v15677_v36, %v15682_v37  ;;  %v12201_v23 = vld [vmem:[%s17191_s12 + $0x70] sm:$0xff]   ;;  %v12216_v16 = vld [vmem:[%s17191_s12 + $0xe0] sm:$0xff]  }
 0x6e5   : > { %v12547_v61 = vpop.eup %12546  ;;  %12572 = vrcp.f32 %v5958_v30  ;;  %v6008_v32 = vmul.f32 %v12545_v42, %v15556_v26  ;;  %v10839_v39 = vpack.c.bf16 %v6006_v10, %v6006_v10  ;;  %6164 = vst.msk [vmem:[#allocation2 + $0x38] sm:$0xf] %vm1146_vm2, %v10837_v9  ;;  %v15692_v8 = vld [vmem:[#allocation2 + $0x1c] sm:$0xf] }
 0x6e6   : > { %v12549_v14 = vpop.eup %12548  ;;  %12574 = vrcp.f32 %v5959_v4  ;;  %v6009_v48 = vmul.f32 %v12547_v61, %v15560_v51  ;;  %v10840_v55 = vpack.c.bf16 %v6007_v46, %v6007_v46  ;;  %6165 = vst.msk [vmem:[#allocation2 + $0x3c] sm:$0xf] %vm1146_vm2, %v10838_v54  ;;  %v10438_v47 = vcombine.low %v15686_v33, %v15692_v8  ;;  %11656 = vmatprep.mubr.msk.bf16.mxu1 %vm5316_vm6, %v10437_v13  ;;  %v15703_v26 = vld [vmem:[#allocation2 + $0x20] sm:$0xf] }
 0x6e7   : > { %11697 = vmatmul.mubr.msk.bf16.vlgmr.msra.gmra.mxu0 %vm5316_vm6, %v10437_v13  ;;  %v12551_v52 = vpop.eup %12550  ;;  %12576 = vrcp.f32 %v5960_v25  ;;  %v6010_v51 = vmul.f32 %v12549_v14, %v15564_v50  ;;  %v10841_v60 = vpack.c.bf16 %v6008_v32, %v6008_v32  ;;  %6166 = vst.msk [vmem:[#allocation2 + $0x40] sm:$0xf] %vm1146_vm2, %v10839_v39  ;;  %v15710_v2 = vld [vmem:[#allocation2 + $0x24] sm:$0xf] }
 0x6e8   : > { %11769 = vmatpush3.bf16.msra.mxu0 %v15422_v5  ;;  %v12553_v62 = vpop.eup %12552  ;;  %12578 = vrcp.f32 %v5961_v24  ;;  %v6011_v20 = vmul.f32 %v12551_v52, %v15568_v6  ;;  %v10842_v57 = vpack.c.bf16 %v6009_v48, %v6009_v48  ;;  %6167 = vst.msk [vmem:[#allocation2 + $0x44] sm:$0xf] %vm1146_vm2, %v10840_v55  ;;  %11657 = vmatmul.mubr.msk.bf16.vlgmr.msra.gmra.mxu1 %vm5316_vm6, %v10438_v47  ;;  %v15729_v40 = vld [vmem:[#allocation2 + $0x28] sm:$0xf]  ;;  %v12221_v24 = vld [vmem:[%s17191_s12 + $0x60] sm:$0xff]   ;;  %v17491_v55 = vld [vmem:[#allocation17_spill] sm:$0xff] }
 0x6e9   : > { %11700 = vmatprep.mubr.msk.bf16.mxu0 %vm5316_vm6, %v10438_v47  ;;  %v10439_v50 = vcombine.low %v15703_v26, %v15710_v2  ;;  %v12555_v5 = vpop.eup %12554  ;;  %v6012_v0 = vmul.f32 %v12553_v62, %v15572_v58  ;;  %v10843_v19 = vpack.c.bf16 %v6010_v51, %v6010_v51  ;;  %6168 = vst.msk [vmem:[#allocation2 + $0x48] sm:$0xf] %vm1146_vm2, %v10841_v60  ;;  %v15731_v49 = vld [vmem:[#allocation2 + $0x2c] sm:$0xf]  ;;  %v15793_v60 = vld [vmem:[%s17191_s12 + $0xd8] sm:$0xff]  }
 0x6ea   : > { %11729 = vmatpush3.bf16.msra.mxu1 %v15435_v45  ;;  %11770 = vmatprep.subr.bf16.mxu0 %v12201_v23  ;;  %v12557_v6 = vpop.eup %12556  ;;  %v6013_v21 = vmul.f32 %v12555_v5, %v15576_v41  ;;  %v10844_v17 = vpack.c.bf16 %v6011_v20, %v6011_v20  ;;  %6169 = vst.msk [vmem:[#allocation2 + $0x4c] sm:$0xf] %vm1146_vm2, %v10842_v57  ;;  %v12206_v45 = vld [vmem:[%s17191_s12 + $0xe8] sm:$0xff]   ;;  %v15741_v22 = vld [vmem:[#allocation2 + $0x30] sm:$0xf]  ;;  %v17492_v62 = vld [vmem:[#allocation22_spill] sm:$0xff] }
 0x6eb   : > { %11660 = vmatprep.mubr.msk.bf16.mxu1 %vm5316_vm6, %v10439_v50  ;;  %11730 = vmatprep.subr.bf16.mxu1 %v12196_v38  ;;  %v12559_v58 = vpop.eup %12558  ;;  %v6014_v59 = vmul.f32 %v12557_v6, %v15581_v15  ;;  %v10845_v12 = vpack.c.bf16 %v6012_v0, %v6012_v0  ;;  %6170 = vst.msk [vmem:[#allocation2 + $0x50] sm:$0xf] %vm1146_vm2, %v10843_v19  ;;  %v15743_v1 = vld [vmem:[#allocation2 + $0x34] sm:$0xf] }
 0x6ec   : > { %11771 = vmatpush3.bf16.msra.mxu0 %v12201_v23  ;;  %v12561_v41 = vpop.eup %12560  ;;  %v6015_v30 = vmul.f32 %v12559_v58, %v15586_v3  ;;  %v10846_v7 = vpack.c.bf16 %v6013_v21, %v6013_v21  ;;  %6171 = vst.msk [vmem:[#allocation2 + $0x54] sm:$0xf] %vm1146_vm2, %v10844_v17  ;;  %v10440_v63 = vcombine.low %v15729_v40, %v15731_v49 }
 0x6ed   : > { %11772 = vmatprep.subr.bf16.mxu0 %v15722_v43  ;;  %v12563_v15 = vpop.eup %12562  ;;  %v6016_v4 = vmul.f32 %v12561_v41, %v15591_v44  ;;  %v10847_v56 = vpack.c.bf16 %v6014_v59, %v6014_v59  ;;  %6172 = vst.msk [vmem:[#allocation2 + $0x58] sm:$0xf] %vm1146_vm2, %v10845_v12  ;;  %v15774_v39 = vld [vmem:[#allocation2 + $0x3c] sm:$0xf] }
 0x6ee   : > { %11731 = vmatpush3.bf16.msra.mxu1 %v12196_v38  ;;  %v12565_v3 = vpop.eup %12564  ;;  %v6017_v28 = vmul.f32 %v12563_v15, %v15596_v27  ;;  %v10848_v25 = vpack.c.bf16 %v6015_v30, %v6015_v30  ;;  %6173 = vst.msk [vmem:[#allocation2 + $0x5c] sm:$0xf] %vm1146_vm2, %v10846_v7  ;;  %v10441_v27 = vcombine.low %v15741_v22, %v15743_v1  ;;  %v15786_v52 = vld [vmem:[#allocation2 + $0x40] sm:$0xf] }
 0x6ef   : > { %11701 = vmatmul.mubr.msk.bf16.gmra.mxu0 %vm5316_vm6, %v10439_v50  ;;  %v12567_v44 = vpop.eup %12566  ;;  %v6018_v34 = vmul.f32 %v12565_v3, %v15601_v29  ;;  %v10849_v31 = vpack.c.bf16 %v6016_v4, %v6016_v4  ;;  %6174 = vst.msk [vmem:[#allocation2 + $0x60] sm:$0xf] %vm1146_vm2, %v10847_v56  ;;  %11732 = vmatprep.subr.bf16.mxu1 %v12206_v45  ;;  %v15788_v51 = vld [vmem:[#allocation2 + $0x44] sm:$0xf]  ;;  %v7139_v3 = vld [vmem:[#allocation2 + $0xc] sm:$0x8] }
 0x6f0   : > { %11704 = vmatprep.mubr.msk.bf16.mxu0 %vm5316_vm6, %v10440_v63  ;;  %v12569_v10 = vpop.eup %12568  ;;  %v6019_v9 = vmul.f32 %v12567_v44, %v15608_v35  ;;  %v10850_v42 = vpack.c.bf16 %v6017_v28, %v6017_v28  ;;  %6175 = vst.msk [vmem:[#allocation2 + $0x64] sm:$0xf] %vm1146_vm2, %v10848_v25  ;;  %11661 = vmatmul.mubr.msk.bf16.gmra.mxu1 %vm5316_vm6, %v10440_v63  ;;  %v15772_v35 = vld [vmem:[#allocation2 + $0x38] sm:$0xf]  ;;  %v15813_v17 = vld [vmem:[#allocation2 + $0x48] sm:$0xf] }
 0x6f1   : > { %v12571_v29 = vpop.eup %12570  ;;  %v6020_v46 = vmul.f32 %v12569_v10, %v15613_v11  ;;  %v10851_v54 = vpack.c.bf16 %v6018_v34, %v6018_v34  ;;  %6176 = vst.msk [vmem:[#allocation2 + $0x68] sm:$0xf] %vm1146_vm2, %v10849_v31  ;;  %11664 = vmatprep.mubr.msk.bf16.mxu1 %vm5316_vm6, %v10441_v27  ;;  %11773 = vmatpush3.bf16.msra.mxu0 %v15722_v43  ;;  %v15780_v11 = vld [vmem:[%s17191_s12 + $0x18] sm:$0xff]   ;;  %v17493_v43 = vld [vmem:[#allocation19_spill] sm:$0xff]  ;;  %v15815_v58 = vld [vmem:[#allocation2 + $0x4c] sm:$0xf] }
 0x6f2   : > { %11733 = vmatpush3.bf16.msra.mxu1 %v12206_v45  ;;  %v12573_v13 = vpop.eup %12572  ;;  %v6021_v61 = vmul.f32 %v12571_v29, %v15618_v18  ;;  %v10852_v32 = vpack.c.bf16 %v6019_v9, %v6019_v9  ;;  %6177 = vst.msk [vmem:[#allocation2 + $0x6c] sm:$0xf] %vm1146_vm2, %v10850_v42  ;;  %11774 = vmatprep.subr.bf16.mxu0 %v12221_v24  ;;  %v15817_v59 = vld [vmem:[#allocation2 + $0x50] sm:$0xf] }
 0x6f3   : > { %11734 = vmatprep.subr.bf16.mxu1 %v12216_v16  ;;  %v12575_v23 = vpop.eup %12574  ;;  %v6022_v14 = vmul.f32 %v12573_v13, %v15623_v53  ;;  %v10853_v48 = vpack.c.bf16 %v6020_v46, %v6020_v46  ;;  %6178 = vst.msk [vmem:[#allocation2 + $0x70] sm:$0xf] %vm1146_vm2, %v10851_v54  ;;  %v10442_v50 = vcombine.low %v15772_v35, %v15774_v39  ;;  %v15819_v12 = vld [vmem:[#allocation2 + $0x54] sm:$0xf]  ;;  %v12582_v54 = vld [vmem:[#allocation2 + $0x8] sm:$0xf] }
 0x6f4   : > { %v12577_v18 = vpop.eup %12576  ;;  %v6023_v47 = vmul.f32 %v12575_v23, %v17491_v55  ;;  %v10854_v38 = vpack.c.bf16 %v6021_v61, %v6021_v61  ;;  %6179 = vst.msk [vmem:[#allocation2 + $0x74] sm:$0xf] %vm1146_vm2, %v10852_v32  ;;  %v10443_v6 = vcombine.low %v15786_v52, %v15788_v51  ;;  %v10444_v45 = vcombine.low %v15813_v17, %v15815_v58  ;;  %v15829_v30 = vld [vmem:[#allocation2 + $0x58] sm:$0xf] }
 0x6f5   : > { %v12579_v53 = vpop.eup %12578  ;;  %v6024_v20 = vmul.f32 %v12577_v18, %v17492_v62  ;;  %v10855_v57 = vpack.c.bf16 %v6022_v14, %v6022_v14  ;;  %6180 = vst.msk [vmem:[#allocation2 + $0x78] sm:$0xf] %vm1146_vm2, %v10853_v48  ;;  %11775 = vmatpush3.bf16.msra.mxu0 %v12221_v24  ;;  %v10445_v41 = vcombine.low %v15817_v59, %v15819_v12  ;;  %v15831_v7 = vld [vmem:[#allocation2 + $0x5c] sm:$0xf]  ;;  %v7130_v24 = vld [vmem:[#allocation2 + $0x4] sm:$0x8] }
 0x6f6   : > { %11735 = vmatpush3.bf16.msra.mxu1 %v12216_v16  ;;  %v6025_v5 = vmul.f32 %v12579_v53, %v17493_v43  ;;  %v10856_v0 = vpack.c.bf16 %v6023_v47, %v6023_v47  ;;  %6181 = vst.msk [vmem:[#allocation2 + $0x7c] sm:$0xf] %vm1146_vm2, %v10854_v38  ;;  %11848 = vmatprep.subr.bf16.mxu0 %v15793_v60  ;;  %v15833_v15 = vld [vmem:[#allocation2 + $0x60] sm:$0xf] }
 0x6f7   : > { %11705 = vmatmul.mubr.msk.bf16.gmra.mxu0 %vm5316_vm6, %v10441_v27  ;;  %11808 = vmatprep.subr.bf16.mxu1 %v15780_v11  ;;  %v10857_v19 = vpack.c.bf16 %v6024_v20, %v6024_v20  ;;  %6182 = vst.msk [vmem:[#allocation2 + $0x80] sm:$0xf] %vm1146_vm2, %v10855_v57  ;;  %v15835_v4 = vld [vmem:[#allocation2 + $0x64] sm:$0xf]  ;;  %v10446_v56 = vcombine.low %v15829_v30, %v15831_v7 }
 0x6f8   : > { %11708 = vmatprep.mubr.msk.bf16.mxu0 %vm5316_vm6, %v10442_v50  ;;  %v10858_v21 = vpack.c.bf16 %v6025_v5, %v6025_v5  ;;  %6183 = vst.msk [vmem:[#allocation2 + $0x84] sm:$0xf] %vm1146_vm2, %v10856_v0  ;;  %11665 = vmatmul.mubr.msk.bf16.gmra.mxu1 %vm5316_vm6, %v10442_v50  ;;  %v10447_v63 = vcombine.low %v15833_v15, %v15835_v4  ;;  %v15845_v28 = vld [vmem:[#allocation2 + $0x68] sm:$0xf]  ;;  %v15886_v50 = vld [vmem:[#allocation2 + $0x18] sm:$0xf] }
 0x6f9   : > { %6184 = vst.msk [vmem:[#allocation2 + $0x88] sm:$0xf] %vm1146_vm2, %v10857_v19  ;;  %11668 = vmatprep.mubr.msk.bf16.mxu1 %vm5316_vm6, %v10443_v6  ;;  %v15847_v25 = vld [vmem:[#allocation2 + $0x6c] sm:$0xf]  ;;  %v10547_v44 = vcombine.low %v15682_v37, %v15686_v33  ;;  %v10546_v31 = vcombine.low %v7139_v3, %v15677_v36  ;;  %v10583_v13 = vcombine.low %v7130_v24, %v12582_v54 }
 0x6fa   : > { %6185 = vst.msk [vmem:[#allocation2 + $0x8c] sm:$0xf] %vm1146_vm2, %v10858_v21  ;;  %v15849_v16 = vld [vmem:[#allocation2 + $0x70] sm:$0xf]  ;;  %v10448_v27 = vcombine.low %v15845_v28, %v15847_v25  ;;  %v10548_v23 = vcombine.low %v15692_v8, %v15703_v26  ;;  %v10549_v14 = vcombine.low %v15710_v2, %v15729_v40  ;;  %v10550_v19 = vcombine.low %v15731_v49, %v15741_v22  ;;  %v12583_v21 = vld [vmem:[#allocation2 + $0xc] sm:$0xf] }
 0x6fb   : > { %v15853_v34 = vld [vmem:[#allocation2 + $0x74] sm:$0xf]  ;;  %v7169_v9 = vshrl.u32 %v10546_v31, 16  ;;  %v7177_v42 = vshrl.u32 %v10547_v44, 16  ;;  %v7172_v37 = vshll.u32 %v10546_v31, 16  ;;  %v7180_v33 = vshll.u32 %v10547_v44, 16 }
 0x6fc   : > { %v10449_v10 = vcombine.low %v15849_v16, %v15853_v34  ;;  %v15864_v29 = vld [vmem:[#allocation2 + $0x78] sm:$0xf]  ;;  %v7559_v8 = vshrl.u32 %v10583_v13, 16  ;;  %v7562_v26 = vshll.u32 %v10583_v13, 16  ;;  %v7186_v62 = vshrl.u32 %v10548_v23, 16 }
 0x6fd   : > { %v15866_v46 = vld [vmem:[#allocation2 + $0x7c] sm:$0xf]  ;;  %v7171_v18 = vrot.slane %v7169_v9, 3  ;;  %v7174_v55 = vrot.slane %v7172_v37, 4  ;;  %v7179_v47 = vrot.slane %v7177_v42, 3  ;;  %v7182_v38 = vrot.slane %v7180_v33, 4 }
 0x6fe   : > { %v15868_v61 = vld [vmem:[#allocation2 + $0x80] sm:$0xf]  ;;  %v10450_v48 = vcombine.low %v15864_v29, %v15866_v46  ;;  %v7189_v2 = vshll.u32 %v10548_v23, 16  ;;  %v7195_v43 = vshrl.u32 %v10549_v14, 16  ;;  %v7198_v5 = vshll.u32 %v10549_v14, 16 }
 0x6ff   : > { %11709 = vmatmul.mubr.msk.bf16.gmra.mxu0 %vm5316_vm6, %v10443_v6  ;;  %v15870_v32 = vld [vmem:[#allocation2 + $0x84] sm:$0xf]  ;;  %v7175_v20 = vor.u32 %v7174_v55, %v7171_v18  ;;  %v7183_v57 = vor.u32 %v7182_v38, %v7179_v47  ;;  %v15892_v6 = vld [vmem:[#allocation2 + $0x1c] sm:$0xf]  ;;  %v7564_v22 = vrot.slane %v7562_v26, 4  ;;  %v7204_v24 = vshrl.u32 %v10550_v19, 16 }
 0x700   : > { %11712 = vmatprep.mubr.msk.bf16.mxu0 %vm5316_vm6, %v10444_v45  ;;  %11669 = vmatmul.mubr.msk.bf16.gmra.mxu1 %vm5316_vm6, %v10444_v45  ;;  %v10451_v53 = vcombine.low %v15868_v61, %v15870_v32  ;;  %v15883_v40 = vld [vmem:[#allocation2 + $0x88] sm:$0xf]  ;;  %v10584_v45 = vcombine.low %v12583_v21, %v15677_v36  ;;  %v7197_v31 = vrot.slane %v7195_v43, 3  ;;  %v10502_v49 = vcombine.low %v15886_v50, %v15892_v6  ;;  %v15907_v9 = vld [vmem:[#allocation2 + $0x24] sm:$0xf] }
 0x701   : > { %11672 = vmatprep.mubr.msk.bf16.mxu1 %vm5316_vm6, %v10445_v41  ;;  %v15888_v0 = vld [vmem:[#allocation2 + $0x8c] sm:$0xf]  ;;  %v7184_v44 = vsel %vm2901_vm4, %v7175_v20, %v7183_v57  ;;  %v7561_v36 = vrot.slane %v7559_v8, 3  ;;  %v15910_v23 = vld [vmem:[#allocation2 + $0x28] sm:$0xf]  ;;  %v7206_v55 = vrot.slane %v7204_v24, 3  ;;  %v10552_v47 = vcombine.low %v15774_v39, %v15786_v52 }
 0x702   : > { %v10452_v3 = vcombine.low %v15883_v40, %v15888_v0  ;;  %v7567_v42 = vshrl.u32 %v10584_v45, 16  ;;  %v7570_v37 = vshll.u32 %v10584_v45, 16  ;;  %v15914_v38 = vld [vmem:[#allocation2 + $0x2c] sm:$0xf]  ;;  %v10553_v26 = vcombine.low %v15788_v51, %v15813_v17  ;;  %v12265_v24 = vld [vmem:[%s17191_s12 + $0xc0] sm:$0xff]  }
 0x703   : > { %v7565_v14 = vor.u32 %v7564_v22, %v7561_v36  ;;  %v10560_v51 = vcombine.low %v15866_v46, %v15868_v61  ;;  %v10504_v17 = vcombine.low %v15910_v23, %v15914_v38  ;;  %v7222_v21 = vshrl.u32 %v10552_v47, 16  ;;  %v12254_v45 = vld [vmem:[%s17191_s12 + $0xc8] sm:$0xff]   ;;  %v15962_v36 = vld [vmem:[#allocation2 + $0x38] sm:$0xf]  ;;  %v15964_v22 = vld [vmem:[#allocation2 + $0x3c] sm:$0xf] }
 0x704   : > { %v7572_v18 = vrot.slane %v7570_v37, 4  ;;  %v7225_v61 = vshll.u32 %v10552_v47, 16 }
 0x707   : > { %11713 = vmatmul.mubr.msk.bf16.gmra.mxu0 %vm5316_vm6, %v10445_v41  ;;  %v7188_v41 = vrot.slane %v7186_v62, 3 }
 0x708   : > { %11716 = vmatprep.mubr.msk.bf16.mxu0 %vm5316_vm6, %v10446_v56  ;;  %11673 = vmatmul.mubr.msk.bf16.gmra.mxu1 %vm5316_vm6, %v10446_v56  ;;  %v7191_v56 = vrot.slane %v7189_v2, 4 }
 0x709   : > { %11676 = vmatprep.mubr.msk.bf16.mxu1 %vm5316_vm6, %v10447_v63 }
 0x70f   : > { %11717 = vmatmul.mubr.msk.bf16.gmra.mxu0 %vm5316_vm6, %v10447_v63  ;;  %v10551_v63 = vcombine.low %v15743_v1, %v15772_v35  ;;  %v7192_v1 = vor.u32 %v7191_v56, %v7188_v41  ;;  %v7207_v35 = vshll.u32 %v10550_v19, 16  ;;  %v7231_v56 = vshrl.u32 %v10553_v26, 16 }
 0x710   : > { %11720 = vmatprep.mubr.msk.bf16.mxu0 %vm5316_vm6, %v10448_v27  ;;  %11677 = vmatmul.mubr.msk.bf16.gmra.mxu1 %vm5316_vm6, %v10448_v27  ;;  %v7200_v27 = vrot.slane %v7198_v5, 4  ;;  %v12239_v5 = vld [vmem:[%s17191_s12 + $0x10] sm:$0xff]  }
 0x711   : > { %11680 = vmatprep.mubr.msk.bf16.mxu1 %vm5316_vm6, %v10449_v10  ;;  %v7213_v54 = vshrl.u32 %v10551_v63, 16  ;;  %v7216_v13 = vshll.u32 %v10551_v63, 16  ;;  %v7209_v8 = vrot.slane %v7207_v35, 4  ;;  %v15922_v62 = vsel %vm2901_vm4, %v7183_v57, %v7192_v1 }
 0x712   : > { %v7201_v33 = vor.u32 %v7200_v27, %v7197_v31  ;;  %v7234_v63 = vshll.u32 %v10553_v26, 16  ;;  %v7297_v31 = vshll.u32 %v10560_v51, 16  ;;  %v15956_v27 = vld [vmem:[#allocation2 + $0x30] sm:$0xf]  ;;  %v10555_v35 = vcombine.low %v15819_v12, %v15829_v30  ;;  %v12259_v12 = vld [vmem:[%s17191_s12] sm:$0xff]  }
 0x713   : > { %v7215_v52 = vrot.slane %v7213_v54, 3  ;;  %v7218_v43 = vrot.slane %v7216_v13, 4  ;;  %v7233_v54 = vrot.slane %v7231_v56, 3  ;;  %v16012_v56 = vld [vmem:[#allocation2 + $0x4c] sm:$0xf] }
 0x714   : > { %v15929_v39 = vsel %vm2901_vm4, %v7192_v1, %v7201_v33  ;;  %v7227_v1 = vrot.slane %v7225_v61, 4  ;;  %v7236_v13 = vrot.slane %v7234_v63, 4  ;;  %v10556_v61 = vcombine.low %v15831_v7, %v15833_v15 }
 0x715   : > { %v7219_v41 = vor.u32 %v7218_v43, %v7215_v52  ;;  %v16000_v52 = vld [vmem:[%s17191_s12 + $0xb8] sm:$0xff]   ;;  %v16002_v43 = vld [vmem:[#allocation2 + $0x40] sm:$0xf] }
 0x716   : > { %v7237_v26 = vor.u32 %v7236_v13, %v7233_v54  ;;  %v16038_v54 = vld [vmem:[#allocation2 + $0x50] sm:$0xf]  ;;  %v16040_v13 = vld [vmem:[#allocation2 + $0x54] sm:$0xf] }
 0x717   : > { %11721 = vmatmul.mubr.msk.bf16.gmra.mxu0 %vm5316_vm6, %v10449_v10  ;;  %v15905_v10 = vld [vmem:[#allocation2 + $0x20] sm:$0xf] }
 0x718   : > { %11724 = vmatprep.mubr.msk.bf16.mxu0 %vm5316_vm6, %v10450_v48  ;;  %11681 = vmatmul.mubr.msk.bf16.gmra.mxu1 %vm5316_vm6, %v10450_v48  ;;  %v7569_v48 = vrot.slane %v7567_v42, 3  ;;  %v10503_v20 = vcombine.low %v15905_v10, %v15907_v9  ;;  %v10585_v42 = vcombine.low %v15870_v32, %v15870_v32 }
 0x719   : > { %11684 = vmatprep.mubr.msk.bf16.mxu1 %vm5316_vm6, %v10451_v53 }
 0x71a   : > { %v7573_v2 = vor.u32 %v7572_v18, %v7569_v48  ;;  %v15994_v18 = vld [vmem:[%s17191_s12 + $0x58] sm:$0xff]  }
 0x71c   : > { %v15942_v19 = vsel %vm2901_vm4, %v7565_v14, %v7573_v2  ;;  %v15949_v46 = vsel %vm2901_vm4, %v7573_v2, %v7183_v57  ;;  %v15958_v57 = vld [vmem:[#allocation2 + $0x34] sm:$0xf]  ;;  %v10506_v14 = vcombine.low %v15962_v36, %v15964_v22  ;;  %v7249_v2 = vshrl.u32 %v10555_v35, 16 }
 0x71e   : > { %v7251_v15 = vrot.slane %v7249_v2, 3 }
 0x71f   : > { %11725 = vmatmul.mubr.msk.bf16.gmra.mxu0 %vm5316_vm6, %v10451_v53  ;;  %v12244_v53 = vld [vmem:[%s17191_s12 + $0xd0] sm:$0xff]  }
 0x720   : > { %11776 = vmatprep.mubr.msk.bf16.mxu0 %vm5316_vm6, %v7184_v44  ;;  %11685 = vmatmul.mubr.msk.bf16.gmra.mxu1 %vm5316_vm6, %v10452_v3  ;;  %v12249_v3 = vld [vmem:[%s17191_s12 + $0x8] sm:$0xff]   ;;  %v7294_v44 = vshrl.u32 %v10560_v51, 16 }
 0x721   : > { %11736 = vmatprep.mubr.msk.bf16.mxu1 %vm5316_vm6, %v10502_v49  ;;  %v7224_v49 = vrot.slane %v7222_v21, 3 }
 0x722   : > { %v7296_v30 = vrot.slane %v7294_v44, 3 }
 0x723   : > { %v7228_v47 = vor.u32 %v7227_v1, %v7224_v49 }
 0x725   : > { %v16018_v44 = vsel %vm2901_vm4, %v7219_v41, %v7228_v47  ;;  %v16025_v7 = vsel %vm2901_vm4, %v7228_v47, %v7237_v26 }
 0x727   : > { %11777 = vmatmul.mubr.msk.bf16.vlgmr.msra.gmra.mxu0 %vm5316_vm6, %v15922_v62 }
 0x728   : > { %11780 = vmatprep.mubr.msk.bf16.mxu0 %vm5316_vm6, %v15929_v39  ;;  %11849 = vmatpush3.bf16.msra.mxu0 %v15793_v60  ;;  %v7210_v60 = vor.u32 %v7209_v8, %v7206_v55  ;;  %v7580_v8 = vshll.u32 %v10585_v42, 16 }
 0x729   : > { %11737 = vmatmul.mubr.msk.bf16.vlgmr.msra.gmra.mxu1 %vm5316_vm6, %v10503_v20  ;;  %11850 = vmatprep.subr.bf16.mxu0 %v12244_v53  ;;  %v7252_v20 = vshll.u32 %v10555_v35, 16 }
 0x72a   : > { %11809 = vmatpush3.bf16.msra.mxu1 %v15780_v11  ;;  %11740 = vmatprep.mubr.msk.bf16.mxu1 %vm5316_vm6, %v10504_v17  ;;  %v10554_v11 = vcombine.low %v15815_v58, %v15817_v59  ;;  %v15974_v37 = vsel %vm2901_vm4, %v7201_v33, %v7210_v60  ;;  %v10505_v58 = vcombine.low %v15956_v27, %v15958_v57  ;;  %v7299_v33 = vrot.slane %v7297_v31, 4 }
 0x72b   : > { %11810 = vmatprep.subr.bf16.mxu1 %v12239_v5  ;;  %v15981_v59 = vsel %vm2901_vm4, %v7210_v60, %v7219_v41  ;;  %v7582_v21 = vrot.slane %v7580_v8, 4  ;;  %v16010_v60 = vld [vmem:[#allocation2 + $0x48] sm:$0xf]  ;;  %v7258_v41 = vshrl.u32 %v10556_v61, 16 }
 0x72c   : > { %11851 = vmatpush3.bf16.msra.mxu0 %v12244_v53  ;;  %v7240_v48 = vshrl.u32 %v10554_v11, 16  ;;  %v7243_v55 = vshll.u32 %v10554_v11, 16  ;;  %v7577_v53 = vshrl.u32 %v10585_v42, 16  ;;  %v16006_v51 = vor.u32 %v7299_v33, %v7296_v30  ;;  %v16042_v30 = vld [vmem:[#allocation2 + $0x58] sm:$0xf] }
 0x72d   : > { %11852 = vmatprep.subr.bf16.mxu0 %v12254_v45  ;;  %v7254_v11 = vrot.slane %v7252_v20, 4  ;;  %v16044_v33 = vld [vmem:[#allocation2 + $0x5c] sm:$0xf] }
 0x72e   : > { %11811 = vmatpush3.bf16.msra.mxu1 %v12239_v5  ;;  %v16004_v5 = vld [vmem:[#allocation2 + $0x44] sm:$0xf]  ;;  %v7579_v17 = vrot.slane %v7577_v53, 3  ;;  %v7245_v63 = vrot.slane %v7243_v55, 4  ;;  %v10559_v55 = vcombine.low %v15853_v34, %v15864_v29  ;;  %v10509_v53 = vcombine.low %v16038_v54, %v16040_v13 }
 0x72f   : > { %11781 = vmatmul.mubr.msk.bf16.gmra.mxu0 %vm5316_vm6, %v15974_v37  ;;  %11812 = vmatprep.subr.bf16.mxu1 %v12249_v3  ;;  %v10507_v49 = vcombine.low %v16002_v43, %v16004_v5  ;;  %v7255_v35 = vor.u32 %v7254_v11, %v7251_v15  ;;  %v10561_v15 = vcombine.low %v15870_v32, %v15883_v40 }
 0x730   : > { %11784 = vmatprep.mubr.msk.bf16.mxu0 %vm5316_vm6, %v15981_v59  ;;  %11853 = vmatpush3.bf16.msra.mxu0 %v12254_v45  ;;  %v7242_v45 = vrot.slane %v7240_v48, 3  ;;  %v7583_v31 = vor.u32 %v7582_v21, %v7579_v17  ;;  %v10558_v48 = vcombine.low %v15847_v25, %v15849_v16  ;;  %v10510_v25 = vcombine.low %v16042_v30, %v16044_v33 }
 0x731   : > { %11741 = vmatmul.mubr.msk.bf16.gmra.mxu1 %vm5316_vm6, %v10505_v58  ;;  %11854 = vmatprep.subr.bf16.mxu0 %v12265_v24  ;;  %v7285_v17 = vshrl.u32 %v10559_v55, 16  ;;  %v7288_v21 = vshll.u32 %v10559_v55, 16  ;;  %v16096_v55 = vld [vmem:[#allocation2 + $0x78] sm:$0xf] }
 0x732   : > { %11744 = vmatprep.mubr.msk.bf16.mxu1 %vm5316_vm6, %v10506_v14  ;;  %11813 = vmatpush3.bf16.msra.mxu1 %v12249_v3  ;;  %v10557_v3 = vcombine.low %v15835_v4, %v15845_v28  ;;  %v10508_v4 = vcombine.low %v16010_v60, %v16012_v56  ;;  %v16034_v28 = vsel %vm2901_vm4, %v16006_v51, %v7583_v31  ;;  %v7276_v16 = vshrl.u32 %v10558_v48, 16 }
 0x733   : > { %11814 = vmatprep.subr.bf16.mxu1 %v12259_v12  ;;  %v7246_v1 = vor.u32 %v7245_v63, %v7242_v45  ;;  %v7279_v34 = vshll.u32 %v10558_v48, 16  ;;  %v16066_v45 = vld [vmem:[#allocation2 + $0x60] sm:$0xf]  ;;  %v16070_v63 = vld [vmem:[#allocation2 + $0x68] sm:$0xf] }
 0x734   : > { %11855 = vmatpush3.bf16.msra.mxu0 %v12265_v24  ;;  %v7261_v24 = vshll.u32 %v10556_v61, 16  ;;  %v7267_v42 = vshrl.u32 %v10557_v3, 16  ;;  %v7270_v58 = vshll.u32 %v10557_v3, 16  ;;  %v16068_v61 = vld [vmem:[#allocation2 + $0x64] sm:$0xf]  ;;  %v7278_v31 = vrot.slane %v7276_v16, 3 }
 0x735   : > { %11928 = vmatprep.subr.bf16.mxu0 %v15994_v18  ;;  %v16051_v47 = vsel %vm2901_vm4, %v7237_v26, %v7246_v1  ;;  %v16058_v8 = vsel %vm2901_vm4, %v7246_v1, %v7255_v35  ;;  %v16072_v3 = vld [vmem:[#allocation2 + $0x6c] sm:$0xf]  ;;  %v7290_v1 = vrot.slane %v7288_v21, 4  ;;  %v16094_v48 = vld [vmem:[#allocation2 + $0x74] sm:$0xf] }
 0x736   : > { %11815 = vmatpush3.bf16.msra.mxu1 %v12259_v12  ;;  %v7260_v12 = vrot.slane %v7258_v41, 3  ;;  %v7263_v14 = vrot.slane %v7261_v24, 4  ;;  %v7269_v2 = vrot.slane %v7267_v42, 3  ;;  %v7272_v20 = vrot.slane %v7270_v58, 4 }
 0x737   : > { %11785 = vmatmul.mubr.msk.bf16.gmra.mxu0 %vm5316_vm6, %v16018_v44  ;;  %11888 = vmatprep.subr.bf16.mxu1 %v16000_v52  ;;  %v7287_v24 = vrot.slane %v7285_v17, 3  ;;  %v10512_v32 = vcombine.low %v16070_v63, %v16072_v3  ;;  %v7306_v42 = vshll.u32 %v10561_v15, 16 }
 0x738   : > { %11788 = vmatprep.mubr.msk.bf16.mxu0 %vm5316_vm6, %v16025_v7  ;;  %v7264_v29 = vor.u32 %v7263_v14, %v7260_v12  ;;  %v7273_v26 = vor.u32 %v7272_v20, %v7269_v2  ;;  %v7779_v12 = vld [vmem:[#allocation2 + $0x14] sm:$0x8]  ;;  %v16092_v14 = vld [vmem:[#allocation2 + $0x70] sm:$0xf]  ;;  %v10562_v2 = vcombine.low %v15888_v0, %v15888_v0 }
 0x739   : > { %11745 = vmatmul.mubr.msk.bf16.gmra.mxu1 %vm5316_vm6, %v10507_v49  ;;  %v7281_v49 = vrot.slane %v7279_v34, 4  ;;  %v7291_v58 = vor.u32 %v7290_v1, %v7287_v24  ;;  %v7308_v16 = vrot.slane %v7306_v42, 4  ;;  %v10614_v34 = vcombine.low %v7779_v12, %v15886_v50  ;;  %v16120_v50 = vld [vmem:[#allocation2 + $0x80] sm:$0xf]  ;;  %v16133_v42 = vld [vmem:[#allocation2 + $0x8c] sm:$0xf] }
 0x73a   : > { %11748 = vmatprep.mubr.msk.bf16.mxu1 %vm5316_vm6, %v10508_v4  ;;  %v16077_v11 = vsel %vm2901_vm4, %v7255_v35, %v7264_v29  ;;  %v10511_v4 = vcombine.low %v16066_v45, %v16068_v61  ;;  %v16084_v41 = vsel %vm2901_vm4, %v7264_v29, %v7273_v26  ;;  %v7303_v35 = vshrl.u32 %v10561_v15, 16 }
 0x73b   : > { %v7282_v40 = vor.u32 %v7281_v49, %v7278_v31  ;;  %v10615_v29 = vcombine.low %v15892_v6, %v15905_v10  ;;  %v10513_v17 = vcombine.low %v16092_v14, %v16094_v48  ;;  %v16122_v6 = vld [vmem:[#allocation2 + $0x84] sm:$0xf]  ;;  %v7315_v31 = vshll.u32 %v10562_v2, 16 }
 0x73c   : > { %v7809_v49 = vshrl.u32 %v10614_v34, 16  ;;  %v7812_v15 = vshll.u32 %v10614_v34, 16  ;;  %v10616_v1 = vcombine.low %v15907_v9, %v15910_v23  ;;  %v16137_v12 = vsel %vm2901_vm4, %v7291_v58, %v16006_v51 }
 0x73d   : > { %v16103_v20 = vsel %vm2901_vm4, %v7273_v26, %v7282_v40  ;;  %v16113_v21 = vsel %vm2901_vm4, %v7282_v40, %v7291_v58  ;;  %v7312_v26 = vshrl.u32 %v10562_v2, 16  ;;  %v7820_v24 = vshll.u32 %v10615_v29, 16 }
 0x73e   : > { %v10515_v40 = vcombine.low %v16120_v50, %v16122_v6  ;;  %v7811_v9 = vrot.slane %v7809_v49, 3  ;;  %v7814_v23 = vrot.slane %v7812_v15, 4  ;;  %v7826_v58 = vshrl.u32 %v10616_v1, 16  ;;  %v16148_v49 = vld [vmem:[#allocation2 + $0x90] sm:$0xf] }
 0x73f   : > { %11789 = vmatmul.mubr.msk.bf16.gmra.mxu0 %vm5316_vm6, %v16051_v47  ;;  %v16150_v15 = vld [vmem:[#allocation2 + $0x94] sm:$0xf] }
 0x740   : > { %11792 = vmatprep.mubr.msk.bf16.mxu0 %vm5316_vm6, %v16058_v8 }
 0x741   : > { %11749 = vmatmul.mubr.msk.bf16.gmra.mxu1 %vm5316_vm6, %v10509_v53  ;;  %v16098_v53 = vld [vmem:[#allocation2 + $0x7c] sm:$0xf] }
 0x742   : > { %11752 = vmatprep.mubr.msk.bf16.mxu1 %vm5316_vm6, %v10510_v25  ;;  %v7305_v25 = vrot.slane %v7303_v35, 3  ;;  %v10514_v0 = vcombine.low %v16096_v55, %v16098_v53  ;;  %v16131_v35 = vld [vmem:[#allocation2 + $0x88] sm:$0xf] }
 0x743   : > { %v10516_v34 = vcombine.low %v16131_v35, %v16133_v42 }
 0x744   : > { %v7309_v10 = vor.u32 %v7308_v16, %v7305_v25  ;;  %v7314_v25 = vrot.slane %v7312_v26, 3  ;;  %v7317_v16 = vrot.slane %v7315_v31, 4 }
 0x746   : > { %v7310_v2 = vsel %vm2901_vm4, %v16006_v51, %v7309_v10  ;;  %v7318_v51 = vor.u32 %v7317_v16, %v7314_v25  ;;  %v10619_v25 = vcombine.low %v15964_v22, %v16002_v43  ;;  %v12269_v22 = vld [vmem:[%s17191_s12 + $0x50] sm:$0xff]  }
 0x747   : > { %11793 = vmatmul.mubr.msk.bf16.gmra.mxu0 %vm5316_vm6, %v16077_v11 }
 0x748   : > { %11796 = vmatprep.mubr.msk.bf16.mxu0 %vm5316_vm6, %v16084_v41 }
 0x749   : > { %11753 = vmatmul.mubr.msk.bf16.gmra.mxu1 %vm5316_vm6, %v10511_v4  ;;  %v7817_v4 = vshrl.u32 %v10615_v29, 16  ;;  %v7829_v29 = vshll.u32 %v10616_v1, 16  ;;  %v7319_v1 = vsel %vm2901_vm4, %v7309_v10, %v7318_v51  ;;  %v7856_v10 = vshll.u32 %v10619_v25, 16 }
 0x74a   : > { %11756 = vmatprep.mubr.msk.bf16.mxu1 %vm5316_vm6, %v10512_v32  ;;  %v10617_v32 = vcombine.low %v15914_v38, %v15956_v27  ;;  %v7822_v27 = vrot.slane %v7820_v24, 4  ;;  %v7828_v24 = vrot.slane %v7826_v58, 3  ;;  %v10620_v58 = vcombine.low %v16004_v5, %v16010_v60  ;;  %v12271_v5 = vld [vmem:[%s17191_s12 + $0x48] sm:$0xff]  }
 0x74b   : > { %v7819_v38 = vrot.slane %v7817_v4, 3  ;;  %v10517_v4 = vcombine.low %v16148_v49, %v16150_v15  ;;  %v10621_v51 = vcombine.low %v16012_v56, %v16038_v54 }
 0x74c   : > { %v7835_v26 = vshrl.u32 %v10617_v32, 16  ;;  %v7838_v31 = vshll.u32 %v10617_v32, 16  ;;  %v7862_v60 = vshrl.u32 %v10620_v58, 16  ;;  %v7865_v56 = vshll.u32 %v10620_v58, 16 }
 0x74e   : > { %v7837_v16 = vrot.slane %v7835_v26, 3  ;;  %v7858_v26 = vrot.slane %v7856_v10, 4  ;;  %v10624_v10 = vcombine.low %v16068_v61, %v16070_v63 }
 0x74f   : > { %11797 = vmatmul.mubr.msk.bf16.gmra.mxu0 %vm5316_vm6, %v16103_v20 }
 0x750   : > { %11800 = vmatprep.mubr.msk.bf16.mxu0 %vm5316_vm6, %v16113_v21  ;;  %v7898_v61 = vshrl.u32 %v10624_v10, 16  ;;  %v7901_v63 = vshll.u32 %v10624_v10, 16 }
 0x751   : > { %11757 = vmatmul.mubr.msk.bf16.gmra.mxu1 %vm5316_vm6, %v10513_v17  ;;  %v7815_v17 = vor.u32 %v7814_v23, %v7811_v9  ;;  %v7840_v9 = vrot.slane %v7838_v31, 4  ;;  %v12268_v31 = vld [vmem:[%s17191_s12 + $0xb0] sm:$0xff]  }
 0x752   : > { %11760 = vmatprep.mubr.msk.bf16.mxu1 %vm5316_vm6, %v10514_v0  ;;  %v7823_v0 = vor.u32 %v7822_v27, %v7819_v38 }
 0x754   : > { %v7824_v32 = vsel %vm2901_vm4, %v7815_v17, %v7823_v0 }
 0x757   : > { %11801 = vmatmul.mubr.msk.bf16.gmra.mxu0 %vm5316_vm6, %v16137_v12 }
 0x758   : > { %11804 = vmatprep.mubr.msk.bf16.mxu0 %vm5316_vm6, %v7310_v2  ;;  %v7831_v2 = vrot.slane %v7829_v29, 4 }
 0x759   : > { %11761 = vmatmul.mubr.msk.bf16.gmra.mxu1 %vm5316_vm6, %v10515_v40  ;;  %v10618_v40 = vcombine.low %v15958_v57, %v15962_v36  ;;  %v7841_v57 = vor.u32 %v7840_v9, %v7837_v16  ;;  %v7853_v36 = vshrl.u32 %v10619_v25, 16  ;;  %v12272_v9 = vld [vmem:[%s17191_s12 + $0xa0] sm:$0xff]  }
 0x75a   : > { %11764 = vmatprep.mubr.msk.bf16.mxu1 %vm5316_vm6, %v10516_v34  ;;  %v7832_v23 = vor.u32 %v7831_v2, %v7828_v24  ;;  %v12273_v24 = vld [vmem:[%s17191_s12 + $0x40] sm:$0xff]   ;;  %v7864_v2 = vrot.slane %v7862_v60, 3 }
 0x75b   : > { %v7844_v38 = vshrl.u32 %v10618_v40, 16  ;;  %v7847_v27 = vshll.u32 %v10618_v40, 16  ;;  %v7855_v17 = vrot.slane %v7853_v36, 3 }
 0x75c   : > { %v7833_v29 = vsel %vm2901_vm4, %v7823_v0, %v7832_v23 }
 0x75d   : > { %v7846_v43 = vrot.slane %v7844_v38, 3  ;;  %v7849_v34 = vrot.slane %v7847_v27, 4  ;;  %v7859_v0 = vor.u32 %v7858_v26, %v7855_v17  ;;  %v7903_v17 = vrot.slane %v7901_v63, 4 }
 0x75e   : > { %v10626_v26 = vcombine.low %v16094_v48, %v16096_v55 }
 0x75f   : > { %11805 = vmatmul.mubr.msk.bf16.gmra.mxu0 %vm5316_vm6, %v7319_v1  ;;  %v7850_v54 = vor.u32 %v7849_v34, %v7846_v43  ;;  %v10623_v1 = vcombine.low %v16044_v33, %v16066_v45 }
 0x760   : > { %11856 = vmatprep.mubr.msk.bf16.mxu0 %vm5316_vm6, %v7824_v32 }
 0x761   : > { %11765 = vmatmul.mubr.msk.bf16.gmra.mxu1 %vm5316_vm6, %v10517_v4  ;;  %v7871_v4 = vshrl.u32 %v10621_v51, 16  ;;  %v7851_v40 = vsel %vm2901_vm4, %v7841_v57, %v7850_v54  ;;  %v7860_v25 = vsel %vm2901_vm4, %v7850_v54, %v7859_v0  ;;  %v7889_v38 = vshrl.u32 %v10623_v1, 16 }
 0x762   : > { %11816 = vmatprep.mubr.msk.bf16.mxu1 %vm5316_vm6, %v15942_v19  ;;  %v7842_v19 = vsel %vm2901_vm4, %v7832_v23, %v7841_v57  ;;  %v7892_v27 = vshll.u32 %v10623_v1, 16  ;;  %v7919_v54 = vshll.u32 %v10626_v26, 16 }
 0x763   : > { %v7873_v32 = vrot.slane %v7871_v4, 3  ;;  %v7891_v34 = vrot.slane %v7889_v38, 3 }
 0x764   : > { %v7894_v58 = vrot.slane %v7892_v27, 4  ;;  %v7921_v4 = vrot.slane %v7919_v54, 4 }
 0x767   : > { %11857 = vmatmul.mubr.msk.bf16.vlgmr.msra.gmra.mxu0 %vm5316_vm6, %v7833_v29 }
 0x768   : > { %11860 = vmatprep.mubr.msk.bf16.mxu0 %vm5316_vm6, %v7842_v19  ;;  %11929 = vmatpush3.bf16.msra.mxu0 %v15994_v18  ;;  %v7874_v18 = vshll.u32 %v10621_v51, 16  ;;  %v7900_v19 = vrot.slane %v7898_v61, 3 }
 0x769   : > { %11817 = vmatmul.mubr.msk.bf16.vlgmr.msra.gmra.mxu1 %vm5316_vm6, %v15949_v46  ;;  %11930 = vmatprep.subr.bf16.mxu0 %v12269_v22  ;;  %v12270_v46 = vld [vmem:[%s17191_s12 + $0xa8] sm:$0xff]  }
 0x76a   : > { %11889 = vmatpush3.bf16.msra.mxu1 %v16000_v52  ;;  %11820 = vmatprep.mubr.msk.bf16.mxu1 %vm5316_vm6, %v15922_v62  ;;  %v7867_v52 = vrot.slane %v7865_v56, 4  ;;  %v10622_v62 = vcombine.low %v16040_v13, %v16042_v30  ;;  %v7876_v16 = vrot.slane %v7874_v18, 4  ;;  %v16210_v13 = vld [vmem:[%s17193_s14 + $0x8] sm:$0xff]   ;;  %v7916_v56 = vshrl.u32 %v10626_v26, 16 }
 0x76b   : > { %11890 = vmatprep.subr.bf16.mxu1 %v12268_v31  ;;  %v7904_v48 = vor.u32 %v7903_v17, %v7900_v19  ;;  %v10628_v18 = vcombine.low %v16122_v6, %v16131_v35  ;;  %v12279_v26 = vld [vmem:[#allocation2 + $0x28] sm:$0xff]  }
 0x76c   : > { %11931 = vmatpush3.bf16.msra.mxu0 %v12269_v22  ;;  %v7880_v30 = vshrl.u32 %v10622_v62, 16  ;;  %v7883_v33 = vshll.u32 %v10622_v62, 16  ;;  %v7868_v45 = vor.u32 %v7867_v52, %v7864_v2  ;;  %v7877_v23 = vor.u32 %v7876_v16, %v7873_v32 }
 0x76d   : > { %11932 = vmatprep.subr.bf16.mxu0 %v12271_v5  ;;  %v10625_v22 = vcombine.low %v16072_v3, %v16092_v14  ;;  %v7895_v3 = vor.u32 %v7894_v58, %v7891_v34  ;;  %v7934_v52 = vshrl.u32 %v10628_v18, 16  ;;  %v7937_v62 = vshll.u32 %v10628_v18, 16  ;;  %v12278_v34 = vld [vmem:[#allocation2 + $0x20] sm:$0xff]  }
 0x76e   : > { %11891 = vmatpush3.bf16.msra.mxu1 %v12268_v31  ;;  %v7882_v57 = vrot.slane %v7880_v30, 3  ;;  %v7885_v36 = vrot.slane %v7883_v33, 4  ;;  %v7878_v43 = vsel %vm2901_vm4, %v7868_v45, %v7877_v23  ;;  %v12275_v30 = vld [vmem:[#allocation2 + $0x8] sm:$0xff]  }
 0x76f   : > { %11861 = vmatmul.mubr.msk.bf16.gmra.mxu0 %vm5316_vm6, %v7851_v40  ;;  %11892 = vmatprep.subr.bf16.mxu1 %v12270_v46  ;;  %v7907_v14 = vshrl.u32 %v10625_v22, 16  ;;  %v7910_v51 = vshll.u32 %v10625_v22, 16  ;;  %v7936_v1 = vrot.slane %v7934_v52, 3  ;;  %v8802_v38 = vshll.u32 %v12275_v30, 16 }
 0x770   : > { %11864 = vmatprep.mubr.msk.bf16.mxu0 %vm5316_vm6, %v7860_v25  ;;  %11933 = vmatpush3.bf16.msra.mxu0 %v12271_v5  ;;  %v7886_v29 = vor.u32 %v7885_v36, %v7882_v57  ;;  %v10627_v5 = vcombine.low %v16098_v53, %v16120_v50  ;;  %v7918_v50 = vrot.slane %v7916_v56, 3  ;;  %v7939_v25 = vrot.slane %v7937_v62, 4 }
 0x771   : > { %11821 = vmatmul.mubr.msk.bf16.gmra.mxu1 %vm5316_vm6, %v15929_v39  ;;  %11934 = vmatprep.subr.bf16.mxu0 %v12273_v24  ;;  %v16217_v39 = vld [vmem:[%s17191_s12 + $0x118] sm:$0xff]   ;;  %v7909_v60 = vrot.slane %v7907_v14, 3  ;;  %v8800_v22 = vshrl.u32 %v12275_v30, 16  ;;  %v8442_v14 = vshll.u32 %v12278_v34, 16 }
 0x772   : > { %11824 = vmatprep.mubr.msk.bf16.mxu1 %vm5316_vm6, %v15974_v37  ;;  %11893 = vmatpush3.bf16.msra.mxu1 %v12270_v46  ;;  %v7869_v37 = vsel %vm2901_vm4, %v7859_v0, %v7868_v45  ;;  %v7887_v31 = vsel %vm2901_vm4, %v7877_v23, %v7886_v29  ;;  %v7925_v0 = vshrl.u32 %v10627_v5, 16  ;;  %v7928_v53 = vshll.u32 %v10627_v5, 16  ;;  %v12281_v5 = vld [vmem:[#allocation2 + $0x30] sm:$0xff]  }
 0x773   : > { %11894 = vmatprep.subr.bf16.mxu1 %v12272_v9  ;;  %v7905_v46 = vsel %vm2901_vm4, %v7895_v3, %v7904_v48  ;;  %v7922_v6 = vor.u32 %v7921_v4, %v7918_v50  ;;  %v8458_v54 = vshll.u32 %v12281_v5, 16  ;;  %v12283_v50 = vld [vmem:[%s17191_s12 + $0x110] sm:$0xff]  }
 0x774   : > { %11935 = vmatpush3.bf16.msra.mxu0 %v12273_v24  ;;  %v10629_v24 = vcombine.low %v16133_v42, %v16148_v49  ;;  %v7927_v2 = vrot.slane %v7925_v0, 3  ;;  %v10630_v49 = vcombine.low %v16150_v15, %v16150_v15  ;;  %v7940_v15 = vor.u32 %v7939_v25, %v7936_v1 }
 0x775   : > { %12008 = vmatprep.subr.bf16.mxu0 %v16210_v13 }
 0x776   : > { %11895 = vmatpush3.bf16.msra.mxu1 %v12272_v9  ;;  %v7943_v40 = vshrl.u32 %v10629_v24, 16  ;;  %v7946_v42 = vshll.u32 %v10629_v24, 16  ;;  %v7952_v33 = vshrl.u32 %v10630_v49, 16  ;;  %v7955_v45 = vshll.u32 %v10630_v49, 16 }
 0x777   : > { %11865 = vmatmul.mubr.msk.bf16.gmra.mxu0 %vm5316_vm6, %v7869_v37  ;;  %11968 = vmatprep.subr.bf16.mxu1 %v16217_v39  ;;  %v8454_v24 = vshrl.u32 %v12279_v26, 16 }
 0x778   : > { %11868 = vmatprep.mubr.msk.bf16.mxu0 %vm5316_vm6, %v7878_v43  ;;  %v7945_v16 = vrot.slane %v7943_v40, 3  ;;  %v7948_v9 = vrot.slane %v7946_v42, 4  ;;  %v7954_v36 = vrot.slane %v7952_v33, 3  ;;  %v7957_v10 = vrot.slane %v7955_v45, 4  ;;  %v12276_v43 = vld [vmem:[#allocation2 + $0x18] sm:$0xff]   ;;  %v12288_v40 = vld [vmem:[%s17191_s12 + $0x108] sm:$0xff]  }
 0x779   : > { %11825 = vmatmul.mubr.msk.bf16.gmra.mxu1 %vm5316_vm6, %v15981_v59  ;;  %v7896_v59 = vsel %vm2901_vm4, %v7886_v29, %v7895_v3  ;;  %v8434_v29 = vshll.u32 %v12276_v43, 16 }
 0x77a   : > { %11828 = vmatprep.mubr.msk.bf16.mxu1 %vm5316_vm6, %v16018_v44  ;;  %v7912_v44 = vrot.slane %v7910_v51, 4  ;;  %v7949_v23 = vor.u32 %v7948_v9, %v7945_v16  ;;  %v7958_v58 = vor.u32 %v7957_v10, %v7954_v36  ;;  %v12286_v36 = vld [vmem:[#allocation2 + $0x50] sm:$0xff]  }
 0x77b   : > { %v8436_v17 = vrot.slane %v8434_v29, 1  ;;  %v8490_v29 = vshll.u32 %v12286_v36, 16 }
 0x77c   : > { %v7913_v55 = vor.u32 %v7912_v44, %v7909_v60  ;;  %v7950_v37 = vsel %vm2901_vm4, %v7940_v15, %v7949_v23  ;;  %v7959_v51 = vsel %vm2901_vm4, %v7949_v23, %v7958_v58  ;;  %v8446_v60 = vshrl.u32 %v12278_v34, 16 }
 0x77d   : > { %v8450_v44 = vshll.u32 %v12279_v26, 16  ;;  %v12287_v26 = vld [vmem:[#allocation2 + $0x58] sm:$0xff]  }
 0x77e   : > { %v7923_v32 = vsel %vm2901_vm4, %v7913_v55, %v7922_v6 }
 0x77f   : > { %11869 = vmatmul.mubr.msk.bf16.gmra.mxu0 %vm5316_vm6, %v7887_v31  ;;  %v8444_v31 = vrot.slane %v8442_v14, 1  ;;  %v8452_v0 = vrot.slane %v8450_v44, 1  ;;  %v12289_v44 = vld [vmem:[#allocation2 + $0x60] sm:$0xff]  }
 0x780   : > { %11872 = vmatprep.mubr.msk.bf16.mxu0 %vm5316_vm6, %v7896_v59 }
 0x781   : > { %11829 = vmatmul.mubr.msk.bf16.gmra.mxu1 %vm5316_vm6, %v16025_v7  ;;  %v7914_v7 = vsel %vm2901_vm4, %v7904_v48, %v7913_v55  ;;  %v8448_v56 = vor.u32 %v8446_v60, %v8444_v31  ;;  %v12291_v48 = vld [vmem:[%s17193_s14] sm:$0xff]   ;;  %v8456_v52 = vor.u32 %v8454_v24, %v8452_v0  ;;  %v8492_v60 = vrot.slane %v8490_v29, 1 }
 0x782   : > { %11832 = vmatprep.mubr.msk.bf16.mxu1 %vm5316_vm6, %v16051_v47  ;;  %v7930_v47 = vrot.slane %v7928_v53, 4  ;;  %v12282_v53 = vld [vmem:[#allocation2 + $0x38] sm:$0xff]  }
 0x784   : > { %v7931_v35 = vor.u32 %v7930_v47, %v7927_v2  ;;  %v12284_v2 = vld [vmem:[#allocation2 + $0x40] sm:$0xff]  }
 0x786   : > { %v7941_v57 = vsel %vm2901_vm4, %v7931_v35, %v7940_v15  ;;  %v12294_v15 = vld [vmem:[%s17191_s12 + $0x100] sm:$0xff]  }
 0x787   : > { %11873 = vmatmul.mubr.msk.bf16.gmra.mxu0 %vm5316_vm6, %v7905_v46  ;;  %v8453_v46 = vsel %vm4112_vm5, %v8448_v56, %v8452_v0  ;;  %v8498_v0 = vshll.u32 %v12287_v26, 16 }
 0x788   : > { %11876 = vmatprep.mubr.msk.bf16.mxu0 %vm5316_vm6, %v7914_v7  ;;  %v8460_v7 = vrot.slane %v8458_v54, 1 }
 0x789   : > { %11833 = vmatmul.mubr.msk.bf16.gmra.mxu1 %vm5316_vm6, %v16058_v8  ;;  %v7932_v8 = vsel %vm2901_vm4, %v7922_v6, %v7931_v35  ;;  %v8466_v35 = vshll.u32 %v12282_v53, 16 }
 0x78a   : > { %11836 = vmatprep.mubr.msk.bf16.mxu1 %vm5316_vm6, %v16077_v11  ;;  %v12274_v11 = vld [vmem:[#allocation2 + $0x10] sm:$0xff]   ;;  %v8461_v9 = vsel %vm4112_vm5, %v8456_v52, %v8460_v7 }
 0x78b   : > { %v8429_v27 = vshll.u32 %v12274_v11, 16  ;;  %v8427_v63 = vshrl.u32 %v12274_v11, 16  ;;  %v8468_v30 = vrot.slane %v8466_v35, 1  ;;  %v12285_v11 = vld [vmem:[#allocation2 + $0x48] sm:$0xff]  }
 0x78f   : > { %11877 = vmatmul.mubr.msk.bf16.gmra.mxu0 %vm5316_vm6, %v7923_v32  ;;  %v8474_v32 = vshll.u32 %v12284_v2, 16 }
 0x790   : > { %11880 = vmatprep.mubr.msk.bf16.mxu0 %vm5316_vm6, %v7932_v8 }
 0x791   : > { %11837 = vmatmul.mubr.msk.bf16.gmra.mxu1 %vm5316_vm6, %v16084_v41  ;;  %v8804_v41 = vrot.slane %v8802_v38, 1 }
 0x792   : > { %11840 = vmatprep.mubr.msk.bf16.mxu1 %vm5316_vm6, %v16103_v20  ;;  %v8431_v20 = vrot.slane %v8429_v27, 1  ;;  %v8470_v27 = vshrl.u32 %v12282_v53, 16 }
 0x793   : > { %v8805_v61 = vor.u32 %v8804_v41, %v8800_v22 }
 0x794   : > { %v8432_v3 = vor.u32 %v8431_v20, %v8427_v63 }
 0x795   : > { %v8806_v19 = vsel %vm4112_vm5, %v8805_v61, %v8431_v20  ;;  %v8482_v20 = vshll.u32 %v12285_v11, 16 }
 0x797   : > { %11881 = vmatmul.mubr.msk.bf16.gmra.mxu0 %vm5316_vm6, %v7941_v57  ;;  %v8476_v57 = vrot.slane %v8474_v32, 1  ;;  %v12292_v32 = vld [vmem:[#allocation2 + $0x70] sm:$0xff]  }
 0x798   : > { %11884 = vmatprep.mubr.msk.bf16.mxu0 %vm5316_vm6, %v7950_v37  ;;  %v8472_v37 = vor.u32 %v8470_v27, %v8468_v30 }
 0x799   : > { %11841 = vmatmul.mubr.msk.bf16.gmra.mxu1 %vm5316_vm6, %v16113_v21  ;;  %v8437_v21 = vsel %vm4112_vm5, %v8432_v3, %v8436_v17 }
 0x79a   : > { %11844 = vmatprep.mubr.msk.bf16.mxu1 %vm5316_vm6, %v16137_v12  ;;  %v8438_v12 = vshrl.u32 %v12276_v43, 16  ;;  %v8478_v43 = vshrl.u32 %v12284_v2, 16 }
 0x79c   : > { %v8440_v59 = vor.u32 %v8438_v12, %v8436_v17  ;;  %v8480_v63 = vor.u32 %v8478_v43, %v8476_v57  ;;  %v8484_v17 = vrot.slane %v8482_v20, 1  ;;  %v12293_v20 = vld [vmem:[#allocation2 + $0x78] sm:$0xff]  }
 0x79f   : > { %11885 = vmatmul.mubr.msk.bf16.gmra.mxu0 %vm5316_vm6, %v7959_v51 }
 0x7a0   : > { %11936 = vmatprep.mubr.msk.bf16.mxu0 %vm5316_vm6, %v8806_v19  ;;  %v8477_v19 = vsel %vm4112_vm5, %v8472_v37, %v8476_v57  ;;  %v8522_v57 = vshll.u32 %v12292_v32, 16 }
 0x7a1   : > { %11845 = vmatmul.mubr.msk.bf16.gmra.mxu1 %vm5316_vm6, %v16034_v28  ;;  %v8445_v28 = vsel %vm4112_vm5, %v8440_v59, %v8444_v31  ;;  %v8486_v59 = vshrl.u32 %v12285_v11, 16  ;;  %v8510_v11 = vshrl.u32 %v12289_v44, 16 }
 0x7a2   : > { %11896 = vmatprep.mubr.msk.bf16.mxu1 %vm5316_vm6, %v8437_v21 }
 0x7a3   : > { %v8488_v54 = vor.u32 %v8486_v59, %v8484_v17  ;;  %v8530_v59 = vshll.u32 %v12293_v20, 16 }
 0x7a5   : > { %v8493_v52 = vsel %vm4112_vm5, %v8488_v54, %v8492_v60 }
 0x7a7   : > { %v11698_v55 = vpop.f32.mrf.mxu0  ;;  %11937 = vmatmul.mubr.msk.bf16.vlgmr.msra.gmra.mxu0 %vm5316_vm6, %v8437_v21 }
 0x7a8   : > { %11940 = vmatprep.mubr.msk.bf16.mxu0 %vm5316_vm6, %v8445_v28  ;;  %12009 = vmatpush3.bf16.msra.mxu0 %v16210_v13  ;;  %v11658_v4 = vpop.f32.mrf.mxu1  ;;  %v8462_v13 = vshrl.u32 %v12281_v5, 16  ;;  %v8485_v5 = vsel %vm4112_vm5, %v8480_v63, %v8484_v17 }
 0x7a9   : > { %11897 = vmatmul.mubr.msk.bf16.vlgmr.msra.gmra.mxu1 %vm5316_vm6, %v8445_v28  ;;  %v6617_v18 = vpop.f32.mrf.mxu0  ;;  %12010 = vmatprep.subr.bf16.mxu0 %v12291_v48  ;;  %v16295_v47 = vadd.f32 %v11698_v55, %v11658_v4  ;;  %v8494_v28 = vshrl.u32 %v12286_v36, 16 }
 0x7aa   : > { %11969 = vmatpush3.bf16.msra.mxu1 %v16217_v39  ;;  %11900 = vmatprep.mubr.msk.bf16.mxu1 %vm5316_vm6, %v8453_v46  ;;  %v6424_v62 = vpop.f32.mrf.mxu1  ;;  %v8464_v25 = vor.u32 %v8462_v13, %v8460_v7 }
 0x7ab   : > { %v11699_v6 = vpop.f32.mrf.mxu0  ;;  %11970 = vmatprep.subr.bf16.mxu1 %v12283_v50  ;;  %v16302_v42 = vadd.f32 %v6617_v18, %v6424_v62  ;;  %v8496_v18 = vor.u32 %v8494_v28, %v8492_v60  ;;  %v8500_v62 = vrot.slane %v8498_v0, 1 }
 0x7ac   : > { %12011 = vmatpush3.bf16.msra.mxu0 %v12291_v48  ;;  %v11659_v49 = vpop.f32.mrf.mxu1  ;;  %v8469_v38 = vsel %vm4112_vm5, %v8464_v25, %v8468_v30 }
 0x7ad   : > { %v6620_v1 = vpop.f32.mrf.mxu0  ;;  %v16304_v39 = vadd.f32 %v11699_v6, %v11659_v49  ;;  %v12290_v6 = vld [vmem:[#allocation2 + $0x68] sm:$0xff]   ;;  %v8501_v49 = vsel %vm4112_vm5, %v8496_v18, %v8500_v62  ;;  %v8532_v18 = vrot.slane %v8530_v59, 1 }
 0x7ae   : > { %11971 = vmatpush3.bf16.msra.mxu1 %v12283_v50  ;;  %v6427_v8 = vpop.f32.mrf.mxu1 }
 0x7af   : > { %v11702_v16 = vpop.f32.mrf.mxu0  ;;  %11941 = vmatmul.mubr.msk.bf16.gmra.mxu0 %vm5316_vm6, %v8453_v46  ;;  %11972 = vmatprep.subr.bf16.mxu1 %v12288_v40  ;;  %v16311_v33 = vadd.f32 %v6620_v1, %v6427_v8  ;;  %v8506_v46 = vshll.u32 %v12289_v44, 16  ;;  %v8502_v1 = vshrl.u32 %v12287_v26, 16 }
 0x7b0   : > { %11944 = vmatprep.mubr.msk.bf16.mxu0 %vm5316_vm6, %v8461_v9  ;;  %v11662_v45 = vpop.f32.mrf.mxu1 }
 0x7b1   : > { %11901 = vmatmul.mubr.msk.bf16.gmra.mxu1 %vm5316_vm6, %v8461_v9  ;;  %v6633_v23 = vpop.f32.mrf.mxu0  ;;  %v16316_v10 = vadd.f32 %v11702_v16, %v11662_v45  ;;  %v8508_v25 = vrot.slane %v8506_v46, 1  ;;  %v8504_v16 = vor.u32 %v8502_v1, %v8500_v62  ;;  %v12296_v46 = vld [vmem:[#allocation2 + $0x88] sm:$0xff]  }
 0x7b2   : > { %11904 = vmatprep.mubr.msk.bf16.mxu1 %vm5316_vm6, %v8469_v38  ;;  %11973 = vmatpush3.bf16.msra.mxu1 %v12288_v40  ;;  %v6440_v22 = vpop.f32.mrf.mxu1  ;;  %v8550_v59 = vshrl.u32 %v12296_v46, 16 }
 0x7b3   : > { %v11703_v41 = vpop.f32.mrf.mxu0  ;;  %11974 = vmatprep.subr.bf16.mxu1 %v12294_v15  ;;  %v16319_v34 = vadd.f32 %v6633_v23, %v6440_v22  ;;  %v8512_v27 = vor.u32 %v8510_v11, %v8508_v25 }
 0x7b4   : > { %v11663_v58 = vpop.f32.mrf.mxu1 }
 0x7b5   : > { %v6636_v61 = vpop.f32.mrf.mxu0  ;;  %v16321_v3 = vadd.f32 %v11703_v41, %v11663_v58  ;;  %v8509_v41 = vsel %vm4112_vm5, %v8504_v16, %v8508_v25 }
 0x7b6   : > { %11975 = vmatpush3.bf16.msra.mxu1 %v12294_v15  ;;  %v6443_v14 = vpop.f32.mrf.mxu1  ;;  %v8514_v15 = vshll.u32 %v12290_v6, 16 }
 0x7b7   : > { %v11706_v51 = vpop.f32.mrf.mxu0  ;;  %11945 = vmatmul.mubr.msk.bf16.gmra.mxu0 %vm5316_vm6, %v8469_v38  ;;  %v16325_v21 = vadd.f32 %v6636_v61, %v6443_v14  ;;  %v8518_v14 = vshrl.u32 %v12290_v6, 16  ;;  %v8534_v6 = vshrl.u32 %v12293_v20, 16 }
 0x7b8   : > { %11948 = vmatprep.mubr.msk.bf16.mxu0 %vm5316_vm6, %v8477_v19  ;;  %v11666_v12 = vpop.f32.mrf.mxu1  ;;  %v8516_v43 = vrot.slane %v8514_v15, 1  ;;  %v12297_v15 = vld [vmem:[#allocation2 + $0x88] ss:$0 sps:$4 sm:$0x11]  }
 0x7b9   : > { %11905 = vmatmul.mubr.msk.bf16.gmra.mxu1 %vm5316_vm6, %v8477_v19  ;;  %v6649_v31 = vpop.f32.mrf.mxu0  ;;  %v16330_v56 = vadd.f32 %v11706_v51, %v11666_v12  ;;  %v8524_v51 = vrot.slane %v8522_v57, 1  ;;  %v12295_v19 = vld [vmem:[#allocation2 + $0x80] sm:$0xff]   ;;  %v8536_v1 = vor.u32 %v8534_v6, %v8532_v18 }
 0x7ba   : > { %11908 = vmatprep.mubr.msk.bf16.mxu1 %vm5316_vm6, %v8485_v5  ;;  %v6456_v48 = vpop.f32.mrf.mxu1  ;;  %v8517_v29 = vsel %vm4112_vm5, %v8512_v27, %v8516_v43  ;;  %v8520_v26 = vor.u32 %v8518_v14, %v8516_v43  ;;  %v8542_v16 = vshrl.u32 %v12295_v19, 16  ;;  %v8808_v14 = vshll.u32 %v12297_v15, 16 }
 0x7bb   : > { %v11707_v55 = vpop.f32.mrf.mxu0  ;;  %v16333_v53 = vadd.f32 %v6649_v31, %v6456_v48 }
 0x7bc   : > { %v11667_v50 = vpop.f32.mrf.mxu1 }
 0x7bd   : > { %v6652_v4 = vpop.f32.mrf.mxu0  ;;  %v16335_v24 = vadd.f32 %v11707_v55, %v11667_v50  ;;  %v8538_v55 = vshll.u32 %v12295_v19, 16 }
 0x7be   : > { %v6459_v7 = vpop.f32.mrf.mxu1 }
 0x7bf   : > { %v11710_v2 = vpop.f32.mrf.mxu0  ;;  %11949 = vmatmul.mubr.msk.bf16.gmra.mxu0 %vm5316_vm6, %v8485_v5  ;;  %v16339_v13 = vadd.f32 %v6652_v4, %v6459_v7  ;;  %v8526_v5 = vshrl.u32 %v12292_v32, 16  ;;  %v8525_v4 = vsel %vm4112_vm5, %v8520_v26, %v8524_v51 }
 0x7c0   : > { %11952 = vmatprep.mubr.msk.bf16.mxu0 %vm5316_vm6, %v8493_v52  ;;  %v11670_v35 = vpop.f32.mrf.mxu1 }
 0x7c1   : > { %11909 = vmatmul.mubr.msk.bf16.gmra.mxu1 %vm5316_vm6, %v8493_v52  ;;  %v6665_v40 = vpop.f32.mrf.mxu0  ;;  %v16344_v8 = vadd.f32 %v11710_v2, %v11670_v35  ;;  %v8528_v48 = vor.u32 %v8526_v5, %v8524_v51  ;;  %v8540_v35 = vrot.slane %v8538_v55, 1 }
 0x7c2   : > { %11912 = vmatprep.mubr.msk.bf16.mxu1 %vm5316_vm6, %v8501_v49  ;;  %v6472_v9 = vpop.f32.mrf.mxu1 }
 0x7c3   : > { %v11711_v30 = vpop.f32.mrf.mxu0  ;;  %v16347_v45 = vadd.f32 %v6665_v40, %v6472_v9  ;;  %v8533_v62 = vsel %vm4112_vm5, %v8528_v48, %v8532_v18  ;;  %v12299_v40 = vld [vmem:[#allocation2 + $0x18] sm:$0xff]   ;;  %v8546_v9 = vshll.u32 %v12296_v46, 16  ;;  %v8544_v27 = vor.u32 %v8542_v16, %v8540_v35 }
 0x7c4   : > { %v11671_v23 = vpop.f32.mrf.mxu1  ;;  %v9131_v57 = vshll.u32 %v12299_v40, 16  ;;  %v8541_v43 = vsel %vm4112_vm5, %v8536_v1, %v8540_v35  ;;  %v9129_v55 = vshrl.u32 %v12299_v40, 16  ;;  %v8810_v18 = vrot.slane %v8808_v14, 1 }
 0x7c5   : > { %v6668_v38 = vpop.f32.mrf.mxu0  ;;  %v16349_v36 = vadd.f32 %v11711_v30, %v11671_v23  ;;  %v12298_v30 = vld [vmem:[#allocation2 + $0x90] ss:$0 sps:$4 sm:$0x11]   ;;  %v8548_v20 = vrot.slane %v8546_v9, 1 }
 0x7c6   : > { %v6475_v37 = vpop.f32.mrf.mxu1  ;;  %v8811_v46 = vsel %vm4112_vm5, %v8544_v27, %v8810_v18 }
 0x7c7   : > { %v11714_v22 = vpop.f32.mrf.mxu0  ;;  %11953 = vmatmul.mubr.msk.bf16.gmra.mxu0 %vm5316_vm6, %v8501_v49  ;;  %v16353_v58 = vadd.f32 %v6668_v38, %v6475_v37  ;;  %v8549_v26 = vsel %vm4112_vm5, %v8544_v27, %v8548_v20 }
 0x7c8   : > { %11956 = vmatprep.mubr.msk.bf16.mxu0 %vm5316_vm6, %v8509_v41  ;;  %v11674_v61 = vpop.f32.mrf.mxu1 }
 0x7c9   : > { %11913 = vmatmul.mubr.msk.bf16.gmra.mxu1 %vm5316_vm6, %v8509_v41  ;;  %v6681_v63 = vpop.f32.mrf.mxu0  ;;  %v16358_v17 = vadd.f32 %v11714_v22, %v11674_v61  ;;  %v8554_v61 = vshll.u32 %v12298_v30, 16  ;;  %v12302_v30 = vld [vmem:[#allocation2 + $0x30] sm:$0xff]  }
 0x7ca   : > { %11916 = vmatprep.mubr.msk.bf16.mxu1 %vm5316_vm6, %v8517_v29  ;;  %v6488_v12 = vpop.f32.mrf.mxu1 }
 0x7cb   : > { %v11715_v31 = vpop.f32.mrf.mxu0  ;;  %v16361_v60 = vadd.f32 %v6681_v63, %v6488_v12  ;;  %v12300_v63 = vld [vmem:[#allocation2 + $0x20] sm:$0xff]   ;;  %v9133_v12 = vrot.slane %v9131_v57, 1  ;;  %v8556_v48 = vrot.slane %v8554_v61, 1 }
 0x7cc   : > { %v11675_v44 = vpop.f32.mrf.mxu1 }
 0x7cd   : > { %v6684_v54 = vpop.f32.mrf.mxu0  ;;  %v16363_v28 = vadd.f32 %v11715_v31, %v11675_v44  ;;  %v12301_v31 = vld [vmem:[#allocation2 + $0x28] sm:$0xff]   ;;  %v9134_v1 = vor.u32 %v9133_v12, %v9129_v55 }
 0x7ce   : > { %v6491_v0 = vpop.f32.mrf.mxu1  ;;  %v9148_v12 = vshrl.u32 %v12301_v31, 16  ;;  %v12589_v55 = vld [vmem:[%s12755_s20 + $0x28] sm:$0xff] }
 0x7cf   : > { %v11718_v50 = vpop.f32.mrf.mxu0  ;;  %11957 = vmatmul.mubr.msk.bf16.gmra.mxu0 %vm5316_vm6, %v8517_v29  ;;  %v16367_v7 = vadd.f32 %v6684_v54, %v6491_v0  ;;  %v9136_v0 = vshll.u32 %v12300_v63, 16 }
 0x7d0   : > { %11960 = vmatprep.mubr.msk.bf16.mxu0 %vm5316_vm6, %v8525_v4  ;;  %v11678_v2 = vpop.f32.mrf.mxu1 }
 0x7d1   : > { %11917 = vmatmul.mubr.msk.bf16.gmra.mxu1 %vm5316_vm6, %v8525_v4  ;;  %v6697_v52 = vpop.f32.mrf.mxu0  ;;  %v16372_v49 = vadd.f32 %v11718_v50, %v11678_v2  ;;  %v8552_v50 = vor.u32 %v8550_v59, %v8548_v20  ;;  %v12584_v2 = vld [vmem:[%s12755_s20] sm:$0xff]  ;;  %v9138_v40 = vrot.slane %v9136_v0, 1  ;;  %v9140_v20 = vshrl.u32 %v12300_v63, 16 }
 0x7d2   : > { %11920 = vmatprep.mubr.msk.bf16.mxu1 %vm5316_vm6, %v8533_v62  ;;  %v6504_v25 = vpop.f32.mrf.mxu1  ;;  %v9152_v59 = vshll.u32 %v12302_v30, 16 }
 0x7d3   : > { %v11719_v32 = vpop.f32.mrf.mxu0  ;;  %v16375_v11 = vadd.f32 %v6697_v52, %v6504_v25  ;;  %v12585_v52 = vld [vmem:[%s12755_s20 + $0x8] sm:$0xff]  ;;  %v9144_v25 = vshll.u32 %v12301_v31, 16  ;;  %v9139_v27 = vsel %vm4112_vm5, %v9134_v1, %v9138_v40  ;;  %v12304_v31 = vld [vmem:[#allocation2 + $0x40] sm:$0xff]  }
 0x7d4   : > { %v11679_v23 = vpop.f32.mrf.mxu1 }
 0x7d5   : > { %v6700_v38 = vpop.f32.mrf.mxu0  ;;  %v16377_v37 = vadd.f32 %v11719_v32, %v11679_v23  ;;  %v8557_v23 = vsel %vm4112_vm5, %v8552_v50, %v8556_v48  ;;  %v12588_v48 = vld [vmem:[%s12755_s20 + $0x20] sm:$0xff] }
 0x7d6   : > { %v6507_v22 = vpop.f32.mrf.mxu1  ;;  %v9630_v0 = vpack.c.bf16 %v12589_v55, %v12588_v48 }
 0x7d7   : > { %v11722_v41 = vpop.f32.mrf.mxu0  ;;  %11961 = vmatmul.mubr.msk.bf16.gmra.mxu0 %vm5316_vm6, %v8533_v62  ;;  %v16381_v29 = vadd.f32 %v6700_v38, %v6507_v22  ;;  %v9628_v62 = vpack.c.bf16 %v12585_v52, %v12584_v2  ;;  %v9146_v22 = vrot.slane %v9144_v25, 1 }
 0x7d8   : > { %11964 = vmatprep.mubr.msk.bf16.mxu0 %vm5316_vm6, %v8541_v43  ;;  %v11682_v51 = vpop.f32.mrf.mxu1 }
 0x7d9   : > { %11921 = vmatmul.mubr.msk.bf16.gmra.mxu1 %vm5316_vm6, %v8541_v43  ;;  %v6713_v19 = vpop.f32.mrf.mxu0  ;;  %v16386_v5 = vadd.f32 %v11722_v41, %v11682_v51  ;;  %v12303_v41 = vld [vmem:[#allocation2 + $0x38] sm:$0xff]   ;;  %v12586_v51 = vld [vmem:[%s12755_s20 + $0x10] sm:$0xff]  ;;  %v9150_v2 = vor.u32 %v9148_v12, %v9146_v22 }
 0x7da   : > { %11924 = vmatprep.mubr.msk.bf16.mxu1 %vm5316_vm6, %v8549_v26  ;;  %v6520_v44 = vpop.f32.mrf.mxu1  ;;  %v9160_v52 = vshll.u32 %v12303_v41, 16 }
 0x7db   : > { %v11723_v54 = vpop.f32.mrf.mxu0  ;;  %v16389_v4 = vadd.f32 %v6713_v19, %v6520_v44  ;;  %v12587_v19 = vld [vmem:[%s12755_s20 + $0x18] sm:$0xff]  ;;  %v9142_v44 = vor.u32 %v9140_v20, %v9138_v40  ;;  %v12590_v20 = vld [vmem:[%s12755_s20 + $0x30] sm:$0xff] }
 0x7dc   : > { %v11683_v6 = vpop.f32.mrf.mxu1  ;;  %v9629_v26 = vpack.c.bf16 %v12587_v19, %v12586_v51  ;;  %v9162_v40 = vrot.slane %v9160_v52, 1  ;;  %v9164_v51 = vshrl.u32 %v12303_v41, 16  ;;  %v9168_v19 = vshll.u32 %v12304_v31, 16 }
 0x7dd   : > { %v6716_v35 = vpop.f32.mrf.mxu0  ;;  %v16393_v32 = vadd.f32 %v11723_v54, %v11683_v6  ;;  %v9147_v25 = vsel %vm4112_vm5, %v9142_v44, %v9146_v22  ;;  %v12593_v44 = vld [vmem:[%s12755_s20 + $0x48] sm:$0xff] }
 0x7de   : > { %v6523_v16 = vpop.f32.mrf.mxu1  ;;  %v9170_v41 = vrot.slane %v9168_v19, 1 }
 0x7df   : > { %v11726_v9 = vpop.f32.mrf.mxu0  ;;  %11965 = vmatmul.mubr.msk.bf16.gmra.mxu0 %vm5316_vm6, %v8811_v46  ;;  %v16397_v15 = vadd.f32 %v6716_v35, %v6523_v16  ;;  %v9154_v35 = vrot.slane %v9152_v59, 1  ;;  %v12592_v59 = vld [vmem:[%s12755_s20 + $0x40] sm:$0xff] }
 0x7e0   : > { %12012 = vmatprep.mubr.msk.bf16.mxu0 %vm1187_vm1, %v9628_v62  ;;  %v11686_v38 = vpop.f32.mrf.mxu1  ;;  %v9632_v48 = vpack.c.bf16 %v12593_v44, %v12592_v59  ;;  %v12596_v44 = vld [vmem:[%s12755_s20 + $0x60] sm:$0xff] }
 0x7e1   : > { %11925 = vmatmul.mubr.msk.bf16.gmra.mxu1 %vm5316_vm6, %v8557_v23  ;;  %v6729_v57 = vpop.f32.mrf.mxu0  ;;  %v16403_v43 = vadd.f32 %v11726_v9, %v11686_v38  ;;  %v9155_v9 = vsel %vm4112_vm5, %v9150_v2, %v9154_v35  ;;  %v12305_v23 = vld [vmem:[#allocation2 + $0x48] sm:$0xff]  }
 0x7e2   : > { %11976 = vmatprep.mubr.msk.bf16.mxu1 %vm5316_vm6, %v9139_v27  ;;  %v6536_v61 = vpop.f32.mrf.mxu1 }
 0x7e3   : > { %v11727_v14 = vpop.f32.mrf.mxu0  ;;  %v16408_v54 = vadd.f32 %v6729_v57, %v6536_v61  ;;  %v9156_v57 = vshrl.u32 %v12302_v30, 16  ;;  %v12591_v61 = vld [vmem:[%s12755_s20 + $0x38] sm:$0xff]  ;;  %v9166_v30 = vor.u32 %v9164_v51, %v9162_v40  ;;  %v9180_v51 = vshrl.u32 %v12305_v23, 16 }
 0x7e4   : > { %v11687_v50 = vpop.f32.mrf.mxu1 }
 0x7e5   : > { %v6732_v18 = vpop.f32.mrf.mxu0  ;;  %v16412_v63 = vadd.f32 %v11727_v14, %v11687_v50  ;;  %v9631_v14 = vpack.c.bf16 %v12591_v61, %v12590_v20  ;;  %v12594_v20 = vld [vmem:[%s12755_s20 + $0x50] sm:$0xff]  ;;  %v12595_v61 = vld [vmem:[%s12755_s20 + $0x58] sm:$0xff] }
 0x7e6   : > { %v6539_v62 = vpop.f32.mrf.mxu1 }
 0x7e7   : > { %v16414_v6 = vpop.f32.mrf.mxu0  ;;  %12013 = vmatmul.mubr.msk.bf16.vlgmr.msra.gmra.mxu0 %vm1187_vm1, %v9629_v26  ;;  %v16417_v1 = vadd.f32 %v6732_v18, %v6539_v62  ;;  %v9158_v26 = vor.u32 %v9156_v57, %v9154_v35 }
 0x7e8   : > { %12016 = vmatprep.mubr.msk.bf16.mxu0 %vm1187_vm1, %v9630_v0  ;;  %v9176_v0 = vshll.u32 %v12305_v23, 16 }
 0x7e9   : > { %v11738_v46 = vpop.f32.mrf.mxu1  ;;  %11977 = vmatmul.mubr.msk.bf16.vlgmr.msra.gmra.mxu1 %vm5316_vm6, %v9147_v25  ;;  %v16422_v16 = vpop.f32.mrf.mxu0  ;;  %v9163_v62 = vsel %vm4112_vm5, %v9158_v26, %v9162_v40  ;;  %v9171_v25 = vsel %vm4112_vm5, %v9166_v30, %v9170_v41 }
 0x7ea   : > { %v16426_v38 = vadd.f32 %v11738_v46, %v16295_v47  ;;  %11980 = vmatprep.mubr.msk.bf16.mxu1 %vm5316_vm6, %v9155_v9  ;;  %v9178_v46 = vrot.slane %v9176_v0, 1  ;;  %v12307_v9 = vld [vmem:[#allocation2 + $0x58] sm:$0xff]  }
 0x7eb   : > { %v6971_v27 = vpop.f32.mrf.mxu1  ;;  %v16429_v22 = vpop.f32.mrf.mxu0  ;;  %v9192_v0 = vshll.u32 %v12307_v9, 16 }
 0x7ec   : > { %v16434_v12 = vadd.f32 %v6971_v27, %v16302_v42  ;;  %v12306_v42 = vld [vmem:[#allocation2 + $0x50] sm:$0xff]  }
 0x7ed   : > { %v11739_v47 = vpop.f32.mrf.mxu1  ;;  %v16438_v55 = vpop.f32.mrf.mxu0  ;;  %v9184_v19 = vshll.u32 %v12306_v42, 16 }
 0x7ee   : > { %v16441_v50 = vadd.f32 %v11739_v47, %v16304_v39 }
 0x7ef   : > { %v6974_v18 = vpop.f32.mrf.mxu1  ;;  %v16443_v2 = vpop.f32.mrf.mxu0  ;;  %12017 = vmatmul.mubr.msk.bf16.gmra.mxu0 %vm1187_vm1, %v9631_v14  ;;  %v9633_v14 = vpack.c.bf16 %v12595_v61, %v12594_v20  ;;  %v9186_v23 = vrot.slane %v9184_v19, 1  ;;  %v9194_v20 = vrot.slane %v9192_v0, 1  ;;  %v12309_v61 = vld [vmem:[#allocation2 + $0x68] sm:$0xff]   ;;  %v12598_v19 = vld [vmem:[%s12755_s20 + $0x70] sm:$0xff]  ;;  %v12600_v0 = vld [vmem:[%s12755_s20 + $0x80] sm:$0xff] }
 0x7f0   : > { %v16447_v52 = vadd.f32 %v6974_v18, %v16311_v33  ;;  %12020 = vmatprep.mubr.msk.bf16.mxu0 %vm1187_vm1, %v9632_v48  ;;  %v9172_v33 = vshrl.u32 %v12304_v31, 16  ;;  %v12597_v48 = vld [vmem:[%s12755_s20 + $0x68] sm:$0xff]  ;;  %v9182_v31 = vor.u32 %v9180_v51, %v9178_v46 }
 0x7f1   : > { %v11742_v35 = vpop.f32.mrf.mxu1  ;;  %11981 = vmatmul.mubr.msk.bf16.gmra.mxu1 %vm5316_vm6, %v9163_v62  ;;  %v16452_v39 = vpop.f32.mrf.mxu0  ;;  %v9634_v47 = vpack.c.bf16 %v12597_v48, %v12596_v44  ;;  %v9196_v48 = vshrl.u32 %v12307_v9, 16 }
 0x7f2   : > { %v16456_v57 = vadd.f32 %v11742_v35, %v16316_v10  ;;  %11984 = vmatprep.mubr.msk.bf16.mxu1 %vm5316_vm6, %v9171_v25  ;;  %v9174_v26 = vor.u32 %v9172_v33, %v9170_v41 }
 0x7f3   : > { %v6987_v40 = vpop.f32.mrf.mxu1  ;;  %v16459_v27 = vpop.f32.mrf.mxu0 }
 0x7f4   : > { %v16464_v59 = vadd.f32 %v6987_v40, %v16319_v34  ;;  %v12308_v34 = vld [vmem:[#allocation2 + $0x60] sm:$0xff]   ;;  %v9179_v25 = vsel %vm4112_vm5, %v9174_v26, %v9178_v46  ;;  %v9187_v40 = vsel %vm4112_vm5, %v9182_v31, %v9186_v23  ;;  %v12599_v26 = vld [vmem:[%s12755_s20 + $0x78] sm:$0xff] }
 0x7f5   : > { %v11743_v10 = vpop.f32.mrf.mxu1  ;;  %v16468_v30 = vpop.f32.mrf.mxu0  ;;  %v9635_v44 = vpack.c.bf16 %v12599_v26, %v12598_v19 }
 0x7f6   : > { %v16471_v18 = vadd.f32 %v11743_v10, %v16321_v3 }
 0x7f7   : > { %v6990_v62 = vpop.f32.mrf.mxu1  ;;  %v16473_v35 = vpop.f32.mrf.mxu0  ;;  %12021 = vmatmul.mubr.msk.bf16.gmra.mxu0 %vm1187_vm1, %v9633_v14 }
 0x7f8   : > { %v16477_v41 = vadd.f32 %v6990_v62, %v16325_v21  ;;  %12024 = vmatprep.mubr.msk.bf16.mxu0 %vm1187_vm1, %v9634_v47  ;;  %v9188_v21 = vshrl.u32 %v12306_v42, 16  ;;  %v9200_v47 = vshll.u32 %v12308_v34, 16  ;;  %v12601_v62 = vld [vmem:[%s12755_s20 + $0x88] sm:$0xff]  ;;  %v9198_v42 = vor.u32 %v9196_v48, %v9194_v20 }
 0x7f9   : > { %v11746_v33 = vpop.f32.mrf.mxu1  ;;  %11985 = vmatmul.mubr.msk.bf16.gmra.mxu1 %vm5316_vm6, %v9179_v25  ;;  %v16482_v3 = vpop.f32.mrf.mxu0  ;;  %v9636_v25 = vpack.c.bf16 %v12601_v62, %v12600_v0  ;;  %v9212_v62 = vshrl.u32 %v12309_v61, 16 }
 0x7fa   : > { %17494 = vst [vmem:[#allocation6_spill] sm:$0xff] %v16482_v3  ;;  %v16486_v14 = vadd.f32 %v11746_v33, %v16330_v56  ;;  %11988 = vmatprep.mubr.msk.bf16.mxu1 %vm5316_vm6, %v9187_v40  ;;  %v9190_v10 = vor.u32 %v9188_v21, %v9186_v23  ;;  %v9208_v40 = vshll.u32 %v12309_v61, 16  ;;  %v9202_v9 = vrot.slane %v9200_v47, 1  ;;  %v12602_v47 = vld [vmem:[%s12755_s20 + $0x90] sm:$0xff] }
 0x7fb   : > { %v7003_v46 = vpop.f32.mrf.mxu1  ;;  %v16489_v51 = vpop.f32.mrf.mxu0 }
 0x7fc   : > { %17495 = vst [vmem:[#allocation24_spill] sm:$0xff] %v16486_v14  ;;  %17496 = vst [vmem:[#allocation62_spill] sm:$0xff] %v16489_v51  ;;  %v16494_v31 = vadd.f32 %v7003_v46, %v16333_v53  ;;  %v12310_v53 = vld [vmem:[#allocation2 + $0x70] sm:$0xff]   ;;  %v9195_v21 = vsel %vm4112_vm5, %v9190_v10, %v9194_v20  ;;  %v9203_v19 = vsel %vm4112_vm5, %v9198_v42, %v9202_v9  ;;  %v9210_v26 = vrot.slane %v9208_v40, 1  ;;  %v12603_v10 = vld [vmem:[%s12755_s20 + $0x98] sm:$0xff] }
 0x7fd   : > { %v11747_v56 = vpop.f32.mrf.mxu1  ;;  %v16498_v33 = vpop.f32.mrf.mxu0  ;;  %v9637_v0 = vpack.c.bf16 %v12603_v10, %v12602_v47  ;;  %v12604_v40 = vld [vmem:[%s12755_s20 + $0xa0] sm:$0xff] }
 0x7fe   : > { %v16501_v14 = vadd.f32 %v11747_v56, %v16335_v24 }
 0x7ff   : > { %v7006_v51 = vpop.f32.mrf.mxu1  ;;  %v16503_v3 = vpop.f32.mrf.mxu0  ;;  %12025 = vmatmul.mubr.msk.bf16.gmra.mxu0 %vm1187_vm1, %v9635_v44  ;;  %v12311_v44 = vld [vmem:[#allocation2 + $0x78] sm:$0xff]  }
 0x800   : > { %v16507_v23 = vadd.f32 %v7006_v51, %v16339_v13  ;;  %12028 = vmatprep.mubr.msk.bf16.mxu0 %vm1187_vm1, %v9636_v25  ;;  %v9204_v13 = vshrl.u32 %v12308_v34, 16  ;;  %v9216_v25 = vshll.u32 %v12310_v53, 16  ;;  %v9214_v34 = vor.u32 %v9212_v62, %v9210_v26 }
 0x801   : > { %v11750_v46 = vpop.f32.mrf.mxu1  ;;  %11989 = vmatmul.mubr.msk.bf16.gmra.mxu1 %vm5316_vm6, %v9195_v21  ;;  %v16512_v24 = vpop.f32.mrf.mxu0  ;;  %v12605_v21 = vld [vmem:[%s12755_s20 + $0xa8] sm:$0xff] }
 0x802   : > { %17497 = vst [vmem:[#allocation39_spill] sm:$0xff] %v16507_v23  ;;  %17498 = vst [vmem:[#allocation66_spill] sm:$0xff] %v16512_v24  ;;  %v16516_v48 = vadd.f32 %v11750_v46, %v16344_v8  ;;  %11992 = vmatprep.mubr.msk.bf16.mxu1 %vm5316_vm6, %v9203_v19  ;;  %v9206_v56 = vor.u32 %v9204_v13, %v9202_v9  ;;  %v9638_v24 = vpack.c.bf16 %v12605_v21, %v12604_v40 }
 0x803   : > { %v7019_v20 = vpop.f32.mrf.mxu1  ;;  %v16519_v51 = vpop.f32.mrf.mxu0  ;;  %v9224_v19 = vshll.u32 %v12311_v44, 16  ;;  %v9218_v61 = vrot.slane %v9216_v25, 1  ;;  %v12607_v25 = vld [vmem:[%s12755_s20 + $0xb8] sm:$0xff]  ;;  %v9228_v40 = vshrl.u32 %v12311_v44, 16 }
 0x804   : > { %17499 = vst [vmem:[#allocation42_spill] sm:$0xff] %v16516_v48  ;;  %17500 = vst [vmem:[#allocation68_spill] sm:$0xff] %v16519_v51  ;;  %v16524_v42 = vadd.f32 %v7019_v20, %v16347_v45  ;;  %v12312_v45 = vld [vmem:[#allocation2 + $0x80] sm:$0xff]   ;;  %v9211_v13 = vsel %vm4112_vm5, %v9206_v56, %v9210_v26 }
 0x805   : > { %v11751_v8 = vpop.f32.mrf.mxu1  ;;  %v16528_v46 = vpop.f32.mrf.mxu0  ;;  %v9219_v47 = vsel %vm4112_vm5, %v9214_v34, %v9218_v61  ;;  %v9226_v10 = vrot.slane %v9224_v19, 1  ;;  %v9232_v21 = vshll.u32 %v12312_v45, 16  ;;  %v12608_v19 = vld [vmem:[%s12755_s20 + $0xc0] sm:$0xff] }
 0x806   : > { %v16531_v48 = vadd.f32 %v11751_v8, %v16349_v36 }
 0x807   : > { %v7022_v51 = vpop.f32.mrf.mxu1  ;;  %v16533_v23 = vpop.f32.mrf.mxu0  ;;  %12029 = vmatmul.mubr.msk.bf16.gmra.mxu0 %vm1187_vm1, %v9637_v0  ;;  %v12313_v0 = vld [vmem:[#allocation2 + $0x88] sm:$0xff]   ;;  %v9234_v44 = vrot.slane %v9232_v21, 1  ;;  %v12610_v21 = vld [vmem:[%s12755_s20 + $0xd0] sm:$0xff] }
 0x808   : > { %v16537_v9 = vadd.f32 %v7022_v51, %v16353_v58  ;;  %12032 = vmatprep.mubr.msk.bf16.mxu0 %vm1187_vm1, %v9638_v24  ;;  %v9220_v58 = vshrl.u32 %v12310_v53, 16  ;;  %v12606_v24 = vld [vmem:[%s12755_s20 + $0xb0] sm:$0xff]  ;;  %v9230_v53 = vor.u32 %v9228_v40, %v9226_v10 }
 0x809   : > { %v11754_v20 = vpop.f32.mrf.mxu1  ;;  %11993 = vmatmul.mubr.msk.bf16.gmra.mxu1 %vm5316_vm6, %v9211_v13  ;;  %v16542_v36 = vpop.f32.mrf.mxu0  ;;  %v9639_v56 = vpack.c.bf16 %v12607_v25, %v12606_v24  ;;  %v12609_v13 = vld [vmem:[%s12755_s20 + $0xc8] sm:$0xff] }
 0x80a   : > { %17501 = vst [vmem:[#allocation73_spill] sm:$0xff] %v16537_v9  ;;  %17502 = vst [vmem:[#allocation70_spill] sm:$0xff] %v16542_v36  ;;  %v16546_v62 = vadd.f32 %v11754_v20, %v16358_v17  ;;  %11996 = vmatprep.mubr.msk.bf16.mxu1 %vm5316_vm6, %v9219_v47  ;;  %v9222_v8 = vor.u32 %v9220_v58, %v9218_v61  ;;  %v9640_v36 = vpack.c.bf16 %v12609_v13, %v12608_v19 }
 0x80b   : > { %v7035_v26 = vpop.f32.mrf.mxu1  ;;  %v16549_v51 = vpop.f32.mrf.mxu0  ;;  %v9240_v47 = vshll.u32 %v12313_v0, 16  ;;  %v9244_v13 = vshrl.u32 %v12313_v0, 16 }
 0x80c   : > { %17503 = vst [vmem:[#allocation71_spill] sm:$0xff] %v16546_v62  ;;  %17504 = vst [vmem:[#allocation45_spill] sm:$0xff] %v16549_v51  ;;  %v16554_v34 = vadd.f32 %v7035_v26, %v16361_v60  ;;  %v12314_v62 = vld [vmem:[#allocation2 + $0x90] sm:$0xff]   ;;  %v9227_v61 = vsel %vm4112_vm5, %v9222_v8, %v9226_v10  ;;  %v9235_v26 = vsel %vm4112_vm5, %v9230_v53, %v9234_v44  ;;  %v12611_v8 = vld [vmem:[%s12755_s20 + $0xd8] sm:$0xff] }
 0x80d   : > { %v11755_v17 = vpop.f32.mrf.mxu1  ;;  %v16558_v20 = vpop.f32.mrf.mxu0  ;;  %v9242_v25 = vrot.slane %v9240_v47, 1  ;;  %v9641_v19 = vpack.c.bf16 %v12611_v8, %v12610_v21  ;;  %v12612_v47 = vld [vmem:[%s12755_s20 + $0xe0] sm:$0xff]  ;;  %v12615_v21 = vld [vmem:[%s12755_s20 + $0xf8] sm:$0xff] }
 0x80e   : > { %17505 = vst [vmem:[#allocation43_spill] sm:$0xff] %v16554_v34  ;;  %v16561_v51 = vadd.f32 %v11755_v17, %v16363_v28 }
 0x80f   : > { %v7038_v9 = vpop.f32.mrf.mxu1  ;;  %v16563_v24 = vpop.f32.mrf.mxu0  ;;  %12033 = vmatmul.mubr.msk.bf16.gmra.mxu0 %vm1187_vm1, %v9639_v56  ;;  %v9248_v56 = vshll.u32 %v12314_v62, 16 }
 0x810   : > { %v16567_v60 = vadd.f32 %v7038_v9, %v16367_v7  ;;  %12036 = vmatprep.mubr.msk.bf16.mxu0 %vm1187_vm1, %v9640_v36  ;;  %v9236_v7 = vshrl.u32 %v12312_v45, 16  ;;  %v12315_v9 = vld [vmem:[#allocation2 + $0x98] ss:$0 sps:$4 sm:$0x11]   ;;  %v9246_v45 = vor.u32 %v9244_v13, %v9242_v25 }
 0x811   : > { %v11758_v58 = vpop.f32.mrf.mxu1  ;;  %11997 = vmatmul.mubr.msk.bf16.gmra.mxu1 %vm5316_vm6, %v9227_v61  ;;  %v16572_v28 = vpop.f32.mrf.mxu0  ;;  %v12613_v61 = vld [vmem:[%s12755_s20 + $0xe8] sm:$0xff] }
 0x812   : > { %17506 = vst [vmem:[#allocation75_spill] sm:$0xff] %v16567_v60  ;;  %17507 = vst [vmem:[#allocation47_spill] sm:$0xff] %v16572_v28  ;;  %v16576_v40 = vadd.f32 %v11758_v58, %v16372_v49  ;;  %12000 = vmatprep.mubr.msk.bf16.mxu1 %vm5316_vm6, %v9235_v26  ;;  %v9238_v17 = vor.u32 %v9236_v7, %v9234_v44  ;;  %v9642_v28 = vpack.c.bf16 %v12613_v61, %v12612_v47 }
 0x813   : > { %v7051_v10 = vpop.f32.mrf.mxu1  ;;  %v16579_v36 = vpop.f32.mrf.mxu0  ;;  %v9250_v26 = vrot.slane %v9248_v56, 1  ;;  %v9256_v60 = vshll.u32 %v12315_v9, 16 }
 0x814   : > { %17508 = vst [vmem:[#allocation77_spill] sm:$0xff] %v16576_v40  ;;  %17509 = vst [vmem:[#allocation80_spill] sm:$0xff] %v16579_v36  ;;  %v16584_v53 = vadd.f32 %v7051_v10, %v16375_v11  ;;  %v9252_v36 = vshrl.u32 %v12314_v62, 16  ;;  %v9243_v44 = vsel %vm4112_vm5, %v9238_v17, %v9242_v25  ;;  %v12614_v25 = vld [vmem:[%s12755_s20 + $0xf0] sm:$0xff] }
 0x815   : > { %v11759_v49 = vpop.f32.mrf.mxu1  ;;  %v16588_v58 = vpop.f32.mrf.mxu0  ;;  %v9251_v62 = vsel %vm4112_vm5, %v9246_v45, %v9250_v26  ;;  %v9258_v10 = vrot.slane %v9256_v60, 1 }
 0x816   : > { %v16591_v40 = vadd.f32 %v11759_v49, %v16377_v37  ;;  %v9254_v9 = vor.u32 %v9252_v36, %v9250_v26 }
 0x817   : > { %v7054_v34 = vpop.f32.mrf.mxu1  ;;  %v16593_v0 = vpop.f32.mrf.mxu0  ;;  %12037 = vmatmul.mubr.msk.bf16.gmra.mxu0 %vm1187_vm1, %v9641_v19 }
 0x818   : > { %v16597_v11 = vadd.f32 %v7054_v34, %v16381_v29  ;;  %12040 = vmatprep.mubr.msk.bf16.mxu0 %vm1187_vm1, %v9642_v28  ;;  %v9643_v28 = vpack.c.bf16 %v12615_v21, %v12614_v25 }
 0x819   : > { %v11762_v56 = vpop.f32.mrf.mxu1  ;;  %12001 = vmatmul.mubr.msk.bf16.gmra.mxu1 %vm5316_vm6, %v9243_v44  ;;  %v16602_v37 = vpop.f32.mrf.mxu0 }
 0x81a   : > { %v16606_v7 = vadd.f32 %v11762_v56, %v16386_v5  ;;  %12004 = vmatprep.mubr.msk.bf16.mxu1 %vm5316_vm6, %v9251_v62  ;;  %v9259_v5 = vsel %vm4112_vm5, %v9254_v9, %v9258_v10 }
 0x81b   : > { %v7067_v29 = vpop.f32.mrf.mxu1  ;;  %v16609_v34 = vpop.f32.mrf.mxu0 }
 0x81c   : > { %v16614_v8 = vadd.f32 %v7067_v29, %v16389_v4 }
 0x81d   : > { %v11763_v19 = vpop.f32.mrf.mxu1  ;;  %v16616_v13 = vpop.f32.mrf.mxu0 }
 0x81e   : > { %v16619_v17 = vadd.f32 %v11763_v19, %v16393_v32 }
 0x81f   : > { %v7070_v36 = vpop.f32.mrf.mxu1  ;;  %v16622_v47 = vpop.f32.mrf.mxu0  ;;  %12041 = vmatmul.mubr.msk.bf16.gmra.mxu0 %vm1187_vm1, %v9643_v28 }
 0x820   : > { %v16626_v60 = vadd.f32 %v7070_v36, %v16397_v15 }
 0x821   : > { %v11766_v61 = vpop.f32.mrf.mxu1  ;;  %12005 = vmatmul.mubr.msk.bf16.gmra.mxu1 %vm5316_vm6, %v9259_v5  ;;  %v16629_v4 = vpop.f32.mrf.mxu0 }
 0x822   : > { %v16632_v49 = vadd.f32 %v11766_v61, %v16403_v43  ;;  %v17514_v61 = vld [vmem:[#allocation32_spill] sm:$0xff] }
 0x823   : > { %v7083_v32 = vpop.f32.mrf.mxu1  ;;  %v16634_v45 = vpop.f32.mrf.mxu0 }
 0x824   : > { %17510 = vst [vmem:[#allocation78_spill] sm:$0xff] %v16632_v49  ;;  %v16637_v26 = vadd.f32 %v7083_v32, %v16408_v54 }
 0x825   : > { %v11767_v44 = vpop.f32.mrf.mxu1  ;;  %v16639_v56 = vpop.f32.mrf.mxu0 }
 0x826   : > { %17511 = vst [vmem:[#allocation50_spill] sm:$0xff] %v16637_v26  ;;  %v16642_v15 = vadd.f32 %v11767_v44, %v16412_v63 }
 0x827   : > { %v7086_v62 = vpop.f32.mrf.mxu1  ;;  %v11858_v9 = vpop.f32.mrf.mxu0 }
 0x828   : > { %17512 = vst [vmem:[#allocation79_spill] sm:$0xff] %v16642_v15  ;;  %v16645_v10 = vadd.f32 %v7086_v62, %v16417_v1  ;;  %v17515_v1 = vld [vmem:[#allocation33_spill] sm:$0xff] }
 0x829   : > { %v11818_v29 = vpop.f32.mrf.mxu1  ;;  %v8066_v43 = vpop.f32.mrf.mxu0 }
 0x82a   : > { %17513 = vst [vmem:[#allocation81_spill] sm:$0xff] %v16645_v10  ;;  %v7661_v25 = vadd.f32 %v11818_v29, %v16414_v6 }
 0x82b   : > { %v7652_v21 = vpop.f32.mrf.mxu1  ;;  %v11859_v28 = vpop.f32.mrf.mxu0 }
 0x82c   : > { %v8195_v19 = vadd.f32 %v11858_v9, %v7661_v25  ;;  %v7653_v54 = vadd.f32 %v7652_v21, %v16422_v16 }
 0x82d   : > { %v11819_v5 = vpop.f32.mrf.mxu1  ;;  %v8069_v36 = vpop.f32.mrf.mxu0 }
 0x82e   : > { %v8227_v32 = vmul.f32 %v17514_v61, %v8195_v19  ;;  %v8193_v63 = vadd.f32 %v8066_v43, %v7653_v54  ;;  %v7664_v44 = vadd.f32 %v11819_v5, %v16429_v22  ;;  %v17516_v5 = vld [vmem:[#allocation35_spill] sm:$0xff] }
 0x82f   : > { %v7655_v26 = vpop.f32.mrf.mxu1  ;;  %v11862_v15 = vpop.f32.mrf.mxu0 }
 0x830   : > { %v8225_v62 = vmul.f32 %v17515_v1, %v8193_v63  ;;  %v8196_v10 = vadd.f32 %v11859_v28, %v7664_v44  ;;  %v7656_v49 = vadd.f32 %v7655_v26, %v16438_v55  ;;  %v16654_v6 = vadd.f32 %v8227_v32, %v16426_v38 }
 0x831   : > { %v11822_v9 = vpop.f32.mrf.mxu1  ;;  %v8082_v29 = vpop.f32.mrf.mxu0 }
 0x832   : > { %v16657_v16 = vadd.f32 %v8196_v10, %v16441_v50  ;;  %v8194_v25 = vadd.f32 %v8069_v36, %v7656_v49  ;;  %v7677_v43 = vadd.f32 %v11822_v9, %v16443_v2  ;;  %v16661_v22 = vadd.f32 %v8225_v62, %v16434_v12  ;;  %v17517_v36 = vld [vmem:[#allocation36_spill] sm:$0xff] }
 0x833   : > { %v7668_v21 = vpop.f32.mrf.mxu1  ;;  %v11863_v19 = vpop.f32.mrf.mxu0 }
 0x834   : > { %v16664_v28 = vadd.f32 %v8194_v25, %v16447_v52  ;;  %v8199_v55 = vadd.f32 %v11862_v15, %v7677_v43  ;;  %v7669_v38 = vadd.f32 %v7668_v21, %v16452_v39  ;;  %v17518_v43 = vld [vmem:[#allocation6_spill] sm:$0xff] }
 0x835   : > { %v11823_v26 = vpop.f32.mrf.mxu1  ;;  %v8085_v54 = vpop.f32.mrf.mxu0 }
 0x836   : > { %v8231_v61 = vmul.f32 %v17516_v5, %v8199_v55  ;;  %v8197_v50 = vadd.f32 %v8082_v29, %v7669_v38  ;;  %v7680_v49 = vadd.f32 %v11823_v26, %v16459_v27  ;;  %v17519_v55 = vld [vmem:[#allocation37_spill] sm:$0xff]  ;;  %v17520_v26 = vld [vmem:[#allocation62_spill] sm:$0xff] }
 0x837   : > { %v7671_v10 = vpop.f32.mrf.mxu1  ;;  %v11866_v2 = vpop.f32.mrf.mxu0 }
 0x838   : > { %v8229_v12 = vmul.f32 %v17517_v36, %v8197_v50  ;;  %v8200_v32 = vadd.f32 %v11863_v19, %v7680_v49  ;;  %v7672_v63 = vadd.f32 %v7671_v10, %v16468_v30  ;;  %v16672_v52 = vadd.f32 %v8231_v61, %v16456_v57  ;;  %v17521_v61 = vld [vmem:[#allocation38_spill] sm:$0xff]  ;;  %v17522_v10 = vld [vmem:[#allocation24_spill] sm:$0xff] }
 0x839   : > { %v11826_v15 = vpop.f32.mrf.mxu1  ;;  %v8098_v44 = vpop.f32.mrf.mxu0 }
 0x83a   : > { %v16675_v39 = vadd.f32 %v8200_v32, %v16471_v18  ;;  %v8198_v1 = vadd.f32 %v8085_v54, %v7672_v63  ;;  %v7693_v62 = vadd.f32 %v11826_v15, %v16473_v35  ;;  %v16679_v27 = vadd.f32 %v8229_v12, %v16464_v59 }
 0x83b   : > { %v7684_v9 = vpop.f32.mrf.mxu1  ;;  %v11867_v29 = vpop.f32.mrf.mxu0 }
 0x83c   : > { %v16682_v25 = vadd.f32 %v8198_v1, %v16477_v41  ;;  %v8203_v30 = vadd.f32 %v11866_v2, %v7693_v62  ;;  %v7685_v57 = vadd.f32 %v7684_v9, %v17518_v43  ;;  %v17523_v62 = vld [vmem:[#allocation39_spill] sm:$0xff] }
 0x83d   : > { %v11827_v21 = vpop.f32.mrf.mxu1  ;;  %v8101_v19 = vpop.f32.mrf.mxu0 }
 0x83e   : > { %v8235_v38 = vmul.f32 %v17519_v55, %v8203_v30  ;;  %v8201_v18 = vadd.f32 %v8098_v44, %v7685_v57  ;;  %v7696_v54 = vadd.f32 %v11827_v21, %v17520_v26  ;;  %v17525_v21 = vld [vmem:[#allocation40_spill] sm:$0xff]  ;;  %v17527_v26 = vld [vmem:[#allocation41_spill] sm:$0xff] }
 0x83f   : > { %v7687_v5 = vpop.f32.mrf.mxu1  ;;  %v11870_v35 = vpop.f32.mrf.mxu0 }
 0x840   : > { %v8233_v59 = vmul.f32 %v17521_v61, %v8201_v18  ;;  %v8204_v50 = vadd.f32 %v11867_v29, %v7696_v54  ;;  %v7688_v49 = vadd.f32 %v7687_v5, %v16498_v33  ;;  %v16690_v41 = vadd.f32 %v8235_v38, %v17522_v10  ;;  %v17524_v29 = vld [vmem:[#allocation66_spill] sm:$0xff]  ;;  %v17526_v38 = vld [vmem:[#allocation68_spill] sm:$0xff] }
 0x841   : > { %v11830_v2 = vpop.f32.mrf.mxu1  ;;  %v8114_v36 = vpop.f32.mrf.mxu0  ;;  %v17528_v61 = vld [vmem:[#allocation42_spill] sm:$0xff] }
 0x842   : > { %v16693_v12 = vadd.f32 %v8204_v50, %v16501_v14  ;;  %v8202_v32 = vadd.f32 %v8101_v19, %v7688_v49  ;;  %v7709_v63 = vadd.f32 %v11830_v2, %v16503_v3  ;;  %v16697_v15 = vadd.f32 %v8233_v59, %v16494_v31 }
 0x843   : > { %v7700_v44 = vpop.f32.mrf.mxu1  ;;  %v11871_v1 = vpop.f32.mrf.mxu0 }
 0x844   : > { %v16700_v9 = vadd.f32 %v8202_v32, %v17523_v62  ;;  %v8207_v33 = vadd.f32 %v11870_v35, %v7709_v63  ;;  %v7701_v30 = vadd.f32 %v7700_v44, %v17524_v29  ;;  %v17530_v44 = vld [vmem:[#allocation73_spill] sm:$0xff]  ;;  %v17532_v62 = vld [vmem:[#allocation70_spill] sm:$0xff] }
 0x845   : > { %v11831_v43 = vpop.f32.mrf.mxu1  ;;  %v8117_v57 = vpop.f32.mrf.mxu0 }
 0x846   : > { %v8239_v55 = vmul.f32 %v17525_v21, %v8207_v33  ;;  %v8205_v14 = vadd.f32 %v8114_v36, %v7701_v30  ;;  %v7712_v19 = vadd.f32 %v11831_v43, %v17526_v38  ;;  %v17533_v43 = vld [vmem:[#allocation44_spill] sm:$0xff]  ;;  %v17535_v38 = vld [vmem:[#allocation46_spill] sm:$0xff] }
 0x847   : > { %v7703_v18 = vpop.f32.mrf.mxu1  ;;  %v11874_v3 = vpop.f32.mrf.mxu0 }
 0x848   : > { %v8237_v31 = vmul.f32 %v17527_v26, %v8205_v14  ;;  %v8208_v54 = vadd.f32 %v11871_v1, %v7712_v19  ;;  %v7704_v5 = vadd.f32 %v7703_v18, %v16528_v46  ;;  %v16708_v59 = vadd.f32 %v8239_v55, %v17528_v61  ;;  %v17534_v55 = vld [vmem:[#allocation45_spill] sm:$0xff]  ;;  %v17536_v26 = vld [vmem:[#allocation71_spill] sm:$0xff] }
 0x849   : > { %v11834_v35 = vpop.f32.mrf.mxu1  ;;  %v8130_v50 = vpop.f32.mrf.mxu0 }
 0x84a   : > { %v16711_v49 = vadd.f32 %v8208_v54, %v16531_v48  ;;  %v8206_v10 = vadd.f32 %v8117_v57, %v7704_v5  ;;  %v7725_v2 = vadd.f32 %v11834_v35, %v16533_v23  ;;  %v16715_v36 = vadd.f32 %v8237_v31, %v16524_v42 }
 0x84b   : > { %v7716_v32 = vpop.f32.mrf.mxu1  ;;  %v11875_v63 = vpop.f32.mrf.mxu0 }
 0x84c   : > { %17529 = vst [vmem:[#allocation48_spill] sm:$0xff] %v16711_v49  ;;  %v16718_v1 = vadd.f32 %v8206_v10, %v17530_v44  ;;  %v8211_v46 = vadd.f32 %v11874_v3, %v7725_v2  ;;  %v7717_v33 = vadd.f32 %v7716_v32, %v17532_v62  ;;  %v17541_v44 = vld [vmem:[#allocation75_spill] sm:$0xff] }
 0x84d   : > { %v11835_v29 = vpop.f32.mrf.mxu1  ;;  %v8133_v30 = vpop.f32.mrf.mxu0 }
 0x84e   : > { %17531 = vst [vmem:[#allocation52_spill] sm:$0xff] %v16718_v1  ;;  %v8243_v21 = vmul.f32 %v17533_v43, %v8211_v46  ;;  %v8209_v48 = vadd.f32 %v8130_v50, %v7717_v33  ;;  %v7728_v57 = vadd.f32 %v11835_v29, %v17534_v55  ;;  %v17539_v50 = vld [vmem:[#allocation43_spill] sm:$0xff]  ;;  %v17544_v43 = vld [vmem:[#allocation49_spill] sm:$0xff] }
 0x84f   : > { %v7719_v14 = vpop.f32.mrf.mxu1  ;;  %v11878_v23 = vpop.f32.mrf.mxu0  ;;  %v17543_v46 = vld [vmem:[#allocation47_spill] sm:$0xff] }
 0x850   : > { %v8241_v42 = vmul.f32 %v17535_v38, %v8209_v48  ;;  %v8212_v19 = vadd.f32 %v11875_v63, %v7728_v57  ;;  %v7720_v18 = vadd.f32 %v7719_v14, %v16558_v20  ;;  %v16726_v31 = vadd.f32 %v8243_v21, %v17536_v26  ;;  %v17545_v48 = vld [vmem:[#allocation80_spill] sm:$0xff]  ;;  %v17546_v57 = vld [vmem:[#allocation51_spill] sm:$0xff] }
 0x851   : > { %v11838_v3 = vpop.f32.mrf.mxu1  ;;  %v8146_v54 = vpop.f32.mrf.mxu0 }
 0x852   : > { %17537 = vst [vmem:[#allocation82_spill] sm:$0xff] %v16726_v31  ;;  %v16729_v5 = vadd.f32 %v8212_v19, %v16561_v51  ;;  %v8210_v61 = vadd.f32 %v8133_v30, %v7720_v18  ;;  %v7741_v35 = vadd.f32 %v11838_v3, %v16563_v24  ;;  %v16733_v10 = vadd.f32 %v8241_v42, %v17539_v50  ;;  %v17547_v19 = vld [vmem:[#allocation77_spill] sm:$0xff] }
 0x853   : > { %v7732_v2 = vpop.f32.mrf.mxu1  ;;  %v11879_v32 = vpop.f32.mrf.mxu0 }
 0x854   : > { %17538 = vst [vmem:[#allocation55_spill] sm:$0xff] %v16729_v5  ;;  %17540 = vst [vmem:[#allocation84_spill] sm:$0xff] %v16733_v10  ;;  %v16736_v63 = vadd.f32 %v8210_v61, %v17541_v44  ;;  %v8215_v20 = vadd.f32 %v11878_v23, %v7741_v35  ;;  %v7733_v62 = vadd.f32 %v7732_v2, %v17543_v46 }
 0x855   : > { %v11839_v33 = vpop.f32.mrf.mxu1  ;;  %v8149_v29 = vpop.f32.mrf.mxu0 }
 0x856   : > { %17542 = vst [vmem:[#allocation85_spill] sm:$0xff] %v16736_v63  ;;  %v8247_v21 = vmul.f32 %v17544_v43, %v8215_v20  ;;  %v8213_v51 = vadd.f32 %v8146_v54, %v7733_v62  ;;  %v7744_v30 = vadd.f32 %v11839_v33, %v17545_v48  ;;  %v17552_v62 = vld [vmem:[#allocation54_spill] sm:$0xff] }
 0x857   : > { %v7735_v55 = vpop.f32.mrf.mxu1  ;;  %v11882_v24 = vpop.f32.mrf.mxu0 }
 0x858   : > { %v8245_v14 = vmul.f32 %v17546_v57, %v8213_v51  ;;  %v8216_v38 = vadd.f32 %v11879_v32, %v7744_v30  ;;  %v7736_v42 = vadd.f32 %v7735_v55, %v16588_v58  ;;  %v16744_v18 = vadd.f32 %v8247_v21, %v17547_v19  ;;  %v17553_v21 = vld [vmem:[#allocation56_spill] sm:$0xff] }
 0x859   : > { %v11842_v23 = vpop.f32.mrf.mxu1  ;;  %v8162_v26 = vpop.f32.mrf.mxu0 }
 0x85a   : > { %17548 = vst [vmem:[#allocation83_spill] sm:$0xff] %v16744_v18  ;;  %v16747_v3 = vadd.f32 %v8216_v38, %v16591_v40  ;;  %v8214_v61 = vadd.f32 %v8149_v29, %v7736_v42  ;;  %v7757_v54 = vadd.f32 %v11842_v23, %v16593_v0  ;;  %v16751_v35 = vadd.f32 %v8245_v14, %v16584_v53 }
 0x85b   : > { %v7748_v50 = vpop.f32.mrf.mxu1  ;;  %v11883_v2 = vpop.f32.mrf.mxu0 }
 0x85c   : > { %17549 = vst [vmem:[#allocation53_spill] sm:$0xff] %v16747_v3  ;;  %17550 = vst [vmem:[#allocation86_spill] sm:$0xff] %v16751_v35  ;;  %v16754_v32 = vadd.f32 %v8214_v61, %v16597_v11  ;;  %v8219_v58 = vadd.f32 %v11882_v24, %v7757_v54  ;;  %v7749_v44 = vadd.f32 %v7748_v50, %v16602_v37 }
 0x85d   : > { %v11843_v20 = vpop.f32.mrf.mxu1  ;;  %v8165_v46 = vpop.f32.mrf.mxu0 }
 0x85e   : > { %17551 = vst [vmem:[#allocation87_spill] sm:$0xff] %v16754_v32  ;;  %v8251_v33 = vmul.f32 %v17552_v62, %v8219_v58  ;;  %v8217_v40 = vadd.f32 %v8162_v26, %v7749_v44  ;;  %v7760_v29 = vadd.f32 %v11843_v20, %v16609_v34  ;;  %v17558_v26 = vld [vmem:[#allocation59_spill] sm:$0xff] }
 0x85f   : > { %v7751_v43 = vpop.f32.mrf.mxu1  ;;  %v11886_v0 = vpop.f32.mrf.mxu0  ;;  %v17562_v62 = vld [vmem:[#allocation79_spill] sm:$0xff] }
 0x860   : > { %v8249_v53 = vmul.f32 %v17553_v21, %v8217_v40  ;;  %v8220_v51 = vadd.f32 %v11883_v2, %v7760_v29  ;;  %v7752_v48 = vadd.f32 %v7751_v43, %v16616_v13  ;;  %v16762_v11 = vadd.f32 %v8251_v33, %v16606_v7  ;;  %v17566_v21 = vld [vmem:[#allocation81_spill] sm:$0xff] }
 0x861   : > { %v11846_v30 = vpop.f32.mrf.mxu1  ;;  %v8178_v55 = vpop.f32.mrf.mxu0 }
 0x862   : > { %17554 = vst [vmem:[#allocation57_spill] sm:$0xff] %v16762_v11  ;;  %v16765_v37 = vadd.f32 %v8220_v51, %v16619_v17  ;;  %v8218_v24 = vadd.f32 %v8165_v46, %v7752_v48  ;;  %v7773_v57 = vadd.f32 %v11846_v30, %v16622_v47  ;;  %v16769_v34 = vadd.f32 %v8249_v53, %v16614_v8  ;;  %v17559_v8 = vld [vmem:[#allocation5_spill] sm:$0xff] }
 0x863   : > { %v7764_v14 = vpop.f32.mrf.mxu1  ;;  %v11887_v38 = vpop.f32.mrf.mxu0 }
 0x864   : > { %17555 = vst [vmem:[#allocation60_spill] sm:$0xff] %v16765_v37  ;;  %17556 = vst [vmem:[#allocation89_spill] sm:$0xff] %v16769_v34  ;;  %v16772_v42 = vadd.f32 %v8218_v24, %v16626_v60  ;;  %v8223_v13 = vadd.f32 %v11886_v0, %v7773_v57  ;;  %v7765_v7 = vadd.f32 %v7764_v14, %v16629_v4  ;;  %v17560_v60 = vld [vmem:[#allocation78_spill] sm:$0xff] }
 0x865   : > { %v11847_v19 = vpop.f32.mrf.mxu1  ;;  %v8181_v23 = vpop.f32.mrf.mxu0 }
 0x866   : > { %17557 = vst [vmem:[#allocation90_spill] sm:$0xff] %v16772_v42  ;;  %v8255_v61 = vmul.f32 %v17558_v26, %v8223_v13  ;;  %v8221_v17 = vadd.f32 %v8178_v55, %v7765_v7  ;;  %v7776_v54 = vadd.f32 %v11847_v19, %v16634_v45  ;;  %v17564_v45 = vld [vmem:[#allocation50_spill] sm:$0xff] }
 0x867   : > { %v7767_v50 = vpop.f32.mrf.mxu1  ;;  %v16777_v47 = vpop.f32.mrf.mxu0 }
 0x868   : > { %v8253_v2 = vmul.f32 %v17559_v8, %v8221_v17  ;;  %v8224_v58 = vadd.f32 %v11887_v38, %v7776_v54  ;;  %v7768_v44 = vadd.f32 %v7767_v50, %v16639_v56  ;;  %v16782_v20 = vadd.f32 %v8255_v61, %v17560_v60 }
 0x869   : > { %v16784_v46 = vpop.f32.mrf.mxu1  ;;  %v16786_v4 = vpop.f32.mrf.mxu0 }
 0x86a   : > { %17561 = vst [vmem:[#allocation88_spill] sm:$0xff] %v16782_v20  ;;  %v16789_v33 = vadd.f32 %v8224_v58, %v17562_v62  ;;  %v8222_v40 = vadd.f32 %v8181_v23, %v7768_v44  ;;  %v16792_v29 = vadd.f32 %v8253_v2, %v17564_v45 }
 0x86b   : > { %v16794_v43 = vpop.f32.mrf.mxu1  ;;  %v16796_v0 = vpop.f32.mrf.mxu0 }
 0x86c   : > { %17563 = vst [vmem:[#allocation29_spill] sm:$0xff] %v16789_v33  ;;  %17565 = vst [vmem:[#allocation27_spill] sm:$0xff] %v16792_v29  ;;  %v16799_v56 = vadd.f32 %v8222_v40, %v17566_v21 }
 0x86d   : > { %v16801_v53 = vpop.f32.mrf.mxu1  ;;  %v16803_v51 = vpop.f32.mrf.mxu0 }
 0x86e   : > { %17567 = vst [vmem:[#allocation58_spill] sm:$0xff] %v16799_v56 }
 0x86f   : > { %v16805_v48 = vpop.f32.mrf.mxu1  ;;  %v16807_v30 = vpop.f32.mrf.mxu0 }
 0x871   : > { %v16809_v55 = vpop.f32.mrf.mxu1  ;;  %v16811_v24 = vpop.f32.mrf.mxu0 }
 0x873   : > { %v16813_v57 = vpop.f32.mrf.mxu1  ;;  %v16815_v14 = vpop.f32.mrf.mxu0 }
 0x875   : > { %v16817_v38 = vpop.f32.mrf.mxu1  ;;  %v16819_v13 = vpop.f32.mrf.mxu0 }
 0x877   : > { %v16821_v7 = vpop.f32.mrf.mxu1  ;;  %v16823_v19 = vpop.f32.mrf.mxu0 }
 0x879   : > { %v16825_v23 = vpop.f32.mrf.mxu1  ;;  %v16827_v26 = vpop.f32.mrf.mxu0 }
 0x87b   : > { %v16829_v61 = vpop.f32.mrf.mxu1  ;;  %v16831_v17 = vpop.f32.mrf.mxu0 }
 0x87d   : > { %v16833_v54 = vpop.f32.mrf.mxu1  ;;  %v16835_v50 = vpop.f32.mrf.mxu0 }
 0x87f   : > { %v16837_v8 = vpop.f32.mrf.mxu1  ;;  %v16839_v2 = vpop.f32.mrf.mxu0 }
 0x881   : > { %v16841_v58 = vpop.f32.mrf.mxu1  ;;  %v16843_v44 = vpop.f32.mrf.mxu0 }
 0x883   : > { %v16845_v60 = vpop.f32.mrf.mxu1  ;;  %v16847_v62 = vpop.f32.mrf.mxu0 }
 0x885   : > { %v16849_v40 = vpop.f32.mrf.mxu1  ;;  %v16851_v45 = vpop.f32.mrf.mxu0 }
 0x887   : > { %v16853_v21 = vpop.f32.mrf.mxu1  ;;  %v16855_v56 = vpop.f32.mrf.mxu0 }
 0x889   : > { %v16857_v33 = vpop.f32.mrf.mxu1  ;;  %v16859_v29 = vpop.f32.mrf.mxu0 }
 0x88a   : > { %17568 = vst [vmem:[#allocation12_spill] sm:$0xff] %v16859_v29 }
 0x88b   : > { %v16861_v20 = vpop.f32.mrf.mxu1  ;;  %v16863_v42 = vpop.f32.mrf.mxu0 }
 0x88c   : > { %17569 = vst [vmem:[#allocation26_spill] sm:$0xff] %v16863_v42 }
 0x88d   : > { %v16865_v37 = vpop.f32.mrf.mxu1  ;;  %v16867_v34 = vpop.f32.mrf.mxu0 }
 0x88e   : > { %17570 = vst [vmem:[#allocation14_spill] sm:$0xff] %v16865_v37  ;;  %17571 = vst [vmem:[#allocation61_spill] sm:$0xff] %v16867_v34 }
 0x88f   : > { %v16869_v32 = vpop.f32.mrf.mxu1  ;;  %v16871_v11 = vpop.f32.mrf.mxu0 }
 0x890   : > { %17572 = vst [vmem:[#allocation7_spill] sm:$0xff] %v16869_v32  ;;  %17573 = vst [vmem:[#allocation28_spill] sm:$0xff] %v16871_v11 }
 0x891   : > { %v16873_v3 = vpop.f32.mrf.mxu1  ;;  %v16875_v35 = vpop.f32.mrf.mxu0 }
 0x892   : > { %17574 = vst [vmem:[#allocation30_spill] sm:$0xff] %v16873_v3  ;;  %17575 = vst [vmem:[#allocation63_spill] sm:$0xff] %v16875_v35 }
 0x893   : > { %v16877_v18 = vpop.f32.mrf.mxu1  ;;  %v16879_v63 = vpop.f32.mrf.mxu0 }
 0x894   : > { %17576 = vst [vmem:[#allocation64_spill] sm:$0xff] %v16877_v18  ;;  %17577 = vst [vmem:[#allocation65_spill] sm:$0xff] %v16879_v63 }
 0x895   : > { %v16881_v5 = vpop.f32.mrf.mxu1  ;;  %v16883_v10 = vpop.f32.mrf.mxu0 }
 0x896   : > { %17578 = vst [vmem:[#allocation67_spill] sm:$0xff] %v16881_v5  ;;  %17579 = vst [vmem:[#allocation69_spill] sm:$0xff] %v16883_v10 }
 0x897   : > { %v16885_v42 = vpop.f32.mrf.mxu1  ;;  %v16887_v37 = vpop.f32.mrf.mxu0 }
 0x898   : > { %17580 = vst [vmem:[#allocation72_spill] sm:$0xff] %v16885_v42  ;;  %17581 = vst [vmem:[#allocation74_spill] sm:$0xff] %v16887_v37 }
 0x899   : > { %v16889_v34 = vpop.f32.mrf.mxu1  ;;  %v16891_v32 = vpop.f32.mrf.mxu0 }
 0x89a   : > { %17582 = vst [vmem:[#allocation76_spill] sm:$0xff] %v16889_v34  ;;  %17583 = vst [vmem:[#allocation17_spill] sm:$0xff] %v16891_v32 }
 0x89b   : > { %v16893_v11 = vpop.f32.mrf.mxu1  ;;  %v16895_v3 = vpop.f32.mrf.mxu0 }
 0x89c   : > { %17584 = vst [vmem:[#allocation22_spill] sm:$0xff] %v16893_v11  ;;  %17585 = vst [vmem:[#allocation19_spill] sm:$0xff] %v16895_v3 }
 0x89d   : > { %v16897_v35 = vpop.f32.mrf.mxu1  ;;  %v16899_v18 = vpop.f32.mrf.mxu0 }
 0x89e   : > { %17586 = vst [vmem:[#allocation32_spill] sm:$0xff] %v16897_v35  ;;  %17587 = vst [vmem:[#allocation33_spill] sm:$0xff] %v16899_v18  ;;  %v8885_v18 = vadd.f32 %v16777_v47, %v16784_v46  ;;  %v8888_v47 = vadd.f32 %v16796_v0, %v16801_v53  ;;  %v8901_v0 = vadd.f32 %v16807_v30, %v16809_v55  ;;  %v17598_v55 = vld [vmem:[#allocation8_spill] sm:$0xff] }
 0x89f   : > { %v16901_v63 = vpop.f32.mrf.mxu1  ;;  %v16903_v5 = vpop.f32.mrf.mxu0 }
 0x8a0   : > { %17588 = vst [vmem:[#allocation35_spill] sm:$0xff] %v16901_v63  ;;  %17589 = vst [vmem:[#allocation36_spill] sm:$0xff] %v16903_v5  ;;  %v16924_v5 = vld [vmem:[%s17194_s15] ss:$0 sm:$0xff] }
 0x8a1   : > { %v16905_v10 = vpop.f32.mrf.mxu1  ;;  %v16907_v42 = vpop.f32.mrf.mxu0 }
 0x8a2   : > { %17590 = vst [vmem:[#allocation6_spill] sm:$0xff] %v16905_v10  ;;  %17591 = vst [vmem:[#allocation37_spill] sm:$0xff] %v16907_v42 }
 0x8a3   : > { %v16909_v37 = vpop.f32.mrf.mxu1  ;;  %v16911_v34 = vpop.f32.mrf.mxu0 }
 0x8a4   : > { %17592 = vst [vmem:[#allocation62_spill] sm:$0xff] %v16909_v37  ;;  %17593 = vst [vmem:[#allocation38_spill] sm:$0xff] %v16911_v34  ;;  %v8877_v34 = vadd.f32 %v16786_v4, %v16794_v43  ;;  %v8880_v4 = vadd.f32 %v16803_v51, %v16805_v48 }
 0x8a5   : > { %v16913_v32 = vpop.f32.mrf.mxu1  ;;  %v16915_v11 = vpop.f32.mrf.mxu0 }
 0x8a6   : > { %17594 = vst [vmem:[#allocation24_spill] sm:$0xff] %v16913_v32  ;;  %17595 = vst [vmem:[#allocation39_spill] sm:$0xff] %v16915_v11  ;;  %v16931_v11 = vld [vmem:[%s17192_s13] ss:$0 sm:$0xff] }
 0x8a7   : > { %v16917_v3 = vpop.f32.mrf.mxu1  ;;  %v12014_v35 = vpop.f32.mrf.mxu0 }
 0x8a8   : > { %17596 = vst [vmem:[#allocation66_spill] sm:$0xff] %v16917_v3  ;;  %v9758_v10 = vadd.f32 %v12014_v35, %v16924_v5 }
 0x8a9   : > { %v11978_v63 = vpop.f32.mrf.mxu1  ;;  %v9749_v42 = vpop.f32.mrf.mxu0 }
 0x8aa   : > { %v9495_v37 = vadd.f32 %v11978_v63, %v8885_v18  ;;  %v9750_v49 = vadd.f32 %v16924_v5, %v9749_v42  ;;  %v8893_v42 = vadd.f32 %v16811_v24, %v16813_v57 }
 0x8ab   : > { %v9366_v3 = vpop.f32.mrf.mxu1  ;;  %v12015_v32 = vpop.f32.mrf.mxu0 }
 0x8ac   : > { %v9559_v46 = vadd.f32 %v9495_v37, %v16654_v6  ;;  %v9493_v31 = vadd.f32 %v9366_v3, %v8877_v34 }
 0x8ad   : > { %v11979_v63 = vpop.f32.mrf.mxu1  ;;  %v9752_v18 = vpop.f32.mrf.mxu0 }
 0x8ae   : > { %v9598_v43 = vadd.f32 %v16931_v11, %v9559_v46  ;;  %v9557_v1 = vadd.f32 %v9493_v31, %v16661_v22  ;;  %v9496_v29 = vadd.f32 %v11979_v63, %v8888_v47  ;;  %v17597_v22 = vld [vmem:[#allocation3_spill] sm:$0xff] }
 0x8af   : > { %v9369_v6 = vpop.f32.mrf.mxu1  ;;  %v12018_v3 = vpop.f32.mrf.mxu0 }
 0x8b0   : > { %v9878_v35 = vadd.f32 %v9758_v10, %v9598_v43  ;;  %v9596_v37 = vadd.f32 %v16931_v11, %v9557_v1  ;;  %v9528_v31 = vmul.f32 %v17597_v22, %v9496_v29  ;;  %v9494_v34 = vadd.f32 %v9369_v6, %v8880_v4 }
 0x8b1   : > { %v11982_v53 = vpop.f32.mrf.mxu1  ;;  %v9765_v51 = vpop.f32.mrf.mxu0  ;;  %v9761_v10 = vadd.f32 %v12015_v32, %v16924_v5  ;;  %v9774_v1 = vadd.f32 %v12018_v3, %v16924_v5  ;;  %v8896_v32 = vadd.f32 %v16819_v13, %v16821_v7  ;;  %v9753_v43 = vadd.f32 %v16924_v5, %v9752_v18 }
 0x8b2   : > { %9910 = vst.msk [vmem:[%s16949_s25 + $0x10] sm:$0xff] %vm5316_vm6, %v9878_v35  ;;  %v9876_v48 = vadd.f32 %v9750_v49, %v9596_v37  ;;  %v9560_v30 = vadd.f32 %v9528_v31, %v16657_v16  ;;  %v9526_v47 = vmul.f32 %v17598_v55, %v9494_v34  ;;  %v9499_v46 = vadd.f32 %v11982_v53, %v8901_v0 }
 0x8b3   : > { %v9382_v63 = vpop.f32.mrf.mxu1  ;;  %v12019_v29 = vpop.f32.mrf.mxu0  ;;  %v8904_v16 = vadd.f32 %v16815_v14, %v16817_v38  ;;  %v9766_v0 = vadd.f32 %v16924_v5, %v9765_v51  ;;  %v8917_v14 = vadd.f32 %v16823_v19, %v16825_v23  ;;  %v17600_v23 = vld [vmem:[#allocation11_spill] sm:$0xff] }
 0x8b4   : > { %9908 = vst.msk [vmem:[%s16949_s25] sm:$0xff] %vm5316_vm6, %v9876_v48  ;;  %v9599_v24 = vadd.f32 %v16931_v11, %v9560_v30  ;;  %v9558_v57 = vadd.f32 %v9526_v47, %v16664_v28  ;;  %v9563_v4 = vadd.f32 %v9499_v46, %v16672_v52  ;;  %v9497_v49 = vadd.f32 %v9382_v63, %v8893_v42  ;;  %v17599_v42 = vld [vmem:[#allocation9_spill] sm:$0xff] }
 0x8b5   : > { %v11983_v6 = vpop.f32.mrf.mxu1  ;;  %v9768_v3 = vpop.f32.mrf.mxu0  ;;  %v8920_v47 = vadd.f32 %v16831_v17, %v16833_v54 }
 0x8b6   : > { %v9879_v35 = vadd.f32 %v9761_v10, %v9599_v24  ;;  %v9597_v37 = vadd.f32 %v16931_v11, %v9558_v57  ;;  %v9602_v28 = vadd.f32 %v16931_v11, %v9563_v4  ;;  %v9561_v52 = vadd.f32 %v9497_v49, %v16679_v27 }
 0x8b7   : > { %v9500_v38 = vadd.f32 %v11983_v6, %v8904_v16  ;;  %v9385_v13 = vpop.f32.mrf.mxu1  ;;  %v12022_v7 = vpop.f32.mrf.mxu0  ;;  %v8909_v27 = vadd.f32 %v16827_v26, %v16829_v61  ;;  %v9777_v4 = vadd.f32 %v12019_v29, %v16924_v5  ;;  %v9769_v49 = vadd.f32 %v16924_v5, %v9768_v3 }
 0x8b8   : > { %9911 = vst.msk [vmem:[%s16949_s25 + $0x18] sm:$0xff] %vm5316_vm6, %v9879_v35  ;;  %v9877_v18 = vadd.f32 %v9753_v43, %v9597_v37  ;;  %v9882_v22 = vadd.f32 %v9774_v1, %v9602_v28  ;;  %v9600_v31 = vadd.f32 %v16931_v11, %v9561_v52  ;;  %v9498_v34 = vadd.f32 %v9385_v13, %v8896_v32  ;;  %v17601_v52 = vld [vmem:[#allocation10_spill] sm:$0xff] }
 0x8b9   : > { %v9532_v53 = vmul.f32 %v17599_v42, %v9500_v38  ;;  %v11986_v51 = vpop.f32.mrf.mxu1  ;;  %v9781_v48 = vpop.f32.mrf.mxu0  ;;  %v9790_v61 = vadd.f32 %v12022_v7, %v16924_v5  ;;  %v8912_v43 = vadd.f32 %v16835_v50, %v16837_v8  ;;  %v8933_v29 = vadd.f32 %v16839_v2, %v16841_v58 }
 0x8ba   : > { %9909 = vst.msk [vmem:[%s16949_s25 + $0x8] sm:$0xff] %vm5316_vm6, %v9877_v18  ;;  %9914 = vst.msk [vmem:[%s16949_s25 + $0x30] sm:$0xff] %vm5316_vm6, %v9882_v22  ;;  %v9880_v19 = vadd.f32 %v9766_v0, %v9600_v31  ;;  %v9530_v30 = vmul.f32 %v17600_v23, %v9498_v34  ;;  %v9503_v55 = vadd.f32 %v11986_v51, %v8917_v14  ;;  %v17602_v22 = vld [vmem:[#allocation16_spill] sm:$0xff] }
 0x8bb   : > { %v9564_v46 = vadd.f32 %v9532_v53, %v16675_v39  ;;  %v9398_v10 = vpop.f32.mrf.mxu1  ;;  %v12023_v1 = vpop.f32.mrf.mxu0  ;;  %v9782_v17 = vadd.f32 %v16924_v5, %v9781_v48  ;;  %v8925_v50 = vadd.f32 %v16843_v44, %v16845_v60  ;;  %v8936_v7 = vadd.f32 %v16847_v62, %v16849_v40 }
 0x8bc   : > { %9912 = vst.msk [vmem:[%s16949_s25 + $0x20] sm:$0xff] %vm5316_vm6, %v9880_v19  ;;  %v9562_v63 = vadd.f32 %v9530_v30, %v16682_v25  ;;  %v9567_v26 = vadd.f32 %v9503_v55, %v16690_v41  ;;  %v9501_v24 = vadd.f32 %v9398_v10, %v8909_v27  ;;  %v9793_v18 = vadd.f32 %v12023_v1, %v16924_v5  ;;  %v17603_v1 = vld [vmem:[#allocation4_spill] sm:$0xff] }
 0x8bd   : > { %v9603_v57 = vadd.f32 %v16931_v11, %v9564_v46  ;;  %v11987_v39 = vpop.f32.mrf.mxu1  ;;  %v9784_v54 = vpop.f32.mrf.mxu0  ;;  %v8928_v51 = vadd.f32 %v16851_v45, %v16853_v21  ;;  %v8949_v55 = vadd.f32 %v16855_v56, %v16857_v33 }
 0x8be   : > { %v9601_v16 = vadd.f32 %v16931_v11, %v9562_v63  ;;  %v9606_v25 = vadd.f32 %v16931_v11, %v9567_v26  ;;  %v9565_v41 = vadd.f32 %v9501_v24, %v16697_v15  ;;  %v9504_v32 = vadd.f32 %v11987_v39, %v8920_v47  ;;  %v17604_v26 = vld [vmem:[#allocation12_spill] sm:$0xff] }
 0x8bf   : > { %v9883_v0 = vadd.f32 %v9777_v4, %v9603_v57  ;;  %v9401_v6 = vpop.f32.mrf.mxu1  ;;  %v12026_v3 = vpop.f32.mrf.mxu0  ;;  %v9785_v45 = vadd.f32 %v16924_v5, %v9784_v54  ;;  %v17605_v4 = vld [vmem:[#allocation48_spill] sm:$0xff] }
 0x8c0   : > { %v9881_v35 = vadd.f32 %v9769_v49, %v9601_v16  ;;  %v9886_v37 = vadd.f32 %v9790_v61, %v9606_v25  ;;  %v9604_v28 = vadd.f32 %v16931_v11, %v9565_v41  ;;  %v9536_v14 = vmul.f32 %v17601_v52, %v9504_v32  ;;  %v17611_v52 = vld [vmem:[#allocation7_spill] sm:$0xff] }
 0x8c1   : > { %9915 = vst.msk [vmem:[%s16949_s25 + $0x38] sm:$0xff] %vm5316_vm6, %v9883_v0  ;;  %v9502_v15 = vadd.f32 %v9401_v6, %v8912_v43  ;;  %v11990_v38 = vpop.f32.mrf.mxu1  ;;  %v9797_v13 = vpop.f32.mrf.mxu0  ;;  %v9806_v53 = vadd.f32 %v12026_v3, %v16924_v5  ;;  %v8941_v61 = vadd.f32 %v17604_v26, %v16861_v20  ;;  %v17607_v43 = vld [vmem:[#allocation52_spill] sm:$0xff]  ;;  %v17608_v0 = vld [vmem:[#allocation82_spill] sm:$0xff] }
 0x8c2   : > { %9913 = vst.msk [vmem:[%s16949_s25 + $0x28] sm:$0xff] %vm5316_vm6, %v9881_v35  ;;  %9918 = vst.msk [vmem:[%s16949_s25 + $0x50] sm:$0xff] %vm5316_vm6, %v9886_v37  ;;  %v9884_v8 = vadd.f32 %v9782_v17, %v9604_v28  ;;  %v9568_v2 = vadd.f32 %v9536_v14, %v16693_v12  ;;  %v9507_v58 = vadd.f32 %v11990_v38, %v8933_v29  ;;  %v17606_v17 = vld [vmem:[#allocation21_spill] sm:$0xff]  ;;  %v17609_v35 = vld [vmem:[#allocation14_spill] sm:$0xff] }
 0x8c3   : > { %v9534_v31 = vmul.f32 %v17602_v22, %v9502_v15  ;;  %v9414_v34 = vpop.f32.mrf.mxu1  ;;  %v12027_v42 = vpop.f32.mrf.mxu0  ;;  %v9798_v40 = vadd.f32 %v16924_v5, %v9797_v13  ;;  %v17610_v37 = vld [vmem:[#allocation26_spill] sm:$0xff]  ;;  %v17612_v14 = vld [vmem:[#allocation61_spill] sm:$0xff] }
 0x8c4   : > { %9916 = vst.msk [vmem:[%s16949_s25 + $0x40] sm:$0xff] %vm5316_vm6, %v9884_v8  ;;  %v9607_v44 = vadd.f32 %v16931_v11, %v9568_v2  ;;  %v9571_v60 = vadd.f32 %v9507_v58, %v16708_v59  ;;  %v9505_v12 = vadd.f32 %v9414_v34, %v8925_v50  ;;  %v9809_v16 = vadd.f32 %v12027_v42, %v16924_v5  ;;  %v17615_v34 = vld [vmem:[#allocation28_spill] sm:$0xff] }
 0x8c5   : > { %v9566_v62 = vadd.f32 %v9534_v31, %v16700_v9  ;;  %v11991_v48 = vpop.f32.mrf.mxu1  ;;  %v9800_v27 = vpop.f32.mrf.mxu0  ;;  %v8952_v28 = vadd.f32 %v17610_v37, %v17609_v35  ;;  %v8944_v15 = vadd.f32 %v17612_v14, %v17611_v52  ;;  %v17614_v31 = vld [vmem:[#allocation30_spill] sm:$0xff]  ;;  %v17627_v35 = vld [vmem:[#allocation69_spill] sm:$0xff] }
 0x8c6   : > { %v9887_v19 = vadd.f32 %v9793_v18, %v9607_v44  ;;  %v9610_v23 = vadd.f32 %v16931_v11, %v9571_v60  ;;  %v9569_v30 = vadd.f32 %v9505_v12, %v16715_v36  ;;  %v9508_v59 = vadd.f32 %v11991_v48, %v8936_v7  ;;  %v17613_v18 = vld [vmem:[#allocation84_spill] sm:$0xff]  ;;  %v17616_v48 = vld [vmem:[#allocation23_spill] sm:$0xff] }
 0x8c7   : > { %v9605_v47 = vadd.f32 %v16931_v11, %v9566_v62  ;;  %v9417_v21 = vpop.f32.mrf.mxu1  ;;  %v12030_v9 = vpop.f32.mrf.mxu0  ;;  %v9801_v38 = vadd.f32 %v16924_v5, %v9800_v27  ;;  %v8965_v42 = vadd.f32 %v17615_v34, %v17614_v31  ;;  %v17631_v31 = vld [vmem:[#allocation22_spill] sm:$0xff]  ;;  %v17632_v34 = vld [vmem:[#allocation17_spill] sm:$0xff] }
 0x8c8   : > { %9919 = vst.msk [vmem:[%s16949_s25 + $0x58] sm:$0xff] %vm5316_vm6, %v9887_v19  ;;  %v9890_v46 = vadd.f32 %v9806_v53, %v9610_v23  ;;  %v9608_v10 = vadd.f32 %v16931_v11, %v9569_v30  ;;  %v9540_v63 = vmul.f32 %v17603_v1, %v9508_v59  ;;  %v9506_v36 = vadd.f32 %v9417_v21, %v8928_v51  ;;  %v17617_v30 = vld [vmem:[#allocation64_spill] sm:$0xff]  ;;  %v17618_v59 = vld [vmem:[#allocation63_spill] sm:$0xff] }
 0x8c9   : > { %v9885_v33 = vadd.f32 %v9785_v45, %v9605_v47  ;;  %v11994_v56 = vpop.f32.mrf.mxu1  ;;  %v9813_v24 = vpop.f32.mrf.mxu0  ;;  %v9822_v25 = vadd.f32 %v12030_v9, %v16924_v5  ;;  %v17619_v45 = vld [vmem:[#allocation34_spill] sm:$0xff] }
 0x8ca   : > { %9922 = vst.msk [vmem:[%s16949_s25 + $0x70] sm:$0xff] %vm5316_vm6, %v9890_v46  ;;  %v9888_v57 = vadd.f32 %v9798_v40, %v9608_v10  ;;  %v9572_v49 = vadd.f32 %v9540_v63, %v17605_v4  ;;  %v9538_v39 = vmul.f32 %v17606_v17, %v9506_v36  ;;  %v9511_v54 = vadd.f32 %v11994_v56, %v8949_v55  ;;  %v17620_v46 = vld [vmem:[#allocation67_spill] sm:$0xff]  ;;  %v17621_v10 = vld [vmem:[#allocation65_spill] sm:$0xff] }
 0x8cb   : > { %9917 = vst.msk [vmem:[%s16949_s25 + $0x48] sm:$0xff] %vm5316_vm6, %v9885_v33  ;;  %v9430_v41 = vpop.f32.mrf.mxu1  ;;  %v12031_v32 = vpop.f32.mrf.mxu0  ;;  %v9814_v13 = vadd.f32 %v16924_v5, %v9813_v24  ;;  %v8957_v55 = vadd.f32 %v17618_v59, %v17617_v30  ;;  %v8968_v1 = vadd.f32 %v17621_v10, %v17620_v46  ;;  %v17622_v63 = vld [vmem:[#allocation55_spill] sm:$0xff]  ;;  %v17623_v33 = vld [vmem:[#allocation85_spill] sm:$0xff] }
 0x8cc   : > { %9920 = vst.msk [vmem:[%s16949_s25 + $0x60] sm:$0xff] %vm5316_vm6, %v9888_v57  ;;  %v9611_v20 = vadd.f32 %v16931_v11, %v9572_v49  ;;  %v9570_v29 = vadd.f32 %v9538_v39, %v17607_v43  ;;  %v9575_v6 = vadd.f32 %v9511_v54, %v17608_v0  ;;  %v9509_v3 = vadd.f32 %v9430_v41, %v8941_v61  ;;  %v17624_v24 = vld [vmem:[#allocation83_spill] sm:$0xff]  ;;  %v17639_v46 = vld [vmem:[#allocation33_spill] sm:$0xff] }
 0x8cd   : > { %v11995_v50 = vpop.f32.mrf.mxu1  ;;  %v9816_v8 = vpop.f32.mrf.mxu0  ;;  %v9825_v39 = vadd.f32 %v12031_v32, %v16924_v5  ;;  %v17628_v32 = vld [vmem:[#allocation76_spill] sm:$0xff] }
 0x8ce   : > { %v9891_v2 = vadd.f32 %v9809_v16, %v9611_v20  ;;  %v9609_v58 = vadd.f32 %v16931_v11, %v9570_v29  ;;  %v9614_v7 = vadd.f32 %v16931_v11, %v9575_v6  ;;  %v9573_v22 = vadd.f32 %v9509_v3, %v17613_v18  ;;  %v17625_v29 = vld [vmem:[#allocation86_spill] sm:$0xff]  ;;  %v17626_v3 = vld [vmem:[#allocation72_spill] sm:$0xff] }
 0x8cf   : > { %v9512_v44 = vadd.f32 %v11995_v50, %v8952_v28  ;;  %v9433_v60 = vpop.f32.mrf.mxu1  ;;  %v12034_v53 = vpop.f32.mrf.mxu0  ;;  %v9817_v54 = vadd.f32 %v16924_v5, %v9816_v8  ;;  %v8960_v37 = vadd.f32 %v17627_v35, %v17626_v3  ;;  %v17629_v28 = vld [vmem:[#allocation74_spill] sm:$0xff] }
 0x8d0   : > { %9923 = vst.msk [vmem:[%s16949_s25 + $0x78] sm:$0xff] %vm5316_vm6, %v9891_v2  ;;  %v9889_v12 = vadd.f32 %v9801_v38, %v9609_v58  ;;  %v9894_v51 = vadd.f32 %v9822_v25, %v9614_v7  ;;  %v9612_v62 = vadd.f32 %v16931_v11, %v9573_v22  ;;  %v9510_v40 = vadd.f32 %v9433_v60, %v8944_v15  ;;  %v17630_v2 = vld [vmem:[#allocation25_spill] sm:$0xff]  ;;  %v17645_v35 = vld [vmem:[#allocation62_spill] sm:$0xff] }
 0x8d1   : > { %v9544_v27 = vmul.f32 %v17616_v48, %v9512_v44  ;;  %v11998_v19 = vpop.f32.mrf.mxu1  ;;  %v9829_v23 = vpop.f32.mrf.mxu0  ;;  %v9838_v4 = vadd.f32 %v12034_v53, %v16924_v5  ;;  %v8981_v52 = vadd.f32 %v17629_v28, %v17628_v32  ;;  %v17633_v60 = vld [vmem:[#allocation53_spill] sm:$0xff] }
 0x8d2   : > { %9921 = vst.msk [vmem:[%s16949_s25 + $0x68] sm:$0xff] %vm5316_vm6, %v9889_v12  ;;  %9926 = vst.msk [vmem:[%s16949_s25 + $0x90] sm:$0xff] %vm5316_vm6, %v9894_v51  ;;  %v9892_v47 = vadd.f32 %v9814_v13, %v9612_v62  ;;  %v9542_v21 = vmul.f32 %v17619_v45, %v9510_v40  ;;  %v9515_v9 = vadd.f32 %v11998_v19, %v8965_v42  ;;  %v17634_v51 = vld [vmem:[#allocation32_spill] sm:$0xff]  ;;  %v17635_v62 = vld [vmem:[#allocation19_spill] sm:$0xff] }
 0x8d3   : > { %v9576_v36 = vadd.f32 %v9544_v27, %v17622_v63  ;;  %v9446_v26 = vpop.f32.mrf.mxu1  ;;  %v12035_v61 = vpop.f32.mrf.mxu0  ;;  %v9830_v16 = vadd.f32 %v16924_v5, %v9829_v23  ;;  %v8973_v42 = vadd.f32 %v17632_v34, %v17631_v31  ;;  %v8984_v40 = vadd.f32 %v17635_v62, %v17634_v51  ;;  %v17636_v27 = vld [vmem:[#allocation31_spill] sm:$0xff]  ;;  %v17650_v34 = vld [vmem:[#allocation88_spill] sm:$0xff]  ;;  %v17653_v51 = vld [vmem:[#allocation66_spill] sm:$0xff] }
 0x8d4   : > { %9924 = vst.msk [vmem:[%s16949_s25 + $0x80] sm:$0xff] %vm5316_vm6, %v9892_v47  ;;  %v9574_v56 = vadd.f32 %v9542_v21, %v17623_v33  ;;  %v9579_v57 = vadd.f32 %v9515_v9, %v17624_v24  ;;  %v9513_v49 = vadd.f32 %v9446_v26, %v8957_v55  ;;  %v9841_v48 = vadd.f32 %v12035_v61, %v16924_v5  ;;  %v17637_v55 = vld [vmem:[#allocation57_spill] sm:$0xff]  ;;  %v17638_v9 = vld [vmem:[#allocation35_spill] sm:$0xff] }
 0x8d5   : > { %v9615_v17 = vadd.f32 %v16931_v11, %v9576_v36  ;;  %v11999_v25 = vpop.f32.mrf.mxu1  ;;  %v9832_v41 = vpop.f32.mrf.mxu0  ;;  %v8976_v10 = vadd.f32 %v17639_v46, %v17638_v9  ;;  %v17641_v24 = vld [vmem:[#allocation89_spill] sm:$0xff]  ;;  %v17654_v62 = vld [vmem:[#allocation39_spill] sm:$0xff] }
 0x8d6   : > { %v9613_v20 = vadd.f32 %v16931_v11, %v9574_v56  ;;  %v9618_v43 = vadd.f32 %v16931_v11, %v9579_v57  ;;  %v9577_v0 = vadd.f32 %v9513_v49, %v17625_v29  ;;  %v9516_v6 = vadd.f32 %v11999_v25, %v8968_v1  ;;  %v17640_v1 = vld [vmem:[#allocation87_spill] sm:$0xff]  ;;  %v17642_v49 = vld [vmem:[#allocation6_spill] sm:$0xff] }
 0x8d7   : > { %v9895_v14 = vadd.f32 %v9825_v39, %v9615_v17  ;;  %v9449_v15 = vpop.f32.mrf.mxu1  ;;  %v12038_v38 = vpop.f32.mrf.mxu0  ;;  %v17643_v17 = vld [vmem:[#allocation36_spill] sm:$0xff] }
 0x8d8   : > { %v9893_v13 = vadd.f32 %v9817_v54, %v9613_v20  ;;  %v9898_v50 = vadd.f32 %v9838_v4, %v9618_v43  ;;  %v9616_v8 = vadd.f32 %v16931_v11, %v9577_v0  ;;  %v9548_v58 = vmul.f32 %v17630_v2, %v9516_v6  ;;  %v17644_v0 = vld [vmem:[#allocation18_spill] sm:$0xff] }
 0x8d9   : > { %9927 = vst.msk [vmem:[%s16949_s25 + $0x98] sm:$0xff] %vm5316_vm6, %v9895_v14  ;;  %v9514_v7 = vadd.f32 %v9449_v15, %v8960_v37  ;;  %v12002_v18 = vpop.f32.mrf.mxu1  ;;  %v9845_v22 = vpop.f32.mrf.mxu0  ;;  %v9854_v45 = vadd.f32 %v12038_v38, %v16924_v5  ;;  %v8997_v39 = vadd.f32 %v17643_v17, %v17642_v49  ;;  %v17646_v37 = vld [vmem:[#allocation37_spill] sm:$0xff]  ;;  %v17647_v14 = vld [vmem:[#allocation60_spill] sm:$0xff]  ;;  %v17659_v49 = vld [vmem:[#allocation58_spill] sm:$0xff] }
 0x8da   : > { %9925 = vst.msk [vmem:[%s16949_s25 + $0x88] sm:$0xff] %vm5316_vm6, %v9893_v13  ;;  %9930 = vst.msk [vmem:[%s16949_s25 + $0xb0] sm:$0xff] %vm5316_vm6, %v9898_v50  ;;  %v9896_v44 = vadd.f32 %v9830_v16, %v9616_v8  ;;  %v9580_v53 = vadd.f32 %v9548_v58, %v17633_v60  ;;  %v9519_v12 = vadd.f32 %v12002_v18, %v8981_v52  ;;  %v17648_v38 = vld [vmem:[#allocation20_spill] sm:$0xff] }
 0x8db   : > { %v9546_v19 = vmul.f32 %v17636_v27, %v9514_v7  ;;  %v9462_v23 = vpop.f32.mrf.mxu1  ;;  %v12039_v30 = vpop.f32.mrf.mxu0  ;;  %v9846_v36 = vadd.f32 %v16924_v5, %v9845_v22  ;;  %v9833_v16 = vadd.f32 %v16924_v5, %v9832_v41  ;;  %v8989_v32 = vadd.f32 %v17646_v37, %v17645_v35  ;;  %v17649_v22 = vld [vmem:[#allocation90_spill] sm:$0xff]  ;;  %v17651_v60 = vld [vmem:[#allocation24_spill] sm:$0xff] }
 0x8dc   : > { %9928 = vst.msk [vmem:[%s16949_s25 + $0xa0] sm:$0xff] %vm5316_vm6, %v9896_v44  ;;  %v9619_v59 = vadd.f32 %v16931_v11, %v9580_v53  ;;  %v9583_v47 = vadd.f32 %v9519_v12, %v17637_v55  ;;  %v9517_v21 = vadd.f32 %v9462_v23, %v8973_v42  ;;  %v9857_v8 = vadd.f32 %v12039_v30, %v16924_v5  ;;  %v17652_v53 = vld [vmem:[#allocation38_spill] sm:$0xff]  ;;  %v17655_v55 = vld [vmem:[#allocation27_spill] sm:$0xff] }
 0x8dd   : > { %v9578_v63 = vadd.f32 %v9546_v19, %v17640_v1  ;;  %v12003_v26 = vpop.f32.mrf.mxu1  ;;  %v9848_v61 = vpop.f32.mrf.mxu0  ;;  %v9000_v12 = vadd.f32 %v17652_v53, %v17651_v60 }
 0x8de   : > { %v9899_v33 = vadd.f32 %v9841_v48, %v9619_v59  ;;  %v9622_v56 = vadd.f32 %v16931_v11, %v9583_v47  ;;  %v9581_v57 = vadd.f32 %v9517_v21, %v17641_v24  ;;  %v9520_v4 = vadd.f32 %v12003_v26, %v8984_v40  ;;  %v17658_v24 = vld [vmem:[#allocation29_spill] sm:$0xff] }
 0x8df   : > { %v9617_v54 = vadd.f32 %v16931_v11, %v9578_v63  ;;  %v9465_v25 = vpop.f32.mrf.mxu1  ;;  %v12042_v20 = vpop.f32.mrf.mxu0  ;;  %v8992_v40 = vadd.f32 %v17654_v62, %v17653_v51  ;;  %v9849_v48 = vadd.f32 %v16924_v5, %v9848_v61 }
 0x8e0   : > { %9931 = vst.msk [vmem:[%s16949_s25 + $0xb8] sm:$0xff] %vm5316_vm6, %v9899_v33  ;;  %v9902_v43 = vadd.f32 %v9854_v45, %v9622_v56  ;;  %v9620_v29 = vadd.f32 %v16931_v11, %v9581_v57  ;;  %v9552_v6 = vmul.f32 %v17644_v0, %v9520_v4  ;;  %v9518_v3 = vadd.f32 %v9465_v25, %v8976_v10  ;;  %v17657_v33 = vld [vmem:[#allocation15_spill] sm:$0xff] }
 0x8e1   : > { %v9897_v28 = vadd.f32 %v9833_v16, %v9617_v54  ;;  %v12006_v52 = vpop.f32.mrf.mxu1  ;;  %v9870_v2 = vadd.f32 %v12042_v20, %v16924_v5  ;;  %v9861_v7 = vpop.f32.mrf.mxu0 }
 0x8e2   : > { %9934 = vst.msk [vmem:[%s16949_s25 + $0xd0] sm:$0xff] %vm5316_vm6, %v9902_v43  ;;  %v9900_v41 = vadd.f32 %v9846_v36, %v9620_v29  ;;  %v9584_v15 = vadd.f32 %v9552_v6, %v17647_v14  ;;  %v9550_v13 = vmul.f32 %v17648_v38, %v9518_v3  ;;  %v9523_v50 = vadd.f32 %v12006_v52, %v8997_v39  ;;  %v17656_v36 = vld [vmem:[#allocation13_spill] sm:$0xff] }
 0x8e3   : > { %9929 = vst.msk [vmem:[%s16949_s25 + $0xa8] sm:$0xff] %vm5316_vm6, %v9897_v28  ;;  %v9478_v58 = vpop.f32.mrf.mxu1  ;;  %v9862_v27 = vadd.f32 %v16924_v5, %v9861_v7  ;;  %v12043_v21 = vpop.f32.mrf.mxu0 }
 0x8e4   : > { %9932 = vst.msk [vmem:[%s16949_s25 + $0xc0] sm:$0xff] %vm5316_vm6, %v9900_v41  ;;  %v9623_v18 = vadd.f32 %v16931_v11, %v9584_v15  ;;  %v9582_v31 = vadd.f32 %v9550_v13, %v17649_v22  ;;  %v9587_v42 = vadd.f32 %v9523_v50, %v17650_v34  ;;  %v9521_v44 = vadd.f32 %v9478_v58, %v8989_v32 }
 0x8e5   : > { %v12007_v19 = vpop.f32.mrf.mxu1  ;;  %v9864_v4 = vpop.f32.mrf.mxu0  ;;  %v9873_v54 = vadd.f32 %v12043_v21, %v16924_v5 }
 0x8e6   : > { %v9903_v23 = vadd.f32 %v9857_v8, %v9623_v18  ;;  %v9621_v30 = vadd.f32 %v16931_v11, %v9582_v31  ;;  %v9626_v59 = vadd.f32 %v16931_v11, %v9587_v42  ;;  %v9585_v47 = vadd.f32 %v9521_v44, %v17655_v55 }
 0x8e7   : > { %v9524_v45 = vadd.f32 %v12007_v19, %v9000_v12  ;;  %v9481_v9 = vpop.f32.mrf.mxu1  ;;  %v9865_v25 = vadd.f32 %v16924_v5, %v9864_v4 }
 0x8e8   : > { %9935 = vst.msk [vmem:[%s16949_s25 + $0xd8] sm:$0xff] %vm5316_vm6, %v9903_v23  ;;  %v9901_v46 = vadd.f32 %v9849_v48, %v9621_v30  ;;  %v9906_v10 = vadd.f32 %v9870_v2, %v9626_v59  ;;  %v9624_v1 = vadd.f32 %v16931_v11, %v9585_v47  ;;  %v9522_v63 = vadd.f32 %v9481_v9, %v8992_v40 }
 0x8e9   : > { %v9556_v26 = vmul.f32 %v17656_v36, %v9524_v45 }
 0x8ea   : > { %9933 = vst.msk [vmem:[%s16949_s25 + $0xc8] sm:$0xff] %vm5316_vm6, %v9901_v46  ;;  %9938 = vst.msk [vmem:[%s16949_s25 + $0xf0] sm:$0xff] %vm5316_vm6, %v9906_v10  ;;  %v9904_v61 = vadd.f32 %v9862_v27, %v9624_v1  ;;  %v9554_v56 = vmul.f32 %v17657_v33, %v9522_v63 }
 0x8eb   : > { %v9588_v57 = vadd.f32 %v9556_v26, %v17658_v24 }
 0x8ec   : > { %9936 = vst.msk [vmem:[%s16949_s25 + $0xe0] sm:$0xff] %vm5316_vm6, %v9904_v61  ;;  %v9586_v17 = vadd.f32 %v9554_v56, %v17659_v49 }
 0x8ed   : > { %v9627_v39 = vadd.f32 %v16931_v11, %v9588_v57 }
 0x8ee   : > { %v9625_v16 = vadd.f32 %v16931_v11, %v9586_v17 }
 0x8ef   : > { %v9907_v20 = vadd.f32 %v9873_v54, %v9627_v39 }
 0x8f0   : > { %v9905_v43 = vadd.f32 %v9865_v25, %v9625_v16 }
 0x8f1   : > { %9939 = vst.msk [vmem:[%s16949_s25 + $0xf8] sm:$0xff] %vm5316_vm6, %v9907_v20 }
 0x8f2   : > { %9937 = vst.msk [vmem:[%s16949_s25 + $0xe8] sm:$0xff] %vm5316_vm6, %v9905_v43 }
 0x8f3 PF: > { %s26_s21 = sadd.s32 1, %s12622_s21  }
 0x8f4   : > { %p23_p4 = scmp.ge.s32.totalorder %s26_s21, 4  }
 0x8f6   :  { %25 = sbr.rel (!%p23_p4) target bundleno = 2 (0x2), region = 133 }

</bundles_post_ra>
